<compile_context>
chip_gen: v7x
topology: tpu7x:2x2x1
jax: 0.10.0
libtpu: 0.0.40
codegen_flags: <defaults>
</compile_context>

<pallas_src>
import math

import jax
import jax.numpy as jnp
from jax.experimental import pallas as pl
from jax.experimental.pallas import tpu as pltpu

INPUT_DIM = 808
HIDDEN_DIM = 808
OUTPUT_DIM = 1

LANE = 128
SUBLANE = 8
D_PAD = ((max(INPUT_DIM, HIDDEN_DIM) + LANE - 1) // LANE) * LANE  # 896


def _round_up(x, m):
    return ((x + m - 1) // m) * m


def _mlp_kernel(x_ref,
                w1_ref, b1_ref,
                w2_ref, b2_ref,
                w3_ref, b3_ref,
                w4_ref, b4_ref,
                o_ref):
    # Entire hot path stays in VMEM; padded fp32 weights are ~9.2 MiB total.
    x = x_ref[...]

    h = jnp.dot(x, w1_ref[...], preferred_element_type=jnp.float32) + b1_ref[...]
    h = jnp.maximum(h, 0.0)                                   # ReLU

    h = jnp.dot(h, w2_ref[...], preferred_element_type=jnp.float32) + b2_ref[...]
    h = jnp.maximum(h, 0.0)                                   # ReLU

    h = jnp.dot(h, w3_ref[...], preferred_element_type=jnp.float32) + b3_ref[...]
    h = jnp.maximum(h, 0.0)                                   # ReLU

    # Final (D_PAD -> 1) layer on VPU + XLU (lane reduction) instead of an
    # almost-empty MXU pass.  Padded lanes hold zeros, so they don't contribute.
    z = jnp.sum(h * w4_ref[...], axis=-1, keepdims=True) + b4_ref[...]
    o_ref[...] = jax.nn.sigmoid(z)                            # Sigmoid


def _const_spec(shape):
    """Full-array block, revisited every grid step; single-buffered."""
    index_map = lambda i: (0,) * len(shape)
    if hasattr(pl, "Buffered"):
        try:
            return pl.BlockSpec(shape, index_map, pipeline_mode=pl.Buffered(1))
        except TypeError:
            # Older JAX without pipeline_mode: fall back to default buffering.
            pass
    return pl.BlockSpec(shape, index_map)


def _pad_params(params):
    """Zero-pad weights/biases from 808 to D_PAD; flatten the last layer."""
    (w1, b1), (w2, b2), (w3, b3), (w4, b4) = params

    def pad_w(w):
        return jnp.pad(w, ((0, D_PAD - w.shape[0]), (0, D_PAD - w.shape[1])))

    def pad_b(b):
        return jnp.pad(b, ((0, 0), (0, D_PAD - b.shape[1])))

    w1p, w2p, w3p = pad_w(w1), pad_w(w2), pad_w(w3)
    b1p, b2p, b3p = pad_b(b1), pad_b(b2), pad_b(b3)
    # Last layer stored as a (1, D_PAD) row vector; reduced on the VPU/XLU.
    w4p = jnp.pad(w4.reshape(1, -1), ((0, 0), (0, D_PAD - w4.shape[0])))
    b4p = b4.reshape(1, 1)
    return (w1p, b1p, w2p, b2p, w3p, b3p, w4p, b4p)


def net_forward(x, params, *, batch_tile=256):
    """Run the fused MLP kernel. x: (B, 808) float32 -> (B, 1) float32."""
    B = x.shape[0]
    # Batch tile: multiple of 8 sublanes; 256 by default (v6e/v7x MXU height).
    bm = min(_round_up(batch_tile, SUBLANE), _round_up(B, SUBLANE))
    B_pad = _round_up(B, bm)

    xp = jnp.pad(x.astype(jnp.float32),
                 ((0, B_pad - B), (0, D_PAD - x.shape[1])))
    w1p, b1p, w2p, b2p, w3p, b3p, w4p, b4p = _pad_params(params)

    grid_spec = pltpu.PrefetchScalarGridSpec(
        num_scalar_prefetch=0,
        grid=(B_pad // bm,),
        in_specs=[
            pl.BlockSpec((bm, D_PAD), lambda i: (i, 0)),       # x tile (pipelined)
            _const_spec((D_PAD, D_PAD)), _const_spec((1, D_PAD)),  # w1, b1
            _const_spec((D_PAD, D_PAD)), _const_spec((1, D_PAD)),  # w2, b2
            _const_spec((D_PAD, D_PAD)), _const_spec((1, D_PAD)),  # w3, b3
            _const_spec((1, D_PAD)), _const_spec((1, 1)),          # w4 row, b4
        ],
        out_specs=pl.BlockSpec((bm, OUTPUT_DIM), lambda i: (i, 0)),
    )

    out = pl.pallas_call(
        _mlp_kernel,
        out_shape=jax.ShapeDtypeStruct((B_pad, OUTPUT_DIM), jnp.float32),
        grid_spec=grid_spec,
        compiler_params=pltpu.CompilerParams(
            dimension_semantics=("parallel",),     # megacore / 2-TC sharding
            vmem_limit_bytes=48 * 1024 * 1024),    # explicit, fits v5e..v7x
    )(xp, w1p, b1p, w2p, b2p, w3p, b3p, w4p, b4p)

    return out[:B]


def init_params(key):
    """Deterministic init mirroring the torch module's __init__.

    linear1/linear2 weights: xavier_uniform_; linear3/linear4 weights and all
    biases: PyTorch's default Linear init (bound = 1/sqrt(in_features)).
    Weights are stored transposed, as (in, out).
    """
    keys = jax.random.split(key, 8)

    def xavier_uniform(k, fan_in, fan_out):
        bound = math.sqrt(6.0 / (fan_in + fan_out))
        return jax.random.uniform(k, (fan_in, fan_out), jnp.float32, -bound, bound)

    def default_weight(k, fan_in, fan_out):
        # torch default: kaiming_uniform_(a=sqrt(5)) -> bound = 1/sqrt(fan_in)
        bound = 1.0 / math.sqrt(fan_in)
        return jax.random.uniform(k, (fan_in, fan_out), jnp.float32, -bound, bound)

    def default_bias(k, fan_in, out_dim):
        # torch default bias bound uses the layer's fan_in (in_features).
        bound = 1.0 / math.sqrt(fan_in)
        return jax.random.uniform(k, (1, out_dim), jnp.float32, -bound, bound)

    w1 = xavier_uniform(keys[0], INPUT_DIM, HIDDEN_DIM)
    b1 = default_bias(keys[1], INPUT_DIM, HIDDEN_DIM)
    w2 = xavier_uniform(keys[2], HIDDEN_DIM, HIDDEN_DIM)
    b2 = default_bias(keys[3], HIDDEN_DIM, HIDDEN_DIM)
    w3 = default_weight(keys[4], HIDDEN_DIM, HIDDEN_DIM)
    b3 = default_bias(keys[5], HIDDEN_DIM, HIDDEN_DIM)
    w4 = default_weight(keys[6], HIDDEN_DIM, OUTPUT_DIM)
    b4 = default_bias(keys[7], HIDDEN_DIM, OUTPUT_DIM)
    return ((w1, b1), (w2, b2), (w3, b3), (w4, b4))


def _reference_forward(x, params):
    (w1, b1), (w2, b2), (w3, b3), (w4, b4) = params
    h = jnp.maximum(x @ w1 + b1, 0.0)
    h = jnp.maximum(h @ w2 + b2, 0.0)
    h = jnp.maximum(h @ w3 + b3, 0.0)
    return jax.nn.sigmoid(h @ w4 + b4)


if __name__ == "__main__":
    key = jax.random.PRNGKey(0)
    pkey, xkey = jax.random.split(key)
    params = init_params(pkey)

    batch = 8
    x = jax.random.normal(xkey, (batch, INPUT_DIM), jnp.float32)

    out = net_forward(x, params)
    out = jax.block_until_ready(out)

    ref = _reference_forward(x, params)
    assert out.shape == (batch, OUTPUT_DIM)
    assert jnp.allclose(out, ref, atol=1e-4, rtol=1e-4)

    print("KERNEL_OK")
</pallas_src>

<mosaic_0001>
module attributes {stable_mosaic.version = 11 : i64} {
  func.func @_mlp_kernel(%arg0: i32, %arg1: memref<8x896xf32, #tpu.memory_space<vmem>>, %arg2: memref<896x896xf32, #tpu.memory_space<vmem>>, %arg3: memref<1x896xf32, #tpu.memory_space<vmem>>, %arg4: memref<896x896xf32, #tpu.memory_space<vmem>>, %arg5: memref<1x896xf32, #tpu.memory_space<vmem>>, %arg6: memref<896x896xf32, #tpu.memory_space<vmem>>, %arg7: memref<1x896xf32, #tpu.memory_space<vmem>>, %arg8: memref<1x896xf32, #tpu.memory_space<vmem>>, %arg9: memref<1x1xf32, #tpu.memory_space<vmem>>, %arg10: memref<8x1xf32, #tpu.memory_space<vmem>>) attributes {dimension_semantics = [#tpu.dimension_semantics<parallel>], iteration_bounds = array<i64: 1>, scalar_prefetch = 0 : i64, scratch_operands = 0 : i64, tpu.core_type = #tpu.core_type<tc>, window_params = [{transform_indices = @transform_0, window_bounds = array<i64: 8, 896>}, {pipeline_mode = #tpu.pipeline_mode<synchronous>, transform_indices = @transform_1, window_bounds = array<i64: 896, 896>}, {pipeline_mode = #tpu.pipeline_mode<synchronous>, transform_indices = @transform_2, window_bounds = array<i64: 1, 896>}, {pipeline_mode = #tpu.pipeline_mode<synchronous>, transform_indices = @transform_3, window_bounds = array<i64: 896, 896>}, {pipeline_mode = #tpu.pipeline_mode<synchronous>, transform_indices = @transform_4, window_bounds = array<i64: 1, 896>}, {pipeline_mode = #tpu.pipeline_mode<synchronous>, transform_indices = @transform_5, window_bounds = array<i64: 896, 896>}, {pipeline_mode = #tpu.pipeline_mode<synchronous>, transform_indices = @transform_6, window_bounds = array<i64: 1, 896>}, {pipeline_mode = #tpu.pipeline_mode<synchronous>, transform_indices = @transform_7, window_bounds = array<i64: 1, 896>}, {pipeline_mode = #tpu.pipeline_mode<synchronous>, transform_indices = @transform_8, window_bounds = array<i64: 1, 1>}, {transform_indices = @transform_9, window_bounds = array<i64: 8, 1>}]} {
    %c0 = arith.constant 0 : index
    %c0_0 = arith.constant 0 : index
    %0 = vector.load %arg1[%c0, %c0_0] : memref<8x896xf32, #tpu.memory_space<vmem>>, vector<8x896xf32>
    %c0_1 = arith.constant 0 : index
    %c0_2 = arith.constant 0 : index
    %1 = vector.load %arg2[%c0_1, %c0_2] : memref<896x896xf32, #tpu.memory_space<vmem>>, vector<896x896xf32>
    %cst = arith.constant dense<0.000000e+00> : vector<8x896xf32>
    %2 = tpu.matmul %0, %1, %cst {dimension_numbers = #tpu.dot_dimension_numbers<[1], [0], [0], [1], [0, 0, 1, 1], [], []>} : vector<8x896xf32>, vector<896x896xf32>, vector<8x896xf32> -> vector<8x896xf32>
    %c0_3 = arith.constant 0 : index
    %c0_4 = arith.constant 0 : index
    %3 = vector.load %arg3[%c0_3, %c0_4] : memref<1x896xf32, #tpu.memory_space<vmem>>, vector<1x896xf32>
    %4 = vector.broadcast %3 : vector<1x896xf32> to vector<8x896xf32>
    %5 = arith.addf %2, %4 : vector<8x896xf32>
    %cst_5 = arith.constant 0.000000e+00 : f32
    %6 = vector.broadcast %cst_5 : f32 to vector<8x896xf32>
    %7 = arith.maximumf %5, %6 : vector<8x896xf32>
    %c0_6 = arith.constant 0 : index
    %c0_7 = arith.constant 0 : index
    %8 = vector.load %arg4[%c0_6, %c0_7] : memref<896x896xf32, #tpu.memory_space<vmem>>, vector<896x896xf32>
    %cst_8 = arith.constant dense<0.000000e+00> : vector<8x896xf32>
    %9 = tpu.matmul %7, %8, %cst_8 {dimension_numbers = #tpu.dot_dimension_numbers<[1], [0], [0], [1], [0, 0, 1, 1], [], []>} : vector<8x896xf32>, vector<896x896xf32>, vector<8x896xf32> -> vector<8x896xf32>
    %c0_9 = arith.constant 0 : index
    %c0_10 = arith.constant 0 : index
    %10 = vector.load %arg5[%c0_9, %c0_10] : memref<1x896xf32, #tpu.memory_space<vmem>>, vector<1x896xf32>
    %11 = vector.broadcast %10 : vector<1x896xf32> to vector<8x896xf32>
    %12 = arith.addf %9, %11 : vector<8x896xf32>
    %cst_11 = arith.constant 0.000000e+00 : f32
    %13 = vector.broadcast %cst_11 : f32 to vector<8x896xf32>
    %14 = arith.maximumf %12, %13 : vector<8x896xf32>
    %c0_12 = arith.constant 0 : index
    %c0_13 = arith.constant 0 : index
    %15 = vector.load %arg6[%c0_12, %c0_13] : memref<896x896xf32, #tpu.memory_space<vmem>>, vector<896x896xf32>
    %cst_14 = arith.constant dense<0.000000e+00> : vector<8x896xf32>
    %16 = tpu.matmul %14, %15, %cst_14 {dimension_numbers = #tpu.dot_dimension_numbers<[1], [0], [0], [1], [0, 0, 1, 1], [], []>} : vector<8x896xf32>, vector<896x896xf32>, vector<8x896xf32> -> vector<8x896xf32>
    %c0_15 = arith.constant 0 : index
    %c0_16 = arith.constant 0 : index
    %17 = vector.load %arg7[%c0_15, %c0_16] : memref<1x896xf32, #tpu.memory_space<vmem>>, vector<1x896xf32>
    %18 = vector.broadcast %17 : vector<1x896xf32> to vector<8x896xf32>
    %19 = arith.addf %16, %18 : vector<8x896xf32>
    %cst_17 = arith.constant 0.000000e+00 : f32
    %20 = vector.broadcast %cst_17 : f32 to vector<8x896xf32>
    %21 = arith.maximumf %19, %20 : vector<8x896xf32>
    %c0_18 = arith.constant 0 : index
    %c0_19 = arith.constant 0 : index
    %22 = vector.load %arg8[%c0_18, %c0_19] : memref<1x896xf32, #tpu.memory_space<vmem>>, vector<1x896xf32>
    %23 = vector.broadcast %22 : vector<1x896xf32> to vector<8x896xf32>
    %24 = arith.mulf %21, %23 : vector<8x896xf32>
    %cst_20 = arith.constant dense<0.000000e+00> : vector<8xf32>
    %25 = vector.multi_reduction <add>, %24, %cst_20 [1] : vector<8x896xf32> to vector<8xf32>
    %26 = vector.shape_cast %25 : vector<8xf32> to vector<8x1xf32>
    %c0_21 = arith.constant 0 : index
    %c0_22 = arith.constant 0 : index
    %27 = vector.load %arg9[%c0_21, %c0_22] : memref<1x1xf32, #tpu.memory_space<vmem>>, vector<1x1xf32>
    %28 = vector.broadcast %27 : vector<1x1xf32> to vector<8x1xf32>
    %29 = arith.addf %26, %28 : vector<8x1xf32>
    %30 = arith.negf %29 : vector<8x1xf32>
    %31 = math.exp %30 : vector<8x1xf32>
    %cst_23 = arith.constant 1.000000e+00 : f32
    %32 = vector.broadcast %cst_23 : f32 to vector<8x1xf32>
    %33 = arith.addf %32, %31 : vector<8x1xf32>
    %34 = arith.divf %32, %33 : vector<8x1xf32>
    %c0_24 = arith.constant 0 : index
    %c0_25 = arith.constant 0 : index
    %35 = vector.load %arg10[%c0_24, %c0_25] : memref<8x1xf32, #tpu.memory_space<vmem>>, vector<8x1xf32>
    tpu.vector_store %arg10[%c0_24, %c0_25], %34 {strides = array<i32>} : memref<8x1xf32, #tpu.memory_space<vmem>>, vector<8x1xf32>,
    return
  }
  func.func @transform_0(%arg0: i32) -> (i32, i32) {
    %c0_i32 = arith.constant 0 : i32
    %c0_i32_0 = arith.constant 0 : i32
    return %arg0, %c0_i32 : i32, i32
  }
  func.func @transform_1(%arg0: i32) -> (i32, i32) {
    %c0_i32 = arith.constant 0 : i32
    %c0_i32_0 = arith.constant 0 : i32
    %c0_i32_1 = arith.constant 0 : i32
    return %c0_i32, %c0_i32_0 : i32, i32
  }
  func.func @transform_2(%arg0: i32) -> (i32, i32) {
    %c0_i32 = arith.constant 0 : i32
    %c0_i32_0 = arith.constant 0 : i32
    %c0_i32_1 = arith.constant 0 : i32
    return %c0_i32, %c0_i32_0 : i32, i32
  }
  func.func @transform_3(%arg0: i32) -> (i32, i32) {
    %c0_i32 = arith.constant 0 : i32
    %c0_i32_0 = arith.constant 0 : i32
    %c0_i32_1 = arith.constant 0 : i32
    return %c0_i32, %c0_i32_0 : i32, i32
  }
  func.func @transform_4(%arg0: i32) -> (i32, i32) {
    %c0_i32 = arith.constant 0 : i32
    %c0_i32_0 = arith.constant 0 : i32
    %c0_i32_1 = arith.constant 0 : i32
    return %c0_i32, %c0_i32_0 : i32, i32
  }
  func.func @transform_5(%arg0: i32) -> (i32, i32) {
    %c0_i32 = arith.constant 0 : i32
    %c0_i32_0 = arith.constant 0 : i32
    %c0_i32_1 = arith.constant 0 : i32
    return %c0_i32, %c0_i32_0 : i32, i32
  }
  func.func @transform_6(%arg0: i32) -> (i32, i32) {
    %c0_i32 = arith.constant 0 : i32
    %c0_i32_0 = arith.constant 0 : i32
    %c0_i32_1 = arith.constant 0 : i32
    return %c0_i32, %c0_i32_0 : i32, i32
  }
  func.func @transform_7(%arg0: i32) -> (i32, i32) {
    %c0_i32 = arith.constant 0 : i32
    %c0_i32_0 = arith.constant 0 : i32
    %c0_i32_1 = arith.constant 0 : i32
    return %c0_i32, %c0_i32_0 : i32, i32
  }
  func.func @transform_8(%arg0: i32) -> (i32, i32) {
    %c0_i32 = arith.constant 0 : i32
    %c0_i32_0 = arith.constant 0 : i32
    %c0_i32_1 = arith.constant 0 : i32
    return %c0_i32, %c0_i32_0 : i32, i32
  }
  func.func @transform_9(%arg0: i32) -> (i32, i32) {
    %c0_i32 = arith.constant 0 : i32
    %c0_i32_0 = arith.constant 0 : i32
    return %arg0, %c0_i32 : i32, i32
  }
}

</mosaic_0001>

<bundles_post_ra>
// kernel: tpu_custom_call.1
= control target key start
LH: loop header
LB: loop body
LE: loop exit
PB: predicated region body
PF: predicated region fallthrough
CT: control target
= control target key end

     0   :  { %s9687_s0 = inlined_call_operand.hbm [shape: f32[8,896], index: 0, kind: input, shape index: {}]   ;;  %s9688_s1 = inlined_call_operand.hbm [shape: f32[896,896], index: 1, kind: input, shape index: {}]   ;;  %s9689_s2 = inlined_call_operand.hbm [shape: f32[1,896], index: 2, kind: input, shape index: {}]   ;;  %s9690_s3 = inlined_call_operand.hbm [shape: f32[896,896], index: 3, kind: input, shape index: {}]   ;;  %s9691_s4 = inlined_call_operand.hbm [shape: f32[1,896], index: 4, kind: input, shape index: {}]   ;;  %s9692_s5 = inlined_call_operand.hbm [shape: f32[896,896], index: 5, kind: input, shape index: {}]   ;;  %s9693_s6 = inlined_call_operand.hbm [shape: f32[1,896], index: 6, kind: input, shape index: {}]   ;;  %s9694_s7 = inlined_call_operand.hbm [shape: f32[1,896], index: 7, kind: input, shape index: {}]   ;;  %s9695_s8 = inlined_call_operand.<no memory space> [shape: f32[1,1], index: 8, kind: input, shape index: {}]   ;;  %s9696_s9 = inlined_call_operand.vmem [shape: f32[8,1], index: 9, kind: output, shape index: {}]  }
   0x1   :  { %v14_v0 = vstv %s9695_s8 }
   0x2   :  { %15 = vst [vmem:[#allocation2] sm:$0x1] %v14_v0 }
   0x3   :  { %16 = vsyncpa [#allocation4], 0 }
   0x4   :  { %17 = vsyncpa [#allocation6], 0 }
   0x5   :  { %18 = vsyncpa [#allocation9], 0 }
   0x6   :  { %19 = vsyncpa [#allocation12], 0 }
   0x7   :  { %20 = vsyncpa [#allocation15], 0  ;;  %s9234_s11 = smov [#allocation5]   ;;  %s9048_s15 = scalar_lea.hbm %s9688_s1, 100352 }
   0x8   :  { %s36_s12 = sshll.u32 %s9234_s11, 4  ;;  %p9049_p0 = scmp.ne.s32.totalorder %s9688_s1, %s9048_s15  ;;  %s37_s12 = int_to_ptr.vmem [resolvable:$true] %s36_s12 }
   0x9   :  { %p9052_p1 = scmp.lt.u32.totalorder %s9048_s15, %s9688_s1 }
   0xb   :  { %p9054_p2 = pnand %p9052_p1, %p9049_p0 }
   0xd   :  { %9057 = shalt.err (!%p9054_p2)
}
   0xe   :  { %s9058_s8 = scalar_lea.vmem %s37_s12, 100352  ;;  %p9063_p4 = scmp.lt.s32.totalorder %s37_s12, %s37_s12 }
   0xf   :  { %p9059_p3 = scmp.ne.s32.totalorder %s37_s12, %s9058_s8  ;;  %p9064_p5 = scmp.lt.s32.totalorder %s9058_s8, %s9058_s8 }
  0x11   :  { %p9065_p6 = por %p9064_p5, %p9063_p4 }
  0x13   :  { %p9066_p7 = pnand %p9065_p6, %p9059_p3 }
  0x15   :  { %9069 = shalt.err (!%p9066_p7)
}
  0x16   :  { %s9235_s20 = smov 896   ;;  %s9236_s21 = smov 56  }
  0x17   :  { %42 = dma.hbm_to_vmem [thread:$0]  %s9688_s1, 100352, %s37_s12, [#allocation6], %s9235_s20, %s9235_s20, %s9236_s21  }
  0x18   :  { %s9237_s24 = smov [#allocation8]   ;;  %s9238_s26 = smov [#allocation11]  }
  0x19   :  { %s58_s25 = sshll.u32 %s9237_s24, 4  ;;  %s80_s27 = sshll.u32 %s9238_s26, 4  ;;  %s59_s25 = int_to_ptr.vmem [resolvable:$true] %s58_s25  ;;  %s81_s27 = int_to_ptr.vmem [resolvable:$true] %s80_s27 }
  0x1a   :  { %s9070_s30 = scalar_lea.hbm %s9690_s3, 100352 }
  0x1b   :  { %p9071_p8 = scmp.ne.s32.totalorder %s9690_s3, %s9070_s30  ;;  %p9074_p9 = scmp.lt.u32.totalorder %s9070_s30, %s9690_s3 }
  0x1d   :  { %p9076_p10 = pnand %p9074_p9, %p9071_p8 }
  0x1f   :  { %9079 = shalt.err (!%p9076_p10)
}
  0x20   :  { %s9080_s1 = scalar_lea.vmem %s59_s25, 100352  ;;  %p9085_p12 = scmp.lt.s32.totalorder %s59_s25, %s59_s25 }
  0x21   :  { %p9081_p11 = scmp.ne.s32.totalorder %s59_s25, %s9080_s1  ;;  %p9086_p13 = scmp.lt.s32.totalorder %s9080_s1, %s9080_s1 }
  0x23   :  { %p9087_p0 = por %p9086_p13, %p9085_p12 }
  0x25   :  { %p9088_p1 = pnand %p9087_p0, %p9081_p11 }
  0x27   :  { %9091 = shalt.err (!%p9088_p1)
}
  0x28   :  { %64 = dma.hbm_to_vmem [thread:$0]  %s9690_s3, 100352, %s59_s25, [#allocation9], %s9235_s20, %s9235_s20, %s9236_s21  }
  0x29   :  { %s9092_s18 = scalar_lea.hbm %s9692_s5, 100352 }
  0x2a   :  { %p9093_p2 = scmp.ne.s32.totalorder %s9692_s5, %s9092_s18  ;;  %p9096_p3 = scmp.lt.u32.totalorder %s9092_s18, %s9692_s5 }
  0x2c   :  { %p9098_p4 = pnand %p9096_p3, %p9093_p2 }
  0x2e   :  { %9101 = shalt.err (!%p9098_p4)
}
  0x2f   :  { %s9102_s24 = scalar_lea.vmem %s81_s27, 100352  ;;  %p9107_p6 = scmp.lt.s32.totalorder %s81_s27, %s81_s27 }
  0x30   :  { %p9103_p5 = scmp.ne.s32.totalorder %s81_s27, %s9102_s24  ;;  %p9108_p7 = scmp.lt.s32.totalorder %s9102_s24, %s9102_s24 }
  0x32   :  { %p9109_p8 = por %p9108_p7, %p9107_p6 }
  0x34   :  { %p9110_p9 = pnand %p9109_p8, %p9103_p5 }
  0x36   :  { %9113 = shalt.err (!%p9110_p9)
}
  0x37   :  { %86 = dma.hbm_to_vmem [thread:$0]  %s9692_s5, 100352, %s81_s27, [#allocation12], %s9235_s20, %s9235_s20, %s9236_s21  }
  0x38   :  { %s9239_s26 = smov [#allocation3]   ;;  %s9240_s29 = smov [#allocation7]  }
  0x39   :  { %s27_s28 = sshll.u32 %s9239_s26, 4  ;;  %s49_s30 = sshll.u32 %s9240_s29, 4  ;;  %s28_s28 = int_to_ptr.vmem [resolvable:$true] %s27_s28  ;;  %s50_s30 = int_to_ptr.vmem [resolvable:$true] %s49_s30 }
  0x3a   :  { %s9114_s13 = scalar_lea.hbm %s9687_s0, 896 }
  0x3b   :  { %p9115_p10 = scmp.ne.s32.totalorder %s9687_s0, %s9114_s13  ;;  %p9118_p11 = scmp.lt.u32.totalorder %s9114_s13, %s9687_s0 }
  0x3d   :  { %p9120_p12 = pnand %p9118_p11, %p9115_p10 }
  0x3f   :  { %9123 = shalt.err (!%p9120_p12)
}
  0x40   :  { %s9124_s5 = scalar_lea.vmem %s28_s28, 896  ;;  %p9129_p0 = scmp.lt.s32.totalorder %s28_s28, %s28_s28 }
  0x41   :  { %p9125_p13 = scmp.ne.s32.totalorder %s28_s28, %s9124_s5  ;;  %p9130_p1 = scmp.lt.s32.totalorder %s9124_s5, %s9124_s5 }
  0x43   :  { %p9131_p2 = por %p9130_p1, %p9129_p0 }
  0x45   :  { %p9132_p3 = pnand %p9131_p2, %p9125_p13 }
  0x47   :  { %9135 = shalt.err (!%p9132_p3)
}
  0x48   :  { %30 = dma.hbm_to_vmem [thread:$0]  %s9687_s0, 896, %s28_s28, [#allocation4]  }
  0x49   :  { %s9136_s17 = scalar_lea.hbm %s9689_s2, 112 }
  0x4a   :  { %p9137_p4 = scmp.ne.s32.totalorder %s9689_s2, %s9136_s17  ;;  %p9140_p5 = scmp.lt.u32.totalorder %s9136_s17, %s9689_s2 }
  0x4c   :  { %p9142_p6 = pnand %p9140_p5, %p9137_p4 }
  0x4e   :  { %9145 = shalt.err (!%p9142_p6)
}
  0x4f   :  { %s9146_s23 = scalar_lea.vmem %s50_s30, 112  ;;  %s9150_s24 = scalar_lea.vmem %s50_s30, 128 }
  0x50   :  { %p9147_p7 = scmp.ne.s32.totalorder %s50_s30, %s9146_s23  ;;  %p9151_p8 = scmp.lt.s32.totalorder %s50_s30, %s50_s30 }
  0x51   :  { %p9152_p9 = scmp.lt.s32.totalorder %s9150_s24, %s9146_s23 }
  0x53   :  { %p9153_p10 = por %p9152_p9, %p9151_p8 }
  0x55   :  { %p9154_p11 = pnand %p9153_p10, %p9147_p7 }
  0x57   :  { %9157 = shalt.err (!%p9154_p11)
}
  0x58   :  { %52 = dma.hbm_to_vmem [thread:$0]  %s9689_s2, 112, %s50_s30, [#allocation6]  }
  0x59   :  { %s9241_s25 = smov [#allocation10]   ;;  %s9242_s28 = smov [#allocation13]  }
  0x5a   :  { %s71_s26 = sshll.u32 %s9241_s25, 4  ;;  %s93_s29 = sshll.u32 %s9242_s28, 4  ;;  %s72_s26 = int_to_ptr.vmem [resolvable:$true] %s71_s26  ;;  %s94_s29 = int_to_ptr.vmem [resolvable:$true] %s93_s29 }
  0x5b   :  { %s9158_s13 = scalar_lea.hbm %s9691_s4, 112 }
  0x5c   :  { %p9159_p12 = scmp.ne.s32.totalorder %s9691_s4, %s9158_s13  ;;  %p9162_p13 = scmp.lt.u32.totalorder %s9158_s13, %s9691_s4 }
  0x5e   :  { %p9164_p0 = pnand %p9162_p13, %p9159_p12 }
  0x60   :  { %9167 = shalt.err (!%p9164_p0)
}
  0x61   :  { %s9168_s2 = scalar_lea.vmem %s72_s26, 112  ;;  %s9172_s30 = scalar_lea.vmem %s72_s26, 128 }
  0x62   :  { %p9169_p1 = scmp.ne.s32.totalorder %s72_s26, %s9168_s2  ;;  %p9173_p2 = scmp.lt.s32.totalorder %s72_s26, %s72_s26 }
  0x63   :  { %p9174_p3 = scmp.lt.s32.totalorder %s9172_s30, %s9168_s2 }
  0x65   :  { %p9175_p4 = por %p9174_p3, %p9173_p2 }
  0x67   :  { %p9176_p5 = pnand %p9175_p4, %p9169_p1 }
  0x69   :  { %9179 = shalt.err (!%p9176_p5)
}
  0x6a   :  { %74 = dma.hbm_to_vmem [thread:$0]  %s9691_s4, 112, %s72_s26, [#allocation9]  }
  0x6b   :  { %s9180_s16 = scalar_lea.hbm %s9693_s6, 112 }
  0x6c   :  { %p9181_p6 = scmp.ne.s32.totalorder %s9693_s6, %s9180_s16  ;;  %p9184_p7 = scmp.lt.u32.totalorder %s9180_s16, %s9693_s6 }
  0x6e   :  { %p9186_p8 = pnand %p9184_p7, %p9181_p6 }
  0x70   :  { %9189 = shalt.err (!%p9186_p8)
}
  0x71   :  { %s9190_s22 = scalar_lea.vmem %s94_s29, 112  ;;  %s9194_s23 = scalar_lea.vmem %s94_s29, 128 }
  0x72   :  { %p9191_p9 = scmp.ne.s32.totalorder %s94_s29, %s9190_s22  ;;  %p9195_p10 = scmp.lt.s32.totalorder %s94_s29, %s94_s29 }
  0x73   :  { %p9196_p11 = scmp.lt.s32.totalorder %s9194_s23, %s9190_s22 }
  0x75   :  { %p9197_p12 = por %p9196_p11, %p9195_p10 }
  0x77   :  { %p9198_p13 = pnand %p9197_p12, %p9191_p9 }
  0x79   :  { %9201 = shalt.err (!%p9198_p13)
}
  0x7a   :  { %96 = dma.hbm_to_vmem [thread:$0]  %s9693_s6, 112, %s94_s29, [#allocation12]  }
  0x7b   :  { %s9243_s0 = smov [#allocation14]   ;;  %s9202_s28 = scalar_lea.hbm %s9694_s7, 112 }
  0x7c   :  { %s103_s3 = sshll.u32 %s9243_s0, 4  ;;  %p9203_p0 = scmp.ne.s32.totalorder %s9694_s7, %s9202_s28  ;;  %s104_s3 = int_to_ptr.vmem [resolvable:$true] %s103_s3 }
  0x7d   :  { %p9206_p1 = scmp.lt.u32.totalorder %s9202_s28, %s9694_s7 }
  0x7f   :  { %p9208_p2 = pnand %p9206_p1, %p9203_p0 }
  0x81   :  { %9211 = shalt.err (!%p9208_p2)
}
  0x82   :  { %s9212_s1 = scalar_lea.vmem %s104_s3, 112  ;;  %s9216_s6 = scalar_lea.vmem %s104_s3, 128 }
  0x83   :  { %p9213_p3 = scmp.ne.s32.totalorder %s104_s3, %s9212_s1  ;;  %p9217_p4 = scmp.lt.s32.totalorder %s104_s3, %s104_s3 }
  0x84   :  { %p9218_p5 = scmp.lt.s32.totalorder %s9216_s6, %s9212_s1 }
  0x86   :  { %p9219_p6 = por %p9218_p5, %p9217_p4 }
  0x88   :  { %p9220_p7 = pnand %p9219_p6, %p9213_p3 }
  0x8a   :  { %9223 = shalt.err (!%p9220_p7)
}
  0x8b   :  { %106 = dma.hbm_to_vmem [thread:$0]  %s9694_s7, 112, %s104_s3, [#allocation15]  }
  0x8c   :  { %9224 = dma.done.wait [#allocation4], 896  }
  0x8d   :  { %9225 = vsyncadd [#allocation4], 4294966400 }
  0x8e   :  { %9226 = dma.done.wait [#allocation6], 100464  }
  0x8f   :  { %9227 = vsyncadd [#allocation6], 4294866832 }
  0x90   :  { %9228 = dma.done.wait [#allocation9], 100464  }
  0x91   :  { %9229 = vsyncadd [#allocation9], 4294866832 }
  0x92   :  { %9230 = dma.done.wait [#allocation12], 100464  }
  0x93   :  { %9231 = vsyncadd [#allocation12], 4294866832 }
  0x94   :  { %9232 = dma.done.wait [#allocation15], 112  }
  0x95   :  { %9233 = vsyncadd [#allocation15], 4294967184  ;;  %v141_v1 = vld [vmem:[#allocation5 + $0x8] sm:$0xff]  ;;  %v148_v2 = vld [vmem:[#allocation5 + $0x40] sm:$0xff]  ;;  %vm9246_vm0 = vmmov 0   ;;  %vm6086_vm1 = vcmask 7168  }
  0x96   :  { %v365_v3 = vld [vmem:[#allocation5 + $0x708] sm:$0xff]  ;;  %v6570_v4 = vpack.c.bf16 %v148_v2, %v141_v1  ;;  %v372_v5 = vld [vmem:[#allocation5 + $0x740] sm:$0xff]  ;;  %v147_v7 = vld [vmem:[#allocation5 + $0x38] sm:$0xff] }
  0x97   :  { %v140_v6 = vld [vmem:[#allocation5] sm:$0xff]  ;;  %v6634_v8 = vpack.c.bf16 %v372_v5, %v365_v3  ;;  %v371_v11 = vld [vmem:[#allocation5 + $0x738] sm:$0xff]  ;;  %v162_v14 = vld [vmem:[#allocation5 + $0xb0] sm:$0xff] }
  0x98   :  { %v6572_v9 = vpack.c.bf16 %v147_v7, %v140_v6  ;;  %v364_v10 = vld [vmem:[#allocation5 + $0x700] sm:$0xff]  ;;  %v155_v12 = vld [vmem:[#allocation5 + $0x78] sm:$0xff]  ;;  %6571 = vmatprep.subr.bf16.mxu1 %v6570_v4  ;;  %v386_v16 = vld [vmem:[#allocation5 + $0x7b0] sm:$0xff] }
  0x99   :  { %v6636_v13 = vpack.c.bf16 %v371_v11, %v364_v10  ;;  %v379_v15 = vld [vmem:[#allocation5 + $0x778] sm:$0xff]  ;;  %6635 = vmatprep.subr.bf16.mxu0 %v6634_v8  ;;  %v6574_v17 = vpack.c.bf16 %v162_v14, %v155_v12  ;;  %v154_v19 = vld [vmem:[#allocation5 + $0x70] sm:$0xff]  ;;  %v161_v20 = vld [vmem:[#allocation5 + $0xa8] sm:$0xff] }
  0x9a   :  { %6573 = vmatpush1.bf16.msra.mxu1 %v6572_v9  ;;  %v6638_v18 = vpack.c.bf16 %v386_v16, %v379_v15  ;;  %v378_v21 = vld [vmem:[#allocation5 + $0x770] sm:$0xff]  ;;  %v6576_v22 = vpack.c.bf16 %v161_v20, %v154_v19  ;;  %v385_v23 = vld [vmem:[#allocation5 + $0x7a8] sm:$0xff]  ;;  %v176_v25 = vld [vmem:[#allocation5 + $0x120] sm:$0xff] }
  0x9b   :  { %6637 = vmatpush1.bf16.msra.mxu0 %v6636_v13  ;;  %v169_v24 = vld [vmem:[#allocation5 + $0xe8] sm:$0xff]  ;;  %6575 = vmatprep.subr.bf16.mxu1 %v6574_v17  ;;  %v6640_v26 = vpack.c.bf16 %v385_v23, %v378_v21  ;;  %v400_v29 = vld [vmem:[#allocation5 + $0x820] sm:$0xff]  ;;  %v175_v32 = vld [vmem:[#allocation5 + $0x118] sm:$0xff] }
  0x9c   :  { %6639 = vmatprep.subr.bf16.mxu0 %v6638_v18  ;;  %v6578_v27 = vpack.c.bf16 %v176_v25, %v169_v24  ;;  %v393_v28 = vld [vmem:[#allocation5 + $0x7e8] sm:$0xff]  ;;  %v168_v30 = vld [vmem:[#allocation5 + $0xe0] sm:$0xff]  ;;  %v399_v34 = vld [vmem:[#allocation5 + $0x818] sm:$0xff] }
  0x9d   :  { %v6642_v31 = vpack.c.bf16 %v400_v29, %v393_v28  ;;  %v392_v33 = vld [vmem:[#allocation5 + $0x7e0] sm:$0xff]  ;;  %v6580_v35 = vpack.c.bf16 %v175_v32, %v168_v30  ;;  %v183_v36 = vld [vmem:[#allocation5 + $0x158] sm:$0xff]  ;;  %v190_v37 = vld [vmem:[#allocation5 + $0x190] sm:$0xff] }
  0x9e   :  { %6577 = vmatpush1.bf16.msra.mxu1 %v6576_v22  ;;  %v407_v38 = vld [vmem:[#allocation5 + $0x858] sm:$0xff]  ;;  %v6644_v39 = vpack.c.bf16 %v399_v34, %v392_v33  ;;  %v6582_v40 = vpack.c.bf16 %v190_v37, %v183_v36  ;;  %v414_v41 = vld [vmem:[#allocation5 + $0x890] sm:$0xff]  ;;  %v189_v43 = vld [vmem:[#allocation5 + $0x188] sm:$0xff] }
  0x9f   :  { %6641 = vmatpush1.bf16.msra.mxu0 %v6640_v26  ;;  %6579 = vmatprep.subr.bf16.mxu1 %v6578_v27  ;;  %v182_v42 = vld [vmem:[#allocation5 + $0x150] sm:$0xff]  ;;  %v6646_v44 = vpack.c.bf16 %v414_v41, %v407_v38  ;;  %v413_v46 = vld [vmem:[#allocation5 + $0x888] sm:$0xff]  ;;  %v204_v48 = vld [vmem:[#allocation5 + $0x200] sm:$0xff] }
  0xa0   :  { %6643 = vmatprep.subr.bf16.mxu0 %v6642_v31  ;;  %v406_v45 = vld [vmem:[#allocation5 + $0x850] sm:$0xff]  ;;  %v197_v47 = vld [vmem:[#allocation5 + $0x1c8] sm:$0xff]  ;;  %v428_v50 = vld [vmem:[#allocation5 + $0x900] sm:$0xff]  ;;  %v6584_v51 = vpack.c.bf16 %v189_v43, %v182_v42 }
  0xa1   :  { %v421_v49 = vld [vmem:[#allocation5 + $0x8c8] sm:$0xff]  ;;  %v6648_v52 = vpack.c.bf16 %v413_v46, %v406_v45  ;;  %v6586_v53 = vpack.c.bf16 %v204_v48, %v197_v47  ;;  %v196_v54 = vld [vmem:[#allocation5 + $0x1c0] sm:$0xff]  ;;  %v203_v55 = vld [vmem:[#allocation5 + $0x1f8] sm:$0xff] }
  0xa2   :  { %6581 = vmatpush1.bf16.msra.mxu1 %v6580_v35  ;;  %v420_v56 = vld [vmem:[#allocation5 + $0x8c0] sm:$0xff]  ;;  %v6650_v57 = vpack.c.bf16 %v428_v50, %v421_v49  ;;  %v427_v58 = vld [vmem:[#allocation5 + $0x8f8] sm:$0xff]  ;;  %v218_v60 = vld [vmem:[#allocation5 + $0x270] sm:$0xff]  ;;  %v6588_v63 = vpack.c.bf16 %v203_v55, %v196_v54 }
  0xa3   :  { %6645 = vmatpush1.bf16.msra.mxu0 %v6644_v39  ;;  %6583 = vmatprep.subr.bf16.mxu1 %v6582_v40  ;;  %v211_v59 = vld [vmem:[#allocation5 + $0x238] sm:$0xff]  ;;  %v442_v62 = vld [vmem:[#allocation5 + $0x970] sm:$0xff]  ;;  %v6652_v0 = vpack.c.bf16 %v427_v58, %v420_v56  ;;  %v217_v3 = vld [vmem:[#allocation5 + $0x268] sm:$0xff] }
  0xa4   :  { %6647 = vmatprep.subr.bf16.mxu0 %v6646_v44  ;;  %v435_v61 = vld [vmem:[#allocation5 + $0x938] sm:$0xff]  ;;  %v6590_v1 = vpack.c.bf16 %v218_v60, %v211_v59  ;;  %v210_v2 = vld [vmem:[#allocation5 + $0x230] sm:$0xff]  ;;  %v441_v6 = vld [vmem:[#allocation5 + $0x968] sm:$0xff] }
  0xa5   :  { %v434_v4 = vld [vmem:[#allocation5 + $0x930] sm:$0xff]  ;;  %v6654_v5 = vpack.c.bf16 %v442_v62, %v435_v61  ;;  %v225_v7 = vld [vmem:[#allocation5 + $0x2a8] sm:$0xff]  ;;  %v232_v8 = vld [vmem:[#allocation5 + $0x2e0] sm:$0xff]  ;;  %v6592_v11 = vpack.c.bf16 %v217_v3, %v210_v2 }
  0xa6   :  { %6585 = vmatpush1.bf16.msra.mxu1 %v6584_v51  ;;  %v449_v9 = vld [vmem:[#allocation5 + $0x9a8] sm:$0xff]  ;;  %v456_v10 = vld [vmem:[#allocation5 + $0x9e0] sm:$0xff]  ;;  %v6656_v12 = vpack.c.bf16 %v441_v6, %v434_v4  ;;  %v6594_v13 = vpack.c.bf16 %v232_v8, %v225_v7  ;;  %v231_v15 = vld [vmem:[#allocation5 + $0x2d8] sm:$0xff] }
  0xa7   :  { %6649 = vmatpush1.bf16.msra.mxu0 %v6648_v52  ;;  %6587 = vmatprep.subr.bf16.mxu1 %v6586_v53  ;;  %v224_v14 = vld [vmem:[#allocation5 + $0x2a0] sm:$0xff]  ;;  %v6658_v17 = vpack.c.bf16 %v456_v10, %v449_v9  ;;  %v455_v18 = vld [vmem:[#allocation5 + $0x9d8] sm:$0xff]  ;;  %v246_v20 = vld [vmem:[#allocation5 + $0x350] sm:$0xff] }
  0xa8   :  { %6651 = vmatprep.subr.bf16.mxu0 %v6650_v57  ;;  %v448_v16 = vld [vmem:[#allocation5 + $0x9a0] sm:$0xff]  ;;  %v239_v19 = vld [vmem:[#allocation5 + $0x318] sm:$0xff]  ;;  %v470_v22 = vld [vmem:[#allocation5 + $0xa50] sm:$0xff]  ;;  %v6596_v23 = vpack.c.bf16 %v231_v15, %v224_v14 }
  0xa9   :  { %v463_v21 = vld [vmem:[#allocation5 + $0xa18] sm:$0xff]  ;;  %v6660_v24 = vpack.c.bf16 %v455_v18, %v448_v16  ;;  %v6598_v25 = vpack.c.bf16 %v246_v20, %v239_v19  ;;  %v238_v26 = vld [vmem:[#allocation5 + $0x310] sm:$0xff]  ;;  %v245_v27 = vld [vmem:[#allocation5 + $0x348] sm:$0xff] }
  0xaa   :  { %6589 = vmatpush1.bf16.msra.mxu1 %v6588_v63  ;;  %v462_v28 = vld [vmem:[#allocation5 + $0xa10] sm:$0xff]  ;;  %v6662_v29 = vpack.c.bf16 %v470_v22, %v463_v21  ;;  %v469_v30 = vld [vmem:[#allocation5 + $0xa48] sm:$0xff]  ;;  %v260_v32 = vld [vmem:[#allocation5 + $0x3c0] sm:$0xff]  ;;  %v6600_v35 = vpack.c.bf16 %v245_v27, %v238_v26 }
  0xab   :  { %6653 = vmatpush1.bf16.msra.mxu0 %v6652_v0  ;;  %6591 = vmatprep.subr.bf16.mxu1 %v6590_v1  ;;  %v253_v31 = vld [vmem:[#allocation5 + $0x388] sm:$0xff]  ;;  %v484_v34 = vld [vmem:[#allocation5 + $0xac0] sm:$0xff]  ;;  %v6664_v36 = vpack.c.bf16 %v469_v30, %v462_v28  ;;  %v259_v39 = vld [vmem:[#allocation5 + $0x3b8] sm:$0xff] }
  0xac   :  { %6655 = vmatprep.subr.bf16.mxu0 %v6654_v5  ;;  %v477_v33 = vld [vmem:[#allocation5 + $0xa88] sm:$0xff]  ;;  %v6602_v37 = vpack.c.bf16 %v260_v32, %v253_v31  ;;  %v252_v38 = vld [vmem:[#allocation5 + $0x380] sm:$0xff]  ;;  %v483_v42 = vld [vmem:[#allocation5 + $0xab8] sm:$0xff] }
  0xad   :  { %v476_v40 = vld [vmem:[#allocation5 + $0xa80] sm:$0xff]  ;;  %v6666_v41 = vpack.c.bf16 %v484_v34, %v477_v33  ;;  %v267_v43 = vld [vmem:[#allocation5 + $0x3f8] sm:$0xff]  ;;  %v274_v44 = vld [vmem:[#allocation5 + $0x430] sm:$0xff]  ;;  %v6604_v47 = vpack.c.bf16 %v259_v39, %v252_v38 }
  0xae   :  { %6593 = vmatpush1.bf16.msra.mxu1 %v6592_v11  ;;  %v491_v45 = vld [vmem:[#allocation5 + $0xaf8] sm:$0xff]  ;;  %v498_v46 = vld [vmem:[#allocation5 + $0xb30] sm:$0xff]  ;;  %v6668_v48 = vpack.c.bf16 %v483_v42, %v476_v40  ;;  %v6606_v49 = vpack.c.bf16 %v274_v44, %v267_v43  ;;  %v273_v51 = vld [vmem:[#allocation5 + $0x428] sm:$0xff] }
  0xaf   :  { %6657 = vmatpush1.bf16.msra.mxu0 %v6656_v12  ;;  %6595 = vmatprep.subr.bf16.mxu1 %v6594_v13  ;;  %v266_v50 = vld [vmem:[#allocation5 + $0x3f0] sm:$0xff]  ;;  %v6670_v53 = vpack.c.bf16 %v498_v46, %v491_v45  ;;  %v497_v54 = vld [vmem:[#allocation5 + $0xb28] sm:$0xff]  ;;  %v288_v56 = vld [vmem:[#allocation5 + $0x4a0] sm:$0xff] }
  0xb0   :  { %6659 = vmatprep.subr.bf16.mxu0 %v6658_v17  ;;  %v490_v52 = vld [vmem:[#allocation5 + $0xaf0] sm:$0xff]  ;;  %v281_v55 = vld [vmem:[#allocation5 + $0x468] sm:$0xff]  ;;  %v512_v58 = vld [vmem:[#allocation5 + $0xba0] sm:$0xff]  ;;  %v6608_v59 = vpack.c.bf16 %v273_v51, %v266_v50 }
  0xb1   :  { %v505_v57 = vld [vmem:[#allocation5 + $0xb68] sm:$0xff]  ;;  %v6672_v60 = vpack.c.bf16 %v497_v54, %v490_v52  ;;  %v6610_v61 = vpack.c.bf16 %v288_v56, %v281_v55  ;;  %v280_v62 = vld [vmem:[#allocation5 + $0x460] sm:$0xff]  ;;  %v287_v63 = vld [vmem:[#allocation5 + $0x498] sm:$0xff] }
  0xb2   :  { %6597 = vmatpush1.bf16.msra.mxu1 %v6596_v23  ;;  %v504_v0 = vld [vmem:[#allocation5 + $0xb60] sm:$0xff]  ;;  %v6674_v1 = vpack.c.bf16 %v512_v58, %v505_v57  ;;  %v511_v2 = vld [vmem:[#allocation5 + $0xb98] sm:$0xff]  ;;  %v302_v4 = vld [vmem:[#allocation5 + $0x510] sm:$0xff]  ;;  %v6612_v7 = vpack.c.bf16 %v287_v63, %v280_v62 }
  0xb3   :  { %6661 = vmatpush1.bf16.msra.mxu0 %v6660_v24  ;;  %6599 = vmatprep.subr.bf16.mxu1 %v6598_v25  ;;  %v295_v3 = vld [vmem:[#allocation5 + $0x4d8] sm:$0xff]  ;;  %v526_v6 = vld [vmem:[#allocation5 + $0xc10] sm:$0xff]  ;;  %v6676_v9 = vpack.c.bf16 %v511_v2, %v504_v0  ;;  %v301_v11 = vld [vmem:[#allocation5 + $0x508] sm:$0xff] }
  0xb4   :  { %6663 = vmatprep.subr.bf16.mxu0 %v6662_v29  ;;  %v519_v5 = vld [vmem:[#allocation5 + $0xbd8] sm:$0xff]  ;;  %v294_v8 = vld [vmem:[#allocation5 + $0x4d0] sm:$0xff]  ;;  %v6614_v10 = vpack.c.bf16 %v302_v4, %v295_v3  ;;  %v525_v13 = vld [vmem:[#allocation5 + $0xc08] sm:$0xff] }
  0xb5   :  { %v518_v12 = vld [vmem:[#allocation5 + $0xbd0] sm:$0xff]  ;;  %v6678_v14 = vpack.c.bf16 %v526_v6, %v519_v5  ;;  %v309_v15 = vld [vmem:[#allocation5 + $0x548] sm:$0xff]  ;;  %v316_v16 = vld [vmem:[#allocation5 + $0x580] sm:$0xff]  ;;  %v6616_v21 = vpack.c.bf16 %v301_v11, %v294_v8 }
  0xb6   :  { %6601 = vmatpush1.bf16.msra.mxu1 %v6600_v35  ;;  %v9405_v17 = vld [vmem:[#allocation3 + $0x8] sm:$0xff]  ;;  %v533_v18 = vld [vmem:[#allocation5 + $0xc48] sm:$0xff]  ;;  %v540_v19 = vld [vmem:[#allocation5 + $0xc80] sm:$0xff]  ;;  %v6680_v22 = vpack.c.bf16 %v525_v13, %v518_v12  ;;  %v6618_v23 = vpack.c.bf16 %v316_v16, %v309_v15 }
  0xb7   :  { %6665 = vmatpush1.bf16.msra.mxu0 %v6664_v36  ;;  %6603 = vmatprep.subr.bf16.mxu1 %v6602_v37  ;;  %v9408_v20 = vld [vmem:[#allocation3 + $0x18] sm:$0xff]  ;;  %v315_v25 = vld [vmem:[#allocation5 + $0x578] sm:$0xff]  ;;  %v6682_v27 = vpack.c.bf16 %v540_v19, %v533_v18  ;;  %v330_v30 = vld [vmem:[#allocation5 + $0x5f0] sm:$0xff] }
  0xb8   :  { %6667 = vmatprep.subr.bf16.mxu0 %v6666_v41  ;;  %1025 = vmatprep.mubr.f32.mxu1 %v9405_v17  ;;  %v308_v24 = vld [vmem:[#allocation5 + $0x540] sm:$0xff]  ;;  %v539_v28 = vld [vmem:[#allocation5 + $0xc78] sm:$0xff]  ;;  %v554_v32 = vld [vmem:[#allocation5 + $0xcf0] sm:$0xff] }
  0xb9   :  { %1096 = vmatprep.mubr.f32.mxu0 %v9408_v20  ;;  %v532_v26 = vld [vmem:[#allocation5 + $0xc40] sm:$0xff]  ;;  %v323_v29 = vld [vmem:[#allocation5 + $0x5b8] sm:$0xff]  ;;  %v6620_v33 = vpack.c.bf16 %v315_v25, %v308_v24  ;;  %v322_v36 = vld [vmem:[#allocation5 + $0x5b0] sm:$0xff] }
  0xba   :  { %6605 = vmatpush1.bf16.msra.mxu1 %v6604_v47  ;;  %v547_v31 = vld [vmem:[#allocation5 + $0xcb8] sm:$0xff]  ;;  %v6684_v34 = vpack.c.bf16 %v539_v28, %v532_v26  ;;  %v6622_v35 = vpack.c.bf16 %v330_v30, %v323_v29  ;;  %v329_v37 = vld [vmem:[#allocation5 + $0x5e8] sm:$0xff]  ;;  %v546_v38 = vld [vmem:[#allocation5 + $0xcb0] sm:$0xff] }
  0xbb   :  { %6669 = vmatpush1.bf16.msra.mxu0 %v6668_v48  ;;  %6607 = vmatprep.subr.bf16.mxu1 %v6606_v49  ;;  %v6686_v39 = vpack.c.bf16 %v554_v32, %v547_v31  ;;  %v553_v40 = vld [vmem:[#allocation5 + $0xce8] sm:$0xff]  ;;  %v344_v42 = vld [vmem:[#allocation5 + $0x660] sm:$0xff]  ;;  %v6624_v45 = vpack.c.bf16 %v329_v37, %v322_v36  ;;  %v343_v49 = vld [vmem:[#allocation5 + $0x658] sm:$0xff] }
  0xbc   :  { %6671 = vmatprep.subr.bf16.mxu0 %v6670_v53  ;;  %v337_v41 = vld [vmem:[#allocation5 + $0x628] sm:$0xff]  ;;  %v568_v44 = vld [vmem:[#allocation5 + $0xd60] sm:$0xff]  ;;  %v6688_v46 = vpack.c.bf16 %v553_v40, %v546_v38  ;;  %v567_v52 = vld [vmem:[#allocation5 + $0xd58] sm:$0xff] }
  0xbd   :  { %v561_v43 = vld [vmem:[#allocation5 + $0xd28] sm:$0xff]  ;;  %v6626_v47 = vpack.c.bf16 %v344_v42, %v337_v41  ;;  %v336_v48 = vld [vmem:[#allocation5 + $0x620] sm:$0xff]  ;;  %v351_v53 = vld [vmem:[#allocation5 + $0x698] sm:$0xff] }
  0xbe   :  { %6609 = vmatpush1.bf16.msra.mxu1 %v6608_v59  ;;  %v560_v50 = vld [vmem:[#allocation5 + $0xd20] sm:$0xff]  ;;  %v6690_v51 = vpack.c.bf16 %v568_v44, %v561_v43  ;;  %v358_v54 = vld [vmem:[#allocation5 + $0x6d0] sm:$0xff]  ;;  %v575_v55 = vld [vmem:[#allocation5 + $0xd98] sm:$0xff]  ;;  %v6628_v57 = vpack.c.bf16 %v343_v49, %v336_v48 }
  0xbf   :  { %6673 = vmatpush1.bf16.msra.mxu0 %v6672_v60  ;;  %6611 = vmatprep.subr.bf16.mxu1 %v6610_v61  ;;  %v582_v56 = vld [vmem:[#allocation5 + $0xdd0] sm:$0xff]  ;;  %v6692_v58 = vpack.c.bf16 %v567_v52, %v560_v50  ;;  %v6630_v59 = vpack.c.bf16 %v358_v54, %v351_v53  ;;  %v357_v61 = vld [vmem:[#allocation5 + $0x6c8] sm:$0xff]  ;;  %v596_v4 = vld [vmem:[#allocation5 + $0xe40] sm:$0xff] }
  0xc0   :  { %6675 = vmatprep.subr.bf16.mxu0 %v6674_v1  ;;  %v350_v60 = vld [vmem:[#allocation5 + $0x690] sm:$0xff]  ;;  %v6694_v63 = vpack.c.bf16 %v582_v56, %v575_v55  ;;  %v581_v0 = vld [vmem:[#allocation5 + $0xdc8] sm:$0xff]  ;;  %v143_v1 = vld [vmem:[#allocation5 + $0x18] sm:$0xff] }
  0xc1   :  { %v574_v62 = vld [vmem:[#allocation5 + $0xd90] sm:$0xff]  ;;  %v589_v3 = vld [vmem:[#allocation5 + $0xe08] sm:$0xff]  ;;  %v6632_v5 = vpack.c.bf16 %v357_v61, %v350_v60  ;;  %v588_v8 = vld [vmem:[#allocation5 + $0xe00] sm:$0xff] }
  0xc2   :  { %6613 = vmatpush1.bf16.msra.mxu1 %v6612_v7  ;;  %v150_v2 = vld [vmem:[#allocation5 + $0x50] sm:$0xff]  ;;  %v6696_v6 = vpack.c.bf16 %v581_v0, %v574_v62  ;;  %v6698_v11 = vpack.c.bf16 %v596_v4, %v589_v3  ;;  %v595_v12 = vld [vmem:[#allocation5 + $0xe38] sm:$0xff]  ;;  %v157_v13 = vld [vmem:[#allocation5 + $0x88] sm:$0xff] }
  0xc3   :  { %6677 = vmatpush1.bf16.msra.mxu0 %v6676_v9  ;;  %6615 = vmatprep.subr.bf16.mxu1 %v6614_v10  ;;  %v6794_v7 = vpack.c.bf16 %v150_v2, %v143_v1  ;;  %v142_v9 = vld [vmem:[#allocation5 + $0x10] sm:$0xff]  ;;  %v149_v10 = vld [vmem:[#allocation5 + $0x48] sm:$0xff]  ;;  %v603_v15 = vld [vmem:[#allocation5 + $0xe78] sm:$0xff] }
  0xc4   :  { %6679 = vmatprep.subr.bf16.mxu0 %v6678_v14  ;;  %v164_v14 = vld [vmem:[#allocation5 + $0xc0] sm:$0xff]  ;;  %v610_v16 = vld [vmem:[#allocation5 + $0xeb0] sm:$0xff]  ;;  %v9411_v18 = vld [vmem:[#allocation3] sm:$0xff] }
  0xc5   :  { %v135_v19 = vld [vmem:[#allocation3 + $0x10] sm:$0xff]  ;;  %v602_v24 = vld [vmem:[#allocation5 + $0xe70] sm:$0xff]  ;;  %v156_v25 = vld [vmem:[#allocation5 + $0x80] sm:$0xff] }
  0xc6   :  { %6617 = vmatpush1.bf16.msra.mxu1 %v6616_v21  ;;  %v6796_v21 = vpack.c.bf16 %v149_v10, %v142_v9  ;;  %v163_v26 = vld [vmem:[#allocation5 + $0xb8] sm:$0xff]  ;;  %v609_v28 = vld [vmem:[#allocation5 + $0xea8] sm:$0xff]  ;;  %v178_v30 = vld [vmem:[#allocation5 + $0x130] sm:$0xff] }
  0xc7   :  { %6681 = vmatpush1.bf16.msra.mxu0 %v6680_v22  ;;  %6619 = vmatprep.subr.bf16.mxu1 %v6618_v23  ;;  %v6700_v22 = vpack.c.bf16 %v595_v12, %v588_v8  ;;  %v6798_v23 = vpack.c.bf16 %v164_v14, %v157_v13  ;;  %v171_v29 = vld [vmem:[#allocation5 + $0xf8] sm:$0xff]  ;;  %v617_v31 = vld [vmem:[#allocation5 + $0xee8] sm:$0xff]  ;;  %v624_v32 = vld [vmem:[#allocation5 + $0xf20] sm:$0xff] }
  0xc8   :  { %6683 = vmatprep.subr.bf16.mxu0 %v6682_v27  ;;  %v6702_v27 = vpack.c.bf16 %v610_v16, %v603_v15  ;;  %v616_v36 = vld [vmem:[#allocation5 + $0xee0] sm:$0xff]  ;;  %v170_v37 = vld [vmem:[#allocation5 + $0xf0] sm:$0xff]  ;;  %v177_v38 = vld [vmem:[#allocation5 + $0x128] sm:$0xff] }
  0xc9   :  { %v623_v40 = vld [vmem:[#allocation5 + $0xf18] sm:$0xff]  ;;  %v185_v41 = vld [vmem:[#allocation5 + $0x168] sm:$0xff]  ;;  %v192_v42 = vld [vmem:[#allocation5 + $0x1a0] sm:$0xff] }
  0xca   :  { %6621 = vmatpush1.bf16.msra.mxu1 %v6620_v33  ;;  %v6800_v33 = vpack.c.bf16 %v163_v26, %v156_v25  ;;  %v631_v43 = vld [vmem:[#allocation5 + $0xf58] sm:$0xff]  ;;  %v638_v44 = vld [vmem:[#allocation5 + $0xf90] sm:$0xff]  ;;  %v184_v49 = vld [vmem:[#allocation5 + $0x160] sm:$0xff] }
  0xcb   :  { %6685 = vmatpush1.bf16.msra.mxu0 %v6684_v34  ;;  %6623 = vmatprep.subr.bf16.mxu1 %v6622_v35  ;;  %v6704_v34 = vpack.c.bf16 %v609_v28, %v602_v24  ;;  %v6802_v35 = vpack.c.bf16 %v178_v30, %v171_v29  ;;  %v630_v48 = vld [vmem:[#allocation5 + $0xf50] sm:$0xff]  ;;  %v191_v50 = vld [vmem:[#allocation5 + $0x198] sm:$0xff]  ;;  %v637_v52 = vld [vmem:[#allocation5 + $0xf88] sm:$0xff] }
  0xcc   :  { %6687 = vmatprep.subr.bf16.mxu0 %v6686_v39  ;;  %v6706_v39 = vpack.c.bf16 %v624_v32, %v617_v31  ;;  %v199_v53 = vld [vmem:[#allocation5 + $0x1d8] sm:$0xff]  ;;  %v206_v54 = vld [vmem:[#allocation5 + $0x210] sm:$0xff]  ;;  %v645_v55 = vld [vmem:[#allocation5 + $0xfc8] sm:$0xff] }
  0xcd   :  { %v652_v56 = vld [vmem:[#allocation5 + $0x1000] sm:$0xff]  ;;  %v198_v60 = vld [vmem:[#allocation5 + $0x1d0] sm:$0xff]  ;;  %v205_v61 = vld [vmem:[#allocation5 + $0x208] sm:$0xff] }
  0xce   :  { %6625 = vmatpush1.bf16.msra.mxu1 %v6624_v45  ;;  %v6804_v45 = vpack.c.bf16 %v177_v38, %v170_v37  ;;  %v6714_v62 = vpack.c.bf16 %v652_v56, %v645_v55  ;;  %v213_v0 = vld [vmem:[#allocation5 + $0x248] sm:$0xff]  ;;  %v220_v1 = vld [vmem:[#allocation5 + $0x280] sm:$0xff]  ;;  %v659_v2 = vld [vmem:[#allocation5 + $0x1038] sm:$0xff]  ;;  %v6812_v4 = vpack.c.bf16 %v205_v61, %v198_v60 }
  0xcf   :  { %6689 = vmatpush1.bf16.msra.mxu0 %v6688_v46  ;;  %6627 = vmatprep.subr.bf16.mxu1 %v6626_v47  ;;  %v6708_v46 = vpack.c.bf16 %v623_v40, %v616_v36  ;;  %v6806_v47 = vpack.c.bf16 %v192_v42, %v185_v41  ;;  %v666_v3 = vld [vmem:[#allocation5 + $0x1070] sm:$0xff]  ;;  %v212_v8 = vld [vmem:[#allocation5 + $0x240] sm:$0xff]  ;;  %v219_v9 = vld [vmem:[#allocation5 + $0x278] sm:$0xff] }
  0xd0   :  { %6691 = vmatprep.subr.bf16.mxu0 %v6690_v51  ;;  %v6710_v51 = vpack.c.bf16 %v638_v44, %v631_v43  ;;  %v6718_v10 = vpack.c.bf16 %v666_v3, %v659_v2  ;;  %v227_v12 = vld [vmem:[#allocation5 + $0x2b8] sm:$0xff]  ;;  %v234_v13 = vld [vmem:[#allocation5 + $0x2f0] sm:$0xff]  ;;  %v673_v14 = vld [vmem:[#allocation5 + $0x10a8] sm:$0xff]  ;;  %v6816_v16 = vpack.c.bf16 %v219_v9, %v212_v8 }
  0xd1   :  { %v680_v15 = vld [vmem:[#allocation5 + $0x10e0] sm:$0xff]  ;;  %v226_v24 = vld [vmem:[#allocation5 + $0x2b0] sm:$0xff]  ;;  %v233_v25 = vld [vmem:[#allocation5 + $0x2e8] sm:$0xff] }
  0xd2   :  { %6629 = vmatpush1.bf16.msra.mxu1 %v6628_v57  ;;  %v6712_v57 = vpack.c.bf16 %v637_v52, %v630_v48  ;;  %v6722_v26 = vpack.c.bf16 %v680_v15, %v673_v14  ;;  %v248_v28 = vld [vmem:[#allocation5 + $0x360] sm:$0xff]  ;;  %v9415_v29 = vld [vmem:[#allocation3 + $0x28] sm:$0xff]  ;;  %v687_v30 = vld [vmem:[#allocation5 + $0x1118] sm:$0xff]  ;;  %v6820_v32 = vpack.c.bf16 %v233_v25, %v226_v24 }
  0xd3   :  { %6693 = vmatpush1.bf16.msra.mxu0 %v6692_v58  ;;  %6631 = vmatprep.subr.bf16.mxu1 %v6630_v59  ;;  %v6810_v58 = vpack.c.bf16 %v206_v54, %v199_v53  ;;  %v644_v59 = vld [vmem:[#allocation5 + $0xfc0] sm:$0xff]  ;;  %v694_v31 = vld [vmem:[#allocation5 + $0x1150] sm:$0xff]  ;;  %v247_v37 = vld [vmem:[#allocation5 + $0x358] sm:$0xff] }
  0xd4   :  { %6695 = vmatprep.subr.bf16.mxu0 %v6694_v63  ;;  %v651_v63 = vld [vmem:[#allocation5 + $0xff8] sm:$0xff]  ;;  %v240_v36 = vld [vmem:[#allocation5 + $0x320] sm:$0xff]  ;;  %v6726_v38 = vpack.c.bf16 %v694_v31, %v687_v30  ;;  %v262_v41 = vld [vmem:[#allocation5 + $0x3d0] sm:$0xff] }
  0xd5   :  { %v255_v40 = vld [vmem:[#allocation5 + $0x398] sm:$0xff]  ;;  %v701_v42 = vld [vmem:[#allocation5 + $0x1188] sm:$0xff]  ;;  %v708_v43 = vld [vmem:[#allocation5 + $0x11c0] sm:$0xff]  ;;  %v6824_v44 = vpack.c.bf16 %v247_v37, %v240_v36 }
  0xd6   :  { %6633 = vmatpush1.bf16.msra.mxu1 %v6632_v5  ;;  %v6716_v5 = vpack.c.bf16 %v651_v63, %v644_v59  ;;  %v254_v48 = vld [vmem:[#allocation5 + $0x390] sm:$0xff]  ;;  %v269_v52 = vld [vmem:[#allocation5 + $0x408] sm:$0xff]  ;;  %v276_v53 = vld [vmem:[#allocation5 + $0x440] sm:$0xff] }
  0xd7   :  { %6697 = vmatpush1.bf16.msra.mxu0 %v6696_v6  ;;  %6795 = vmatprep.subr.bf16.mxu1 %v6794_v7  ;;  %v6814_v6 = vpack.c.bf16 %v220_v1, %v213_v0  ;;  %v658_v7 = vld [vmem:[#allocation5 + $0x1030] sm:$0xff]  ;;  %v715_v54 = vld [vmem:[#allocation5 + $0x11f8] sm:$0xff]  ;;  %v268_v59 = vld [vmem:[#allocation5 + $0x400] sm:$0xff] }
  0xd8   :  { %6699 = vmatprep.subr.bf16.mxu0 %v6698_v11  ;;  %v665_v11 = vld [vmem:[#allocation5 + $0x1068] sm:$0xff]  ;;  %v722_v55 = vld [vmem:[#allocation5 + $0x1230] sm:$0xff]  ;;  %v275_v60 = vld [vmem:[#allocation5 + $0x438] sm:$0xff] }
  0xd9   :  { %1026 = vmatmul.mubr.f32.vlgmr.msra.gmra.mrb[0].mxu1 %v9411_v18  ;;  %v6734_v61 = vpack.c.bf16 %v722_v55, %v715_v54  ;;  %v283_v63 = vld [vmem:[#allocation5 + $0x478] sm:$0xff]  ;;  %v290_v0 = vld [vmem:[#allocation5 + $0x4b0] sm:$0xff]  ;;  %v729_v1 = vld [vmem:[#allocation5 + $0x1268] sm:$0xff]  ;;  %v6832_v3 = vpack.c.bf16 %v275_v60, %v268_v59 }
  0xda   :  { %1097 = vmatmul.mubr.f32.vlgmr.msra.gmra.mrb[0].mxu0 %v135_v19  ;;  %6797 = vmatpush1.bf16.msra.mxu1 %v6796_v21  ;;  %v672_v19 = vld [vmem:[#allocation5 + $0x10a0] sm:$0xff]  ;;  %v6720_v21 = vpack.c.bf16 %v665_v11, %v658_v7  ;;  %v282_v7 = vld [vmem:[#allocation5 + $0x470] sm:$0xff]  ;;  %v289_v8 = vld [vmem:[#allocation5 + $0x4a8] sm:$0xff] }
  0xdb   :  { %6701 = vmatpush1.bf16.msra.mxu0 %v6700_v22  ;;  %6799 = vmatprep.subr.bf16.mxu1 %v6798_v23  ;;  %v6818_v22 = vpack.c.bf16 %v234_v13, %v227_v12  ;;  %v679_v23 = vld [vmem:[#allocation5 + $0x10d8] sm:$0xff]  ;;  %v736_v2 = vld [vmem:[#allocation5 + $0x12a0] sm:$0xff]  ;;  %v297_v11 = vld [vmem:[#allocation5 + $0x4e8] sm:$0xff]  ;;  %v6836_v15 = vpack.c.bf16 %v289_v8, %v282_v7 }
  0xdc   :  { %6703 = vmatprep.subr.bf16.mxu0 %v6702_v27  ;;  %1309 = vmatprep.mubr.f32.mxu1 %v9405_v17  ;;  %v6808_v17 = vpack.c.bf16 %v191_v50, %v184_v49  ;;  %v241_v27 = vld [vmem:[#allocation5 + $0x328] sm:$0xff]  ;;  %v6730_v50 = vpack.c.bf16 %v708_v43, %v701_v42  ;;  %v6738_v9 = vpack.c.bf16 %v736_v2, %v729_v1  ;;  %v304_v12 = vld [vmem:[#allocation5 + $0x520] sm:$0xff]  ;;  %v743_v13 = vld [vmem:[#allocation5 + $0x12d8] sm:$0xff] }
  0xdd   :  { %1167 = vmatprep.mubr.f32.mxu0 %v9415_v29  ;;  %v261_v49 = vld [vmem:[#allocation5 + $0x3c8] sm:$0xff]  ;;  %v750_v14 = vld [vmem:[#allocation5 + $0x1310] sm:$0xff]  ;;  %v764_v30 = vld [vmem:[#allocation5 + $0x1380] sm:$0xff] }
  0xde   :  { %6801 = vmatpush1.bf16.msra.mxu1 %v6800_v33  ;;  %v6724_v33 = vpack.c.bf16 %v679_v23, %v672_v19  ;;  %v6828_v56 = vpack.c.bf16 %v261_v49, %v254_v48  ;;  %v6838_v19 = vpack.c.bf16 %v304_v12, %v297_v11  ;;  %v303_v23 = vld [vmem:[#allocation5 + $0x518] sm:$0xff]  ;;  %v6742_v24 = vpack.c.bf16 %v750_v14, %v743_v13  ;;  %v749_v25 = vld [vmem:[#allocation5 + $0x1308] sm:$0xff]  ;;  %v778_v42 = vld [vmem:[#allocation5 + $0x13f0] sm:$0xff] }
  0xdf   :  { %6705 = vmatpush1.bf16.msra.mxu0 %v6704_v34  ;;  %6803 = vmatprep.subr.bf16.mxu1 %v6802_v35  ;;  %v6822_v34 = vpack.c.bf16 %v248_v28, %v241_v27  ;;  %v686_v35 = vld [vmem:[#allocation5 + $0x1110] sm:$0xff]  ;;  %v757_v28 = vld [vmem:[#allocation5 + $0x1348] sm:$0xff]  ;;  %v331_v48 = vld [vmem:[#allocation5 + $0x5f8] sm:$0xff] }
  0xe0   :  { %6707 = vmatprep.subr.bf16.mxu0 %v6706_v39  ;;  %v693_v39 = vld [vmem:[#allocation5 + $0x1148] sm:$0xff]  ;;  %v318_v27 = vld [vmem:[#allocation5 + $0x590] sm:$0xff]  ;;  %v6746_v37 = vpack.c.bf16 %v764_v30, %v757_v28  ;;  %v792_v54 = vld [vmem:[#allocation5 + $0x1460] sm:$0xff] }
  0xe1   :  { %v317_v36 = vld [vmem:[#allocation5 + $0x588] sm:$0xff]  ;;  %v806_v1 = vld [vmem:[#allocation5 + $0x14d0] sm:$0xff]  ;;  %v359_v7 = vld [vmem:[#allocation5 + $0x6d8] sm:$0xff] }
  0xe2   :  { %6805 = vmatpush1.bf16.msra.mxu1 %v6804_v45  ;;  %v6728_v45 = vpack.c.bf16 %v693_v39, %v686_v35  ;;  %v310_v35 = vld [vmem:[#allocation5 + $0x550] sm:$0xff]  ;;  %v325_v39 = vld [vmem:[#allocation5 + $0x5c8] sm:$0xff]  ;;  %v820_v13 = vld [vmem:[#allocation5 + $0x1540] sm:$0xff] }
  0xe3   :  { %6709 = vmatpush1.bf16.msra.mxu0 %v6708_v46  ;;  %6807 = vmatprep.subr.bf16.mxu1 %v6806_v47  ;;  %v6826_v46 = vpack.c.bf16 %v262_v41, %v255_v40  ;;  %v700_v47 = vld [vmem:[#allocation5 + $0x1180] sm:$0xff]  ;;  %v771_v41 = vld [vmem:[#allocation5 + $0x13b8] sm:$0xff]  ;;  %v6844_v43 = vpack.c.bf16 %v317_v36, %v310_v35  ;;  %v345_v59 = vld [vmem:[#allocation5 + $0x668] sm:$0xff] }
  0xe4   :  { %6711 = vmatprep.subr.bf16.mxu0 %v6710_v51  ;;  %v707_v51 = vld [vmem:[#allocation5 + $0x11b8] sm:$0xff]  ;;  %v332_v40 = vld [vmem:[#allocation5 + $0x600] sm:$0xff]  ;;  %v6750_v49 = vpack.c.bf16 %v778_v42, %v771_v41  ;;  %v374_v11 = vld [vmem:[#allocation5 + $0x750] sm:$0xff] }
  0xe5   :  { %v813_v12 = vld [vmem:[#allocation5 + $0x1508] sm:$0xff]  ;;  %v834_v28 = vld [vmem:[#allocation5 + $0x15b0] sm:$0xff]  ;;  %v380_v35 = vld [vmem:[#allocation5 + $0x780] sm:$0xff] }
  0xe6   :  { %6809 = vmatpush1.bf16.msra.mxu1 %v6808_v17  ;;  %v6732_v17 = vpack.c.bf16 %v707_v51, %v700_v47  ;;  %v324_v47 = vld [vmem:[#allocation5 + $0x5c0] sm:$0xff]  ;;  %v339_v51 = vld [vmem:[#allocation5 + $0x638] sm:$0xff]  ;;  %v137_v30 = vld [vmem:[#allocation3 + $0x20] sm:$0xff] }
  0xe7   :  { %6713 = vmatpush1.bf16.msra.mxu0 %v6712_v57  ;;  %6811 = vmatprep.subr.bf16.mxu1 %v6810_v58  ;;  %v6830_v57 = vpack.c.bf16 %v276_v53, %v269_v52  ;;  %v714_v58 = vld [vmem:[#allocation5 + $0x11f0] sm:$0xff]  ;;  %v785_v53 = vld [vmem:[#allocation5 + $0x1428] sm:$0xff]  ;;  %v6848_v55 = vpack.c.bf16 %v331_v48, %v324_v47  ;;  %v387_v36 = vld [vmem:[#allocation5 + $0x7b8] sm:$0xff] }
  0xe8   :  { %6715 = vmatprep.subr.bf16.mxu0 %v6714_v62  ;;  %v721_v62 = vld [vmem:[#allocation5 + $0x1228] sm:$0xff]  ;;  %v346_v52 = vld [vmem:[#allocation5 + $0x670] sm:$0xff]  ;;  %v6754_v60 = vpack.c.bf16 %v792_v54, %v785_v53  ;;  %v848_v42 = vld [vmem:[#allocation5 + $0x1620] sm:$0xff]  ;;  %v9244_v53 = vmov 0.0  }
  0xe9   :  { %v841_v41 = vld [vmem:[#allocation5 + $0x15e8] sm:$0xff]  ;;  %v394_v47 = vld [vmem:[#allocation5 + $0x7f0] sm:$0xff] }
  0xea   :  { %6813 = vmatpush1.bf16.msra.mxu1 %v6812_v4  ;;  %v6736_v4 = vpack.c.bf16 %v721_v62, %v714_v58  ;;  %v338_v58 = vld [vmem:[#allocation5 + $0x630] sm:$0xff]  ;;  %v353_v62 = vld [vmem:[#allocation5 + $0x6a8] sm:$0xff] }
  0xeb   :  { %6717 = vmatpush1.bf16.msra.mxu0 %v6716_v5  ;;  %6815 = vmatprep.subr.bf16.mxu1 %v6814_v6  ;;  %v6834_v5 = vpack.c.bf16 %v290_v0, %v283_v63  ;;  %v728_v6 = vld [vmem:[#allocation5 + $0x1260] sm:$0xff]  ;;  %v799_v0 = vld [vmem:[#allocation5 + $0x1498] sm:$0xff]  ;;  %v6852_v2 = vpack.c.bf16 %v345_v59, %v338_v58  ;;  %v401_v48 = vld [vmem:[#allocation5 + $0x828] sm:$0xff] }
  0xec   :  { %6719 = vmatprep.subr.bf16.mxu0 %v6718_v10  ;;  %v735_v10 = vld [vmem:[#allocation5 + $0x1298] sm:$0xff]  ;;  %v360_v63 = vld [vmem:[#allocation5 + $0x6e0] sm:$0xff]  ;;  %v6758_v8 = vpack.c.bf16 %v806_v1, %v799_v0  ;;  %v862_v54 = vld [vmem:[#allocation5 + $0x1690] sm:$0xff] }
  0xed   :  { %v408_v58 = vld [vmem:[#allocation5 + $0x860] sm:$0xff]  ;;  %v415_v59 = vld [vmem:[#allocation5 + $0x898] sm:$0xff]  ;;  %v869_v0 = vld [vmem:[#allocation5 + $0x16c8] sm:$0xff] }
  0xee   :  { %6817 = vmatpush1.bf16.msra.mxu1 %v6816_v16  ;;  %v6740_v16 = vpack.c.bf16 %v735_v10, %v728_v6  ;;  %v352_v6 = vld [vmem:[#allocation5 + $0x6a0] sm:$0xff]  ;;  %v367_v10 = vld [vmem:[#allocation5 + $0x718] sm:$0xff] }
  0xef   :  { %6721 = vmatpush1.bf16.msra.mxu0 %v6720_v21  ;;  %6819 = vmatprep.subr.bf16.mxu1 %v6818_v22  ;;  %v742_v21 = vld [vmem:[#allocation5 + $0x12d0] sm:$0xff]  ;;  %v296_v22 = vld [vmem:[#allocation5 + $0x4e0] sm:$0xff]  ;;  %v6856_v14 = vpack.c.bf16 %v359_v7, %v352_v6  ;;  %v429_v6 = vld [vmem:[#allocation5 + $0x908] sm:$0xff] }
  0xf0   :  { %6723 = vmatprep.subr.bf16.mxu0 %v6722_v26  ;;  %v311_v26 = vld [vmem:[#allocation5 + $0x558] sm:$0xff]  ;;  %v6840_v31 = vpack.c.bf16 %v303_v23, %v296_v22  ;;  %v373_v22 = vld [vmem:[#allocation5 + $0x748] sm:$0xff]  ;;  %v6762_v23 = vpack.c.bf16 %v820_v13, %v813_v12  ;;  %v876_v1 = vld [vmem:[#allocation5 + $0x1700] sm:$0xff] }
  0xf1   :  { %v6778_v7 = vpack.c.bf16 %v876_v1, %v869_v0  ;;  %v890_v12 = vld [vmem:[#allocation5 + $0x1770] sm:$0xff]  ;;  %v139_v0 = vld [vmem:[#allocation3 + $0x30] sm:$0xff] }
  0xf2   :  { %6821 = vmatpush1.bf16.msra.mxu1 %v6820_v32  ;;  %v6744_v32 = vpack.c.bf16 %v749_v25, %v742_v21  ;;  %v366_v21 = vld [vmem:[#allocation5 + $0x710] sm:$0xff]  ;;  %v381_v25 = vld [vmem:[#allocation5 + $0x788] sm:$0xff] }
  0xf3   :  { %6725 = vmatpush1.bf16.msra.mxu0 %v6724_v33  ;;  %6823 = vmatprep.subr.bf16.mxu1 %v6822_v34  ;;  %v6842_v33 = vpack.c.bf16 %v318_v27, %v311_v26  ;;  %v756_v34 = vld [vmem:[#allocation5 + $0x1340] sm:$0xff]  ;;  %v827_v27 = vld [vmem:[#allocation5 + $0x1578] sm:$0xff] }
  0xf4   :  { %6727 = vmatprep.subr.bf16.mxu0 %v6726_v38  ;;  %v763_v38 = vld [vmem:[#allocation5 + $0x1378] sm:$0xff]  ;;  %v388_v26 = vld [vmem:[#allocation5 + $0x7c0] sm:$0xff] }
  0xf6   :  { %6825 = vmatpush1.bf16.msra.mxu1 %v6824_v44  ;;  %v6748_v44 = vpack.c.bf16 %v763_v38, %v756_v34  ;;  %v826_v34 = vld [vmem:[#allocation5 + $0x1570] sm:$0xff]  ;;  %v833_v38 = vld [vmem:[#allocation5 + $0x15a8] sm:$0xff] }
  0xf7   :  { %6729 = vmatpush1.bf16.msra.mxu0 %v6728_v45  ;;  %6827 = vmatprep.subr.bf16.mxu1 %v6826_v46  ;;  %v6846_v45 = vpack.c.bf16 %v332_v40, %v325_v39  ;;  %v770_v46 = vld [vmem:[#allocation5 + $0x13b0] sm:$0xff]  ;;  %v395_v39 = vld [vmem:[#allocation5 + $0x7f8] sm:$0xff] }
  0xf8   :  { %6731 = vmatprep.subr.bf16.mxu0 %v6730_v50  ;;  %v777_v50 = vld [vmem:[#allocation5 + $0x13e8] sm:$0xff]  ;;  %v402_v40 = vld [vmem:[#allocation5 + $0x830] sm:$0xff] }
  0xfa   :  { %6829 = vmatpush1.bf16.msra.mxu1 %v6828_v56  ;;  %v6752_v56 = vpack.c.bf16 %v777_v50, %v770_v46  ;;  %v840_v46 = vld [vmem:[#allocation5 + $0x15e0] sm:$0xff]  ;;  %v847_v50 = vld [vmem:[#allocation5 + $0x1618] sm:$0xff] }
  0xfb   :  { %6733 = vmatpush1.bf16.msra.mxu0 %v6732_v17  ;;  %6831 = vmatprep.subr.bf16.mxu1 %v6830_v57  ;;  %v6850_v17 = vpack.c.bf16 %v346_v52, %v339_v51  ;;  %v784_v57 = vld [vmem:[#allocation5 + $0x1420] sm:$0xff]  ;;  %v409_v51 = vld [vmem:[#allocation5 + $0x868] sm:$0xff] }
  0xfc   :  { %6735 = vmatprep.subr.bf16.mxu0 %v6734_v61  ;;  %v791_v61 = vld [vmem:[#allocation5 + $0x1458] sm:$0xff]  ;;  %v416_v52 = vld [vmem:[#allocation5 + $0x8a0] sm:$0xff] }
  0xfe   :  { %6833 = vmatpush1.bf16.msra.mxu1 %v6832_v3  ;;  %v6756_v3 = vpack.c.bf16 %v791_v61, %v784_v57  ;;  %v854_v57 = vld [vmem:[#allocation5 + $0x1650] sm:$0xff]  ;;  %v861_v61 = vld [vmem:[#allocation5 + $0x1688] sm:$0xff] }
  0xff   :  { %6737 = vmatpush1.bf16.msra.mxu0 %v6736_v4  ;;  %6835 = vmatprep.subr.bf16.mxu1 %v6834_v5  ;;  %v6854_v4 = vpack.c.bf16 %v360_v63, %v353_v62  ;;  %v798_v5 = vld [vmem:[#allocation5 + $0x1490] sm:$0xff]  ;;  %v423_v62 = vld [vmem:[#allocation5 + $0x8d8] sm:$0xff] }
 0x100   :  { %6739 = vmatprep.subr.bf16.mxu0 %v6738_v9  ;;  %v805_v9 = vld [vmem:[#allocation5 + $0x14c8] sm:$0xff]  ;;  %v430_v63 = vld [vmem:[#allocation5 + $0x910] sm:$0xff] }
 0x102   :  { %6837 = vmatpush1.bf16.msra.mxu1 %v6836_v15  ;;  %v6760_v15 = vpack.c.bf16 %v805_v9, %v798_v5  ;;  %v422_v5 = vld [vmem:[#allocation5 + $0x8d0] sm:$0xff]  ;;  %v437_v9 = vld [vmem:[#allocation5 + $0x948] sm:$0xff] }
 0x103   :  { %6741 = vmatpush1.bf16.msra.mxu0 %v6740_v16  ;;  %6839 = vmatprep.subr.bf16.mxu1 %v6838_v19  ;;  %v6858_v16 = vpack.c.bf16 %v374_v11, %v367_v10  ;;  %v812_v19 = vld [vmem:[#allocation5 + $0x1500] sm:$0xff]  ;;  %v883_v11 = vld [vmem:[#allocation5 + $0x1738] sm:$0xff]  ;;  %v6876_v13 = vpack.c.bf16 %v429_v6, %v422_v5  ;;  %v158_v5 = vld [vmem:[#allocation5 + $0x90] sm:$0xff] }
 0x104   :  { %6743 = vmatprep.subr.bf16.mxu0 %v6742_v24  ;;  %v819_v24 = vld [vmem:[#allocation5 + $0x1538] sm:$0xff]  ;;  %v444_v10 = vld [vmem:[#allocation5 + $0x980] sm:$0xff] }
 0x106   :  { %6841 = vmatpush1.bf16.msra.mxu1 %v6840_v31  ;;  %v6860_v31 = vpack.c.bf16 %v373_v22, %v366_v21  ;;  %v443_v21 = vld [vmem:[#allocation5 + $0x978] sm:$0xff]  ;;  %v6782_v22 = vpack.c.bf16 %v890_v12, %v883_v11  ;;  %v180_v11 = vld [vmem:[#allocation5 + $0x140] sm:$0xff] }
 0x107   :  { %6745 = vmatpush1.bf16.msra.mxu0 %v6744_v32  ;;  %6843 = vmatprep.subr.bf16.mxu1 %v6842_v33  ;;  %v6764_v32 = vpack.c.bf16 %v819_v24, %v812_v19  ;;  %v6862_v33 = vpack.c.bf16 %v388_v26, %v381_v25  ;;  %v436_v19 = vld [vmem:[#allocation5 + $0x940] sm:$0xff]  ;;  %v451_v24 = vld [vmem:[#allocation5 + $0x9b8] sm:$0xff]  ;;  %v458_v25 = vld [vmem:[#allocation5 + $0x9f0] sm:$0xff] }
 0x108   :  { %6747 = vmatprep.subr.bf16.mxu0 %v6746_v37  ;;  %v6766_v37 = vpack.c.bf16 %v834_v28, %v827_v27  ;;  %v897_v26 = vld [vmem:[#allocation5 + $0x17a8] sm:$0xff]  ;;  %v904_v27 = vld [vmem:[#allocation5 + $0x17e0] sm:$0xff]  ;;  %v6880_v28 = vpack.c.bf16 %v443_v21, %v436_v19 }
 0x109   :  { %v172_v19 = vld [vmem:[#allocation5 + $0x100] sm:$0xff] }
 0x10a   :  { %6845 = vmatpush1.bf16.msra.mxu1 %v6844_v43  ;;  %v6864_v43 = vpack.c.bf16 %v387_v36, %v380_v35  ;;  %v6786_v35 = vpack.c.bf16 %v904_v27, %v897_v26  ;;  %v903_v36 = vld [vmem:[#allocation5 + $0x17d8] sm:$0xff]  ;;  %v194_v27 = vld [vmem:[#allocation5 + $0x1b0] sm:$0xff] }
 0x10b   :  { %6749 = vmatpush1.bf16.msra.mxu0 %v6748_v44  ;;  %6847 = vmatprep.subr.bf16.mxu1 %v6846_v45  ;;  %v6768_v44 = vpack.c.bf16 %v833_v38, %v826_v34  ;;  %v6866_v45 = vpack.c.bf16 %v402_v40, %v395_v39  ;;  %v457_v34 = vld [vmem:[#allocation5 + $0x9e8] sm:$0xff]  ;;  %v472_v38 = vld [vmem:[#allocation5 + $0xa60] sm:$0xff]  ;;  %v911_v39 = vld [vmem:[#allocation5 + $0x1818] sm:$0xff] }
 0x10c   :  { %6751 = vmatprep.subr.bf16.mxu0 %v6750_v49  ;;  %v6770_v49 = vpack.c.bf16 %v848_v42, %v841_v41  ;;  %v918_v40 = vld [vmem:[#allocation5 + $0x1850] sm:$0xff]  ;;  %v187_v26 = vld [vmem:[#allocation5 + $0x178] sm:$0xff] }
 0x10e   :  { %6849 = vmatpush1.bf16.msra.mxu1 %v6848_v55  ;;  %v6868_v55 = vpack.c.bf16 %v401_v48, %v394_v47  ;;  %v6790_v47 = vpack.c.bf16 %v918_v40, %v911_v39  ;;  %v917_v48 = vld [vmem:[#allocation5 + $0x1848] sm:$0xff]  ;;  %v208_v40 = vld [vmem:[#allocation5 + $0x220] sm:$0xff] }
 0x10f   :  { %6753 = vmatpush1.bf16.msra.mxu0 %v6752_v56  ;;  %6851 = vmatprep.subr.bf16.mxu1 %v6850_v17  ;;  %v6772_v56 = vpack.c.bf16 %v847_v50, %v840_v46  ;;  %v6870_v17 = vpack.c.bf16 %v416_v52, %v409_v51  ;;  %v471_v46 = vld [vmem:[#allocation5 + $0xa58] sm:$0xff]  ;;  %v486_v50 = vld [vmem:[#allocation5 + $0xad0] sm:$0xff]  ;;  %v145_v51 = vld [vmem:[#allocation5 + $0x28] sm:$0xff] }
 0x110   :  { %6755 = vmatprep.subr.bf16.mxu0 %v6754_v60  ;;  %v152_v52 = vld [vmem:[#allocation5 + $0x60] sm:$0xff]  ;;  %v201_v39 = vld [vmem:[#allocation5 + $0x1e8] sm:$0xff] }
 0x112   :  { %6853 = vmatpush1.bf16.msra.mxu1 %v6852_v2  ;;  %v6872_v2 = vpack.c.bf16 %v415_v59, %v408_v58  ;;  %v7018_v58 = vpack.c.bf16 %v152_v52, %v145_v51  ;;  %v151_v59 = vld [vmem:[#allocation5 + $0x58] sm:$0xff]  ;;  %v222_v52 = vld [vmem:[#allocation5 + $0x290] sm:$0xff] }
 0x113   :  { %6757 = vmatpush1.bf16.msra.mxu0 %v6756_v3  ;;  %6855 = vmatprep.subr.bf16.mxu1 %v6854_v4  ;;  %v6874_v3 = vpack.c.bf16 %v430_v63, %v423_v62  ;;  %v868_v4 = vld [vmem:[#allocation5 + $0x16c0] sm:$0xff]  ;;  %v159_v62 = vld [vmem:[#allocation5 + $0x98] sm:$0xff]  ;;  %v166_v63 = vld [vmem:[#allocation5 + $0xd0] sm:$0xff] }
 0x114   :  { %6759 = vmatprep.subr.bf16.mxu0 %v6758_v8  ;;  %v875_v8 = vld [vmem:[#allocation5 + $0x16f8] sm:$0xff]  ;;  %v7022_v6 = vpack.c.bf16 %v166_v63, %v159_v62  ;;  %v229_v62 = vld [vmem:[#allocation5 + $0x2c8] sm:$0xff]  ;;  %v236_v63 = vld [vmem:[#allocation5 + $0x300] sm:$0xff] }
 0x115   :  { %v215_v51 = vld [vmem:[#allocation5 + $0x258] sm:$0xff] }
 0x116   :  { %6857 = vmatpush1.bf16.msra.mxu1 %v6856_v14  ;;  %v6780_v14 = vpack.c.bf16 %v875_v8, %v868_v4  ;;  %v499_v4 = vld [vmem:[#allocation5 + $0xb38] sm:$0xff] }
 0x117   :  { %6761 = vmatpush1.bf16.msra.mxu0 %v6760_v15  ;;  %6859 = vmatprep.subr.bf16.mxu1 %v6858_v16  ;;  %v6878_v15 = vpack.c.bf16 %v444_v10, %v437_v9  ;;  %v882_v16 = vld [vmem:[#allocation5 + $0x1730] sm:$0xff]  ;;  %v507_v8 = vld [vmem:[#allocation5 + $0xb78] sm:$0xff]  ;;  %v173_v10 = vld [vmem:[#allocation5 + $0x108] sm:$0xff] }
 0x118   :  { %6763 = vmatprep.subr.bf16.mxu0 %v6762_v23  ;;  %v889_v23 = vld [vmem:[#allocation5 + $0x1768] sm:$0xff]  ;;  %v514_v9 = vld [vmem:[#allocation5 + $0xbb0] sm:$0xff]  ;;  %v7026_v21 = vpack.c.bf16 %v180_v11, %v173_v10 }
 0x119   :  { %1310 = vmatmul.mubr.f32.vlgmr.msra.gmra.mrb[2].mxu1 %v9411_v18  ;;  %v855_v18 = vld [vmem:[#allocation5 + $0x1658] sm:$0xff]  ;;  %v250_v10 = vld [vmem:[#allocation5 + $0x370] sm:$0xff] }
 0x11a   :  { %1168 = vmatmul.mubr.f32.vlgmr.msra.gmra.mrb[0].mxu0 %v137_v30  ;;  %6861 = vmatpush1.bf16.msra.mxu1 %v6860_v31  ;;  %v6774_v60 = vpack.c.bf16 %v862_v54, %v855_v18  ;;  %v6784_v30 = vpack.c.bf16 %v889_v23, %v882_v16  ;;  %v6882_v31 = vpack.c.bf16 %v458_v25, %v451_v24  ;;  %v513_v16 = vld [vmem:[#allocation5 + $0xba8] sm:$0xff]  ;;  %v528_v24 = vld [vmem:[#allocation5 + $0xc20] sm:$0xff]  ;;  %v9035_v25 = vld [vmem:[#allocation3 + $0x8] sm:$0xff] }
 0x11b   :  { %6765 = vmatpush1.bf16.msra.mxu0 %v6764_v32  ;;  %6863 = vmatprep.subr.bf16.mxu1 %v6862_v33  ;;  %v896_v32 = vld [vmem:[#allocation5 + $0x17a0] sm:$0xff]  ;;  %v450_v33 = vld [vmem:[#allocation5 + $0x9b0] sm:$0xff]  ;;  %v521_v23 = vld [vmem:[#allocation5 + $0xbe8] sm:$0xff] }
 0x11c   :  { %6767 = vmatprep.subr.bf16.mxu0 %v6766_v37  ;;  %1238 = vmatprep.mubr.f32.mxu0 %v9244_v53  ;;  %v465_v37 = vld [vmem:[#allocation5 + $0xa28] sm:$0xff]  ;;  %v6884_v41 = vpack.c.bf16 %v457_v34, %v450_v33  ;;  %v6788_v42 = vpack.c.bf16 %v903_v36, %v896_v32  ;;  %v520_v32 = vld [vmem:[#allocation5 + $0xbe0] sm:$0xff]  ;;  %v527_v33 = vld [vmem:[#allocation5 + $0xc18] sm:$0xff] }
 0x11d   :  { %1380 = vmatprep.mubr.f32.mxu1 %v9408_v20  ;;  %v6776_v20 = vpack.c.bf16 %v861_v61, %v854_v57  ;;  %v144_v57 = vld [vmem:[#allocation5 + $0x20] sm:$0xff]  ;;  %v186_v34 = vld [vmem:[#allocation5 + $0x170] sm:$0xff]  ;;  %v193_v36 = vld [vmem:[#allocation5 + $0x1a8] sm:$0xff] }
 0x11e   :  { %6865 = vmatpush1.bf16.msra.mxu1 %v6864_v43  ;;  %v6886_v43 = vpack.c.bf16 %v472_v38, %v465_v37  ;;  %v500_v61 = vld [vmem:[#allocation5 + $0xb40] sm:$0xff]  ;;  %v535_v37 = vld [vmem:[#allocation5 + $0xc58] sm:$0xff]  ;;  %v542_v38 = vld [vmem:[#allocation5 + $0xc90] sm:$0xff] }
 0x11f   :  { %6769 = vmatpush1.bf16.msra.mxu0 %v6768_v44  ;;  %6867 = vmatprep.subr.bf16.mxu1 %v6866_v45  ;;  %v910_v44 = vld [vmem:[#allocation5 + $0x1810] sm:$0xff]  ;;  %v464_v45 = vld [vmem:[#allocation5 + $0xa20] sm:$0xff] }
 0x120   :  { %6771 = vmatprep.subr.bf16.mxu0 %v6770_v49  ;;  %v479_v49 = vld [vmem:[#allocation5 + $0xa98] sm:$0xff]  ;;  %v6888_v18 = vpack.c.bf16 %v471_v46, %v464_v45  ;;  %v6792_v54 = vpack.c.bf16 %v917_v48, %v910_v44  ;;  %v534_v44 = vld [vmem:[#allocation5 + $0xc50] sm:$0xff]  ;;  %v541_v45 = vld [vmem:[#allocation5 + $0xc88] sm:$0xff] }
 0x121   :  { %v200_v46 = vld [vmem:[#allocation5 + $0x1e0] sm:$0xff]  ;;  %v207_v48 = vld [vmem:[#allocation5 + $0x218] sm:$0xff] }
 0x122   :  { %6869 = vmatpush1.bf16.msra.mxu1 %v6868_v55  ;;  %v6890_v55 = vpack.c.bf16 %v486_v50, %v479_v49  ;;  %v549_v49 = vld [vmem:[#allocation5 + $0xcc8] sm:$0xff]  ;;  %v556_v50 = vld [vmem:[#allocation5 + $0xd00] sm:$0xff] }
 0x123   :  { %6773 = vmatpush1.bf16.msra.mxu0 %v6772_v56  ;;  %6871 = vmatprep.subr.bf16.mxu1 %v6870_v17  ;;  %v478_v56 = vld [vmem:[#allocation5 + $0xa90] sm:$0xff]  ;;  %v485_v17 = vld [vmem:[#allocation5 + $0xac8] sm:$0xff] }
 0x124   :  { %6775 = vmatprep.subr.bf16.mxu0 %v6774_v60  ;;  %v493_v60 = vld [vmem:[#allocation5 + $0xb08] sm:$0xff]  ;;  %v6892_v1 = vpack.c.bf16 %v485_v17, %v478_v56  ;;  %v548_v56 = vld [vmem:[#allocation5 + $0xcc0] sm:$0xff]  ;;  %v555_v17 = vld [vmem:[#allocation5 + $0xcf8] sm:$0xff] }
 0x126   :  { %6873 = vmatpush1.bf16.msra.mxu1 %v6872_v2  ;;  %v7020_v2 = vpack.c.bf16 %v151_v59, %v144_v57  ;;  %v214_v57 = vld [vmem:[#allocation5 + $0x250] sm:$0xff]  ;;  %v221_v59 = vld [vmem:[#allocation5 + $0x288] sm:$0xff] }
 0x127   :  { %6777 = vmatpush1.bf16.msra.mxu0 %v6776_v20  ;;  %6875 = vmatprep.subr.bf16.mxu1 %v6874_v3  ;;  %v6894_v20 = vpack.c.bf16 %v500_v61, %v493_v60  ;;  %v492_v3 = vld [vmem:[#allocation5 + $0xb00] sm:$0xff]  ;;  %v563_v60 = vld [vmem:[#allocation5 + $0xd38] sm:$0xff]  ;;  %v570_v61 = vld [vmem:[#allocation5 + $0xd70] sm:$0xff] }
 0x128   :  { %6779 = vmatprep.subr.bf16.mxu0 %v6778_v7  ;;  %v165_v7 = vld [vmem:[#allocation5 + $0xc8] sm:$0xff]  ;;  %v6896_v12 = vpack.c.bf16 %v499_v4, %v492_v3  ;;  %v228_v4 = vld [vmem:[#allocation5 + $0x2c0] sm:$0xff] }
 0x129   :  { %v569_v3 = vld [vmem:[#allocation5 + $0xd68] sm:$0xff] }
 0x12a   :  { %6877 = vmatpush1.bf16.msra.mxu1 %v6876_v13  ;;  %v7024_v13 = vpack.c.bf16 %v165_v7, %v158_v5  ;;  %v7042_v5 = vpack.c.bf16 %v236_v63, %v229_v62  ;;  %v577_v7 = vld [vmem:[#allocation5 + $0xda8] sm:$0xff]  ;;  %v306_v62 = vld [vmem:[#allocation5 + $0x530] sm:$0xff] }
 0x12b   :  { %6781 = vmatpush1.bf16.msra.mxu0 %v6780_v14  ;;  %6879 = vmatprep.subr.bf16.mxu1 %v6878_v15  ;;  %v6898_v14 = vpack.c.bf16 %v514_v9, %v507_v8  ;;  %v506_v15 = vld [vmem:[#allocation5 + $0xb70] sm:$0xff]  ;;  %v584_v8 = vld [vmem:[#allocation5 + $0xde0] sm:$0xff]  ;;  %v243_v9 = vld [vmem:[#allocation5 + $0x338] sm:$0xff] }
 0x12c   :  { %6783 = vmatprep.subr.bf16.mxu0 %v6782_v22  ;;  %v179_v22 = vld [vmem:[#allocation5 + $0x138] sm:$0xff] }
 0x12e   :  { %6881 = vmatpush1.bf16.msra.mxu1 %v6880_v28  ;;  %v6900_v28 = vpack.c.bf16 %v513_v16, %v506_v15  ;;  %v583_v15 = vld [vmem:[#allocation5 + $0xdd8] sm:$0xff]  ;;  %v242_v16 = vld [vmem:[#allocation5 + $0x330] sm:$0xff] }
 0x12f   :  { %6785 = vmatpush1.bf16.msra.mxu0 %v6784_v30  ;;  %6883 = vmatprep.subr.bf16.mxu1 %v6882_v31  ;;  %v7028_v30 = vpack.c.bf16 %v179_v22, %v172_v19  ;;  %v6902_v31 = vpack.c.bf16 %v528_v24, %v521_v23  ;;  %v7046_v19 = vpack.c.bf16 %v250_v10, %v243_v9  ;;  %v591_v22 = vld [vmem:[#allocation5 + $0xe18] sm:$0xff]  ;;  %v598_v23 = vld [vmem:[#allocation5 + $0xe50] sm:$0xff]  ;;  %v257_v24 = vld [vmem:[#allocation5 + $0x3a8] sm:$0xff] }
 0x130   :  { %6787 = vmatprep.subr.bf16.mxu0 %v6786_v35  ;;  %v7030_v35 = vpack.c.bf16 %v194_v27, %v187_v26 }
 0x132   :  { %6885 = vmatpush1.bf16.msra.mxu1 %v6884_v41  ;;  %v6904_v41 = vpack.c.bf16 %v527_v33, %v520_v32  ;;  %v256_v32 = vld [vmem:[#allocation5 + $0x3a0] sm:$0xff] }
 0x133   :  { %6789 = vmatpush1.bf16.msra.mxu0 %v6788_v42  ;;  %6887 = vmatprep.subr.bf16.mxu1 %v6886_v43  ;;  %v7032_v42 = vpack.c.bf16 %v193_v36, %v186_v34  ;;  %v6906_v43 = vpack.c.bf16 %v542_v38, %v535_v37  ;;  %v263_v34 = vld [vmem:[#allocation5 + $0x3d8] sm:$0xff]  ;;  %v612_v36 = vld [vmem:[#allocation5 + $0xec0] sm:$0xff]  ;;  %v278_v38 = vld [vmem:[#allocation5 + $0x450] sm:$0xff] }
 0x134   :  { %6791 = vmatprep.subr.bf16.mxu0 %v6790_v47  ;;  %v7034_v47 = vpack.c.bf16 %v208_v40, %v201_v39  ;;  %v271_v37 = vld [vmem:[#allocation5 + $0x418] sm:$0xff]  ;;  %v7052_v40 = vpack.c.bf16 %v263_v34, %v256_v32  ;;  %v333_v32 = vld [vmem:[#allocation5 + $0x608] sm:$0xff]  ;;  %v682_v34 = vld [vmem:[#allocation5 + $0x10f0] sm:$0xff] }
 0x136   :  { %6889 = vmatpush1.bf16.msra.mxu1 %v6888_v18  ;;  %v6908_v18 = vpack.c.bf16 %v541_v45, %v534_v44  ;;  %v270_v44 = vld [vmem:[#allocation5 + $0x410] sm:$0xff]  ;;  %v7054_v45 = vpack.c.bf16 %v278_v38, %v271_v37 }
 0x137   :  { %6793 = vmatpush1.bf16.msra.mxu0 %v6792_v54  ;;  %6891 = vmatprep.subr.bf16.mxu1 %v6890_v55  ;;  %v7036_v54 = vpack.c.bf16 %v207_v48, %v200_v46  ;;  %v6910_v55 = vpack.c.bf16 %v556_v50, %v549_v49  ;;  %v277_v46 = vld [vmem:[#allocation5 + $0x448] sm:$0xff]  ;;  %v626_v48 = vld [vmem:[#allocation5 + $0xf30] sm:$0xff]  ;;  %v9421_v49 = vld [vmem:[#allocation3 + $0x10] sm:$0xff] }
 0x138   :  { %7019 = vmatprep.subr.bf16.mxu0 %v7018_v58  ;;  %v7038_v58 = vpack.c.bf16 %v222_v52, %v215_v51  ;;  %v285_v50 = vld [vmem:[#allocation5 + $0x488] sm:$0xff]  ;;  %v292_v51 = vld [vmem:[#allocation5 + $0x4c0] sm:$0xff] }
 0x13a   :  { %1239 = vmatmul.mubr.f32.vlgmr.msra.gmra.mrb[0].mxu0 %v139_v0  ;;  %6893 = vmatpush1.bf16.msra.mxu1 %v6892_v1  ;;  %v6912_v0 = vpack.c.bf16 %v555_v17, %v548_v56  ;;  %v7040_v1 = vpack.c.bf16 %v221_v59, %v214_v57  ;;  %v625_v56 = vld [vmem:[#allocation5 + $0xf28] sm:$0xff]  ;;  %v284_v17 = vld [vmem:[#allocation5 + $0x480] sm:$0xff]  ;;  %v7058_v57 = vpack.c.bf16 %v292_v51, %v285_v50 }
 0x13b   :  { %7021 = vmatpush1.bf16.msra.mxu0 %v7020_v2  ;;  %6895 = vmatprep.subr.bf16.mxu1 %v6894_v20  ;;  %v6914_v2 = vpack.c.bf16 %v570_v61, %v563_v60  ;;  %v562_v20 = vld [vmem:[#allocation5 + $0xd30] sm:$0xff]  ;;  %v633_v59 = vld [vmem:[#allocation5 + $0xf68] sm:$0xff]  ;;  %v640_v60 = vld [vmem:[#allocation5 + $0xfa0] sm:$0xff] }
 0x13c   :  { %7023 = vmatprep.subr.bf16.mxu0 %v7022_v6  ;;  %1593 = vmatprep.mubr.f32.mxu0 %v9035_v25  ;;  %v235_v6 = vld [vmem:[#allocation5 + $0x2f8] sm:$0xff]  ;;  %v6916_v11 = vpack.c.bf16 %v569_v3, %v562_v20  ;;  %v264_v25 = vld [vmem:[#allocation5 + $0x3e0] sm:$0xff]  ;;  %v298_v20 = vld [vmem:[#allocation5 + $0x4f0] sm:$0xff] }
 0x13d   :  { %v7050_v33 = vpack.c.bf16 %v264_v25, %v257_v24  ;;  %v299_v61 = vld [vmem:[#allocation5 + $0x4f8] sm:$0xff] }
 0x13e   :  { %6897 = vmatpush1.bf16.msra.mxu1 %v6896_v12  ;;  %v7044_v12 = vpack.c.bf16 %v235_v6, %v228_v4  ;;  %v7062_v3 = vpack.c.bf16 %v306_v62, %v299_v61  ;;  %v305_v4 = vld [vmem:[#allocation5 + $0x528] sm:$0xff]  ;;  %v654_v6 = vld [vmem:[#allocation5 + $0x1010] sm:$0xff] }
 0x13f   :  { %7025 = vmatpush1.bf16.msra.mxu0 %v7024_v13  ;;  %6899 = vmatprep.subr.bf16.mxu1 %v6898_v14  ;;  %v6918_v13 = vpack.c.bf16 %v584_v8, %v577_v7  ;;  %v576_v14 = vld [vmem:[#allocation5 + $0xda0] sm:$0xff]  ;;  %v313_v7 = vld [vmem:[#allocation5 + $0x568] sm:$0xff]  ;;  %v7064_v10 = vpack.c.bf16 %v305_v4, %v298_v20  ;;  %v375_v20 = vld [vmem:[#allocation5 + $0x758] sm:$0xff] }
 0x140   :  { %7027 = vmatprep.subr.bf16.mxu0 %v7026_v21  ;;  %v249_v21 = vld [vmem:[#allocation5 + $0x368] sm:$0xff]  ;;  %v6920_v26 = vpack.c.bf16 %v583_v15, %v576_v14  ;;  %v320_v8 = vld [vmem:[#allocation5 + $0x5a0] sm:$0xff] }
 0x141   :  { %v7048_v27 = vpack.c.bf16 %v249_v21, %v242_v16  ;;  %v312_v14 = vld [vmem:[#allocation5 + $0x560] sm:$0xff]  ;;  %v7066_v15 = vpack.c.bf16 %v320_v8, %v313_v7  ;;  %v319_v16 = vld [vmem:[#allocation5 + $0x598] sm:$0xff] }
 0x142   :  { %6901 = vmatpush1.bf16.msra.mxu1 %v6900_v28  ;;  %v6922_v28 = vpack.c.bf16 %v598_v23, %v591_v22  ;;  %v668_v21 = vld [vmem:[#allocation5 + $0x1080] sm:$0xff]  ;;  %v327_v22 = vld [vmem:[#allocation5 + $0x5d8] sm:$0xff]  ;;  %v334_v23 = vld [vmem:[#allocation5 + $0x610] sm:$0xff]  ;;  %v7068_v25 = vpack.c.bf16 %v319_v16, %v312_v14 }
 0x143   :  { %7029 = vmatpush1.bf16.msra.mxu0 %v7028_v30  ;;  %6903 = vmatprep.subr.bf16.mxu1 %v6902_v31  ;;  %v590_v30 = vld [vmem:[#allocation5 + $0xe10] sm:$0xff]  ;;  %v597_v31 = vld [vmem:[#allocation5 + $0xe48] sm:$0xff]  ;;  %v724_v4 = vld [vmem:[#allocation5 + $0x1240] sm:$0xff] }
 0x144   :  { %7031 = vmatprep.subr.bf16.mxu0 %v7030_v35  ;;  %v605_v35 = vld [vmem:[#allocation5 + $0xe88] sm:$0xff]  ;;  %v6924_v39 = vpack.c.bf16 %v597_v31, %v590_v30  ;;  %v326_v30 = vld [vmem:[#allocation5 + $0x5d0] sm:$0xff]  ;;  %v7070_v31 = vpack.c.bf16 %v334_v23, %v327_v22 }
 0x145   :  { %v7072_v38 = vpack.c.bf16 %v333_v32, %v326_v30  ;;  %v389_v14 = vld [vmem:[#allocation5 + $0x7c8] sm:$0xff]  ;;  %v738_v16 = vld [vmem:[#allocation5 + $0x12b0] sm:$0xff] }
 0x146   :  { %6905 = vmatpush1.bf16.msra.mxu1 %v6904_v41  ;;  %v6926_v41 = vpack.c.bf16 %v612_v36, %v605_v35  ;;  %v341_v35 = vld [vmem:[#allocation5 + $0x648] sm:$0xff]  ;;  %v348_v36 = vld [vmem:[#allocation5 + $0x680] sm:$0xff] }
 0x147   :  { %7033 = vmatpush1.bf16.msra.mxu0 %v7032_v42  ;;  %6907 = vmatprep.subr.bf16.mxu1 %v6906_v43  ;;  %v604_v42 = vld [vmem:[#allocation5 + $0xe80] sm:$0xff]  ;;  %v611_v43 = vld [vmem:[#allocation5 + $0xeb8] sm:$0xff]  ;;  %v9425_v22 = vld [vmem:[#allocation3] sm:$0xff] }
 0x148   :  { %7035 = vmatprep.subr.bf16.mxu0 %v7034_v47  ;;  %v619_v47 = vld [vmem:[#allocation5 + $0xef8] sm:$0xff]  ;;  %v6928_v52 = vpack.c.bf16 %v611_v43, %v604_v42  ;;  %v340_v42 = vld [vmem:[#allocation5 + $0x640] sm:$0xff]  ;;  %v7074_v43 = vpack.c.bf16 %v348_v36, %v341_v35  ;;  %v745_v32 = vld [vmem:[#allocation5 + $0x12e8] sm:$0xff] }
 0x149   :  { %v411_v35 = vld [vmem:[#allocation5 + $0x878] sm:$0xff]  ;;  %v418_v36 = vld [vmem:[#allocation5 + $0x8b0] sm:$0xff] }
 0x14a   :  { %6909 = vmatpush1.bf16.msra.mxu1 %v6908_v18  ;;  %v7056_v18 = vpack.c.bf16 %v277_v46, %v270_v44  ;;  %v347_v44 = vld [vmem:[#allocation5 + $0x678] sm:$0xff]  ;;  %v696_v46 = vld [vmem:[#allocation5 + $0x1160] sm:$0xff] }
 0x14b   :  { %7037 = vmatpush1.bf16.msra.mxu0 %v7036_v54  ;;  %6911 = vmatprep.subr.bf16.mxu1 %v6910_v55  ;;  %v6930_v54 = vpack.c.bf16 %v626_v48, %v619_v47  ;;  %v618_v55 = vld [vmem:[#allocation5 + $0xef0] sm:$0xff]  ;;  %v355_v47 = vld [vmem:[#allocation5 + $0x6b8] sm:$0xff]  ;;  %v7076_v51 = vpack.c.bf16 %v347_v44, %v340_v42  ;;  %v417_v44 = vld [vmem:[#allocation5 + $0x8a8] sm:$0xff] }
 0x14c   :  { %7039 = vmatprep.subr.bf16.mxu0 %v7038_v58  ;;  %v291_v58 = vld [vmem:[#allocation5 + $0x4b8] sm:$0xff]  ;;  %v6932_v63 = vpack.c.bf16 %v625_v56, %v618_v55  ;;  %v362_v48 = vld [vmem:[#allocation5 + $0x6f0] sm:$0xff] }
 0x14d   :  { %v354_v55 = vld [vmem:[#allocation5 + $0x6b0] sm:$0xff]  ;;  %v7078_v56 = vpack.c.bf16 %v362_v48, %v355_v47  ;;  %v425_v47 = vld [vmem:[#allocation5 + $0x8e8] sm:$0xff]  ;;  %v432_v48 = vld [vmem:[#allocation5 + $0x920] sm:$0xff] }
 0x14e   :  { %6913 = vmatpush1.bf16.msra.mxu1 %v6912_v0  ;;  %v7060_v0 = vpack.c.bf16 %v291_v58, %v284_v17  ;;  %v361_v17 = vld [vmem:[#allocation5 + $0x6e8] sm:$0xff]  ;;  %v710_v58 = vld [vmem:[#allocation5 + $0x11d0] sm:$0xff] }
 0x14f   :  { %7041 = vmatpush1.bf16.msra.mxu0 %v7040_v1  ;;  %6915 = vmatprep.subr.bf16.mxu1 %v6914_v2  ;;  %v632_v1 = vld [vmem:[#allocation5 + $0xf60] sm:$0xff]  ;;  %v639_v2 = vld [vmem:[#allocation5 + $0xf98] sm:$0xff]  ;;  %v7080_v62 = vpack.c.bf16 %v361_v17, %v354_v55  ;;  %v410_v42 = vld [vmem:[#allocation5 + $0x870] sm:$0xff] }
 0x150   :  { %7043 = vmatprep.subr.bf16.mxu0 %v7042_v5  ;;  %v647_v5 = vld [vmem:[#allocation5 + $0xfd8] sm:$0xff]  ;;  %v6936_v9 = vpack.c.bf16 %v639_v2, %v632_v1  ;;  %v368_v1 = vld [vmem:[#allocation5 + $0x720] sm:$0xff] }
 0x151   :  { %v7084_v8 = vpack.c.bf16 %v375_v20, %v368_v1  ;;  %v424_v55 = vld [vmem:[#allocation5 + $0x8e0] sm:$0xff]  ;;  %v431_v17 = vld [vmem:[#allocation5 + $0x918] sm:$0xff]  ;;  %v438_v1 = vld [vmem:[#allocation5 + $0x950] sm:$0xff] }
 0x152   :  { %6917 = vmatpush1.bf16.msra.mxu1 %v6916_v11  ;;  %v6938_v11 = vpack.c.bf16 %v654_v6, %v647_v5  ;;  %v383_v5 = vld [vmem:[#allocation5 + $0x798] sm:$0xff]  ;;  %v390_v6 = vld [vmem:[#allocation5 + $0x7d0] sm:$0xff]  ;;  %v445_v20 = vld [vmem:[#allocation5 + $0x988] sm:$0xff] }
 0x153   :  { %7045 = vmatpush1.bf16.msra.mxu0 %v7044_v12  ;;  %6919 = vmatprep.subr.bf16.mxu1 %v6918_v13  ;;  %v646_v12 = vld [vmem:[#allocation5 + $0xfd0] sm:$0xff]  ;;  %v653_v13 = vld [vmem:[#allocation5 + $0x1008] sm:$0xff] }
 0x154   :  { %7047 = vmatprep.subr.bf16.mxu0 %v7046_v19  ;;  %v661_v19 = vld [vmem:[#allocation5 + $0x1048] sm:$0xff]  ;;  %v6940_v24 = vpack.c.bf16 %v653_v13, %v646_v12  ;;  %v382_v12 = vld [vmem:[#allocation5 + $0x790] sm:$0xff]  ;;  %v7086_v13 = vpack.c.bf16 %v390_v6, %v383_v5  ;;  %v460_v6 = vld [vmem:[#allocation5 + $0xa00] sm:$0xff] }
 0x155   :  { %v453_v5 = vld [vmem:[#allocation5 + $0x9c8] sm:$0xff] }
 0x156   :  { %6921 = vmatpush1.bf16.msra.mxu1 %v6920_v26  ;;  %v6942_v26 = vpack.c.bf16 %v668_v21, %v661_v19  ;;  %v397_v19 = vld [vmem:[#allocation5 + $0x808] sm:$0xff]  ;;  %v404_v21 = vld [vmem:[#allocation5 + $0x840] sm:$0xff] }
 0x157   :  { %7049 = vmatpush1.bf16.msra.mxu0 %v7048_v27  ;;  %6923 = vmatprep.subr.bf16.mxu1 %v6922_v28  ;;  %v660_v27 = vld [vmem:[#allocation5 + $0x1040] sm:$0xff]  ;;  %v667_v28 = vld [vmem:[#allocation5 + $0x1078] sm:$0xff]  ;;  %v7090_v30 = vpack.c.bf16 %v404_v21, %v397_v19  ;;  %v474_v21 = vld [vmem:[#allocation5 + $0xa70] sm:$0xff] }
 0x158   :  { %7051 = vmatprep.subr.bf16.mxu0 %v7050_v33  ;;  %v675_v33 = vld [vmem:[#allocation5 + $0x10b8] sm:$0xff]  ;;  %v6944_v37 = vpack.c.bf16 %v667_v28, %v660_v27  ;;  %v737_v27 = vld [vmem:[#allocation5 + $0x12a8] sm:$0xff]  ;;  %v396_v28 = vld [vmem:[#allocation5 + $0x800] sm:$0xff] }
 0x159   :  { %1381 = vmatmul.mubr.f32.vlgmr.msra.gmra.mrb[2].mxu1 %v9421_v49  ;;  %v467_v19 = vld [vmem:[#allocation5 + $0xa38] sm:$0xff] }
 0x15a   :  { %6925 = vmatpush1.bf16.msra.mxu1 %v6924_v39  ;;  %1451 = vmatprep.mubr.f32.mxu1 %v9415_v29  ;;  %v6934_v29 = vpack.c.bf16 %v640_v60, %v633_v59  ;;  %v6946_v39 = vpack.c.bf16 %v682_v34, %v675_v33  ;;  %v369_v59 = vld [vmem:[#allocation5 + $0x728] sm:$0xff]  ;;  %v376_v60 = vld [vmem:[#allocation5 + $0x760] sm:$0xff] }
 0x15b   :  { %7053 = vmatpush1.bf16.msra.mxu0 %v7052_v40  ;;  %6927 = vmatprep.subr.bf16.mxu1 %v6926_v41  ;;  %v674_v40 = vld [vmem:[#allocation5 + $0x10b0] sm:$0xff]  ;;  %v681_v41 = vld [vmem:[#allocation5 + $0x10e8] sm:$0xff]  ;;  %v7082_v2 = vpack.c.bf16 %v376_v60, %v369_v59  ;;  %v752_v33 = vld [vmem:[#allocation5 + $0x1320] sm:$0xff] }
 0x15c   :  { %7055 = vmatprep.subr.bf16.mxu0 %v7054_v45  ;;  %v689_v45 = vld [vmem:[#allocation5 + $0x1128] sm:$0xff]  ;;  %v6948_v50 = vpack.c.bf16 %v681_v41, %v674_v40  ;;  %v9428_v34 = vld [vmem:[#allocation3 + $0x18] sm:$0xff]  ;;  %v751_v41 = vld [vmem:[#allocation5 + $0x1318] sm:$0xff] }
 0x15d   :  { %v744_v40 = vld [vmem:[#allocation5 + $0x12e0] sm:$0xff]  ;;  %v439_v59 = vld [vmem:[#allocation5 + $0x958] sm:$0xff]  ;;  %v446_v60 = vld [vmem:[#allocation5 + $0x990] sm:$0xff] }
 0x15e   :  { %6929 = vmatpush1.bf16.msra.mxu1 %v6928_v52  ;;  %v6950_v52 = vpack.c.bf16 %v696_v46, %v689_v45  ;;  %v759_v45 = vld [vmem:[#allocation5 + $0x1358] sm:$0xff]  ;;  %v766_v46 = vld [vmem:[#allocation5 + $0x1390] sm:$0xff] }
 0x15f   :  { %7057 = vmatpush1.bf16.msra.mxu0 %v7056_v18  ;;  %6931 = vmatprep.subr.bf16.mxu1 %v6930_v54  ;;  %v688_v18 = vld [vmem:[#allocation5 + $0x1120] sm:$0xff]  ;;  %v695_v54 = vld [vmem:[#allocation5 + $0x1158] sm:$0xff] }
 0x160   :  { %7059 = vmatprep.subr.bf16.mxu0 %v7058_v57  ;;  %v703_v57 = vld [vmem:[#allocation5 + $0x1198] sm:$0xff]  ;;  %v6952_v61 = vpack.c.bf16 %v695_v54, %v688_v18  ;;  %v758_v18 = vld [vmem:[#allocation5 + $0x1350] sm:$0xff]  ;;  %v765_v54 = vld [vmem:[#allocation5 + $0x1388] sm:$0xff] }
 0x162   :  { %6933 = vmatpush1.bf16.msra.mxu1 %v6932_v63  ;;  %v6954_v63 = vpack.c.bf16 %v710_v58, %v703_v57  ;;  %v773_v57 = vld [vmem:[#allocation5 + $0x13c8] sm:$0xff]  ;;  %v780_v58 = vld [vmem:[#allocation5 + $0x1400] sm:$0xff] }
 0x163   :  { %7061 = vmatpush1.bf16.msra.mxu0 %v7060_v0  ;;  %6935 = vmatprep.subr.bf16.mxu1 %v6934_v29  ;;  %v702_v0 = vld [vmem:[#allocation5 + $0x1190] sm:$0xff]  ;;  %v709_v29 = vld [vmem:[#allocation5 + $0x11c8] sm:$0xff] }
 0x164   :  { %7063 = vmatprep.subr.bf16.mxu0 %v7062_v3  ;;  %v717_v3 = vld [vmem:[#allocation5 + $0x1208] sm:$0xff]  ;;  %v6956_v7 = vpack.c.bf16 %v709_v29, %v702_v0  ;;  %v772_v0 = vld [vmem:[#allocation5 + $0x13c0] sm:$0xff]  ;;  %v779_v29 = vld [vmem:[#allocation5 + $0x13f8] sm:$0xff] }
 0x166   :  { %6937 = vmatpush1.bf16.msra.mxu1 %v6936_v9  ;;  %v6958_v9 = vpack.c.bf16 %v724_v4, %v717_v3  ;;  %v787_v3 = vld [vmem:[#allocation5 + $0x1438] sm:$0xff]  ;;  %v794_v4 = vld [vmem:[#allocation5 + $0x1470] sm:$0xff] }
 0x167   :  { %7065 = vmatpush1.bf16.msra.mxu0 %v7064_v10  ;;  %6939 = vmatprep.subr.bf16.mxu1 %v6938_v11  ;;  %v716_v10 = vld [vmem:[#allocation5 + $0x1200] sm:$0xff]  ;;  %v723_v11 = vld [vmem:[#allocation5 + $0x1238] sm:$0xff] }
 0x168   :  { %7067 = vmatprep.subr.bf16.mxu0 %v7066_v15  ;;  %v731_v15 = vld [vmem:[#allocation5 + $0x1278] sm:$0xff]  ;;  %v6960_v23 = vpack.c.bf16 %v723_v11, %v716_v10  ;;  %v786_v10 = vld [vmem:[#allocation5 + $0x1430] sm:$0xff]  ;;  %v793_v11 = vld [vmem:[#allocation5 + $0x1468] sm:$0xff] }
 0x16a   :  { %6941 = vmatpush1.bf16.msra.mxu1 %v6940_v24  ;;  %v7088_v24 = vpack.c.bf16 %v389_v14, %v382_v12  ;;  %v452_v12 = vld [vmem:[#allocation5 + $0x9c0] sm:$0xff]  ;;  %v459_v14 = vld [vmem:[#allocation5 + $0x9f8] sm:$0xff] }
 0x16b   :  { %7069 = vmatpush1.bf16.msra.mxu0 %v7068_v25  ;;  %6943 = vmatprep.subr.bf16.mxu1 %v6942_v26  ;;  %v6962_v25 = vpack.c.bf16 %v738_v16, %v731_v15  ;;  %v730_v26 = vld [vmem:[#allocation5 + $0x1270] sm:$0xff]  ;;  %v801_v15 = vld [vmem:[#allocation5 + $0x14a8] sm:$0xff]  ;;  %v808_v16 = vld [vmem:[#allocation5 + $0x14e0] sm:$0xff] }
 0x16c   :  { %7071 = vmatprep.subr.bf16.mxu0 %v7070_v31  ;;  %v403_v31 = vld [vmem:[#allocation5 + $0x838] sm:$0xff] }
 0x16e   :  { %6945 = vmatpush1.bf16.msra.mxu1 %v6944_v37  ;;  %v6964_v37 = vpack.c.bf16 %v737_v27, %v730_v26  ;;  %v800_v26 = vld [vmem:[#allocation5 + $0x14a0] sm:$0xff]  ;;  %v807_v27 = vld [vmem:[#allocation5 + $0x14d8] sm:$0xff] }
 0x16f   :  { %7073 = vmatpush1.bf16.msra.mxu0 %v7072_v38  ;;  %6947 = vmatprep.subr.bf16.mxu1 %v6946_v39  ;;  %v7092_v38 = vpack.c.bf16 %v403_v31, %v396_v28  ;;  %v6966_v39 = vpack.c.bf16 %v752_v33, %v745_v32  ;;  %v466_v28 = vld [vmem:[#allocation5 + $0xa30] sm:$0xff]  ;;  %v473_v31 = vld [vmem:[#allocation5 + $0xa68] sm:$0xff]  ;;  %v815_v32 = vld [vmem:[#allocation5 + $0x1518] sm:$0xff] }
 0x170   :  { %7075 = vmatprep.subr.bf16.mxu0 %v7074_v43  ;;  %v7094_v43 = vpack.c.bf16 %v418_v36, %v411_v35  ;;  %v822_v33 = vld [vmem:[#allocation5 + $0x1550] sm:$0xff]  ;;  %v481_v35 = vld [vmem:[#allocation5 + $0xaa8] sm:$0xff]  ;;  %v488_v36 = vld [vmem:[#allocation5 + $0xae0] sm:$0xff] }
 0x172   :  { %6949 = vmatpush1.bf16.msra.mxu1 %v6948_v50  ;;  %v6968_v50 = vpack.c.bf16 %v751_v41, %v744_v40  ;;  %v814_v40 = vld [vmem:[#allocation5 + $0x1510] sm:$0xff]  ;;  %v821_v41 = vld [vmem:[#allocation5 + $0x1548] sm:$0xff] }
 0x173   :  { %7077 = vmatpush1.bf16.msra.mxu0 %v7076_v51  ;;  %6951 = vmatprep.subr.bf16.mxu1 %v6950_v52  ;;  %v7096_v51 = vpack.c.bf16 %v417_v44, %v410_v42  ;;  %v6970_v52 = vpack.c.bf16 %v766_v46, %v759_v45  ;;  %v480_v42 = vld [vmem:[#allocation5 + $0xaa0] sm:$0xff]  ;;  %v487_v44 = vld [vmem:[#allocation5 + $0xad8] sm:$0xff]  ;;  %v829_v45 = vld [vmem:[#allocation5 + $0x1588] sm:$0xff] }
 0x174   :  { %7079 = vmatprep.subr.bf16.mxu0 %v7078_v56  ;;  %v7098_v56 = vpack.c.bf16 %v432_v48, %v425_v47  ;;  %v836_v46 = vld [vmem:[#allocation5 + $0x15c0] sm:$0xff]  ;;  %v495_v47 = vld [vmem:[#allocation5 + $0xb18] sm:$0xff]  ;;  %v502_v48 = vld [vmem:[#allocation5 + $0xb50] sm:$0xff] }
 0x176   :  { %6953 = vmatpush1.bf16.msra.mxu1 %v6952_v61  ;;  %v6972_v61 = vpack.c.bf16 %v765_v54, %v758_v18  ;;  %v828_v18 = vld [vmem:[#allocation5 + $0x1580] sm:$0xff]  ;;  %v835_v54 = vld [vmem:[#allocation5 + $0x15b8] sm:$0xff] }
 0x177   :  { %7081 = vmatpush1.bf16.msra.mxu0 %v7080_v62  ;;  %6955 = vmatprep.subr.bf16.mxu1 %v6954_v63  ;;  %v7100_v62 = vpack.c.bf16 %v431_v17, %v424_v55  ;;  %v6974_v63 = vpack.c.bf16 %v780_v58, %v773_v57  ;;  %v494_v55 = vld [vmem:[#allocation5 + $0xb10] sm:$0xff]  ;;  %v501_v17 = vld [vmem:[#allocation5 + $0xb48] sm:$0xff]  ;;  %v843_v57 = vld [vmem:[#allocation5 + $0x15f8] sm:$0xff] }
 0x178   :  { %7083 = vmatprep.subr.bf16.mxu0 %v7082_v2  ;;  %v7102_v2 = vpack.c.bf16 %v446_v60, %v439_v59  ;;  %v850_v58 = vld [vmem:[#allocation5 + $0x1630] sm:$0xff]  ;;  %v9431_v59 = vld [vmem:[#allocation3 + $0x20] sm:$0xff] }
 0x179   :  { %v509_v60 = vld [vmem:[#allocation5 + $0xb88] sm:$0xff] }
 0x17a   :  { %6957 = vmatpush1.bf16.msra.mxu1 %v6956_v7  ;;  %1594 = vmatmul.mubr.f32.vlgmr.msra.gmra.mrb[2].mxu0 %v9425_v22  ;;  %v6976_v7 = vpack.c.bf16 %v779_v29, %v772_v0  ;;  %v6994_v0 = vpack.c.bf16 %v850_v58, %v843_v57  ;;  %v842_v29 = vld [vmem:[#allocation5 + $0x15f0] sm:$0xff]  ;;  %v571_v58 = vld [vmem:[#allocation5 + $0xd78] sm:$0xff] }
 0x17b   :  { %7085 = vmatpush1.bf16.msra.mxu0 %v7084_v8  ;;  %6959 = vmatprep.subr.bf16.mxu1 %v6958_v9  ;;  %v7104_v8 = vpack.c.bf16 %v445_v20, %v438_v1  ;;  %v6978_v9 = vpack.c.bf16 %v794_v4, %v787_v3  ;;  %v849_v1 = vld [vmem:[#allocation5 + $0x1628] sm:$0xff]  ;;  %v515_v3 = vld [vmem:[#allocation5 + $0xbb8] sm:$0xff] }
 0x17c   :  { %7087 = vmatprep.subr.bf16.mxu0 %v7086_v13  ;;  %1664 = vmatprep.mubr.f32.mxu0 %v9428_v34  ;;  %v7106_v13 = vpack.c.bf16 %v460_v6, %v453_v5  ;;  %v857_v4 = vld [vmem:[#allocation5 + $0x1668] sm:$0xff]  ;;  %v864_v5 = vld [vmem:[#allocation5 + $0x16a0] sm:$0xff]  ;;  %v523_v6 = vld [vmem:[#allocation5 + $0xbf8] sm:$0xff] }
 0x17e   :  { %6961 = vmatpush1.bf16.msra.mxu1 %v6960_v23  ;;  %v6980_v23 = vpack.c.bf16 %v793_v11, %v786_v10  ;;  %v6998_v10 = vpack.c.bf16 %v864_v5, %v857_v4  ;;  %v856_v11 = vld [vmem:[#allocation5 + $0x1660] sm:$0xff]  ;;  %v578_v4 = vld [vmem:[#allocation5 + $0xdb0] sm:$0xff] }
 0x17f   :  { %7089 = vmatpush1.bf16.msra.mxu0 %v7088_v24  ;;  %6963 = vmatprep.subr.bf16.mxu1 %v6962_v25  ;;  %v7108_v24 = vpack.c.bf16 %v459_v14, %v452_v12  ;;  %v6982_v25 = vpack.c.bf16 %v808_v16, %v801_v15  ;;  %v863_v12 = vld [vmem:[#allocation5 + $0x1698] sm:$0xff]  ;;  %v529_v15 = vld [vmem:[#allocation5 + $0xc28] sm:$0xff] }
 0x180   :  { %7091 = vmatprep.subr.bf16.mxu0 %v7090_v30  ;;  %v7110_v30 = vpack.c.bf16 %v474_v21, %v467_v19  ;;  %v871_v16 = vld [vmem:[#allocation5 + $0x16d8] sm:$0xff]  ;;  %v878_v19 = vld [vmem:[#allocation5 + $0x1710] sm:$0xff]  ;;  %v537_v21 = vld [vmem:[#allocation5 + $0xc68] sm:$0xff] }
 0x182   :  { %6965 = vmatpush1.bf16.msra.mxu1 %v6964_v37  ;;  %v6984_v37 = vpack.c.bf16 %v807_v27, %v800_v26  ;;  %v7002_v26 = vpack.c.bf16 %v878_v19, %v871_v16  ;;  %v870_v27 = vld [vmem:[#allocation5 + $0x16d0] sm:$0xff]  ;;  %v153_v16 = vld [vmem:[#allocation5 + $0x68] sm:$0xff] }
 0x183   :  { %7093 = vmatpush1.bf16.msra.mxu0 %v7092_v38  ;;  %6967 = vmatprep.subr.bf16.mxu1 %v6966_v39  ;;  %v7112_v38 = vpack.c.bf16 %v473_v31, %v466_v28  ;;  %v6986_v39 = vpack.c.bf16 %v822_v33, %v815_v32  ;;  %v877_v28 = vld [vmem:[#allocation5 + $0x1708] sm:$0xff]  ;;  %v543_v32 = vld [vmem:[#allocation5 + $0xc98] sm:$0xff] }
 0x184   :  { %7095 = vmatprep.subr.bf16.mxu0 %v7094_v43  ;;  %v7114_v43 = vpack.c.bf16 %v488_v36, %v481_v35  ;;  %v885_v33 = vld [vmem:[#allocation5 + $0x1748] sm:$0xff]  ;;  %v892_v35 = vld [vmem:[#allocation5 + $0x1780] sm:$0xff]  ;;  %v551_v36 = vld [vmem:[#allocation5 + $0xcd8] sm:$0xff] }
 0x186   :  { %6969 = vmatpush1.bf16.msra.mxu1 %v6968_v50  ;;  %v6988_v50 = vpack.c.bf16 %v821_v41, %v814_v40  ;;  %v7006_v40 = vpack.c.bf16 %v892_v35, %v885_v33  ;;  %v884_v41 = vld [vmem:[#allocation5 + $0x1740] sm:$0xff]  ;;  %v167_v33 = vld [vmem:[#allocation5 + $0xd8] sm:$0xff] }
 0x187   :  { %7097 = vmatpush1.bf16.msra.mxu0 %v7096_v51  ;;  %6971 = vmatprep.subr.bf16.mxu1 %v6970_v52  ;;  %v7116_v51 = vpack.c.bf16 %v487_v44, %v480_v42  ;;  %v6990_v52 = vpack.c.bf16 %v836_v46, %v829_v45  ;;  %v891_v42 = vld [vmem:[#allocation5 + $0x1778] sm:$0xff]  ;;  %v557_v45 = vld [vmem:[#allocation5 + $0xd08] sm:$0xff] }
 0x188   :  { %7099 = vmatprep.subr.bf16.mxu0 %v7098_v56  ;;  %v7118_v56 = vpack.c.bf16 %v502_v48, %v495_v47  ;;  %v899_v46 = vld [vmem:[#allocation5 + $0x17b8] sm:$0xff]  ;;  %v906_v47 = vld [vmem:[#allocation5 + $0x17f0] sm:$0xff]  ;;  %v565_v48 = vld [vmem:[#allocation5 + $0xd48] sm:$0xff] }
 0x18a   :  { %6973 = vmatpush1.bf16.msra.mxu1 %v6972_v61  ;;  %v516_v61 = vld [vmem:[#allocation5 + $0xbc0] sm:$0xff] }
 0x18b   :  { %7101 = vmatpush1.bf16.msra.mxu0 %v7100_v62  ;;  %6975 = vmatprep.subr.bf16.mxu1 %v6974_v63  ;;  %v6992_v62 = vpack.c.bf16 %v835_v54, %v828_v18  ;;  %v7120_v63 = vpack.c.bf16 %v501_v17, %v494_v55  ;;  %v7122_v20 = vpack.c.bf16 %v516_v61, %v509_v60  ;;  %v898_v54 = vld [vmem:[#allocation5 + $0x17b0] sm:$0xff]  ;;  %v905_v55 = vld [vmem:[#allocation5 + $0x17e8] sm:$0xff]  ;;  %v920_v61 = vld [vmem:[#allocation5 + $0x1860] sm:$0xff] }
 0x18c   :  { %7103 = vmatprep.subr.bf16.mxu0 %v7102_v2  ;;  %v508_v2 = vld [vmem:[#allocation5 + $0xb80] sm:$0xff]  ;;  %v7010_v18 = vpack.c.bf16 %v906_v47, %v899_v46  ;;  %v913_v60 = vld [vmem:[#allocation5 + $0x1828] sm:$0xff]  ;;  %v174_v46 = vld [vmem:[#allocation5 + $0x110] sm:$0xff] }
 0x18d   :  { %v181_v47 = vld [vmem:[#allocation5 + $0x148] sm:$0xff] }
 0x18e   :  { %6977 = vmatpush1.bf16.msra.mxu1 %v6976_v7  ;;  %v530_v7 = vld [vmem:[#allocation5 + $0xc30] sm:$0xff] }
 0x18f   :  { %7105 = vmatpush1.bf16.msra.mxu0 %v7104_v8  ;;  %6979 = vmatprep.subr.bf16.mxu1 %v6978_v9  ;;  %v6996_v8 = vpack.c.bf16 %v849_v1, %v842_v29  ;;  %v7124_v9 = vpack.c.bf16 %v515_v3, %v508_v2  ;;  %v7126_v14 = vpack.c.bf16 %v530_v7, %v523_v6  ;;  %v919_v3 = vld [vmem:[#allocation5 + $0x1858] sm:$0xff]  ;;  %v585_v6 = vld [vmem:[#allocation5 + $0xde8] sm:$0xff]  ;;  %v258_v7 = vld [vmem:[#allocation5 + $0x3b0] sm:$0xff] }
 0x190   :  { %7107 = vmatprep.subr.bf16.mxu0 %v7106_v13  ;;  %v522_v13 = vld [vmem:[#allocation5 + $0xbf0] sm:$0xff]  ;;  %v7012_v29 = vpack.c.bf16 %v905_v55, %v898_v54  ;;  %v7014_v2 = vpack.c.bf16 %v920_v61, %v913_v60  ;;  %v635_v54 = vld [vmem:[#allocation5 + $0xf78] sm:$0xff]  ;;  %v188_v61 = vld [vmem:[#allocation5 + $0x180] sm:$0xff] }
 0x191   :  { %v642_v55 = vld [vmem:[#allocation5 + $0xfb0] sm:$0xff] }
 0x192   :  { %6981 = vmatpush1.bf16.msra.mxu1 %v6980_v23  ;;  %v544_v23 = vld [vmem:[#allocation5 + $0xca0] sm:$0xff]  ;;  %v634_v60 = vld [vmem:[#allocation5 + $0xf70] sm:$0xff] }
 0x193   :  { %7109 = vmatpush1.bf16.msra.mxu0 %v7108_v24  ;;  %6983 = vmatprep.subr.bf16.mxu1 %v6982_v25  ;;  %v7000_v24 = vpack.c.bf16 %v863_v12, %v856_v11  ;;  %v7128_v25 = vpack.c.bf16 %v529_v15, %v522_v13  ;;  %v7130_v31 = vpack.c.bf16 %v544_v23, %v537_v21  ;;  %v146_v15 = vld [vmem:[#allocation5 + $0x30] sm:$0xff]  ;;  %v599_v21 = vld [vmem:[#allocation5 + $0xe58] sm:$0xff]  ;;  %v272_v23 = vld [vmem:[#allocation5 + $0x420] sm:$0xff] }
 0x194   :  { %7111 = vmatprep.subr.bf16.mxu0 %v7110_v30  ;;  %v536_v30 = vld [vmem:[#allocation5 + $0xc60] sm:$0xff]  ;;  %v7144_v12 = vpack.c.bf16 %v585_v6, %v578_v4 }
 0x196   :  { %6985 = vmatpush1.bf16.msra.mxu1 %v6984_v37  ;;  %v558_v37 = vld [vmem:[#allocation5 + $0xd10] sm:$0xff] }
 0x197   :  { %7113 = vmatpush1.bf16.msra.mxu0 %v7112_v38  ;;  %6987 = vmatprep.subr.bf16.mxu1 %v6986_v39  ;;  %v7004_v38 = vpack.c.bf16 %v877_v28, %v870_v27  ;;  %v7132_v39 = vpack.c.bf16 %v543_v32, %v536_v30  ;;  %v7134_v44 = vpack.c.bf16 %v558_v37, %v551_v36  ;;  %v160_v32 = vld [vmem:[#allocation5 + $0xa0] sm:$0xff]  ;;  %v613_v36 = vld [vmem:[#allocation5 + $0xec8] sm:$0xff]  ;;  %v286_v37 = vld [vmem:[#allocation5 + $0x490] sm:$0xff] }
 0x198   :  { %7115 = vmatprep.subr.bf16.mxu0 %v7114_v43  ;;  %v550_v43 = vld [vmem:[#allocation5 + $0xcd0] sm:$0xff]  ;;  %v7244_v27 = vpack.c.bf16 %v153_v16, %v146_v15 }
 0x199   :  { %1452 = vmatmul.mubr.f32.vlgmr.msra.gmra.mrb[2].mxu1 %v9431_v59  ;;  %v670_v15 = vld [vmem:[#allocation5 + $0x1090] sm:$0xff] }
 0x19a   :  { %6989 = vmatpush1.bf16.msra.mxu1 %v6988_v50  ;;  %1522 = vmatprep.mubr.f32.mxu1 %v9244_v53  ;;  %v572_v50 = vld [vmem:[#allocation5 + $0xd80] sm:$0xff] }
 0x19b   :  { %7117 = vmatpush1.bf16.msra.mxu0 %v7116_v51  ;;  %6991 = vmatprep.subr.bf16.mxu1 %v6990_v52  ;;  %v7008_v51 = vpack.c.bf16 %v891_v42, %v884_v41  ;;  %v7136_v52 = vpack.c.bf16 %v557_v45, %v550_v43  ;;  %v7138_v57 = vpack.c.bf16 %v572_v50, %v565_v48  ;;  %v628_v41 = vld [vmem:[#allocation5 + $0xf40] sm:$0xff]  ;;  %v627_v50 = vld [vmem:[#allocation5 + $0xf38] sm:$0xff] }
 0x19c   :  { %7119 = vmatprep.subr.bf16.mxu0 %v7118_v56  ;;  %v564_v56 = vld [vmem:[#allocation5 + $0xd40] sm:$0xff]  ;;  %v7248_v42 = vpack.c.bf16 %v167_v33, %v160_v32 }
 0x19d   :  { %v7140_v1 = vpack.c.bf16 %v571_v58, %v564_v56  ;;  %v620_v45 = vld [vmem:[#allocation5 + $0xf00] sm:$0xff]  ;;  %v9443_v56 = vld [vmem:[#allocation3 + $0x28] sm:$0xff] }
 0x19e   :  { %6993 = vmatpush1.bf16.msra.mxu1 %v6992_v62  ;;  %v684_v32 = vld [vmem:[#allocation5 + $0x1100] sm:$0xff] }
 0x19f   :  { %7121 = vmatpush1.bf16.msra.mxu0 %v7120_v63  ;;  %6995 = vmatprep.subr.bf16.mxu1 %v6994_v0  ;;  %v579_v63 = vld [vmem:[#allocation5 + $0xdb8] sm:$0xff]  ;;  %v586_v0 = vld [vmem:[#allocation5 + $0xdf0] sm:$0xff] }
 0x1a0   :  { %7123 = vmatprep.subr.bf16.mxu0 %v7122_v20  ;;  %v912_v20 = vld [vmem:[#allocation5 + $0x1820] sm:$0xff]  ;;  %v7142_v5 = vpack.c.bf16 %v586_v0, %v579_v63  ;;  %v195_v63 = vld [vmem:[#allocation5 + $0x1b8] sm:$0xff]  ;;  %v7158_v0 = vpack.c.bf16 %v642_v55, %v635_v54  ;;  %v697_v55 = vld [vmem:[#allocation5 + $0x1168] sm:$0xff] }
 0x1a1   :  { %v7016_v11 = vpack.c.bf16 %v919_v3, %v912_v20  ;;  %v649_v20 = vld [vmem:[#allocation5 + $0xfe8] sm:$0xff]  ;;  %v656_v3 = vld [vmem:[#allocation5 + $0x1020] sm:$0xff]  ;;  %v7256_v4 = vpack.c.bf16 %v195_v63, %v188_v61 }
 0x1a2   :  { %6997 = vmatpush1.bf16.msra.mxu1 %v6996_v8  ;;  %v265_v8 = vld [vmem:[#allocation5 + $0x3e8] sm:$0xff] }
 0x1a3   :  { %7125 = vmatpush1.bf16.msra.mxu0 %v7124_v9  ;;  %6999 = vmatprep.subr.bf16.mxu1 %v6998_v10  ;;  %v593_v9 = vld [vmem:[#allocation5 + $0xe28] sm:$0xff]  ;;  %v600_v10 = vld [vmem:[#allocation5 + $0xe60] sm:$0xff]  ;;  %v7242_v13 = vpack.c.bf16 %v265_v8, %v258_v7  ;;  %v202_v8 = vld [vmem:[#allocation5 + $0x1f0] sm:$0xff] }
 0x1a4   :  { %7127 = vmatprep.subr.bf16.mxu0 %v7126_v14  ;;  %v592_v14 = vld [vmem:[#allocation5 + $0xe20] sm:$0xff]  ;;  %v7146_v19 = vpack.c.bf16 %v600_v10, %v593_v9  ;;  %v209_v9 = vld [vmem:[#allocation5 + $0x228] sm:$0xff]  ;;  %v7162_v10 = vpack.c.bf16 %v656_v3, %v649_v20  ;;  %v711_v3 = vld [vmem:[#allocation5 + $0x11d8] sm:$0xff] }
 0x1a5   :  { %v7148_v28 = vpack.c.bf16 %v599_v21, %v592_v14  ;;  %v648_v7 = vld [vmem:[#allocation5 + $0xfe0] sm:$0xff]  ;;  %v663_v14 = vld [vmem:[#allocation5 + $0x1058] sm:$0xff]  ;;  %v7260_v16 = vpack.c.bf16 %v209_v9, %v202_v8 }
 0x1a6   :  { %7001 = vmatpush1.bf16.msra.mxu1 %v7000_v24  ;;  %v279_v24 = vld [vmem:[#allocation5 + $0x458] sm:$0xff] }
 0x1a7   :  { %7129 = vmatpush1.bf16.msra.mxu0 %v7128_v25  ;;  %7003 = vmatprep.subr.bf16.mxu1 %v7002_v26  ;;  %v607_v25 = vld [vmem:[#allocation5 + $0xe98] sm:$0xff]  ;;  %v614_v26 = vld [vmem:[#allocation5 + $0xed0] sm:$0xff]  ;;  %v7246_v30 = vpack.c.bf16 %v279_v24, %v272_v23  ;;  %v216_v24 = vld [vmem:[#allocation5 + $0x260] sm:$0xff] }
 0x1a8   :  { %7131 = vmatprep.subr.bf16.mxu0 %v7130_v31  ;;  %v606_v31 = vld [vmem:[#allocation5 + $0xe90] sm:$0xff]  ;;  %v7150_v35 = vpack.c.bf16 %v614_v26, %v607_v25  ;;  %v223_v25 = vld [vmem:[#allocation5 + $0x298] sm:$0xff]  ;;  %v7166_v26 = vpack.c.bf16 %v670_v15, %v663_v14  ;;  %v725_v15 = vld [vmem:[#allocation5 + $0x1248] sm:$0xff] }
 0x1a9   :  { %v7152_v43 = vpack.c.bf16 %v613_v36, %v606_v31  ;;  %v662_v23 = vld [vmem:[#allocation5 + $0x1050] sm:$0xff]  ;;  %v677_v31 = vld [vmem:[#allocation5 + $0x10c8] sm:$0xff]  ;;  %v7264_v33 = vpack.c.bf16 %v223_v25, %v216_v24 }
 0x1aa   :  { %7005 = vmatpush1.bf16.msra.mxu1 %v7004_v38  ;;  %v293_v38 = vld [vmem:[#allocation5 + $0x4c8] sm:$0xff] }
 0x1ab   :  { %7133 = vmatpush1.bf16.msra.mxu0 %v7132_v39  ;;  %7007 = vmatprep.subr.bf16.mxu1 %v7006_v40  ;;  %v9439_v39 = vld [vmem:[#allocation3 + $0x30] sm:$0xff]  ;;  %v621_v40 = vld [vmem:[#allocation5 + $0xf08] sm:$0xff] }
 0x1ac   :  { %v9435_v17 = vpop.f32.mrb[0].mxu1  ;;  %7135 = vmatprep.subr.bf16.mxu0 %v7134_v44  ;;  %v7250_v44 = vpack.c.bf16 %v293_v38, %v286_v37  ;;  %v7154_v48 = vpack.c.bf16 %v628_v41, %v621_v40  ;;  %v676_v37 = vld [vmem:[#allocation5 + $0x10c0] sm:$0xff]  ;;  %v230_v38 = vld [vmem:[#allocation5 + $0x2d0] sm:$0xff]  ;;  %v237_v40 = vld [vmem:[#allocation5 + $0x308] sm:$0xff]  ;;  %v7170_v41 = vpack.c.bf16 %v684_v32, %v677_v31 }
 0x1ad   :  { %v9437_v62 = vpop.f32.mrb[1].mxu1  ;;  %v739_v32 = vld [vmem:[#allocation5 + $0x12b8] sm:$0xff] }
 0x1ae   :  { %7009 = vmatpush1.bf16.msra.mxu1 %v7008_v51  ;;  %v300_v51 = vld [vmem:[#allocation5 + $0x500] sm:$0xff] }
 0x1af   :  { %7137 = vmatpush1.bf16.msra.mxu0 %v7136_v52  ;;  %7011 = vmatprep.subr.bf16.mxu1 %v7010_v18  ;;  %v307_v52 = vld [vmem:[#allocation5 + $0x538] sm:$0xff]  ;;  %v9041_v18 = vld [vmem:[#allocation3 + $0x8] sm:$0xff] }
 0x1b0   :  { %7139 = vmatprep.subr.bf16.mxu0 %v7138_v57  ;;  %v7156_v57 = vpack.c.bf16 %v627_v50, %v620_v45  ;;  %v7254_v58 = vpack.c.bf16 %v307_v52, %v300_v51  ;;  %v691_v45 = vld [vmem:[#allocation5 + $0x1138] sm:$0xff]  ;;  %v690_v51 = vld [vmem:[#allocation5 + $0x1130] sm:$0xff]  ;;  %v244_v52 = vld [vmem:[#allocation5 + $0x340] sm:$0xff] }
 0x1b1   :  { %v7176_v63 = vpack.c.bf16 %v697_v55, %v690_v51  ;;  %v433_v55 = vld [vmem:[#allocation5 + $0x928] sm:$0xff] }
 0x1b2   :  { %7013 = vmatpush1.bf16.msra.mxu1 %v7012_v29  ;;  %v641_v29 = vld [vmem:[#allocation5 + $0xfa8] sm:$0xff] }
 0x1b3   :  { %7141 = vmatpush1.bf16.msra.mxu0 %v7140_v1  ;;  %7015 = vmatprep.subr.bf16.mxu1 %v7014_v2  ;;  %v314_v1 = vld [vmem:[#allocation5 + $0x570] sm:$0xff]  ;;  %v321_v2 = vld [vmem:[#allocation5 + $0x5a8] sm:$0xff] }
 0x1b4   :  { %7143 = vmatprep.subr.bf16.mxu0 %v7142_v5  ;;  %v7160_v5 = vpack.c.bf16 %v641_v29, %v634_v60  ;;  %v7258_v6 = vpack.c.bf16 %v321_v2, %v314_v1  ;;  %v712_v60 = vld [vmem:[#allocation5 + $0x11e0] sm:$0xff]  ;;  %v370_v1 = vld [vmem:[#allocation5 + $0x730] sm:$0xff]  ;;  %v377_v2 = vld [vmem:[#allocation5 + $0x768] sm:$0xff] }
 0x1b5   :  { %v704_v29 = vld [vmem:[#allocation5 + $0x11a0] sm:$0xff]  ;;  %v7276_v8 = vpack.c.bf16 %v377_v2, %v370_v1  ;;  %v774_v2 = vld [vmem:[#allocation5 + $0x13d0] sm:$0xff] }
 0x1b6   :  { %7017 = vmatpush1.bf16.msra.mxu1 %v7016_v11  ;;  %v655_v11 = vld [vmem:[#allocation5 + $0x1018] sm:$0xff]  ;;  %v7180_v9 = vpack.c.bf16 %v711_v3, %v704_v29 }
 0x1b7   :  { %7145 = vmatpush1.bf16.msra.mxu0 %v7144_v12  ;;  %7243 = vmatprep.subr.bf16.mxu1 %v7242_v13  ;;  %v328_v12 = vld [vmem:[#allocation5 + $0x5e0] sm:$0xff]  ;;  %v335_v13 = vld [vmem:[#allocation5 + $0x618] sm:$0xff] }
 0x1b8   :  { %7147 = vmatprep.subr.bf16.mxu0 %v7146_v19  ;;  %v7164_v19 = vpack.c.bf16 %v655_v11, %v648_v7  ;;  %v7262_v21 = vpack.c.bf16 %v335_v13, %v328_v12  ;;  %v726_v7 = vld [vmem:[#allocation5 + $0x1250] sm:$0xff]  ;;  %v384_v12 = vld [vmem:[#allocation5 + $0x7a0] sm:$0xff]  ;;  %v391_v13 = vld [vmem:[#allocation5 + $0x7d8] sm:$0xff] }
 0x1b9   :  { %1523 = vmatmul.mubr.f32.vlgmr.msra.gmra.mrb[2].mxu1 %v9439_v39  ;;  %v718_v11 = vld [vmem:[#allocation5 + $0x1210] sm:$0xff]  ;;  %v7280_v24 = vpack.c.bf16 %v391_v13, %v384_v12  ;;  %v447_v3 = vld [vmem:[#allocation5 + $0x998] sm:$0xff]  ;;  %v788_v13 = vld [vmem:[#allocation5 + $0x1440] sm:$0xff] }
 0x1ba   :  { %1665 = vmatmul.mubr.f32.vlgmr.msra.gmra.mrb[2].mxu0 %v9421_v49  ;;  %7245 = vmatpush3.bf16.msra.mxu1 %v7244_v27  ;;  %v7252_v49 = vpack.c.bf16 %v181_v47, %v174_v46  ;;  %v669_v27 = vld [vmem:[#allocation5 + $0x1088] sm:$0xff]  ;;  %v698_v46 = vld [vmem:[#allocation5 + $0x1170] sm:$0xff]  ;;  %v7268_v47 = vpack.c.bf16 %v237_v40, %v230_v38  ;;  %v7184_v25 = vpack.c.bf16 %v725_v15, %v718_v11 }
 0x1bb   :  { %7149 = vmatpush1.bf16.msra.mxu0 %v7148_v28  ;;  %7247 = vmatprep.subr.bf16.mxu1 %v7246_v30  ;;  %v342_v28 = vld [vmem:[#allocation5 + $0x650] sm:$0xff]  ;;  %v349_v30 = vld [vmem:[#allocation5 + $0x688] sm:$0xff]  ;;  %v7174_v54 = vpack.c.bf16 %v698_v46, %v691_v45 }
 0x1bc   :  { %7151 = vmatprep.subr.bf16.mxu0 %v7150_v35  ;;  %1877 = vmatprep.mubr.f32.mxu1 %v9041_v18  ;;  %v7168_v35 = vpack.c.bf16 %v669_v27, %v662_v23  ;;  %v7266_v36 = vpack.c.bf16 %v349_v30, %v342_v28  ;;  %v251_v18 = vld [vmem:[#allocation5 + $0x378] sm:$0xff]  ;;  %v740_v23 = vld [vmem:[#allocation5 + $0x12c0] sm:$0xff]  ;;  %v398_v28 = vld [vmem:[#allocation5 + $0x810] sm:$0xff] }
 0x1bd   :  { %1735 = vmatprep.mubr.f32.mxu0 %v9443_v56  ;;  %v7272_v61 = vpack.c.bf16 %v251_v18, %v244_v52  ;;  %v732_v27 = vld [vmem:[#allocation5 + $0x1280] sm:$0xff]  ;;  %v405_v30 = vld [vmem:[#allocation5 + $0x848] sm:$0xff]  ;;  %v746_v40 = vld [vmem:[#allocation5 + $0x12f0] sm:$0xff] }
 0x1be   :  { %7249 = vmatpush3.bf16.msra.mxu1 %v7248_v42  ;;  %v683_v42 = vld [vmem:[#allocation5 + $0x10f8] sm:$0xff]  ;;  %v7188_v38 = vpack.c.bf16 %v739_v32, %v732_v27  ;;  %v538_v45 = vld [vmem:[#allocation5 + $0xc70] sm:$0xff]  ;;  %v545_v46 = vld [vmem:[#allocation5 + $0xca8] sm:$0xff] }
 0x1bf   :  { %7153 = vmatpush1.bf16.msra.mxu0 %v7152_v43  ;;  %7251 = vmatprep.subr.bf16.mxu1 %v7250_v44  ;;  %v356_v43 = vld [vmem:[#allocation5 + $0x6c0] sm:$0xff]  ;;  %v363_v44 = vld [vmem:[#allocation5 + $0x6f8] sm:$0xff]  ;;  %v7290_v52 = vpack.c.bf16 %v545_v46, %v538_v45  ;;  %v461_v15 = vld [vmem:[#allocation5 + $0xa08] sm:$0xff] }
 0x1c0   :  { %7155 = vmatprep.subr.bf16.mxu0 %v7154_v48  ;;  %v7172_v48 = vpack.c.bf16 %v683_v42, %v676_v37  ;;  %v7270_v50 = vpack.c.bf16 %v363_v44, %v356_v43  ;;  %v7284_v37 = vpack.c.bf16 %v405_v30, %v398_v28  ;;  %v419_v42 = vld [vmem:[#allocation5 + $0x8b8] sm:$0xff]  ;;  %v753_v44 = vld [vmem:[#allocation5 + $0x1328] sm:$0xff]  ;;  %v760_v18 = vld [vmem:[#allocation5 + $0x1360] sm:$0xff] }
 0x1c1   :  { %v7192_v51 = vpack.c.bf16 %v753_v44, %v746_v40  ;;  %v802_v30 = vld [vmem:[#allocation5 + $0x14b0] sm:$0xff]  ;;  %v475_v32 = vld [vmem:[#allocation5 + $0xa78] sm:$0xff]  ;;  %v601_v44 = vld [vmem:[#allocation5 + $0xe68] sm:$0xff] }
 0x1c2   :  { %7253 = vmatpush3.bf16.msra.mxu1 %v7252_v49  ;;  %v482_v49 = vld [vmem:[#allocation5 + $0xab0] sm:$0xff]  ;;  %v823_v46 = vld [vmem:[#allocation5 + $0x1558] sm:$0xff] }
 0x1c3   :  { %7157 = vmatpush1.bf16.msra.mxu0 %v7156_v57  ;;  %7255 = vmatprep.subr.bf16.mxu1 %v7254_v58  ;;  %v489_v57 = vld [vmem:[#allocation5 + $0xae8] sm:$0xff] }
 0x1c4   :  { %7159 = vmatprep.subr.bf16.mxu0 %v7158_v0  ;;  %v705_v58 = vld [vmem:[#allocation5 + $0x11a8] sm:$0xff]  ;;  %v7274_v0 = vpack.c.bf16 %v489_v57, %v482_v49  ;;  %v767_v57 = vld [vmem:[#allocation5 + $0x1398] sm:$0xff] }
 0x1c5   :  { %v7178_v20 = vpack.c.bf16 %v712_v60, %v705_v58  ;;  %v552_v58 = vld [vmem:[#allocation5 + $0xce0] sm:$0xff]  ;;  %v559_v60 = vld [vmem:[#allocation5 + $0xd18] sm:$0xff]  ;;  %v7196_v29 = vpack.c.bf16 %v767_v57, %v760_v18 }
 0x1c6   :  { %7257 = vmatpush3.bf16.msra.mxu1 %v7256_v4  ;;  %v496_v4 = vld [vmem:[#allocation5 + $0xb20] sm:$0xff]  ;;  %v7294_v1 = vpack.c.bf16 %v559_v60, %v552_v58  ;;  %v615_v57 = vld [vmem:[#allocation5 + $0xed8] sm:$0xff]  ;;  %v837_v60 = vld [vmem:[#allocation5 + $0x15c8] sm:$0xff] }
 0x1c7   :  { %7161 = vmatpush1.bf16.msra.mxu0 %v7160_v5  ;;  %7259 = vmatprep.subr.bf16.mxu1 %v7258_v6  ;;  %v503_v5 = vld [vmem:[#allocation5 + $0xb58] sm:$0xff] }
 0x1c8   :  { %7163 = vmatprep.subr.bf16.mxu0 %v7162_v10  ;;  %v719_v6 = vld [vmem:[#allocation5 + $0x1218] sm:$0xff]  ;;  %v7278_v10 = vpack.c.bf16 %v503_v5, %v496_v4  ;;  %v781_v5 = vld [vmem:[#allocation5 + $0x1408] sm:$0xff] }
 0x1c9   :  { %v7182_v14 = vpack.c.bf16 %v726_v7, %v719_v6  ;;  %v566_v6 = vld [vmem:[#allocation5 + $0xd50] sm:$0xff]  ;;  %v573_v7 = vld [vmem:[#allocation5 + $0xd88] sm:$0xff]  ;;  %v7200_v11 = vpack.c.bf16 %v781_v5, %v774_v2 }
 0x1ca   :  { %7261 = vmatpush3.bf16.msra.mxu1 %v7260_v16  ;;  %v510_v16 = vld [vmem:[#allocation5 + $0xb90] sm:$0xff]  ;;  %v7298_v12 = vpack.c.bf16 %v573_v7, %v566_v6  ;;  %v629_v6 = vld [vmem:[#allocation5 + $0xf48] sm:$0xff]  ;;  %v926_v7 = vlaneseq }
 0x1cb   :  { %7165 = vmatpush1.bf16.msra.mxu0 %v7164_v19  ;;  %7263 = vmatprep.subr.bf16.mxu1 %v7262_v21  ;;  %v517_v19 = vld [vmem:[#allocation5 + $0xbc8] sm:$0xff]  ;;  %v622_v5 = vld [vmem:[#allocation5 + $0xf10] sm:$0xff] }
 0x1cc   :  { %7167 = vmatprep.subr.bf16.mxu0 %v7166_v26  ;;  %v733_v21 = vld [vmem:[#allocation5 + $0x1288] sm:$0xff]  ;;  %v7282_v26 = vpack.c.bf16 %v517_v19, %v510_v16  ;;  %v795_v19 = vld [vmem:[#allocation5 + $0x1478] sm:$0xff] }
 0x1cd   :  { %v7186_v31 = vpack.c.bf16 %v740_v23, %v733_v21  ;;  %v580_v21 = vld [vmem:[#allocation5 + $0xdc0] sm:$0xff]  ;;  %v587_v23 = vld [vmem:[#allocation5 + $0xdf8] sm:$0xff]  ;;  %v7204_v27 = vpack.c.bf16 %v795_v19, %v788_v13  ;;  %v866_v13 = vld [vmem:[#allocation5 + $0x16b0] sm:$0xff] }
 0x1ce   :  { %7265 = vmatpush3.bf16.msra.mxu1 %v7264_v33  ;;  %v524_v33 = vld [vmem:[#allocation5 + $0xc00] sm:$0xff]  ;;  %v7302_v28 = vpack.c.bf16 %v587_v23, %v580_v21  ;;  %v643_v21 = vld [vmem:[#allocation5 + $0xfb8] sm:$0xff]  ;;  %v9451_v23 = vshrl.u32 %v926_v7, 7 }
 0x1cf   :  { %7169 = vmatpush1.bf16.msra.mxu0 %v7168_v35  ;;  %7267 = vmatprep.subr.bf16.mxu1 %v7266_v36  ;;  %v531_v35 = vld [vmem:[#allocation5 + $0xc38] sm:$0xff]  ;;  %v636_v19 = vld [vmem:[#allocation5 + $0xf80] sm:$0xff] }
 0x1d0   :  { %7171 = vmatprep.subr.bf16.mxu0 %v7170_v41  ;;  %v747_v36 = vld [vmem:[#allocation5 + $0x12f8] sm:$0xff]  ;;  %v412_v41 = vld [vmem:[#allocation5 + $0x880] sm:$0xff] }
 0x1d2   :  { %7269 = vmatpush3.bf16.msra.mxu1 %v7268_v47  ;;  %v761_v47 = vld [vmem:[#allocation5 + $0x1368] sm:$0xff] }
 0x1d3   :  { %7173 = vmatpush1.bf16.msra.mxu0 %v7172_v48  ;;  %7271 = vmatprep.subr.bf16.mxu1 %v7270_v50  ;;  %v768_v48 = vld [vmem:[#allocation5 + $0x13a0] sm:$0xff]  ;;  %v7288_v50 = vpack.c.bf16 %v419_v42, %v412_v41 }
 0x1d4   :  { %7175 = vmatprep.subr.bf16.mxu0 %v7174_v54  ;;  %v426_v54 = vld [vmem:[#allocation5 + $0x8f0] sm:$0xff]  ;;  %v7194_v49 = vpack.c.bf16 %v768_v48, %v761_v47  ;;  %v816_v42 = vld [vmem:[#allocation5 + $0x1520] sm:$0xff]  ;;  %v727_v48 = vld [vmem:[#allocation5 + $0x1258] sm:$0xff] }
 0x1d5   :  { %v720_v47 = vld [vmem:[#allocation5 + $0x1220] sm:$0xff]  ;;  %v7212_v18 = vpack.c.bf16 %v823_v46, %v816_v42  ;;  %v9457_v42 = vsub.s32 1, %v9451_v23 }
 0x1d6   :  { %7273 = vmatpush3.bf16.msra.mxu1 %v7272_v61  ;;  %v775_v61 = vld [vmem:[#allocation5 + $0x13d8] sm:$0xff] }
 0x1d7   :  { %7177 = vmatpush1.bf16.msra.mxu0 %v7176_v63  ;;  %7275 = vmatprep.subr.bf16.mxu1 %v7274_v0  ;;  %v782_v63 = vld [vmem:[#allocation5 + $0x1410] sm:$0xff]  ;;  %v7292_v0 = vpack.c.bf16 %v433_v55, %v426_v54  ;;  %v7310_v54 = vpack.c.bf16 %v727_v48, %v720_v47 }
 0x1d8   :  { %7179 = vmatprep.subr.bf16.mxu0 %v7178_v20  ;;  %v440_v20 = vld [vmem:[#allocation5 + $0x960] sm:$0xff]  ;;  %v7198_v4 = vpack.c.bf16 %v782_v63, %v775_v61  ;;  %v830_v55 = vld [vmem:[#allocation5 + $0x1590] sm:$0xff]  ;;  %v741_v63 = vld [vmem:[#allocation5 + $0x12c8] sm:$0xff] }
 0x1d9   :  { %1878 = vmatmul.mubr.f32.vlgmr.msra.gmra.mrb[4].mxu1 %v9425_v22  ;;  %v754_v22 = vld [vmem:[#allocation5 + $0x1330] sm:$0xff] }
 0x1da   :  { %7277 = vmatpush3.bf16.msra.mxu1 %v7276_v8  ;;  %1947 = vmatprep.mubr.f32.mxu1 %v9428_v34  ;;  %v7286_v34 = vpack.c.bf16 %v531_v35, %v524_v33  ;;  %v7190_v43 = vpack.c.bf16 %v754_v22, %v747_v36  ;;  %v789_v8 = vld [vmem:[#allocation5 + $0x1448] sm:$0xff]  ;;  %v706_v36 = vld [vmem:[#allocation5 + $0x11b0] sm:$0xff] }
 0x1db   :  { %7181 = vmatpush1.bf16.msra.mxu0 %v7180_v9  ;;  %7279 = vmatprep.subr.bf16.mxu1 %v7278_v10  ;;  %v796_v9 = vld [vmem:[#allocation5 + $0x1480] sm:$0xff]  ;;  %v7296_v10 = vpack.c.bf16 %v447_v3, %v440_v20  ;;  %v809_v35 = vld [vmem:[#allocation5 + $0x14e8] sm:$0xff]  ;;  %v734_v61 = vld [vmem:[#allocation5 + $0x1290] sm:$0xff]  ;;  %v7216_v20 = vpack.c.bf16 %v837_v60, %v830_v55 }
 0x1dc   :  { %7183 = vmatprep.subr.bf16.mxu0 %v7182_v14  ;;  %v454_v14 = vld [vmem:[#allocation5 + $0x9d0] sm:$0xff]  ;;  %v7202_v16 = vpack.c.bf16 %v796_v9, %v789_v8  ;;  %v713_v22 = vld [vmem:[#allocation5 + $0x11e8] sm:$0xff]  ;;  %v7208_v40 = vpack.c.bf16 %v809_v35, %v802_v30  ;;  %v7314_v3 = vpack.c.bf16 %v741_v63, %v734_v61  ;;  %v851_v9 = vld [vmem:[#allocation5 + $0x1638] sm:$0xff] }
 0x1dd   :  { %v7306_v41 = vpack.c.bf16 %v713_v22, %v706_v36  ;;  %v880_v30 = vld [vmem:[#allocation5 + $0x1720] sm:$0xff]  ;;  %v650_v35 = vld [vmem:[#allocation5 + $0xff0] sm:$0xff]  ;;  %v657_v36 = vld [vmem:[#allocation5 + $0x1028] sm:$0xff]  ;;  %v9454_v22 = vsub.s32 0, %v9451_v23 }
 0x1de   :  { %7281 = vmatpush3.bf16.msra.mxu1 %v7280_v24  ;;  %v803_v24 = vld [vmem:[#allocation5 + $0x14b8] sm:$0xff]  ;;  %v886_v48 = vld [vmem:[#allocation5 + $0x1750] sm:$0xff]  ;;  %v908_v60 = vld [vmem:[#allocation5 + $0x1800] sm:$0xff] }
 0x1df   :  { %7185 = vmatpush1.bf16.msra.mxu0 %v7184_v25  ;;  %7283 = vmatprep.subr.bf16.mxu1 %v7282_v26  ;;  %v810_v25 = vld [vmem:[#allocation5 + $0x14f0] sm:$0xff]  ;;  %v7300_v26 = vpack.c.bf16 %v461_v15, %v454_v14 }
 0x1e0   :  { %7187 = vmatprep.subr.bf16.mxu0 %v7186_v31  ;;  %v468_v31 = vld [vmem:[#allocation5 + $0xa40] sm:$0xff]  ;;  %v7206_v33 = vpack.c.bf16 %v810_v25, %v803_v24  ;;  %v865_v25 = vld [vmem:[#allocation5 + $0x16a8] sm:$0xff]  ;;  %v790_v55 = vld [vmem:[#allocation5 + $0x1450] sm:$0xff] }
 0x1e2   :  { %7285 = vmatpush3.bf16.msra.mxu1 %v7284_v37  ;;  %v817_v37 = vld [vmem:[#allocation5 + $0x1528] sm:$0xff] }
 0x1e3   :  { %7189 = vmatpush1.bf16.msra.mxu0 %v7188_v38  ;;  %7287 = vmatprep.subr.bf16.mxu1 %v7286_v34  ;;  %v824_v38 = vld [vmem:[#allocation5 + $0x1560] sm:$0xff]  ;;  %v7304_v34 = vpack.c.bf16 %v475_v32, %v468_v31 }
 0x1e4   :  { %7191 = vmatprep.subr.bf16.mxu0 %v7190_v43  ;;  %v594_v43 = vld [vmem:[#allocation5 + $0xe30] sm:$0xff]  ;;  %v7210_v45 = vpack.c.bf16 %v824_v38, %v817_v37  ;;  %v879_v38 = vld [vmem:[#allocation5 + $0x1718] sm:$0xff] }
 0x1e6   :  { %7289 = vmatpush3.bf16.msra.mxu1 %v7288_v50  ;;  %v831_v50 = vld [vmem:[#allocation5 + $0x1598] sm:$0xff] }
 0x1e7   :  { %7193 = vmatpush1.bf16.msra.mxu0 %v7192_v51  ;;  %7291 = vmatprep.subr.bf16.mxu1 %v7290_v52  ;;  %v838_v51 = vld [vmem:[#allocation5 + $0x15d0] sm:$0xff]  ;;  %v7308_v52 = vpack.c.bf16 %v601_v44, %v594_v43  ;;  %v887_v43 = vld [vmem:[#allocation5 + $0x1758] sm:$0xff] }
 0x1e8   :  { %7195 = vmatprep.subr.bf16.mxu0 %v7194_v49  ;;  %v608_v49 = vld [vmem:[#allocation5 + $0xea0] sm:$0xff]  ;;  %v7214_v58 = vpack.c.bf16 %v838_v51, %v831_v50  ;;  %v894_v44 = vld [vmem:[#allocation5 + $0x1790] sm:$0xff]  ;;  %v671_v51 = vld [vmem:[#allocation5 + $0x1098] sm:$0xff] }
 0x1e9   :  { %v7312_v2 = vpack.c.bf16 %v615_v57, %v608_v49  ;;  %v664_v50 = vld [vmem:[#allocation5 + $0x1060] sm:$0xff]  ;;  %v797_v49 = vld [vmem:[#allocation5 + $0x1488] sm:$0xff] }
 0x1ea   :  { %7293 = vmatpush3.bf16.msra.mxu1 %v7292_v0  ;;  %v9043_v0 = vld [vmem:[#allocation3 + $0x10] sm:$0xff]  ;;  %v7328_v61 = vpack.c.bf16 %v671_v51, %v664_v50 }
 0x1eb   :  { %7197 = vmatpush1.bf16.msra.mxu0 %v7196_v29  ;;  %7295 = vmatprep.subr.bf16.mxu1 %v7294_v1  ;;  %v845_v29 = vld [vmem:[#allocation5 + $0x1608] sm:$0xff]  ;;  %v852_v1 = vld [vmem:[#allocation5 + $0x1640] sm:$0xff] }
 0x1ec   :  { %7199 = vmatprep.subr.bf16.mxu0 %v7198_v4  ;;  %v844_v4 = vld [vmem:[#allocation5 + $0x1600] sm:$0xff]  ;;  %v7218_v8 = vpack.c.bf16 %v852_v1, %v845_v29  ;;  %v678_v1 = vld [vmem:[#allocation5 + $0x10d0] sm:$0xff] }
 0x1ed   :  { %v7220_v14 = vpack.c.bf16 %v851_v9, %v844_v4  ;;  %v900_v29 = vld [vmem:[#allocation5 + $0x17c0] sm:$0xff]  ;;  %v907_v4 = vld [vmem:[#allocation5 + $0x17f8] sm:$0xff] }
 0x1ee   :  { %7297 = vmatpush3.bf16.msra.mxu1 %v7296_v10  ;;  %v748_v10 = vld [vmem:[#allocation5 + $0x1300] sm:$0xff]  ;;  %v915_v9 = vld [vmem:[#allocation5 + $0x1838] sm:$0xff] }
 0x1ef   :  { %7201 = vmatpush1.bf16.msra.mxu0 %v7200_v11  ;;  %7299 = vmatprep.subr.bf16.mxu1 %v7298_v12  ;;  %v755_v11 = vld [vmem:[#allocation5 + $0x1338] sm:$0xff] }
 0x1f0   :  { %7203 = vmatprep.subr.bf16.mxu0 %v7202_v16  ;;  %v859_v12 = vld [vmem:[#allocation5 + $0x1678] sm:$0xff]  ;;  %v7318_v15 = vpack.c.bf16 %v755_v11, %v748_v10  ;;  %v858_v16 = vld [vmem:[#allocation5 + $0x1670] sm:$0xff] }
 0x1f1   :  { %v7222_v24 = vpack.c.bf16 %v866_v13, %v859_v12  ;;  %v7224_v31 = vpack.c.bf16 %v865_v25, %v858_v16  ;;  %v922_v10 = vld [vmem:[#allocation5 + $0x1870] sm:$0xff]  ;;  %v699_v16 = vld [vmem:[#allocation5 + $0x1178] sm:$0xff] }
 0x1f2   :  { %7301 = vmatpush3.bf16.msra.mxu1 %v7300_v26  ;;  %v762_v26 = vld [vmem:[#allocation5 + $0x1370] sm:$0xff]  ;;  %v2110_v25 = vld [vmem:[#allocation8 + $0x50] sm:$0xff] }
 0x1f3   :  { %7205 = vmatpush1.bf16.msra.mxu0 %v7204_v27  ;;  %7303 = vmatprep.subr.bf16.mxu1 %v7302_v28  ;;  %v769_v27 = vld [vmem:[#allocation5 + $0x13a8] sm:$0xff] }
 0x1f4   :  { %7207 = vmatprep.subr.bf16.mxu0 %v7206_v33  ;;  %v873_v28 = vld [vmem:[#allocation5 + $0x16e8] sm:$0xff]  ;;  %v7322_v32 = vpack.c.bf16 %v769_v27, %v762_v26  ;;  %v872_v33 = vld [vmem:[#allocation5 + $0x16e0] sm:$0xff] }
 0x1f5   :  { %v7226_v37 = vpack.c.bf16 %v880_v30, %v873_v28  ;;  %v7228_v46 = vpack.c.bf16 %v879_v38, %v872_v33  ;;  %v818_v28 = vld [vmem:[#allocation5 + $0x1530] sm:$0xff]  ;;  %v825_v30 = vld [vmem:[#allocation5 + $0x1568] sm:$0xff] }
 0x1f6   :  { %7305 = vmatpush3.bf16.msra.mxu1 %v7304_v34  ;;  %v776_v34 = vld [vmem:[#allocation5 + $0x13e0] sm:$0xff]  ;;  %v2117_v33 = vld [vmem:[#allocation8 + $0x88] sm:$0xff] }
 0x1f7   :  { %7209 = vmatpush1.bf16.msra.mxu0 %v7208_v40  ;;  %7307 = vmatprep.subr.bf16.mxu1 %v7306_v41  ;;  %v783_v40 = vld [vmem:[#allocation5 + $0x1418] sm:$0xff]  ;;  %v924_v41 = vld [vmem:[#allocation7] sm:$0xff] }
 0x1f8   :  { %7211 = vmatprep.subr.bf16.mxu0 %v7210_v45  ;;  %v7324_v45 = vpack.c.bf16 %v657_v36, %v650_v35  ;;  %v7326_v47 = vpack.c.bf16 %v783_v40, %v776_v34  ;;  %v933_v57 = vrot.slane %v924_v41, %v9457_v42  ;;  %v2124_v35 = vld [vmem:[#allocation8 + $0xc0] sm:$0xff]  ;;  %v7339_v36 = vpack.c.bf16 %v825_v30, %v818_v28  ;;  %v832_v34 = vld [vmem:[#allocation5 + $0x15a0] sm:$0xff]  ;;  %v839_v40 = vld [vmem:[#allocation5 + $0x15d8] sm:$0xff] }
 0x1f9   :  { %1948 = vmatmul.mubr.f32.vlgmr.msra.gmra.mrb[6].mxu1 %v9043_v0  ;;  %v7330_v0 = vpack.c.bf16 %v797_v49, %v790_v55  ;;  %v7342_v50 = vpack.c.bf16 %v839_v40, %v832_v34  ;;  %v2130_v55 = vld [vmem:[#allocation8 + $0xf0] sm:$0xff]  ;;  %v2137_v49 = vld [vmem:[#allocation8 + $0x128] sm:$0xff]  ;;  %v2200_v34 = vld [vmem:[#allocation8 + $0x320] sm:$0xff] }
 0x1fa   :  { %1736 = vmatmul.mubr.f32.vlgmr.msra.gmra.mrb[2].mxu0 %v9431_v59  ;;  %7309 = vmatpush3.bf16.msra.mxu1 %v7308_v52  ;;  %v7316_v59 = vpack.c.bf16 %v629_v6, %v622_v5  ;;  %v929_v52 = vrot.slane %v924_v41, %v9454_v22  ;;  %v804_v5 = vld [vmem:[#allocation5 + $0x14c0] sm:$0xff]  ;;  %v811_v6 = vld [vmem:[#allocation5 + $0x14f8] sm:$0xff]  ;;  %v1030_v7 = vadd.f32 %v9437_v62, %v933_v57  ;;  %v2145_v57 = vld [vmem:[#allocation8 + $0x168] sm:$0xff] }
 0x1fb   :  { %7213 = vmatpush1.bf16.msra.mxu0 %v7212_v18  ;;  %7311 = vmatprep.subr.bf16.mxu1 %v7310_v54  ;;  %v7230_v18 = vpack.c.bf16 %v894_v44, %v887_v43  ;;  %v893_v54 = vld [vmem:[#allocation5 + $0x1788] sm:$0xff]  ;;  %v2103_v62 = vld [vmem:[#allocation8 + $0x18] sm:$0xff]  ;;  %v7590_v41 = vpack.c.bf16 %v2124_v35, %v2117_v33  ;;  %v2186_v30 = vld [vmem:[#allocation8 + $0x2b0] sm:$0xff] }
 0x1fc   :  { %7215 = vmatprep.subr.bf16.mxu0 %v7214_v58  ;;  %1806 = vmatprep.mubr.f32.mxu0 %v9244_v53  ;;  %v901_v58 = vld [vmem:[#allocation5 + $0x17c8] sm:$0xff]  ;;  %v7232_v63 = vpack.c.bf16 %v893_v54, %v886_v48  ;;  %v2123_v44 = vld [vmem:[#allocation8 + $0xb8] sm:$0xff]  ;;  %v2138_v48 = vld [vmem:[#allocation8 + $0x130] sm:$0xff] }
 0x1fd   :  { %2017 = vmatprep.mubr.f32.mxu1 %v9443_v56  ;;  %v7320_v56 = vpack.c.bf16 %v643_v21, %v636_v19  ;;  %v7238_v19 = vpack.c.bf16 %v922_v10, %v915_v9  ;;  %v914_v21 = vld [vmem:[#allocation5 + $0x1830] sm:$0xff]  ;;  %v2116_v43 = vld [vmem:[#allocation8 + $0x80] sm:$0xff] }
 0x1fe   :  { %7313 = vmatpush3.bf16.msra.mxu1 %v7312_v2  ;;  %v685_v2 = vld [vmem:[#allocation5 + $0x1108] sm:$0xff]  ;;  %v7592_v51 = vpack.c.bf16 %v2123_v44, %v2116_v43  ;;  %v2165_v9 = vld [vmem:[#allocation8 + $0x208] sm:$0xff] }
 0x1ff   :  { %7217 = vmatpush1.bf16.msra.mxu0 %v7216_v20  ;;  %7315 = vmatprep.subr.bf16.mxu1 %v7314_v3  ;;  %v1028_v20 = vadd.f32 %v9435_v17, %v929_v52  ;;  %v7234_v3 = vpack.c.bf16 %v908_v60, %v901_v58  ;;  %v7332_v13 = vpack.c.bf16 %v685_v2, %v678_v1  ;;  %v846_v52 = vld [vmem:[#allocation5 + $0x1610] sm:$0xff]  ;;  %v2152_v58 = vld [vmem:[#allocation8 + $0x1a0] sm:$0xff]  ;;  %v2151_v1 = vld [vmem:[#allocation8 + $0x198] sm:$0xff] }
 0x200   :  { %7219 = vmatprep.subr.bf16.mxu0 %v7218_v8  ;;  %v7334_v17 = vpack.c.bf16 %v811_v6, %v804_v5  ;;  %v7596_v60 = vpack.c.bf16 %v2137_v49, %v2130_v55  ;;  %v2159_v2 = vld [vmem:[#allocation8 + $0x1d8] sm:$0xff]  ;;  %v874_v5 = vld [vmem:[#allocation5 + $0x16f0] sm:$0xff]  ;;  %v881_v6 = vld [vmem:[#allocation5 + $0x1728] sm:$0xff] }
 0x201   :  { %v2173_v10 = vld [vmem:[#allocation8 + $0x248] sm:$0xff]  ;;  %v2108_v44 = vld [vmem:[#allocation8 + $0x40] sm:$0xff] }
 0x202   :  { %7317 = vmatpush3.bf16.msra.mxu1 %v7316_v59  ;;  %v2101_v43 = vld [vmem:[#allocation8 + $0x8] sm:$0xff] }
 0x203   :  { %7221 = vmatpush1.bf16.msra.mxu0 %v7220_v14  ;;  %7319 = vmatprep.subr.bf16.mxu1 %v7318_v15  ;;  %v7236_v14 = vpack.c.bf16 %v907_v4, %v900_v29  ;;  %v692_v15 = vld [vmem:[#allocation5 + $0x1140] sm:$0xff]  ;;  %v2144_v29 = vld [vmem:[#allocation8 + $0x160] sm:$0xff]  ;;  %v2221_v49 = vld [vmem:[#allocation8 + $0x3c8] sm:$0xff] }
 0x204   :  { %7223 = vmatprep.subr.bf16.mxu0 %v7222_v24  ;;  %v921_v24 = vld [vmem:[#allocation5 + $0x1868] sm:$0xff]  ;;  %v7336_v26 = vpack.c.bf16 %v699_v16, %v692_v15  ;;  %v7600_v4 = vpack.c.bf16 %v2151_v1, %v2144_v29  ;;  %v2114_v29 = vld [vmem:[#allocation8 + $0x70] sm:$0xff]  ;;  %v2121_v1 = vld [vmem:[#allocation8 + $0xa8] sm:$0xff] }
 0x205   :  { %v7240_v27 = vpack.c.bf16 %v921_v24, %v914_v21  ;;  %v2172_v16 = vld [vmem:[#allocation8 + $0x240] sm:$0xff]  ;;  %v2187_v21 = vld [vmem:[#allocation8 + $0x2b8] sm:$0xff]  ;;  %v2194_v24 = vld [vmem:[#allocation8 + $0x2f0] sm:$0xff] }
 0x206   :  { %7321 = vmatpush3.bf16.msra.mxu1 %v7320_v56  ;;  %v7586_v56 = vpack.c.bf16 %v2110_v25, %v2103_v62  ;;  %v7610_v28 = vpack.c.bf16 %v2194_v24, %v2187_v21  ;;  %v2257_v21 = vld [vmem:[#allocation8 + $0x4e8] sm:$0xff]  ;;  %v2264_v24 = vld [vmem:[#allocation8 + $0x520] sm:$0xff] }
 0x207   :  { %7225 = vmatpush1.bf16.msra.mxu0 %v7224_v31  ;;  %7323 = vmatprep.subr.bf16.mxu1 %v7322_v32  ;;  %v2102_v31 = vld [vmem:[#allocation8 + $0x10] sm:$0xff]  ;;  %v2109_v32 = vld [vmem:[#allocation8 + $0x48] sm:$0xff] }
 0x208   :  { %7227 = vmatprep.subr.bf16.mxu0 %v7226_v37  ;;  %v9245_v37 = vmov 0.0|0.0   ;;  %v7588_v38 = vpack.c.bf16 %v2109_v32, %v2102_v31  ;;  %v2201_v31 = vld [vmem:[#allocation8 + $0x328] sm:$0xff]  ;;  %v2208_v32 = vld [vmem:[#allocation8 + $0x360] sm:$0xff] }
 0x209   :  { %v7614_v40 = vpack.c.bf16 %v2208_v32, %v2201_v31  ;;  %v2263_v31 = vld [vmem:[#allocation8 + $0x518] sm:$0xff]  ;;  %v2157_v32 = vld [vmem:[#allocation8 + $0x1c8] sm:$0xff] }
 0x20a   :  { %7325 = vmatpush3.bf16.msra.mxu1 %v7324_v45 }
 0x20b   :  { %7229 = vmatpush1.bf16.msra.mxu0 %v7228_v46  ;;  %7327 = vmatprep.subr.bf16.mxu1 %v7326_v47  ;;  %v9044_v46 = vld [vmem:[#allocation3 + $0x20] sm:$0xff]  ;;  %v2131_v47 = vld [vmem:[#allocation8 + $0xf8] sm:$0xff] }
 0x20c   :  { %7231 = vmatprep.subr.bf16.mxu0 %v7230_v18  ;;  %v853_v18 = vld [vmem:[#allocation5 + $0x1648] sm:$0xff]  ;;  %v7594_v54 = vpack.c.bf16 %v2138_v48, %v2131_v47  ;;  %v2222_v47 = vld [vmem:[#allocation8 + $0x3d0] sm:$0xff] }
 0x20d   :  { %v1240_v8 = vpop.f32.mrb[0].mxu0 }
 0x20e   :  { %v9463_v11 = vadd.f32 %v1240_v8, %v1028_v20  ;;  %v1242_v12 = vpop.f32.mrb[1].mxu0  ;;  %7329 = vmatpush3.bf16.msra.mxu1 %v7328_v61  ;;  %v860_v61 = vld [vmem:[#allocation5 + $0x1680] sm:$0xff]  ;;  %v2166_v20 = vld [vmem:[#allocation8 + $0x210] sm:$0xff] }
 0x20f   :  { %v8949_v59 = vadd.f32 %v1242_v12, %v1030_v7  ;;  %7233 = vmatpush1.bf16.msra.mxu0 %v7232_v63  ;;  %7331 = vmatprep.subr.bf16.mxu1 %v7330_v0  ;;  %v867_v63 = vld [vmem:[#allocation5 + $0x16b8] sm:$0xff]  ;;  %v7598_v0 = vpack.c.bf16 %v2152_v58, %v2145_v57  ;;  %v7602_v7 = vpack.c.bf16 %v2166_v20, %v2159_v2  ;;  %v2180_v12 = vld [vmem:[#allocation8 + $0x280] sm:$0xff]  ;;  %v2115_v57 = vld [vmem:[#allocation8 + $0x78] sm:$0xff] }
 0x210   :  { %7235 = vmatprep.subr.bf16.mxu0 %v7234_v3  ;;  %v7348_v3 = vpack.c.bf16 %v867_v63, %v860_v61  ;;  %v2158_v8 = vld [vmem:[#allocation8 + $0x1d0] sm:$0xff]  ;;  %v7606_v15 = vpack.c.bf16 %v2180_v12, %v2173_v10  ;;  %v2228_v2 = vld [vmem:[#allocation8 + $0x400] sm:$0xff] }
 0x211   :  { %v9466_v45 = vmax.f32 %v8949_v59, 0.0  ;;  %v7604_v59 = vpack.c.bf16 %v2165_v9, %v2158_v8  ;;  %v2122_v58 = vld [vmem:[#allocation8 + $0xb0] sm:$0xff]  ;;  %v7368_v9 = vpack.c.bf16 %v2121_v1, %v2114_v29 }
 0x212   :  { %7333 = vmatpush3.bf16.msra.mxu1 %v7332_v13  ;;  %v7351_v13 = vpack.c.bf16 %v881_v6, %v874_v5  ;;  %v2136_v5 = vld [vmem:[#allocation8 + $0x120] sm:$0xff]  ;;  %v9045_v6 = vld [vmem:[#allocation3 + $0x30] sm:$0xff] }
 0x213   :  { %7237 = vmatpush1.bf16.msra.mxu0 %v7236_v14  ;;  %7335 = vmatprep.subr.bf16.mxu1 %v7334_v17  ;;  %v888_v14 = vld [vmem:[#allocation5 + $0x1760] sm:$0xff]  ;;  %v895_v17 = vld [vmem:[#allocation5 + $0x1798] sm:$0xff] }
 0x214   :  { %7239 = vmatprep.subr.bf16.mxu0 %v7238_v19  ;;  %v2179_v19 = vld [vmem:[#allocation8 + $0x278] sm:$0xff]  ;;  %v7354_v62 = vpack.c.bf16 %v895_v17, %v888_v14  ;;  %v2250_v8 = vld [vmem:[#allocation8 + $0x4b0] sm:$0xff] }
 0x215   :  { %v7608_v25 = vpack.c.bf16 %v2179_v19, %v2172_v16  ;;  %v2242_v14 = vld [vmem:[#allocation8 + $0x470] sm:$0xff]  ;;  %v2143_v16 = vld [vmem:[#allocation8 + $0x158] sm:$0xff] }
 0x216   :  { %7337 = vmatpush3.bf16.msra.mxu1 %v7336_v26  ;;  %v902_v26 = vld [vmem:[#allocation5 + $0x17d0] sm:$0xff]  ;;  %v2150_v19 = vld [vmem:[#allocation8 + $0x190] sm:$0xff] }
 0x217   :  { %7241 = vmatpush1.bf16.msra.mxu0 %v7240_v27  ;;  %7338 = vmatprep.subr.bf16.mxu1 %v9245_v37  ;;  %v909_v27 = vld [vmem:[#allocation5 + $0x1808] sm:$0xff]  ;;  %v2306_v29 = vld [vmem:[#allocation8 + $0x670] sm:$0xff] }
 0x218   :  { %7587 = vmatprep.subr.bf16.mxu0 %v7586_v56  ;;  %v2193_v56 = vld [vmem:[#allocation8 + $0x2e8] sm:$0xff]  ;;  %v7357_v33 = vpack.c.bf16 %v909_v27, %v902_v26  ;;  %v7374_v26 = vpack.c.bf16 %v2150_v19, %v2143_v16  ;;  %v2142_v27 = vld [vmem:[#allocation8 + $0x150] sm:$0xff]  ;;  %v2312_v16 = vld [vmem:[#allocation8 + $0x6a0] sm:$0xff] }
 0x219   :  { %2018 = vmatmul.mubr.f32.vlgmr.msra.gmra.mrb[8].mxu1 %v9044_v46  ;;  %v7612_v35 = vpack.c.bf16 %v2193_v56, %v2186_v30  ;;  %v2215_v46 = vld [vmem:[#allocation8 + $0x398] sm:$0xff]  ;;  %v2256_v30 = vld [vmem:[#allocation8 + $0x4e0] sm:$0xff]  ;;  %v7630_v56 = vpack.c.bf16 %v2264_v24, %v2257_v21  ;;  %v2213_v24 = vld [vmem:[#allocation8 + $0x388] sm:$0xff] }
 0x21a   :  { %1807 = vmatmul.mubr.f32.vlgmr.msra.gmra.mrb[2].mxu0 %v9439_v39  ;;  %7340 = vmatpush3.bf16.msra.mxu1 %v7339_v36  ;;  %v7345_v39 = vpack.c.bf16 %v853_v18, %v846_v52  ;;  %v916_v36 = vld [vmem:[#allocation5 + $0x1840] sm:$0xff]  ;;  %v2100_v52 = vld [vmem:[#allocation8] sm:$0xff]  ;;  %v7618_v55 = vpack.c.bf16 %v2222_v47, %v2215_v46  ;;  %v2277_v47 = vld [vmem:[#allocation8 + $0x588] sm:$0xff] }
 0x21b   :  { %7589 = vmatpush1.bf16.msra.mxu0 %v7588_v38  ;;  %3269 = vmatprep.mubr.f32.mxu0 %v9466_v45  ;;  %v923_v38 = vld [vmem:[#allocation5 + $0x1878] sm:$0xff]  ;;  %v2107_v18 = vld [vmem:[#allocation8 + $0x38] sm:$0xff] }
 0x21c   :  { %7341 = vmatprep.subr.bf16.mxu1 %v9245_v37  ;;  %7591 = vmatprep.subr.bf16.mxu0 %v7590_v41  ;;  %v2207_v41 = vld [vmem:[#allocation8 + $0x358] sm:$0xff]  ;;  %v7360_v48 = vpack.c.bf16 %v923_v38, %v916_v36  ;;  %v7364_v61 = vpack.c.bf16 %v2107_v18, %v2100_v52  ;;  %v2278_v36 = vld [vmem:[#allocation8 + $0x590] sm:$0xff]  ;;  %v2292_v52 = vld [vmem:[#allocation8 + $0x600] sm:$0xff] }
 0x21d   :  { %6497 = vmatprep.mubr.msk.f32.mxu1 %vm9246_vm0, %v9244_v53  ;;  %v2319_v21 = vld [vmem:[#allocation8 + $0x6d8] sm:$0xff] }
 0x21e   :  { %7343 = vmatpush3.bf16.msra.mxu1 %v7342_v50  ;;  %v7616_v50 = vpack.c.bf16 %v2207_v41, %v2200_v34  ;;  %v7632_v34 = vpack.c.bf16 %v2263_v31, %v2256_v30  ;;  %v2156_v41 = vld [vmem:[#allocation8 + $0x1c0] sm:$0xff]  ;;  %v2219_v31 = vld [vmem:[#allocation8 + $0x3b8] sm:$0xff] }
 0x21f   :  { %7593 = vmatpush1.bf16.msra.mxu0 %v7592_v51  ;;  %7344 = vmatprep.subr.bf16.mxu1 %v9245_v37  ;;  %v7362_v51 = vpack.c.bf16 %v2108_v44, %v2101_v43  ;;  %v2163_v43 = vld [vmem:[#allocation8 + $0x1f8] sm:$0xff]  ;;  %v2270_v44 = vld [vmem:[#allocation8 + $0x550] sm:$0xff] }
 0x220   :  { %7595 = vmatprep.subr.bf16.mxu0 %v7594_v54  ;;  %v2214_v54 = vld [vmem:[#allocation8 + $0x390] sm:$0xff]  ;;  %v7380_v18 = vpack.c.bf16 %v2163_v43, %v2156_v41 }
 0x221   :  { %v7620_v63 = vpack.c.bf16 %v2221_v49, %v2214_v54  ;;  %v7636_v54 = vpack.c.bf16 %v2277_v47, %v2270_v44  ;;  %v2170_v49 = vld [vmem:[#allocation8 + $0x230] sm:$0xff]  ;;  %v2233_v47 = vld [vmem:[#allocation8 + $0x428] sm:$0xff] }
 0x222   :  { %7346 = vmatpush3.bf16.msra.mxu1 %v7345_v39  ;;  %v2229_v39 = vld [vmem:[#allocation8 + $0x408] sm:$0xff] }
 0x223   :  { %7597 = vmatpush1.bf16.msra.mxu0 %v7596_v60  ;;  %7347 = vmatprep.subr.bf16.mxu1 %v9245_v37  ;;  %v2236_v60 = vld [vmem:[#allocation8 + $0x440] sm:$0xff] }
 0x224   :  { %7599 = vmatprep.subr.bf16.mxu0 %v7598_v0  ;;  %v7366_v0 = vpack.c.bf16 %v2122_v58, %v2115_v57  ;;  %v7622_v20 = vpack.c.bf16 %v2236_v60, %v2229_v39  ;;  %v2177_v57 = vld [vmem:[#allocation8 + $0x268] sm:$0xff]  ;;  %v2284_v58 = vld [vmem:[#allocation8 + $0x5c0] sm:$0xff]  ;;  %v2291_v60 = vld [vmem:[#allocation8 + $0x5f8] sm:$0xff] }
 0x225   :  { %v7384_v1 = vpack.c.bf16 %v2177_v57, %v2170_v49  ;;  %v2362_v49 = vld [vmem:[#allocation8 + $0x830] sm:$0xff] }
 0x226   :  { %7349 = vmatpush3.bf16.msra.mxu1 %v7348_v3  ;;  %v2235_v3 = vld [vmem:[#allocation8 + $0x438] sm:$0xff] }
 0x227   :  { %7601 = vmatpush1.bf16.msra.mxu0 %v7600_v4  ;;  %7350 = vmatprep.subr.bf16.mxu1 %v9245_v37  ;;  %v2129_v4 = vld [vmem:[#allocation8 + $0xe8] sm:$0xff]  ;;  %v7624_v10 = vpack.c.bf16 %v2235_v3, %v2228_v2  ;;  %v7640_v2 = vpack.c.bf16 %v2291_v60, %v2284_v58  ;;  %v2184_v3 = vld [vmem:[#allocation8 + $0x2a0] sm:$0xff] }
 0x228   :  { %7603 = vmatprep.subr.bf16.mxu0 %v7602_v7  ;;  %v2243_v7 = vld [vmem:[#allocation8 + $0x478] sm:$0xff]  ;;  %v7370_v12 = vpack.c.bf16 %v2136_v5, %v2129_v4  ;;  %v2298_v5 = vld [vmem:[#allocation8 + $0x630] sm:$0xff]  ;;  %v2240_v60 = vld [vmem:[#allocation8 + $0x460] sm:$0xff] }
 0x229   :  { %v7626_v17 = vpack.c.bf16 %v2250_v8, %v2243_v7  ;;  %v2191_v4 = vld [vmem:[#allocation8 + $0x2d8] sm:$0xff]  ;;  %v2305_v7 = vld [vmem:[#allocation8 + $0x668] sm:$0xff] }
 0x22a   :  { %7352 = vmatpush3.bf16.msra.mxu1 %v7351_v13  ;;  %v2128_v13 = vld [vmem:[#allocation8 + $0xe0] sm:$0xff]  ;;  %v2199_v8 = vld [vmem:[#allocation8 + $0x318] sm:$0xff] }
 0x22b   :  { %7605 = vmatpush1.bf16.msra.mxu0 %v7604_v59  ;;  %7353 = vmatprep.subr.bf16.mxu1 %v9245_v37  ;;  %v2135_v59 = vld [vmem:[#allocation8 + $0x118] sm:$0xff] }
 0x22c   :  { %7607 = vmatprep.subr.bf16.mxu0 %v7606_v15  ;;  %v2249_v15 = vld [vmem:[#allocation8 + $0x4a8] sm:$0xff] }
 0x22e   :  { %7355 = vmatpush3.bf16.msra.mxu1 %v7354_v62  ;;  %v7372_v62 = vpack.c.bf16 %v2135_v59, %v2128_v13  ;;  %v7388_v13 = vpack.c.bf16 %v2191_v4, %v2184_v3  ;;  %v7644_v59 = vpack.c.bf16 %v2305_v7, %v2298_v5  ;;  %v2261_v7 = vld [vmem:[#allocation8 + $0x508] sm:$0xff] }
 0x22f   :  { %7609 = vmatpush1.bf16.msra.mxu0 %v7608_v25  ;;  %7356 = vmatprep.subr.bf16.mxu1 %v9245_v37  ;;  %v7628_v25 = vpack.c.bf16 %v2249_v15, %v2242_v14  ;;  %v2205_v15 = vld [vmem:[#allocation8 + $0x348] sm:$0xff] }
 0x230   :  { %7611 = vmatprep.subr.bf16.mxu0 %v7610_v28  ;;  %v2149_v28 = vld [vmem:[#allocation8 + $0x188] sm:$0xff] }
 0x231   :  { %v7376_v38 = vpack.c.bf16 %v2149_v28, %v2142_v27  ;;  %v7648_v28 = vpack.c.bf16 %v2319_v21, %v2312_v16  ;;  %v2275_v21 = vld [vmem:[#allocation8 + $0x578] sm:$0xff] }
 0x232   :  { %7358 = vmatpush3.bf16.msra.mxu1 %v7357_v33  ;;  %v2164_v33 = vld [vmem:[#allocation8 + $0x200] sm:$0xff] }
 0x233   :  { %7613 = vmatpush1.bf16.msra.mxu0 %v7612_v35  ;;  %7359 = vmatprep.subr.bf16.mxu1 %v9245_v37  ;;  %v2271_v35 = vld [vmem:[#allocation8 + $0x558] sm:$0xff] }
 0x234   :  { %7615 = vmatprep.subr.bf16.mxu0 %v7614_v40  ;;  %v7378_v40 = vpack.c.bf16 %v2164_v33, %v2157_v32  ;;  %v7634_v46 = vpack.c.bf16 %v2278_v36, %v2271_v35  ;;  %v2326_v32 = vld [vmem:[#allocation8 + $0x710] sm:$0xff]  ;;  %v2333_v35 = vld [vmem:[#allocation8 + $0x748] sm:$0xff]  ;;  %v2227_v36 = vld [vmem:[#allocation8 + $0x3f8] sm:$0xff] }
 0x235   :  { %v7652_v43 = vpack.c.bf16 %v2333_v35, %v2326_v32  ;;  %v2289_v35 = vld [vmem:[#allocation8 + $0x5e8] sm:$0xff] }
 0x236   :  { %7361 = vmatpush3.bf16.msra.mxu1 %v7360_v48  ;;  %v2171_v48 = vld [vmem:[#allocation8 + $0x238] sm:$0xff] }
 0x237   :  { %7617 = vmatpush1.bf16.msra.mxu0 %v7616_v50  ;;  %7363 = vmatprep.subr.bf16.mxu1 %v7362_v51  ;;  %v2178_v50 = vld [vmem:[#allocation8 + $0x270] sm:$0xff]  ;;  %v2285_v51 = vld [vmem:[#allocation8 + $0x5c8] sm:$0xff] }
 0x238   :  { %7619 = vmatprep.subr.bf16.mxu0 %v7618_v55  ;;  %v7382_v55 = vpack.c.bf16 %v2178_v50, %v2171_v48  ;;  %v7638_v39 = vpack.c.bf16 %v2292_v52, %v2285_v51  ;;  %v2340_v48 = vld [vmem:[#allocation8 + $0x780] sm:$0xff]  ;;  %v9481_v50 = vmax.f32 %v9463_v11, 0.0  ;;  %v2347_v52 = vld [vmem:[#allocation8 + $0x7b8] sm:$0xff] }
 0x239   :  { %6498 = vmatmul.mubr.f32.vlgmr.msra.gmra.mrb[10].mxu1 %v9045_v6  ;;  %v7656_v58 = vpack.c.bf16 %v2347_v52, %v2340_v48  ;;  %v2303_v52 = vld [vmem:[#allocation8 + $0x658] sm:$0xff] }
 0x23a   :  { %7365 = vmatpush1.bf16.msra.mxu1 %v7364_v61  ;;  %2985 = vmatprep.mubr.f32.mxu1 %v9466_v45  ;;  %v2185_v61 = vld [vmem:[#allocation8 + $0x2a8] sm:$0xff] }
 0x23b   :  { %7621 = vmatpush1.bf16.msra.mxu0 %v7620_v63  ;;  %7367 = vmatprep.subr.bf16.mxu1 %v7366_v0  ;;  %v2192_v63 = vld [vmem:[#allocation8 + $0x2e0] sm:$0xff]  ;;  %v2299_v0 = vld [vmem:[#allocation8 + $0x638] sm:$0xff] }
 0x23c   :  { %7623 = vmatprep.subr.bf16.mxu0 %v7622_v20  ;;  %v7386_v20 = vpack.c.bf16 %v2192_v63, %v2185_v61  ;;  %v7642_v6 = vpack.c.bf16 %v2306_v29, %v2299_v0  ;;  %v2247_v61 = vld [vmem:[#allocation8 + $0x498] sm:$0xff]  ;;  %v2354_v63 = vld [vmem:[#allocation8 + $0x7f0] sm:$0xff]  ;;  %v2361_v0 = vld [vmem:[#allocation8 + $0x828] sm:$0xff] }
 0x23d   :  { %v2255_v29 = vld [vmem:[#allocation8 + $0x4d8] sm:$0xff]  ;;  %v7404_v3 = vpack.c.bf16 %v2247_v61, %v2240_v60  ;;  %v7660_v4 = vpack.c.bf16 %v2361_v0, %v2354_v63  ;;  %v2317_v0 = vld [vmem:[#allocation8 + $0x6c8] sm:$0xff] }
 0x23e   :  { %7369 = vmatpush1.bf16.msra.mxu1 %v7368_v9  ;;  %v2206_v9 = vld [vmem:[#allocation8 + $0x350] sm:$0xff] }
 0x23f   :  { %7625 = vmatpush1.bf16.msra.mxu0 %v7624_v10  ;;  %7371 = vmatprep.subr.bf16.mxu1 %v7370_v12  ;;  %v2313_v10 = vld [vmem:[#allocation8 + $0x6a8] sm:$0xff]  ;;  %v2320_v12 = vld [vmem:[#allocation8 + $0x6e0] sm:$0xff]  ;;  %v7390_v14 = vpack.c.bf16 %v2206_v9, %v2199_v8 }
 0x240   :  { %7627 = vmatprep.subr.bf16.mxu0 %v7626_v17  ;;  %v2198_v17 = vld [vmem:[#allocation8 + $0x310] sm:$0xff]  ;;  %v7646_v19 = vpack.c.bf16 %v2320_v12, %v2313_v10  ;;  %v2368_v8 = vld [vmem:[#allocation8 + $0x860] sm:$0xff]  ;;  %v2375_v10 = vld [vmem:[#allocation8 + $0x898] sm:$0xff] }
 0x241   :  { %v7392_v27 = vpack.c.bf16 %v2205_v15, %v2198_v17  ;;  %v2269_v12 = vld [vmem:[#allocation8 + $0x548] sm:$0xff]  ;;  %v7664_v15 = vpack.c.bf16 %v2375_v10, %v2368_v8  ;;  %v2331_v10 = vld [vmem:[#allocation8 + $0x738] sm:$0xff] }
 0x242   :  { %7373 = vmatpush1.bf16.msra.mxu1 %v7372_v62  ;;  %v2220_v62 = vld [vmem:[#allocation8 + $0x3c0] sm:$0xff] }
 0x243   :  { %7629 = vmatpush1.bf16.msra.mxu0 %v7628_v25  ;;  %7375 = vmatprep.subr.bf16.mxu1 %v7374_v26  ;;  %v2327_v25 = vld [vmem:[#allocation8 + $0x718] sm:$0xff]  ;;  %v2334_v26 = vld [vmem:[#allocation8 + $0x750] sm:$0xff]  ;;  %v7394_v30 = vpack.c.bf16 %v2220_v62, %v2213_v24 }
 0x244   :  { %7631 = vmatprep.subr.bf16.mxu0 %v7630_v56  ;;  %v2212_v56 = vld [vmem:[#allocation8 + $0x380] sm:$0xff]  ;;  %v7650_v33 = vpack.c.bf16 %v2334_v26, %v2327_v25  ;;  %v2382_v24 = vld [vmem:[#allocation8 + $0x8d0] sm:$0xff]  ;;  %v2389_v25 = vld [vmem:[#allocation8 + $0x908] sm:$0xff] }
 0x245   :  { %v7396_v41 = vpack.c.bf16 %v2219_v31, %v2212_v56  ;;  %v2283_v26 = vld [vmem:[#allocation8 + $0x5b8] sm:$0xff]  ;;  %v7668_v31 = vpack.c.bf16 %v2389_v25, %v2382_v24  ;;  %v2345_v25 = vld [vmem:[#allocation8 + $0x7a8] sm:$0xff] }
 0x246   :  { %7377 = vmatpush1.bf16.msra.mxu1 %v7376_v38  ;;  %v2234_v38 = vld [vmem:[#allocation8 + $0x430] sm:$0xff] }
 0x247   :  { %7633 = vmatpush1.bf16.msra.mxu0 %v7632_v34  ;;  %7379 = vmatprep.subr.bf16.mxu1 %v7378_v40  ;;  %v2341_v34 = vld [vmem:[#allocation8 + $0x788] sm:$0xff]  ;;  %v2348_v40 = vld [vmem:[#allocation8 + $0x7c0] sm:$0xff]  ;;  %v7398_v44 = vpack.c.bf16 %v2234_v38, %v2227_v36 }
 0x248   :  { %7635 = vmatprep.subr.bf16.mxu0 %v7634_v46  ;;  %v2226_v46 = vld [vmem:[#allocation8 + $0x3f0] sm:$0xff]  ;;  %v7654_v51 = vpack.c.bf16 %v2348_v40, %v2341_v34  ;;  %v2396_v36 = vld [vmem:[#allocation8 + $0x940] sm:$0xff]  ;;  %v2403_v34 = vld [vmem:[#allocation8 + $0x978] sm:$0xff] }
 0x249   :  { %v7400_v57 = vpack.c.bf16 %v2233_v47, %v2226_v46  ;;  %v2297_v40 = vld [vmem:[#allocation8 + $0x628] sm:$0xff]  ;;  %v7672_v47 = vpack.c.bf16 %v2403_v34, %v2396_v36  ;;  %v2359_v34 = vld [vmem:[#allocation8 + $0x818] sm:$0xff] }
 0x24a   :  { %7381 = vmatpush1.bf16.msra.mxu1 %v7380_v18  ;;  %v2241_v18 = vld [vmem:[#allocation8 + $0x468] sm:$0xff] }
 0x24b   :  { %7637 = vmatpush1.bf16.msra.mxu0 %v7636_v54  ;;  %7383 = vmatprep.subr.bf16.mxu1 %v7382_v55  ;;  %v2248_v54 = vld [vmem:[#allocation8 + $0x4a0] sm:$0xff]  ;;  %v2355_v55 = vld [vmem:[#allocation8 + $0x7f8] sm:$0xff] }
 0x24c   :  { %7639 = vmatprep.subr.bf16.mxu0 %v7638_v39  ;;  %v7402_v39 = vpack.c.bf16 %v2248_v54, %v2241_v18  ;;  %v7658_v11 = vpack.c.bf16 %v2362_v49, %v2355_v55  ;;  %v2410_v18 = vld [vmem:[#allocation8 + $0x9b0] sm:$0xff]  ;;  %v2417_v55 = vld [vmem:[#allocation8 + $0x9e8] sm:$0xff]  ;;  %v2311_v49 = vld [vmem:[#allocation8 + $0x698] sm:$0xff] }
 0x24d   :  { %v7676_v61 = vpack.c.bf16 %v2417_v55, %v2410_v18  ;;  %v2373_v55 = vld [vmem:[#allocation8 + $0x888] sm:$0xff] }
 0x24e   :  { %7385 = vmatpush1.bf16.msra.mxu1 %v7384_v1  ;;  %v2262_v1 = vld [vmem:[#allocation8 + $0x510] sm:$0xff] }
 0x24f   :  { %7641 = vmatpush1.bf16.msra.mxu0 %v7640_v2  ;;  %7387 = vmatprep.subr.bf16.mxu1 %v7386_v20  ;;  %v2369_v2 = vld [vmem:[#allocation8 + $0x868] sm:$0xff]  ;;  %v2376_v20 = vld [vmem:[#allocation8 + $0x8a0] sm:$0xff]  ;;  %v7406_v5 = vpack.c.bf16 %v2262_v1, %v2255_v29 }
 0x250   :  { %7643 = vmatprep.subr.bf16.mxu0 %v7642_v6  ;;  %v2254_v6 = vld [vmem:[#allocation8 + $0x4d0] sm:$0xff]  ;;  %v7662_v9 = vpack.c.bf16 %v2376_v20, %v2369_v2  ;;  %v2424_v29 = vld [vmem:[#allocation8 + $0xa20] sm:$0xff]  ;;  %v2431_v2 = vld [vmem:[#allocation8 + $0xa58] sm:$0xff] }
 0x251   :  { %v7408_v17 = vpack.c.bf16 %v2261_v7, %v2254_v6  ;;  %v2325_v20 = vld [vmem:[#allocation8 + $0x708] sm:$0xff]  ;;  %v7680_v7 = vpack.c.bf16 %v2431_v2, %v2424_v29  ;;  %v2387_v2 = vld [vmem:[#allocation8 + $0x8f8] sm:$0xff] }
 0x252   :  { %7389 = vmatpush1.bf16.msra.mxu1 %v7388_v13  ;;  %v2276_v13 = vld [vmem:[#allocation8 + $0x580] sm:$0xff] }
 0x253   :  { %7645 = vmatpush1.bf16.msra.mxu0 %v7644_v59  ;;  %7391 = vmatprep.subr.bf16.mxu1 %v7390_v14  ;;  %v2383_v59 = vld [vmem:[#allocation8 + $0x8d8] sm:$0xff]  ;;  %v2390_v14 = vld [vmem:[#allocation8 + $0x910] sm:$0xff]  ;;  %v7410_v16 = vpack.c.bf16 %v2276_v13, %v2269_v12 }
 0x254   :  { %7647 = vmatprep.subr.bf16.mxu0 %v7646_v19  ;;  %v2268_v19 = vld [vmem:[#allocation8 + $0x540] sm:$0xff]  ;;  %v7666_v62 = vpack.c.bf16 %v2390_v14, %v2383_v59  ;;  %v2438_v12 = vld [vmem:[#allocation8 + $0xa90] sm:$0xff]  ;;  %v2445_v59 = vld [vmem:[#allocation8 + $0xac8] sm:$0xff] }
 0x255   :  { %v7412_v56 = vpack.c.bf16 %v2275_v21, %v2268_v19  ;;  %v2339_v14 = vld [vmem:[#allocation8 + $0x778] sm:$0xff]  ;;  %v7684_v21 = vpack.c.bf16 %v2445_v59, %v2438_v12  ;;  %v2394_v59 = vld [vmem:[#allocation8 + $0x930] sm:$0xff] }
 0x256   :  { %7393 = vmatpush1.bf16.msra.mxu1 %v7392_v27  ;;  %v2290_v27 = vld [vmem:[#allocation8 + $0x5f0] sm:$0xff] }
 0x257   :  { %7649 = vmatpush1.bf16.msra.mxu0 %v7648_v28  ;;  %7395 = vmatprep.subr.bf16.mxu1 %v7394_v30  ;;  %v2397_v28 = vld [vmem:[#allocation8 + $0x948] sm:$0xff]  ;;  %v2404_v30 = vld [vmem:[#allocation8 + $0x980] sm:$0xff]  ;;  %v7414_v32 = vpack.c.bf16 %v2290_v27, %v2283_v26 }
 0x258   :  { %7651 = vmatprep.subr.bf16.mxu0 %v7650_v33  ;;  %v2282_v33 = vld [vmem:[#allocation8 + $0x5b0] sm:$0xff]  ;;  %v7670_v38 = vpack.c.bf16 %v2404_v30, %v2397_v28  ;;  %v2452_v26 = vld [vmem:[#allocation8 + $0xb00] sm:$0xff]  ;;  %v2459_v28 = vld [vmem:[#allocation8 + $0xb38] sm:$0xff] }
 0x259   :  { %v7416_v46 = vpack.c.bf16 %v2289_v35, %v2282_v33  ;;  %v2353_v30 = vld [vmem:[#allocation8 + $0x7e8] sm:$0xff]  ;;  %v7688_v35 = vpack.c.bf16 %v2459_v28, %v2452_v26 }
 0x25a   :  { %3270 = vmatmul.mubr.f32.vlgmr.msra.gmra.mrb[4].mxu0 %v9481_v50  ;;  %7397 = vmatpush1.bf16.msra.mxu1 %v7396_v41  ;;  %v2304_v41 = vld [vmem:[#allocation8 + $0x660] sm:$0xff] }
 0x25b   :  { %7653 = vmatpush1.bf16.msra.mxu0 %v7652_v43  ;;  %7399 = vmatprep.subr.bf16.mxu1 %v7398_v44  ;;  %v2411_v43 = vld [vmem:[#allocation8 + $0x9b8] sm:$0xff]  ;;  %v2418_v44 = vld [vmem:[#allocation8 + $0x9f0] sm:$0xff]  ;;  %v7418_v48 = vpack.c.bf16 %v2304_v41, %v2297_v40 }
 0x25c   :  { %7655 = vmatprep.subr.bf16.mxu0 %v7654_v51  ;;  %v2296_v51 = vld [vmem:[#allocation8 + $0x620] sm:$0xff]  ;;  %v7674_v54 = vpack.c.bf16 %v2418_v44, %v2411_v43  ;;  %v2466_v40 = vld [vmem:[#allocation8 + $0xb70] sm:$0xff]  ;;  %v2473_v43 = vld [vmem:[#allocation8 + $0xba8] sm:$0xff] }
 0x25d   :  { %v7420_v60 = vpack.c.bf16 %v2303_v52, %v2296_v51  ;;  %v2367_v44 = vld [vmem:[#allocation8 + $0x858] sm:$0xff]  ;;  %v7692_v52 = vpack.c.bf16 %v2473_v43, %v2466_v40  ;;  %v2537_v43 = vld [vmem:[#allocation8 + $0xda8] sm:$0xff] }
 0x25e   :  { %7401 = vmatpush1.bf16.msra.mxu1 %v7400_v57  ;;  %v2318_v57 = vld [vmem:[#allocation8 + $0x6d0] sm:$0xff] }
 0x25f   :  { %7657 = vmatpush1.bf16.msra.mxu0 %v7656_v58  ;;  %7403 = vmatprep.subr.bf16.mxu1 %v7402_v39  ;;  %v2425_v58 = vld [vmem:[#allocation8 + $0xa28] sm:$0xff]  ;;  %v2432_v39 = vld [vmem:[#allocation8 + $0xa60] sm:$0xff]  ;;  %v7422_v63 = vpack.c.bf16 %v2318_v57, %v2311_v49 }
 0x260   :  { %7659 = vmatprep.subr.bf16.mxu0 %v7658_v11  ;;  %v2310_v11 = vld [vmem:[#allocation8 + $0x690] sm:$0xff]  ;;  %v7678_v1 = vpack.c.bf16 %v2432_v39, %v2425_v58  ;;  %v2480_v49 = vld [vmem:[#allocation8 + $0xbe0] sm:$0xff]  ;;  %v2487_v58 = vld [vmem:[#allocation8 + $0xc18] sm:$0xff] }
 0x261   :  { %v7424_v6 = vpack.c.bf16 %v2317_v0, %v2310_v11  ;;  %v2381_v39 = vld [vmem:[#allocation8 + $0x8c8] sm:$0xff]  ;;  %v7696_v0 = vpack.c.bf16 %v2487_v58, %v2480_v49  ;;  %v2543_v58 = vld [vmem:[#allocation8 + $0xdd8] sm:$0xff] }
 0x262   :  { %7405 = vmatpush1.bf16.msra.mxu1 %v7404_v3  ;;  %v2332_v3 = vld [vmem:[#allocation8 + $0x740] sm:$0xff] }
 0x263   :  { %7661 = vmatpush1.bf16.msra.mxu0 %v7660_v4  ;;  %7407 = vmatprep.subr.bf16.mxu1 %v7406_v5  ;;  %v2439_v4 = vld [vmem:[#allocation8 + $0xa98] sm:$0xff]  ;;  %v2446_v5 = vld [vmem:[#allocation8 + $0xad0] sm:$0xff]  ;;  %v7426_v8 = vpack.c.bf16 %v2332_v3, %v2325_v20 }
 0x264   :  { %7663 = vmatprep.subr.bf16.mxu0 %v7662_v9  ;;  %v2324_v9 = vld [vmem:[#allocation8 + $0x700] sm:$0xff]  ;;  %v7682_v13 = vpack.c.bf16 %v2446_v5, %v2439_v4  ;;  %v2494_v20 = vld [vmem:[#allocation8 + $0xc50] sm:$0xff]  ;;  %v2501_v4 = vld [vmem:[#allocation8 + $0xc88] sm:$0xff] }
 0x265   :  { %v7428_v19 = vpack.c.bf16 %v2331_v10, %v2324_v9  ;;  %v2395_v5 = vld [vmem:[#allocation8 + $0x938] sm:$0xff]  ;;  %v9486_v10 = vsub.s32 3, %v9451_v23  ;;  %v7700_v12 = vpack.c.bf16 %v2501_v4, %v2494_v20  ;;  %v2458_v4 = vld [vmem:[#allocation8 + $0xb30] sm:$0xff] }
 0x266   :  { %7409 = vmatpush1.bf16.msra.mxu1 %v7408_v17  ;;  %v2346_v17 = vld [vmem:[#allocation8 + $0x7b0] sm:$0xff]  ;;  %v2451_v20 = vld [vmem:[#allocation8 + $0xaf8] sm:$0xff] }
 0x267   :  { %7665 = vmatpush1.bf16.msra.mxu0 %v7664_v15  ;;  %7411 = vmatprep.subr.bf16.mxu1 %v7410_v16  ;;  %v2453_v15 = vld [vmem:[#allocation8 + $0xb08] sm:$0xff]  ;;  %v2460_v16 = vld [vmem:[#allocation8 + $0xb40] sm:$0xff]  ;;  %v7430_v24 = vpack.c.bf16 %v2346_v17, %v2339_v14 }
 0x268   :  { %7667 = vmatprep.subr.bf16.mxu0 %v7666_v62  ;;  %v2338_v62 = vld [vmem:[#allocation8 + $0x770] sm:$0xff]  ;;  %v7686_v27 = vpack.c.bf16 %v2460_v16, %v2453_v15  ;;  %v2401_v14 = vld [vmem:[#allocation8 + $0x968] sm:$0xff]  ;;  %v2508_v17 = vld [vmem:[#allocation8 + $0xcc0] sm:$0xff] }
 0x269   :  { %v7432_v33 = vpack.c.bf16 %v2345_v25, %v2338_v62  ;;  %v2515_v16 = vld [vmem:[#allocation8 + $0xcf8] sm:$0xff]  ;;  %v2530_v62 = vld [vmem:[#allocation8 + $0xd70] sm:$0xff] }
 0x26a   :  { %7413 = vmatpush1.bf16.msra.mxu1 %v7412_v56  ;;  %v2360_v56 = vld [vmem:[#allocation8 + $0x820] sm:$0xff]  ;;  %v9488_v25 = vld [vmem:[#allocation7] sm:$0xff]  ;;  %v7704_v28 = vpack.c.bf16 %v2515_v16, %v2508_v17  ;;  %v2465_v17 = vld [vmem:[#allocation8 + $0xb68] sm:$0xff] }
 0x26b   :  { %7669 = vmatpush1.bf16.msra.mxu0 %v7668_v31  ;;  %7415 = vmatprep.subr.bf16.mxu1 %v7414_v32  ;;  %v2467_v31 = vld [vmem:[#allocation8 + $0xb78] sm:$0xff]  ;;  %v2474_v32 = vld [vmem:[#allocation8 + $0xbb0] sm:$0xff]  ;;  %v7434_v36 = vpack.c.bf16 %v2360_v56, %v2353_v30  ;;  %v941_v26 = vrot.slane %v9488_v25, %v9486_v10  ;;  %v2408_v56 = vld [vmem:[#allocation8 + $0x9a0] sm:$0xff] }
 0x26c   :  { %7671 = vmatprep.subr.bf16.mxu0 %v7670_v38  ;;  %v2352_v38 = vld [vmem:[#allocation8 + $0x7e0] sm:$0xff]  ;;  %v7690_v41 = vpack.c.bf16 %v2474_v32, %v2467_v31  ;;  %v2415_v31 = vld [vmem:[#allocation8 + $0x9d8] sm:$0xff]  ;;  %v9493_v32 = vsub.s32 2, %v9451_v23 }
 0x26d   :  { %v7436_v51 = vpack.c.bf16 %v2359_v34, %v2352_v38  ;;  %v2529_v38 = vld [vmem:[#allocation8 + $0xd68] sm:$0xff]  ;;  %v2423_v34 = vld [vmem:[#allocation8 + $0xa18] sm:$0xff] }
 0x26e   :  { %7417 = vmatpush1.bf16.msra.mxu1 %v7416_v46  ;;  %v2374_v46 = vld [vmem:[#allocation8 + $0x890] sm:$0xff] }
 0x26f   :  { %7673 = vmatpush1.bf16.msra.mxu0 %v7672_v47  ;;  %7419 = vmatprep.subr.bf16.mxu1 %v7418_v48  ;;  %v2481_v47 = vld [vmem:[#allocation8 + $0xbe8] sm:$0xff]  ;;  %v2488_v48 = vld [vmem:[#allocation8 + $0xc20] sm:$0xff]  ;;  %v7438_v18 = vpack.c.bf16 %v2374_v46, %v2367_v44 }
 0x270   :  { %7675 = vmatprep.subr.bf16.mxu0 %v7674_v54  ;;  %v2366_v54 = vld [vmem:[#allocation8 + $0x850] sm:$0xff]  ;;  %v7694_v57 = vpack.c.bf16 %v2488_v48, %v2481_v47  ;;  %v2544_v44 = vld [vmem:[#allocation8 + $0xde0] sm:$0xff]  ;;  %v7452_v47 = vpack.c.bf16 %v2415_v31, %v2408_v56  ;;  %v2471_v31 = vld [vmem:[#allocation8 + $0xb98] sm:$0xff] }
 0x271   :  { %v7440_v11 = vpack.c.bf16 %v2373_v55, %v2366_v54  ;;  %v937_v54 = vrot.slane %v9488_v25, %v9493_v32  ;;  %v2464_v56 = vld [vmem:[#allocation8 + $0xb60] sm:$0xff] }
 0x272   :  { %7421 = vmatpush1.bf16.msra.mxu1 %v7420_v60  ;;  %v2388_v60 = vld [vmem:[#allocation8 + $0x900] sm:$0xff] }
 0x273   :  { %7677 = vmatpush1.bf16.msra.mxu0 %v7676_v61  ;;  %7423 = vmatprep.subr.bf16.mxu1 %v7422_v63  ;;  %v2495_v61 = vld [vmem:[#allocation8 + $0xc58] sm:$0xff]  ;;  %v2502_v63 = vld [vmem:[#allocation8 + $0xc90] sm:$0xff]  ;;  %v7442_v29 = vpack.c.bf16 %v2388_v60, %v2381_v39  ;;  %v2437_v39 = vld [vmem:[#allocation8 + $0xa88] sm:$0xff] }
 0x274   :  { %7679 = vmatprep.subr.bf16.mxu0 %v7678_v1  ;;  %v2380_v1 = vld [vmem:[#allocation8 + $0x8c0] sm:$0xff]  ;;  %v7698_v3 = vpack.c.bf16 %v2502_v63, %v2495_v61  ;;  %v2551_v61 = vld [vmem:[#allocation8 + $0xe18] sm:$0xff]  ;;  %v2558_v63 = vld [vmem:[#allocation8 + $0xe50] sm:$0xff] }
 0x275   :  { %v7444_v9 = vpack.c.bf16 %v2387_v2, %v2380_v1  ;;  %v2444_v60 = vld [vmem:[#allocation8 + $0xac0] sm:$0xff]  ;;  %v2443_v2 = vld [vmem:[#allocation8 + $0xab8] sm:$0xff] }
 0x276   :  { %7425 = vmatpush1.bf16.msra.mxu1 %v7424_v6  ;;  %v2402_v6 = vld [vmem:[#allocation8 + $0x970] sm:$0xff]  ;;  %v2436_v1 = vld [vmem:[#allocation8 + $0xa80] sm:$0xff] }
 0x277   :  { %7681 = vmatpush1.bf16.msra.mxu0 %v7680_v7  ;;  %7427 = vmatprep.subr.bf16.mxu1 %v7426_v8  ;;  %v2509_v7 = vld [vmem:[#allocation8 + $0xcc8] sm:$0xff]  ;;  %v2516_v8 = vld [vmem:[#allocation8 + $0xd00] sm:$0xff] }
 0x278   :  { %7683 = vmatprep.subr.bf16.mxu0 %v7682_v13  ;;  %v7446_v13 = vpack.c.bf16 %v2402_v6, %v2395_v5  ;;  %v7702_v15 = vpack.c.bf16 %v2516_v8, %v2509_v7  ;;  %v7714_v5 = vpack.c.bf16 %v2558_v63, %v2551_v61  ;;  %v2550_v6 = vld [vmem:[#allocation8 + $0xe10] sm:$0xff]  ;;  %v2557_v7 = vld [vmem:[#allocation8 + $0xe48] sm:$0xff]  ;;  %v2492_v63 = vld [vmem:[#allocation8 + $0xc40] sm:$0xff] }
 0x279   :  { %2986 = vmatmul.mubr.f32.vlgmr.msra.gmra.mrb[12].mxu1 %v9481_v50  ;;  %v2565_v8 = vld [vmem:[#allocation8 + $0xe88] sm:$0xff] }
 0x27a   :  { %7429 = vmatpush1.bf16.msra.mxu1 %v7428_v19  ;;  %v2409_v19 = vld [vmem:[#allocation8 + $0x9a8] sm:$0xff] }
 0x27b   :  { %7685 = vmatpush1.bf16.msra.mxu0 %v7684_v21  ;;  %7431 = vmatprep.subr.bf16.mxu1 %v7430_v24  ;;  %v2416_v21 = vld [vmem:[#allocation8 + $0x9e0] sm:$0xff]  ;;  %v2523_v24 = vld [vmem:[#allocation8 + $0xd38] sm:$0xff] }
 0x27c   :  { %7687 = vmatprep.subr.bf16.mxu0 %v7686_v27  ;;  %v7448_v27 = vpack.c.bf16 %v2401_v14, %v2394_v59  ;;  %v7450_v30 = vpack.c.bf16 %v2416_v21, %v2409_v19  ;;  %v2450_v59 = vld [vmem:[#allocation8 + $0xaf0] sm:$0xff]  ;;  %v2457_v14 = vld [vmem:[#allocation8 + $0xb28] sm:$0xff]  ;;  %v2472_v19 = vld [vmem:[#allocation8 + $0xba0] sm:$0xff] }
 0x27e   :  { %7433 = vmatpush1.bf16.msra.mxu1 %v7432_v33 }
 0x27f   :  { %7689 = vmatpush1.bf16.msra.mxu0 %v7688_v35  ;;  %7435 = vmatprep.subr.bf16.mxu1 %v7434_v36  ;;  %v7706_v35 = vpack.c.bf16 %v2530_v62, %v2523_v24  ;;  %v2522_v36 = vld [vmem:[#allocation8 + $0xd30] sm:$0xff]  ;;  %v2564_v24 = vld [vmem:[#allocation8 + $0xe80] sm:$0xff]  ;;  %v2571_v62 = vld [vmem:[#allocation8 + $0xeb8] sm:$0xff] }
 0x280   :  { %7691 = vmatprep.subr.bf16.mxu0 %v7690_v41  ;;  %v2430_v41 = vld [vmem:[#allocation8 + $0xa50] sm:$0xff]  ;;  %v7708_v48 = vpack.c.bf16 %v2529_v38, %v2522_v36 }
 0x281   :  { %v7454_v49 = vpack.c.bf16 %v2430_v41, %v2423_v34  ;;  %v2486_v36 = vld [vmem:[#allocation8 + $0xc10] sm:$0xff]  ;;  %v2593_v41 = vld [vmem:[#allocation8 + $0xf68] sm:$0xff] }
 0x282   :  { %7437 = vmatpush1.bf16.msra.mxu1 %v7436_v51  ;;  %v2422_v51 = vld [vmem:[#allocation8 + $0xa10] sm:$0xff] }
 0x283   :  { %7693 = vmatpush1.bf16.msra.mxu0 %v7692_v52  ;;  %7439 = vmatprep.subr.bf16.mxu1 %v7438_v18  ;;  %v2429_v52 = vld [vmem:[#allocation8 + $0xa48] sm:$0xff]  ;;  %v2536_v18 = vld [vmem:[#allocation8 + $0xda0] sm:$0xff]  ;;  %v2578_v34 = vld [vmem:[#allocation8 + $0xef0] sm:$0xff] }
 0x284   :  { %7695 = vmatprep.subr.bf16.mxu0 %v7694_v57  ;;  %v7710_v57 = vpack.c.bf16 %v2544_v44, %v2537_v43  ;;  %v2600_v43 = vld [vmem:[#allocation8 + $0xfa0] sm:$0xff]  ;;  %v7468_v44 = vpack.c.bf16 %v2471_v31, %v2464_v56  ;;  %v2542_v31 = vld [vmem:[#allocation8 + $0xdd0] sm:$0xff] }
 0x286   :  { %7441 = vmatpush1.bf16.msra.mxu1 %v7440_v11  ;;  %v7456_v11 = vpack.c.bf16 %v2429_v52, %v2422_v51  ;;  %v2493_v51 = vld [vmem:[#allocation8 + $0xc48] sm:$0xff] }
 0x287   :  { %7697 = vmatpush1.bf16.msra.mxu0 %v7696_v0  ;;  %7443 = vmatprep.subr.bf16.mxu1 %v7442_v29  ;;  %v7712_v0 = vpack.c.bf16 %v2543_v58, %v2536_v18  ;;  %v7458_v29 = vpack.c.bf16 %v2444_v60, %v2437_v39  ;;  %v2500_v18 = vld [vmem:[#allocation8 + $0xc80] sm:$0xff]  ;;  %v2607_v58 = vld [vmem:[#allocation8 + $0xfd8] sm:$0xff]  ;;  %v2614_v39 = vld [vmem:[#allocation8 + $0x1010] sm:$0xff] }
 0x288   :  { %7699 = vmatprep.subr.bf16.mxu0 %v7698_v3  ;;  %v7474_v61 = vpack.c.bf16 %v2500_v18, %v2493_v51 }
 0x28a   :  { %7445 = vmatpush1.bf16.msra.mxu1 %v7444_v9  ;;  %v2572_v9 = vld [vmem:[#allocation8 + $0xec0] sm:$0xff] }
 0x28b   :  { %7701 = vmatpush1.bf16.msra.mxu0 %v7700_v12  ;;  %7447 = vmatprep.subr.bf16.mxu1 %v7446_v13  ;;  %v7460_v12 = vpack.c.bf16 %v2443_v2, %v2436_v1  ;;  %v7462_v13 = vpack.c.bf16 %v2458_v4, %v2451_v20  ;;  %v7718_v21 = vpack.c.bf16 %v2572_v9, %v2565_v8  ;;  %v2514_v1 = vld [vmem:[#allocation8 + $0xcf0] sm:$0xff]  ;;  %v2621_v4 = vld [vmem:[#allocation8 + $0x1048] sm:$0xff] }
 0x28c   :  { %v1524_v33 = vpop.f32.mrb[2].mxu1  ;;  %7703 = vmatprep.subr.bf16.mxu0 %v7702_v15  ;;  %v7716_v15 = vpack.c.bf16 %v2557_v7, %v2550_v6  ;;  %v7730_v2 = vpack.c.bf16 %v2614_v39, %v2607_v58  ;;  %v2606_v20 = vld [vmem:[#allocation8 + $0xfd0] sm:$0xff]  ;;  %v2513_v9 = vld [vmem:[#allocation8 + $0xce8] sm:$0xff] }
 0x28d   :  { %v1526_v40 = vpop.f32.mrb[3].mxu1  ;;  %v8950_v3 = vadd.f32 %v1524_v33, %v937_v54  ;;  %v2479_v33 = vld [vmem:[#allocation8 + $0xbd8] sm:$0xff]  ;;  %v7726_v54 = vpack.c.bf16 %v2600_v43, %v2593_v41  ;;  %v2506_v8 = vld [vmem:[#allocation8 + $0xcb0] sm:$0xff] }
 0x28e   :  { %v8951_v46 = vadd.f32 %v1526_v40, %v941_v26  ;;  %7449 = vmatpush1.bf16.msra.mxu1 %v7448_v27  ;;  %v2579_v26 = vld [vmem:[#allocation8 + $0xef8] sm:$0xff]  ;;  %v2586_v27 = vld [vmem:[#allocation8 + $0xf30] sm:$0xff]  ;;  %v2585_v40 = vld [vmem:[#allocation8 + $0xf28] sm:$0xff] }
 0x28f   :  { %7705 = vmatpush1.bf16.msra.mxu0 %v7704_v28  ;;  %7451 = vmatprep.subr.bf16.mxu1 %v7450_v30  ;;  %v9501_v16 = vmax.f32 %v8950_v3, 0.0  ;;  %v7464_v28 = vpack.c.bf16 %v2457_v14, %v2450_v59  ;;  %v7466_v30 = vpack.c.bf16 %v2472_v19, %v2465_v17  ;;  %v7722_v38 = vpack.c.bf16 %v2586_v27, %v2579_v26  ;;  %v2613_v3 = vld [vmem:[#allocation8 + $0x1008] sm:$0xff]  ;;  %v2528_v59 = vld [vmem:[#allocation8 + $0xd60] sm:$0xff]  ;;  %v2635_v19 = vld [vmem:[#allocation8 + $0x10b8] sm:$0xff] }
 0x290   :  { %v9497_v55 = vmax.f32 %v8951_v46, 0.0  ;;  %7707 = vmatprep.subr.bf16.mxu0 %v7706_v35  ;;  %v7720_v35 = vpack.c.bf16 %v2571_v62, %v2564_v24  ;;  %v7470_v46 = vpack.c.bf16 %v2486_v36, %v2479_v33  ;;  %v7724_v52 = vpack.c.bf16 %v2585_v40, %v2578_v34  ;;  %v2620_v17 = vld [vmem:[#allocation8 + $0x1040] sm:$0xff]  ;;  %v2527_v27 = vld [vmem:[#allocation8 + $0xd58] sm:$0xff]  ;;  %v2641_v36 = vld [vmem:[#allocation8 + $0x10e8] sm:$0xff] }
 0x291   :  { %v7480_v24 = vpack.c.bf16 %v2513_v9, %v2506_v8  ;;  %v2520_v26 = vld [vmem:[#allocation8 + $0xd20] sm:$0xff]  ;;  %v2649_v34 = vld [vmem:[#allocation8 + $0x1128] sm:$0xff]  ;;  %v2670_v58 = vld [vmem:[#allocation8 + $0x11d0] sm:$0xff] }
 0x292   :  { %7453 = vmatpush1.bf16.msra.mxu1 %v7452_v47  ;;  %3056 = vmatprep.mubr.f32.mxu1 %v9497_v55  ;;  %v2478_v47 = vld [vmem:[#allocation8 + $0xbd0] sm:$0xff]  ;;  %v2656_v40 = vld [vmem:[#allocation8 + $0x1160] sm:$0xff]  ;;  %v7484_v43 = vpack.c.bf16 %v2527_v27, %v2520_v26  ;;  %v2569_v8 = vld [vmem:[#allocation8 + $0xea8] sm:$0xff] }
 0x293   :  { %7709 = vmatpush1.bf16.msra.mxu0 %v7708_v48  ;;  %3340 = vmatprep.mubr.f32.mxu0 %v9497_v55  ;;  %v2485_v48 = vld [vmem:[#allocation8 + $0xc08] sm:$0xff]  ;;  %v7742_v18 = vpack.c.bf16 %v2656_v40, %v2649_v34  ;;  %v2583_v26 = vld [vmem:[#allocation8 + $0xf18] sm:$0xff]  ;;  %v2590_v40 = vld [vmem:[#allocation8 + $0xf50] sm:$0xff] }
 0x294   :  { %7455 = vmatprep.subr.bf16.mxu1 %v7454_v49  ;;  %7711 = vmatprep.subr.bf16.mxu0 %v7710_v57  ;;  %v2592_v49 = vld [vmem:[#allocation8 + $0xf60] sm:$0xff]  ;;  %v2599_v57 = vld [vmem:[#allocation8 + $0xf98] sm:$0xff]  ;;  %v7472_v60 = vpack.c.bf16 %v2485_v48, %v2478_v47  ;;  %v2541_v47 = vld [vmem:[#allocation8 + $0xdc8] sm:$0xff] }
 0x295   :  { %v2549_v48 = vld [vmem:[#allocation8 + $0xe08] sm:$0xff]  ;;  %v2591_v27 = vld [vmem:[#allocation8 + $0xf58] sm:$0xff] }
 0x296   :  { %7457 = vmatpush1.bf16.msra.mxu1 %v7456_v11  ;;  %v2499_v11 = vld [vmem:[#allocation8 + $0xc78] sm:$0xff]  ;;  %v2577_v9 = vld [vmem:[#allocation8 + $0xee8] sm:$0xff] }
 0x297   :  { %7713 = vmatpush1.bf16.msra.mxu0 %v7712_v0  ;;  %7459 = vmatprep.subr.bf16.mxu1 %v7458_v29  ;;  %v2507_v0 = vld [vmem:[#allocation8 + $0xcb8] sm:$0xff]  ;;  %v7728_v29 = vpack.c.bf16 %v2599_v57, %v2592_v49  ;;  %v7476_v6 = vpack.c.bf16 %v2499_v11, %v2492_v63 }
 0x298   :  { %7715 = vmatprep.subr.bf16.mxu0 %v7714_v5  ;;  %v2628_v5 = vld [vmem:[#allocation8 + $0x1080] sm:$0xff]  ;;  %v7478_v7 = vpack.c.bf16 %v2514_v1, %v2507_v0  ;;  %v2655_v49 = vld [vmem:[#allocation8 + $0x1158] sm:$0xff] }
 0x299   :  { %v7734_v14 = vpack.c.bf16 %v2628_v5, %v2621_v4  ;;  %v2663_v57 = vld [vmem:[#allocation8 + $0x1198] sm:$0xff]  ;;  %v2684_v4 = vld [vmem:[#allocation8 + $0x1240] sm:$0xff] }
 0x29a   :  { %3341 = vmatmul.mubr.f32.vlgmr.msra.gmra.mrb[4].mxu0 %v9501_v16  ;;  %7461 = vmatpush1.bf16.msra.mxu1 %v7460_v12  ;;  %v2521_v12 = vld [vmem:[#allocation8 + $0xd28] sm:$0xff]  ;;  %v2555_v63 = vld [vmem:[#allocation8 + $0xe38] sm:$0xff]  ;;  %v7746_v1 = vpack.c.bf16 %v2670_v58, %v2663_v57  ;;  %v2604_v58 = vld [vmem:[#allocation8 + $0xfc0] sm:$0xff] }
 0x29b   :  { %7463 = vmatprep.subr.bf16.mxu1 %v7462_v13  ;;  %7717 = vmatpush1.bf16.msra.mxu0 %v7716_v15  ;;  %v7732_v13 = vpack.c.bf16 %v2613_v3, %v2606_v20  ;;  %v2627_v15 = vld [vmem:[#allocation8 + $0x1078] sm:$0xff]  ;;  %v7482_v62 = vpack.c.bf16 %v2528_v59, %v2521_v12  ;;  %v2669_v20 = vld [vmem:[#allocation8 + $0x11c8] sm:$0xff] }
 0x29c   :  { %7719 = vmatprep.subr.bf16.mxu0 %v7718_v21  ;;  %v2642_v21 = vld [vmem:[#allocation8 + $0x10f0] sm:$0xff]  ;;  %v2563_v11 = vld [vmem:[#allocation8 + $0xe78] sm:$0xff]  ;;  %v2677_v3 = vld [vmem:[#allocation8 + $0x1208] sm:$0xff] }
 0x29d   :  { %v7738_v33 = vpack.c.bf16 %v2642_v21, %v2635_v19  ;;  %v7750_v59 = vpack.c.bf16 %v2684_v4, %v2677_v3  ;;  %v2698_v19 = vld [vmem:[#allocation8 + $0x12b0] sm:$0xff] }
 0x29e   :  { %7465 = vmatpush1.bf16.msra.mxu1 %v7464_v28  ;;  %v2535_v28 = vld [vmem:[#allocation8 + $0xd98] sm:$0xff] }
 0x29f   :  { %7467 = vmatprep.subr.bf16.mxu1 %v7466_v30  ;;  %7721 = vmatpush1.bf16.msra.mxu0 %v7720_v35  ;;  %v7736_v30 = vpack.c.bf16 %v2627_v15, %v2620_v17  ;;  %v2634_v35 = vld [vmem:[#allocation8 + $0x10b0] sm:$0xff]  ;;  %v2683_v17 = vld [vmem:[#allocation8 + $0x1238] sm:$0xff] }
 0x2a0   :  { %7723 = vmatprep.subr.bf16.mxu0 %v7722_v38  ;;  %v7740_v51 = vpack.c.bf16 %v2641_v36, %v2634_v35  ;;  %v2691_v15 = vld [vmem:[#allocation8 + $0x1278] sm:$0xff]  ;;  %v2705_v35 = vld [vmem:[#allocation8 + $0x12e8] sm:$0xff]  ;;  %v2712_v36 = vld [vmem:[#allocation8 + $0x1320] sm:$0xff] }
 0x2a2   :  { %7469 = vmatpush1.bf16.msra.mxu1 %v7468_v44  ;;  %v7486_v44 = vpack.c.bf16 %v2542_v31, %v2535_v28  ;;  %v2690_v31 = vld [vmem:[#allocation8 + $0x1270] sm:$0xff] }
 0x2a3   :  { %7471 = vmatprep.subr.bf16.mxu1 %v7470_v46  ;;  %7725 = vmatpush1.bf16.msra.mxu0 %v7724_v52  ;;  %v2534_v46 = vld [vmem:[#allocation8 + $0xd90] sm:$0xff]  ;;  %v2556_v52 = vld [vmem:[#allocation8 + $0xe40] sm:$0xff] }
 0x2a4   :  { %7727 = vmatprep.subr.bf16.mxu0 %v7726_v54  ;;  %v2648_v54 = vld [vmem:[#allocation8 + $0x1120] sm:$0xff]  ;;  %v7488_v39 = vpack.c.bf16 %v2541_v47, %v2534_v46 }
 0x2a5   :  { %v7744_v0 = vpack.c.bf16 %v2655_v49, %v2648_v54  ;;  %v2612_v47 = vld [vmem:[#allocation8 + $0x1000] sm:$0xff]  ;;  %v2726_v54 = vld [vmem:[#allocation8 + $0x1390] sm:$0xff] }
 0x2a6   :  { %7473 = vmatpush1.bf16.msra.mxu1 %v7472_v60  ;;  %v7490_v60 = vpack.c.bf16 %v2556_v52, %v2549_v48  ;;  %v7758_v48 = vpack.c.bf16 %v2712_v36, %v2705_v35  ;;  %v2711_v52 = vld [vmem:[#allocation8 + $0x1318] sm:$0xff]  ;;  %v2761_v36 = vld [vmem:[#allocation8 + $0x14a8] sm:$0xff] }
 0x2a7   :  { %7475 = vmatprep.subr.bf16.mxu1 %v7474_v61  ;;  %7729 = vmatpush1.bf16.msra.mxu0 %v7728_v29  ;;  %v2548_v61 = vld [vmem:[#allocation8 + $0xe00] sm:$0xff]  ;;  %v2570_v29 = vld [vmem:[#allocation8 + $0xeb0] sm:$0xff] }
 0x2a8   :  { %7731 = vmatprep.subr.bf16.mxu0 %v7730_v2  ;;  %v2662_v2 = vld [vmem:[#allocation8 + $0x1190] sm:$0xff]  ;;  %v7492_v5 = vpack.c.bf16 %v2555_v63, %v2548_v61 }
 0x2a9   :  { %v7748_v12 = vpack.c.bf16 %v2669_v20, %v2662_v2  ;;  %v2626_v63 = vld [vmem:[#allocation8 + $0x1070] sm:$0xff]  ;;  %v2740_v2 = vld [vmem:[#allocation8 + $0x1400] sm:$0xff]  ;;  %v9508_v20 = vsub.s32 6, %v9451_v23 }
 0x2aa   :  { %7477 = vmatpush1.bf16.msra.mxu1 %v7476_v6  ;;  %v7494_v6 = vpack.c.bf16 %v2570_v29, %v2563_v11  ;;  %v2725_v29 = vld [vmem:[#allocation8 + $0x1388] sm:$0xff] }
 0x2ab   :  { %7479 = vmatprep.subr.bf16.mxu1 %v7478_v7  ;;  %7733 = vmatpush1.bf16.msra.mxu0 %v7732_v13  ;;  %v2562_v7 = vld [vmem:[#allocation8 + $0xe70] sm:$0xff]  ;;  %v2584_v13 = vld [vmem:[#allocation8 + $0xf20] sm:$0xff] }
 0x2ac   :  { %v6131_v56 = vpop.f32.mrb[4].mxu1  ;;  %7735 = vmatprep.subr.bf16.mxu0 %v7734_v14  ;;  %v2676_v14 = vld [vmem:[#allocation8 + $0x1200] sm:$0xff]  ;;  %v7496_v21 = vpack.c.bf16 %v2569_v8, %v2562_v7  ;;  %v2633_v7 = vld [vmem:[#allocation8 + $0x10a8] sm:$0xff] }
 0x2ad   :  { %v6132_v38 = vpop.f32.mrb[5].mxu1  ;;  %v7752_v28 = vpack.c.bf16 %v2683_v17, %v2676_v14  ;;  %v2747_v14 = vld [vmem:[#allocation8 + $0x1438] sm:$0xff]  ;;  %v2754_v17 = vld [vmem:[#allocation8 + $0x1470] sm:$0xff] }
 0x2ae   :  { %v9504_v41 = vadd.f32 %v6132_v38, %v6131_v56  ;;  %7481 = vmatpush1.bf16.msra.mxu1 %v7480_v24  ;;  %v7498_v24 = vpack.c.bf16 %v2584_v13, %v2577_v9  ;;  %v7754_v56 = vpack.c.bf16 %v2698_v19, %v2691_v15  ;;  %v2640_v9 = vld [vmem:[#allocation8 + $0x10e0] sm:$0xff]  ;;  %v953_v15 = vrot.slane %v9488_v25, %v9508_v20 }
 0x2af   :  { %7483 = vmatprep.subr.bf16.mxu1 %v7482_v62  ;;  %7737 = vmatpush1.bf16.msra.mxu0 %v7736_v30  ;;  %v2576_v62 = vld [vmem:[#allocation8 + $0xee0] sm:$0xff]  ;;  %v2598_v30 = vld [vmem:[#allocation8 + $0xf90] sm:$0xff] }
 0x2b0   :  { %7739 = vmatprep.subr.bf16.mxu0 %v7738_v33  ;;  %v2697_v33 = vld [vmem:[#allocation8 + $0x12a8] sm:$0xff]  ;;  %v7500_v38 = vpack.c.bf16 %v2583_v26, %v2576_v62  ;;  %v7502_v34 = vpack.c.bf16 %v2598_v30, %v2591_v27  ;;  %v2732_v13 = vld [vmem:[#allocation8 + $0x13c0] sm:$0xff]  ;;  %v2639_v62 = vld [vmem:[#allocation8 + $0x10d8] sm:$0xff] }
 0x2b1   :  { %v7756_v46 = vpack.c.bf16 %v2697_v33, %v2690_v31  ;;  %v2647_v26 = vld [vmem:[#allocation8 + $0x1118] sm:$0xff]  ;;  %v2654_v30 = vld [vmem:[#allocation8 + $0x1150] sm:$0xff]  ;;  %v2753_v33 = vld [vmem:[#allocation8 + $0x1468] sm:$0xff] }
 0x2b2   :  { %7485 = vmatpush1.bf16.msra.mxu1 %v7484_v43  ;;  %v2597_v43 = vld [vmem:[#allocation8 + $0xf88] sm:$0xff]  ;;  %v2746_v31 = vld [vmem:[#allocation8 + $0x1430] sm:$0xff] }
 0x2b3   :  { %7487 = vmatprep.subr.bf16.mxu1 %v7486_v44  ;;  %7741 = vmatpush1.bf16.msra.mxu0 %v7740_v51  ;;  %v2605_v44 = vld [vmem:[#allocation8 + $0xfc8] sm:$0xff]  ;;  %v2704_v51 = vld [vmem:[#allocation8 + $0x12e0] sm:$0xff]  ;;  %v7504_v49 = vpack.c.bf16 %v2597_v43, %v2590_v40 }
 0x2b4   :  { %7743 = vmatprep.subr.bf16.mxu0 %v7742_v18  ;;  %v2719_v18 = vld [vmem:[#allocation8 + $0x1358] sm:$0xff]  ;;  %v7506_v57 = vpack.c.bf16 %v2612_v47, %v2605_v44  ;;  %v7760_v61 = vpack.c.bf16 %v2711_v52, %v2704_v51  ;;  %v7518_v44 = vpack.c.bf16 %v2654_v30, %v2647_v26  ;;  %v2653_v47 = vld [vmem:[#allocation8 + $0x1148] sm:$0xff]  ;;  %v7772_v51 = vpack.c.bf16 %v2753_v33, %v2746_v31  ;;  %v2738_v31 = vld [vmem:[#allocation8 + $0x13f0] sm:$0xff] }
 0x2b5   :  { %v7762_v11 = vpack.c.bf16 %v2726_v54, %v2719_v18  ;;  %v2668_v18 = vld [vmem:[#allocation8 + $0x11c0] sm:$0xff]  ;;  %v2723_v30 = vld [vmem:[#allocation8 + $0x1378] sm:$0xff] }
 0x2b6   :  { %7489 = vmatpush1.bf16.msra.mxu1 %v7488_v39  ;;  %v2611_v39 = vld [vmem:[#allocation8 + $0xff8] sm:$0xff] }
 0x2b7   :  { %7491 = vmatprep.subr.bf16.mxu1 %v7490_v60  ;;  %7745 = vmatpush1.bf16.msra.mxu0 %v7744_v0  ;;  %v2619_v60 = vld [vmem:[#allocation8 + $0x1038] sm:$0xff]  ;;  %v2718_v0 = vld [vmem:[#allocation8 + $0x1350] sm:$0xff]  ;;  %v7508_v3 = vpack.c.bf16 %v2611_v39, %v2604_v58 }
 0x2b8   :  { %7747 = vmatprep.subr.bf16.mxu0 %v7746_v1  ;;  %v2733_v1 = vld [vmem:[#allocation8 + $0x13c8] sm:$0xff]  ;;  %v7510_v4 = vpack.c.bf16 %v2626_v63, %v2619_v60  ;;  %v7764_v8 = vpack.c.bf16 %v2725_v29, %v2718_v0  ;;  %v2775_v58 = vld [vmem:[#allocation8 + $0x1518] sm:$0xff]  ;;  %v2782_v39 = vld [vmem:[#allocation8 + $0x1550] sm:$0xff] }
 0x2b9   :  { %3057 = vmatmul.mubr.f32.vlgmr.msra.gmra.mrb[12].mxu1 %v9501_v16  ;;  %v2667_v63 = vld [vmem:[#allocation8 + $0x11b8] sm:$0xff]  ;;  %v2682_v29 = vld [vmem:[#allocation8 + $0x1230] sm:$0xff] }
 0x2ba   :  { %7493 = vmatpush1.bf16.msra.mxu1 %v7492_v5  ;;  %v2618_v5 = vld [vmem:[#allocation8 + $0x1030] sm:$0xff]  ;;  %v2675_v0 = vld [vmem:[#allocation8 + $0x11f8] sm:$0xff] }
 0x2bb   :  { %7495 = vmatprep.subr.bf16.mxu1 %v7494_v6  ;;  %7749 = vmatpush1.bf16.msra.mxu0 %v7748_v12  ;;  %v2625_v6 = vld [vmem:[#allocation8 + $0x1068] sm:$0xff]  ;;  %v7766_v12 = vpack.c.bf16 %v2740_v2, %v2733_v1  ;;  %v7778_v1 = vpack.c.bf16 %v2782_v39, %v2775_v58  ;;  %v2759_v58 = vld [vmem:[#allocation8 + $0x1498] sm:$0xff]  ;;  %v2766_v39 = vld [vmem:[#allocation8 + $0x14d0] sm:$0xff] }
 0x2bc   :  { %7751 = vmatprep.subr.bf16.mxu0 %v7750_v59  ;;  %v2739_v59 = vld [vmem:[#allocation8 + $0x13f8] sm:$0xff]  ;;  %v7512_v19 = vpack.c.bf16 %v2625_v6, %v2618_v5  ;;  %v2681_v5 = vld [vmem:[#allocation8 + $0x1228] sm:$0xff] }
 0x2bd   :  { %v7768_v27 = vpack.c.bf16 %v2739_v59, %v2732_v13  ;;  %v2689_v6 = vld [vmem:[#allocation8 + $0x1268] sm:$0xff]  ;;  %v2695_v13 = vld [vmem:[#allocation8 + $0x1298] sm:$0xff] }
 0x2be   :  { %7497 = vmatpush1.bf16.msra.mxu1 %v7496_v21  ;;  %v7514_v21 = vpack.c.bf16 %v2640_v9, %v2633_v7  ;;  %v2696_v7 = vld [vmem:[#allocation8 + $0x12a0] sm:$0xff]  ;;  %v2703_v59 = vld [vmem:[#allocation8 + $0x12d8] sm:$0xff] }
 0x2bf   :  { %7499 = vmatprep.subr.bf16.mxu1 %v7498_v24  ;;  %7753 = vmatpush1.bf16.msra.mxu0 %v7752_v28  ;;  %v2632_v24 = vld [vmem:[#allocation8 + $0x10a0] sm:$0xff]  ;;  %v7530_v9 = vpack.c.bf16 %v2696_v7, %v2689_v6 }
 0x2c0   :  { %7755 = vmatprep.subr.bf16.mxu0 %v7754_v56  ;;  %v7770_v56 = vpack.c.bf16 %v2754_v17, %v2747_v14  ;;  %v7516_v43 = vpack.c.bf16 %v2639_v62, %v2632_v24  ;;  %v2710_v14 = vld [vmem:[#allocation8 + $0x1310] sm:$0xff]  ;;  %v2717_v24 = vld [vmem:[#allocation8 + $0x1348] sm:$0xff]  ;;  %v2724_v62 = vld [vmem:[#allocation8 + $0x1380] sm:$0xff] }
 0x2c1   :  { %v2780_v6 = vld [vmem:[#allocation8 + $0x1540] sm:$0xff] }
 0x2c2   :  { %7501 = vmatpush1.bf16.msra.mxu1 %v7500_v38  ;;  %v2768_v38 = vld [vmem:[#allocation8 + $0x14e0] sm:$0xff] }
 0x2c3   :  { %7503 = vmatprep.subr.bf16.mxu1 %v7502_v34  ;;  %7757 = vmatpush1.bf16.msra.mxu0 %v7756_v46  ;;  %v1880_v34 = vadd.f32 %v9504_v41, %v953_v15  ;;  %v2646_v46 = vld [vmem:[#allocation8 + $0x1110] sm:$0xff]  ;;  %v7774_v54 = vpack.c.bf16 %v2768_v38, %v2761_v36  ;;  %v7534_v15 = vpack.c.bf16 %v2710_v14, %v2703_v59  ;;  %v9519_v36 = vsub.s32 5, %v9451_v23  ;;  %v2788_v14 = vld [vmem:[#allocation8 + $0x1580] sm:$0xff] }
 0x2c4   :  { %7759 = vmatprep.subr.bf16.mxu0 %v7758_v48  ;;  %v2661_v48 = vld [vmem:[#allocation8 + $0x1188] sm:$0xff]  ;;  %v7520_v41 = vpack.c.bf16 %v2653_v47, %v2646_v46 }
 0x2c5   :  { %v7522_v60 = vpack.c.bf16 %v2668_v18, %v2661_v48  ;;  %v949_v48 = vrot.slane %v9488_v25, %v9519_v36  ;;  %v2744_v18 = vld [vmem:[#allocation8 + $0x1420] sm:$0xff] }
 0x2c6   :  { %7505 = vmatpush1.bf16.msra.mxu1 %v7504_v49  ;;  %v2760_v49 = vld [vmem:[#allocation8 + $0x14a0] sm:$0xff] }
 0x2c7   :  { %7507 = vmatprep.subr.bf16.mxu1 %v7506_v57  ;;  %7761 = vmatpush1.bf16.msra.mxu0 %v7760_v61  ;;  %v2767_v57 = vld [vmem:[#allocation8 + $0x14d8] sm:$0xff]  ;;  %v2660_v61 = vld [vmem:[#allocation8 + $0x1180] sm:$0xff] }
 0x2c8   :  { %7763 = vmatprep.subr.bf16.mxu0 %v7762_v11  ;;  %v7776_v11 = vpack.c.bf16 %v2767_v57, %v2760_v49  ;;  %v7524_v2 = vpack.c.bf16 %v2667_v63, %v2660_v61 }
 0x2ca   :  { %7509 = vmatpush1.bf16.msra.mxu1 %v7508_v3  ;;  %v7526_v3 = vpack.c.bf16 %v2682_v29, %v2675_v0  ;;  %v2781_v0 = vld [vmem:[#allocation8 + $0x1548] sm:$0xff]  ;;  %v2758_v29 = vld [vmem:[#allocation8 + $0x1490] sm:$0xff] }
 0x2cb   :  { %7511 = vmatprep.subr.bf16.mxu1 %v7510_v4  ;;  %7765 = vmatpush1.bf16.msra.mxu0 %v7764_v8  ;;  %v2674_v4 = vld [vmem:[#allocation8 + $0x11f0] sm:$0xff] }
 0x2cc   :  { %v6166_v28 = vpop.f32.mrb[6].mxu1  ;;  %7767 = vmatprep.subr.bf16.mxu0 %v7766_v12  ;;  %v7528_v8 = vpack.c.bf16 %v2681_v5, %v2674_v4  ;;  %v2688_v12 = vld [vmem:[#allocation8 + $0x1260] sm:$0xff]  ;;  %v7550_v4 = vpack.c.bf16 %v2766_v39, %v2759_v58  ;;  %v2773_v5 = vld [vmem:[#allocation8 + $0x1508] sm:$0xff]  ;;  %v2831_v58 = vld [vmem:[#allocation8 + $0x16d8] sm:$0xff] }
 0x2cd   :  { %v6167_v35 = vpop.f32.mrb[7].mxu1  ;;  %v7532_v17 = vpack.c.bf16 %v2695_v13, %v2688_v12  ;;  %v2838_v39 = vld [vmem:[#allocation8 + $0x1710] sm:$0xff] }
 0x2ce   :  { %v6168_v40 = vadd.f32 %v6167_v35, %v6166_v28  ;;  %7513 = vmatpush1.bf16.msra.mxu1 %v7512_v19  ;;  %v2702_v19 = vld [vmem:[#allocation8 + $0x12d0] sm:$0xff]  ;;  %v2716_v28 = vld [vmem:[#allocation8 + $0x1340] sm:$0xff]  ;;  %v9516_v35 = vsub.s32 4, %v9451_v23 }
 0x2cf   :  { %7515 = vmatprep.subr.bf16.mxu1 %v7514_v21  ;;  %7769 = vmatpush1.bf16.msra.mxu0 %v7768_v27  ;;  %v2709_v21 = vld [vmem:[#allocation8 + $0x1308] sm:$0xff]  ;;  %v7538_v27 = vpack.c.bf16 %v2724_v62, %v2717_v24  ;;  %v7540_v33 = vpack.c.bf16 %v2723_v30, %v2716_v28  ;;  %v2803_v24 = vld [vmem:[#allocation8 + $0x15f8] sm:$0xff] }
 0x2d0   :  { %v9513_v52 = vadd.f32 %v6168_v40, %v1880_v34  ;;  %7771 = vmatprep.subr.bf16.mxu0 %v7770_v56  ;;  %v7536_v26 = vpack.c.bf16 %v2709_v21, %v2702_v19  ;;  %v2731_v56 = vld [vmem:[#allocation8 + $0x13b8] sm:$0xff]  ;;  %v2730_v34 = vld [vmem:[#allocation8 + $0x13b0] sm:$0xff]  ;;  %v2737_v40 = vld [vmem:[#allocation8 + $0x13e8] sm:$0xff]  ;;  %v945_v46 = vrot.slane %v9488_v25, %v9516_v35  ;;  %v7554_v19 = vpack.c.bf16 %v2780_v6, %v2773_v5 }
 0x2d1   :  { %v7542_v38 = vpack.c.bf16 %v2738_v31, %v2731_v56  ;;  %v7544_v47 = vpack.c.bf16 %v2737_v40, %v2730_v34  ;;  %v2765_v25 = vld [vmem:[#allocation8 + $0x14c8] sm:$0xff]  ;;  %v2779_v21 = vld [vmem:[#allocation8 + $0x1538] sm:$0xff]  ;;  %v2802_v56 = vld [vmem:[#allocation8 + $0x15f0] sm:$0xff] }
 0x2d2   :  { %7517 = vmatpush1.bf16.msra.mxu1 %v7516_v43  ;;  %v2745_v43 = vld [vmem:[#allocation8 + $0x1428] sm:$0xff]  ;;  %v7552_v13 = vpack.c.bf16 %v2765_v25, %v2758_v29  ;;  %v2787_v62 = vld [vmem:[#allocation8 + $0x1578] sm:$0xff]  ;;  %v2836_v6 = vld [vmem:[#allocation8 + $0x1700] sm:$0xff] }
 0x2d3   :  { %7519 = vmatprep.subr.bf16.mxu1 %v7518_v44  ;;  %7773 = vmatpush1.bf16.msra.mxu0 %v7772_v51  ;;  %v2752_v44 = vld [vmem:[#allocation8 + $0x1460] sm:$0xff]  ;;  %v2809_v31 = vld [vmem:[#allocation8 + $0x1628] sm:$0xff] }
 0x2d4   :  { %7775 = vmatprep.subr.bf16.mxu0 %v7774_v54  ;;  %v7546_v51 = vpack.c.bf16 %v2752_v44, %v2745_v43  ;;  %v2751_v54 = vld [vmem:[#allocation8 + $0x1458] sm:$0xff]  ;;  %v2793_v34 = vld [vmem:[#allocation8 + $0x15a8] sm:$0xff]  ;;  %v2824_v43 = vld [vmem:[#allocation8 + $0x16a0] sm:$0xff] }
 0x2d5   :  { %v7548_v63 = vpack.c.bf16 %v2751_v54, %v2744_v18  ;;  %v2817_v40 = vld [vmem:[#allocation8 + $0x1668] sm:$0xff]  ;;  %v2816_v18 = vld [vmem:[#allocation8 + $0x1660] sm:$0xff]  ;;  %v2823_v54 = vld [vmem:[#allocation8 + $0x1698] sm:$0xff] }
 0x2d6   :  { %7521 = vmatpush1.bf16.msra.mxu1 %v7520_v41  ;;  %v2801_v44 = vld [vmem:[#allocation8 + $0x15e8] sm:$0xff] }
 0x2d7   :  { %7523 = vmatprep.subr.bf16.mxu1 %v7522_v60  ;;  %7777 = vmatpush1.bf16.msra.mxu0 %v7776_v11  ;;  %v2774_v11 = vld [vmem:[#allocation8 + $0x1510] sm:$0xff]  ;;  %v2837_v29 = vld [vmem:[#allocation8 + $0x1708] sm:$0xff] }
 0x2d8   :  { %7779 = vmatprep.subr.bf16.mxu0 %v7778_v1  ;;  %v2829_v5 = vld [vmem:[#allocation8 + $0x16c8] sm:$0xff] }
 0x2da   :  { %7525 = vmatpush1.bf16.msra.mxu1 %v7524_v2  ;;  %v2789_v2 = vld [vmem:[#allocation8 + $0x1588] sm:$0xff] }
 0x2db   :  { %7527 = vmatprep.subr.bf16.mxu1 %v7526_v3  ;;  %v2796_v3 = vld [vmem:[#allocation8 + $0x15c0] sm:$0xff] }
 0x2dc   :  { %v7782_v59 = vpack.c.bf16 %v2796_v3, %v2789_v2  ;;  %v2821_v2 = vld [vmem:[#allocation8 + $0x1688] sm:$0xff] }
 0x2dd   :  { %v2845_v3 = vld [vmem:[#allocation8 + $0x1748] sm:$0xff] }
 0x2de   :  { %7529 = vmatpush1.bf16.msra.mxu1 %v7528_v8 }
 0x2df   :  { %7531 = vmatprep.subr.bf16.mxu1 %v7530_v9  ;;  %v7780_v9 = vpack.c.bf16 %v2781_v0, %v2774_v11  ;;  %v7794_v11 = vpack.c.bf16 %v2838_v39, %v2831_v58  ;;  %v2830_v0 = vld [vmem:[#allocation8 + $0x16d0] sm:$0xff]  ;;  %v2225_v39 = vld [vmem:[#allocation8 + $0x3e8] sm:$0xff] }
 0x2e0   :  { %v2218_v58 = vld [vmem:[#allocation8 + $0x3b0] sm:$0xff] }
 0x2e2   :  { %7533 = vmatpush1.bf16.msra.mxu1 %v7532_v17  ;;  %v2795_v17 = vld [vmem:[#allocation8 + $0x15b8] sm:$0xff] }
 0x2e3   :  { %7535 = vmatprep.subr.bf16.mxu1 %v7534_v15  ;;  %v2772_v15 = vld [vmem:[#allocation8 + $0x1500] sm:$0xff] }
 0x2e4   :  { %v7556_v28 = vpack.c.bf16 %v2779_v21, %v2772_v15  ;;  %v2828_v15 = vld [vmem:[#allocation8 + $0x16c0] sm:$0xff]  ;;  %v2835_v21 = vld [vmem:[#allocation8 + $0x16f8] sm:$0xff] }
 0x2e6   :  { %7537 = vmatpush1.bf16.msra.mxu1 %v7536_v26  ;;  %v2794_v26 = vld [vmem:[#allocation8 + $0x15b0] sm:$0xff] }
 0x2e7   :  { %7539 = vmatprep.subr.bf16.mxu1 %v7538_v27  ;;  %v7784_v27 = vpack.c.bf16 %v2795_v17, %v2788_v14  ;;  %v2844_v14 = vld [vmem:[#allocation8 + $0x1740] sm:$0xff]  ;;  %v2851_v17 = vld [vmem:[#allocation8 + $0x1778] sm:$0xff] }
 0x2ea   :  { %7541 = vmatpush1.bf16.msra.mxu1 %v7540_v33  ;;  %v2786_v33 = vld [vmem:[#allocation8 + $0x1570] sm:$0xff] }
 0x2eb   :  { %7543 = vmatprep.subr.bf16.mxu1 %v7542_v38  ;;  %v7558_v38 = vpack.c.bf16 %v2794_v26, %v2787_v62  ;;  %v2843_v62 = vld [vmem:[#allocation8 + $0x1738] sm:$0xff]  ;;  %v2850_v26 = vld [vmem:[#allocation8 + $0x1770] sm:$0xff] }
 0x2ec   :  { %v6201_v49 = vpop.f32.mrb[8].mxu1 }
 0x2ed   :  { %v1808_v23 = vpop.f32.mrb[2].mxu0  ;;  %v6202_v57 = vpop.f32.mrb[9].mxu1 }
 0x2ee   :  { %v8952_v41 = vadd.f32 %v1808_v23, %v945_v46  ;;  %v1810_v60 = vpop.f32.mrb[3].mxu0  ;;  %v6203_v61 = vadd.f32 %v6202_v57, %v6201_v49  ;;  %7545 = vmatpush1.bf16.msra.mxu1 %v7544_v47  ;;  %v2808_v46 = vld [vmem:[#allocation8 + $0x1620] sm:$0xff]  ;;  %v7788_v47 = vpack.c.bf16 %v2809_v31, %v2802_v56  ;;  %v2807_v57 = vld [vmem:[#allocation8 + $0x1618] sm:$0xff]  ;;  %v2858_v56 = vld [vmem:[#allocation8 + $0x17b0] sm:$0xff] }
 0x2ef   :  { %v8953_v1 = vadd.f32 %v1810_v60, %v949_v48  ;;  %7547 = vmatprep.subr.bf16.mxu1 %v7546_v51  ;;  %v7560_v48 = vpack.c.bf16 %v2793_v34, %v2786_v33  ;;  %v7790_v51 = vpack.c.bf16 %v2824_v43, %v2817_v40  ;;  %v2800_v49 = vld [vmem:[#allocation8 + $0x15e0] sm:$0xff]  ;;  %v7562_v23 = vpack.c.bf16 %v2808_v46, %v2801_v44  ;;  %v2822_v60 = vld [vmem:[#allocation8 + $0x1690] sm:$0xff]  ;;  %v2865_v31 = vld [vmem:[#allocation8 + $0x17e8] sm:$0xff] }
 0x2f0   :  { %v9526_v7 = vadd.f32 %v6203_v61, %v9513_v52  ;;  %v9530_v12 = vmax.f32 %v8952_v41, 0.0  ;;  %v2810_v52 = vld [vmem:[#allocation8 + $0x1630] sm:$0xff]  ;;  %v2815_v41 = vld [vmem:[#allocation8 + $0x1658] sm:$0xff]  ;;  %v7792_v61 = vpack.c.bf16 %v2823_v54, %v2816_v18  ;;  %v2849_v34 = vld [vmem:[#allocation8 + $0x1768] sm:$0xff] }
 0x2f1   :  { %v9528_v8 = vmax.f32 %v8953_v1, 0.0  ;;  %v7786_v30 = vpack.c.bf16 %v2810_v52, %v2803_v24  ;;  %v2814_v1 = vld [vmem:[#allocation8 + $0x1650] sm:$0xff]  ;;  %v7566_v25 = vpack.c.bf16 %v2822_v60, %v2815_v41  ;;  %v2859_v24 = vld [vmem:[#allocation8 + $0x17b8] sm:$0xff]  ;;  %v2873_v40 = vld [vmem:[#allocation8 + $0x1828] sm:$0xff] }
 0x2f2   :  { %7549 = vmatpush1.bf16.msra.mxu1 %v7548_v63  ;;  %v7564_v63 = vpack.c.bf16 %v2807_v57, %v2800_v49  ;;  %v2866_v52 = vld [vmem:[#allocation8 + $0x17f0] sm:$0xff]  ;;  %v2880_v43 = vld [vmem:[#allocation8 + $0x1860] sm:$0xff]  ;;  %v2857_v44 = vld [vmem:[#allocation8 + $0x17a8] sm:$0xff] }
 0x2f3   :  { %3127 = vmatprep.mubr.f32.mxu1 %v9528_v8  ;;  %3411 = vmatprep.mubr.f32.mxu0 %v9528_v8  ;;  %v2842_v33 = vld [vmem:[#allocation8 + $0x1730] sm:$0xff]  ;;  %v2864_v46 = vld [vmem:[#allocation8 + $0x17e0] sm:$0xff]  ;;  %v2879_v54 = vld [vmem:[#allocation8 + $0x1858] sm:$0xff] }
 0x2f4   :  { %3412 = vmatmul.mubr.f32.vlgmr.msra.gmra.mrb[4].mxu0 %v9530_v12  ;;  %7551 = vmatprep.subr.bf16.mxu1 %v7550_v4  ;;  %v2852_v4 = vld [vmem:[#allocation8 + $0x1780] sm:$0xff]  ;;  %v2863_v57 = vld [vmem:[#allocation8 + $0x17d8] sm:$0xff] }
 0x2f5   :  { %7781 = vmatpush1.bf16.msra.mxu0 %v7780_v9  ;;  %3482 = vmatprep.mubr.f32.mxu0 %v9244_v53  ;;  %v7796_v9 = vpack.c.bf16 %v2837_v29, %v2830_v0  ;;  %v2872_v18 = vld [vmem:[#allocation8 + $0x1820] sm:$0xff]  ;;  %v2871_v60 = vld [vmem:[#allocation8 + $0x1818] sm:$0xff] }
 0x2f6   :  { %7553 = vmatpush1.bf16.msra.mxu1 %v7552_v13  ;;  %7783 = vmatprep.subr.bf16.mxu0 %v7782_v59  ;;  %v7568_v13 = vpack.c.bf16 %v2821_v2, %v2814_v1  ;;  %v7798_v59 = vpack.c.bf16 %v2852_v4, %v2845_v3  ;;  %v2856_v49 = vld [vmem:[#allocation8 + $0x17a0] sm:$0xff]  ;;  %v7808_v0 = vpack.c.bf16 %v2879_v54, %v2872_v18  ;;  %v2113_v2 = vld [vmem:[#allocation8 + $0x68] sm:$0xff]  ;;  %v2870_v3 = vld [vmem:[#allocation8 + $0x1810] sm:$0xff] }
 0x2f7   :  { %7555 = vmatprep.subr.bf16.mxu1 %v7554_v19  ;;  %v7570_v19 = vpack.c.bf16 %v2836_v6, %v2829_v5  ;;  %v7580_v29 = vpack.c.bf16 %v2863_v57, %v2856_v49  ;;  %v8034_v1 = vpack.c.bf16 %v2225_v39, %v2218_v58  ;;  %v2877_v5 = vld [vmem:[#allocation8 + $0x1848] sm:$0xff]  ;;  %v2232_v6 = vld [vmem:[#allocation8 + $0x420] sm:$0xff]  ;;  %v2155_v57 = vld [vmem:[#allocation8 + $0x1b8] sm:$0xff] }
 0x2f8   :  { %v2132_v58 = vld [vmem:[#allocation8 + $0x100] sm:$0xff] }
 0x2f9   :  { %7785 = vmatpush1.bf16.msra.mxu0 %v7784_v27  ;;  %3128 = vmatmul.mubr.f32.vlgmr.msra.gmra.mrb[12].mxu1 %v9530_v12  ;;  %v7800_v27 = vpack.c.bf16 %v2851_v17, %v2844_v14  ;;  %v2112_v14 = vld [vmem:[#allocation8 + $0x60] sm:$0xff]  ;;  %v7584_v17 = vpack.c.bf16 %v2877_v5, %v2870_v3 }
 0x2fa   :  { %7557 = vmatpush1.bf16.msra.mxu1 %v7556_v28  ;;  %7787 = vmatprep.subr.bf16.mxu0 %v7786_v30  ;;  %v7572_v28 = vpack.c.bf16 %v2835_v21, %v2828_v15  ;;  %v7802_v30 = vpack.c.bf16 %v2866_v52, %v2859_v24  ;;  %v2127_v21 = vld [vmem:[#allocation8 + $0xd8] sm:$0xff]  ;;  %v2104_v52 = vld [vmem:[#allocation8 + $0x20] sm:$0xff] }
 0x2fb   :  { %7559 = vmatprep.subr.bf16.mxu1 %v7558_v38  ;;  %3198 = vmatprep.mubr.f32.mxu1 %v9244_v53  ;;  %v7574_v38 = vpack.c.bf16 %v2850_v26, %v2843_v62  ;;  %v2111_v62 = vld [vmem:[#allocation8 + $0x58] sm:$0xff]  ;;  %v2246_v26 = vld [vmem:[#allocation8 + $0x490] sm:$0xff]  ;;  %v2288_v5 = vld [vmem:[#allocation8 + $0x5e0] sm:$0xff] }
 0x2fd   :  { %7789 = vmatpush1.bf16.msra.mxu0 %v7788_v47  ;;  %v7804_v47 = vpack.c.bf16 %v2865_v31, %v2858_v56  ;;  %v7812_v31 = vpack.c.bf16 %v2111_v62, %v2104_v52  ;;  %v2167_v52 = vld [vmem:[#allocation8 + $0x218] sm:$0xff]  ;;  %v2302_v62 = vld [vmem:[#allocation8 + $0x650] sm:$0xff] }
 0x2fe   :  { %7561 = vmatpush1.bf16.msra.mxu1 %v7560_v48  ;;  %7791 = vmatprep.subr.bf16.mxu0 %v7790_v51  ;;  %v7576_v48 = vpack.c.bf16 %v2849_v34, %v2842_v33  ;;  %v7806_v51 = vpack.c.bf16 %v2880_v43, %v2873_v40  ;;  %v2134_v33 = vld [vmem:[#allocation8 + $0x110] sm:$0xff] }
 0x2ff   :  { %7563 = vmatprep.subr.bf16.mxu1 %v7562_v23  ;;  %v7578_v23 = vpack.c.bf16 %v2864_v46, %v2857_v44  ;;  %v2118_v34 = vld [vmem:[#allocation8 + $0x90] sm:$0xff]  ;;  %v2125_v44 = vld [vmem:[#allocation8 + $0xc8] sm:$0xff]  ;;  %v2260_v46 = vld [vmem:[#allocation8 + $0x500] sm:$0xff] }
 0x300   :  { %v7816_v54 = vpack.c.bf16 %v2125_v44, %v2118_v34  ;;  %v2174_v34 = vld [vmem:[#allocation8 + $0x250] sm:$0xff]  ;;  %v2316_v44 = vld [vmem:[#allocation8 + $0x6c0] sm:$0xff] }
 0x301   :  { %7793 = vmatpush1.bf16.msra.mxu0 %v7792_v61  ;;  %v2878_v61 = vld [vmem:[#allocation8 + $0x1850] sm:$0xff] }
 0x302   :  { %7565 = vmatpush1.bf16.msra.mxu1 %v7564_v63  ;;  %7795 = vmatprep.subr.bf16.mxu0 %v7794_v11  ;;  %v7582_v4 = vpack.c.bf16 %v2878_v61, %v2871_v60  ;;  %v2274_v60 = vld [vmem:[#allocation8 + $0x570] sm:$0xff]  ;;  %v2281_v61 = vld [vmem:[#allocation8 + $0x5a8] sm:$0xff] }
 0x303   :  { %7567 = vmatprep.subr.bf16.mxu1 %v7566_v25  ;;  %v2106_v25 = vld [vmem:[#allocation8 + $0x30] sm:$0xff] }
 0x305   :  { %7797 = vmatpush1.bf16.msra.mxu0 %v7796_v9  ;;  %v2239_v9 = vld [vmem:[#allocation8 + $0x458] sm:$0xff] }
 0x306   :  { %7569 = vmatpush1.bf16.msra.mxu1 %v7568_v13  ;;  %7799 = vmatprep.subr.bf16.mxu0 %v7798_v59  ;;  %v2105_v59 = vld [vmem:[#allocation8 + $0x28] sm:$0xff]  ;;  %v8038_v15 = vpack.c.bf16 %v2239_v9, %v2232_v6  ;;  %v2295_v6 = vld [vmem:[#allocation8 + $0x618] sm:$0xff] }
 0x307   :  { %7571 = vmatprep.subr.bf16.mxu1 %v7570_v19  ;;  %v2120_v19 = vld [vmem:[#allocation8 + $0xa0] sm:$0xff]  ;;  %v7810_v24 = vpack.c.bf16 %v2112_v14, %v2105_v59  ;;  %v2161_v9 = vld [vmem:[#allocation8 + $0x1e8] sm:$0xff] }
 0x308   :  { %v8040_v56 = vpack.c.bf16 %v2127_v21, %v2120_v19  ;;  %v2168_v59 = vld [vmem:[#allocation8 + $0x220] sm:$0xff]  ;;  %v2183_v19 = vld [vmem:[#allocation8 + $0x298] sm:$0xff] }
 0x309   :  { %7801 = vmatpush1.bf16.msra.mxu0 %v7800_v27  ;;  %v2253_v27 = vld [vmem:[#allocation8 + $0x4c8] sm:$0xff]  ;;  %v2160_v21 = vld [vmem:[#allocation8 + $0x1e0] sm:$0xff] }
 0x30a   :  { %7573 = vmatpush1.bf16.msra.mxu1 %v7572_v28  ;;  %7803 = vmatprep.subr.bf16.mxu0 %v7802_v30  ;;  %v2119_v28 = vld [vmem:[#allocation8 + $0x98] sm:$0xff]  ;;  %v2126_v30 = vld [vmem:[#allocation8 + $0xd0] sm:$0xff]  ;;  %v8042_v40 = vpack.c.bf16 %v2253_v27, %v2246_v26  ;;  %v2309_v26 = vld [vmem:[#allocation8 + $0x688] sm:$0xff] }
 0x30b   :  { %7575 = vmatprep.subr.bf16.mxu1 %v7574_v38  ;;  %v2141_v38 = vld [vmem:[#allocation8 + $0x148] sm:$0xff]  ;;  %v7814_v43 = vpack.c.bf16 %v2126_v30, %v2119_v28  ;;  %v2175_v27 = vld [vmem:[#allocation8 + $0x258] sm:$0xff]  ;;  %v2182_v28 = vld [vmem:[#allocation8 + $0x290] sm:$0xff] }
 0x30c   :  { %v2089_v41 = vpop.f32.mrb[10].mxu1  ;;  %v8044_v18 = vpack.c.bf16 %v2141_v38, %v2134_v33  ;;  %v2190_v33 = vld [vmem:[#allocation8 + $0x2d0] sm:$0xff]  ;;  %v2197_v38 = vld [vmem:[#allocation8 + $0x308] sm:$0xff] }
 0x30d   :  { %7805 = vmatpush1.bf16.msra.mxu0 %v7804_v47  ;;  %v2090_v63 = vadd.f32 %v2089_v41, %v9526_v7  ;;  %v6499_v11 = vpop.f32.mrb[11].mxu1  ;;  %v8036_v7 = vpack.c.bf16 %v2113_v2, %v2106_v25  ;;  %v2267_v47 = vld [vmem:[#allocation8 + $0x538] sm:$0xff]  ;;  %v2169_v25 = vld [vmem:[#allocation8 + $0x228] sm:$0xff]  ;;  %v2146_v2 = vld [vmem:[#allocation8 + $0x170] sm:$0xff] }
 0x30e   :  { %7577 = vmatpush1.bf16.msra.mxu1 %v7576_v48  ;;  %7807 = vmatprep.subr.bf16.mxu0 %v7806_v51  ;;  %v2133_v48 = vld [vmem:[#allocation8 + $0x108] sm:$0xff]  ;;  %v2140_v51 = vld [vmem:[#allocation8 + $0x140] sm:$0xff]  ;;  %v8046_v49 = vpack.c.bf16 %v2267_v47, %v2260_v46  ;;  %v2139_v41 = vld [vmem:[#allocation8 + $0x138] sm:$0xff] }
 0x30f   :  { %7579 = vmatprep.subr.bf16.mxu1 %v7578_v23  ;;  %v9539_v13 = vmax.f32 %v2090_v63, 0.0  ;;  %v2148_v23 = vld [vmem:[#allocation8 + $0x180] sm:$0xff]  ;;  %v7818_v39 = vpack.c.bf16 %v2140_v51, %v2133_v48  ;;  %v2147_v63 = vld [vmem:[#allocation8 + $0x178] sm:$0xff]  ;;  %v2154_v11 = vld [vmem:[#allocation8 + $0x1b0] sm:$0xff]  ;;  %v8060_v51 = vpack.c.bf16 %v2197_v38, %v2190_v33 }
 0x310   :  { %v7822_v3 = vpack.c.bf16 %v2154_v11, %v2147_v63  ;;  %v2323_v46 = vld [vmem:[#allocation8 + $0x6f8] sm:$0xff]  ;;  %v2189_v47 = vld [vmem:[#allocation8 + $0x2c8] sm:$0xff]  ;;  %v2196_v48 = vld [vmem:[#allocation8 + $0x300] sm:$0xff] }
 0x311   :  { %7809 = vmatpush1.bf16.msra.mxu0 %v7808_v0  ;;  %v8048_v0 = vpack.c.bf16 %v2155_v57, %v2148_v23  ;;  %v2211_v23 = vld [vmem:[#allocation8 + $0x378] sm:$0xff]  ;;  %v2188_v57 = vld [vmem:[#allocation8 + $0x2c0] sm:$0xff]  ;;  %v2210_v63 = vld [vmem:[#allocation8 + $0x370] sm:$0xff] }
 0x312   :  { %7581 = vmatpush1.bf16.msra.mxu1 %v7580_v29  ;;  %8035 = vmatprep.subr.bf16.mxu0 %v8034_v1  ;;  %v7820_v29 = vpack.c.bf16 %v2139_v41, %v2132_v58  ;;  %v8050_v1 = vpack.c.bf16 %v2281_v61, %v2274_v60  ;;  %v7834_v58 = vpack.c.bf16 %v2196_v48, %v2189_v47  ;;  %v2442_v41 = vld [vmem:[#allocation8 + $0xab0] sm:$0xff]  ;;  %v2449_v60 = vld [vmem:[#allocation8 + $0xae8] sm:$0xff]  ;;  %v2203_v61 = vld [vmem:[#allocation8 + $0x338] sm:$0xff] }
 0x313   :  { %7583 = vmatprep.subr.bf16.mxu1 %v7582_v4  ;;  %v2153_v4 = vld [vmem:[#allocation8 + $0x1a8] sm:$0xff]  ;;  %v2230_v38 = vld [vmem:[#allocation8 + $0x410] sm:$0xff]  ;;  %v2252_v47 = vld [vmem:[#allocation8 + $0x4c0] sm:$0xff] }
 0x314   :  { %3483 = vmatmul.mubr.f32.vlgmr.msra.gmra.mrb[4].mxu0 %v9539_v13  ;;  %v2365_v33 = vld [vmem:[#allocation8 + $0x848] sm:$0xff] }
 0x315   :  { %8037 = vmatpush3.bf16.msra.mxu0 %v8036_v7  ;;  %3837 = vmatprep.mubr.f32.mxu0 %v9466_v45  ;;  %v7824_v7 = vpack.c.bf16 %v2153_v4, %v2146_v2  ;;  %v7838_v2 = vpack.c.bf16 %v2210_v63, %v2203_v61  ;;  %v2456_v4 = vld [vmem:[#allocation8 + $0xb20] sm:$0xff]  ;;  %v2266_v61 = vld [vmem:[#allocation8 + $0x530] sm:$0xff] }
 0x316   :  { %7585 = vmatpush1.bf16.msra.mxu1 %v7584_v17  ;;  %8039 = vmatprep.subr.bf16.mxu0 %v8038_v15  ;;  %v8054_v17 = vpack.c.bf16 %v2295_v6, %v2288_v5  ;;  %v2176_v15 = vld [vmem:[#allocation8 + $0x260] sm:$0xff]  ;;  %v2463_v5 = vld [vmem:[#allocation8 + $0xb58] sm:$0xff]  ;;  %v2217_v6 = vld [vmem:[#allocation8 + $0x3a8] sm:$0xff] }
 0x317   :  { %7811 = vmatprep.subr.bf16.mxu1 %v7810_v24  ;;  %v7826_v24 = vpack.c.bf16 %v2168_v59, %v2161_v9  ;;  %v8056_v30 = vpack.c.bf16 %v2183_v19, %v2176_v15  ;;  %v2224_v9 = vld [vmem:[#allocation8 + $0x3e0] sm:$0xff]  ;;  %v2351_v15 = vld [vmem:[#allocation8 + $0x7d8] sm:$0xff] }
 0x318   :  { %v2216_v19 = vld [vmem:[#allocation8 + $0x3a0] sm:$0xff] }
 0x319   :  { %8041 = vmatpush3.bf16.msra.mxu0 %v8040_v56  ;;  %3199 = vmatmul.mubr.f32.vlgmr.msra.gmra.mrb[12].mxu1 %v9539_v13  ;;  %v7828_v56 = vpack.c.bf16 %v2167_v52, %v2160_v21  ;;  %v7842_v21 = vpack.c.bf16 %v2224_v9, %v2217_v6  ;;  %v2470_v52 = vld [vmem:[#allocation8 + $0xb90] sm:$0xff]  ;;  %v2280_v6 = vld [vmem:[#allocation8 + $0x5a0] sm:$0xff] }
 0x31a   :  { %7813 = vmatpush1.bf16.msra.mxu1 %v7812_v31  ;;  %3553 = vmatprep.mubr.f32.mxu1 %v9466_v45  ;;  %v2162_v45 = vld [vmem:[#allocation8 + $0x1f0] sm:$0xff]  ;;  %v8058_v31 = vpack.c.bf16 %v2309_v26, %v2302_v62  ;;  %v2477_v62 = vld [vmem:[#allocation8 + $0xbc8] sm:$0xff]  ;;  %v2231_v26 = vld [vmem:[#allocation8 + $0x418] sm:$0xff] }
 0x31b   :  { %8043 = vmatprep.subr.bf16.mxu0 %v8042_v40  ;;  %7815 = vmatprep.subr.bf16.mxu1 %v7814_v43  ;;  %v8052_v14 = vpack.c.bf16 %v2169_v25, %v2162_v45  ;;  %v7830_v40 = vpack.c.bf16 %v2182_v28, %v2175_v27  ;;  %v2181_v43 = vld [vmem:[#allocation8 + $0x288] sm:$0xff]  ;;  %v2202_v25 = vld [vmem:[#allocation8 + $0x330] sm:$0xff] }
 0x31c   :  { %v2337_v45 = vld [vmem:[#allocation8 + $0x768] sm:$0xff]  ;;  %v2238_v27 = vld [vmem:[#allocation8 + $0x450] sm:$0xff] }
 0x31d   :  { %8045 = vmatpush3.bf16.msra.mxu0 %v8044_v18  ;;  %v7832_v18 = vpack.c.bf16 %v2181_v43, %v2174_v34  ;;  %v7846_v34 = vpack.c.bf16 %v2238_v27, %v2231_v26  ;;  %v2484_v43 = vld [vmem:[#allocation8 + $0xc00] sm:$0xff]  ;;  %v2294_v26 = vld [vmem:[#allocation8 + $0x610] sm:$0xff] }
 0x31e   :  { %7817 = vmatpush1.bf16.msra.mxu1 %v7816_v54  ;;  %8047 = vmatprep.subr.bf16.mxu0 %v8046_v49  ;;  %v8062_v54 = vpack.c.bf16 %v2323_v46, %v2316_v44  ;;  %v2204_v49 = vld [vmem:[#allocation8 + $0x340] sm:$0xff]  ;;  %v2491_v44 = vld [vmem:[#allocation8 + $0xc38] sm:$0xff]  ;;  %v2245_v46 = vld [vmem:[#allocation8 + $0x488] sm:$0xff] }
 0x31f   :  { %7819 = vmatprep.subr.bf16.mxu1 %v7818_v39  ;;  %v2195_v39 = vld [vmem:[#allocation8 + $0x2f8] sm:$0xff]  ;;  %v8064_v11 = vpack.c.bf16 %v2211_v23, %v2204_v49  ;;  %v2244_v23 = vld [vmem:[#allocation8 + $0x480] sm:$0xff] }
 0x320   :  { %v2379_v49 = vld [vmem:[#allocation8 + $0x8b8] sm:$0xff] }
 0x321   :  { %8049 = vmatpush3.bf16.msra.mxu0 %v8048_v0  ;;  %v7836_v0 = vpack.c.bf16 %v2195_v39, %v2188_v57  ;;  %v7850_v57 = vpack.c.bf16 %v2252_v47, %v2245_v46  ;;  %v2498_v39 = vld [vmem:[#allocation8 + $0xc70] sm:$0xff]  ;;  %v2308_v46 = vld [vmem:[#allocation8 + $0x680] sm:$0xff] }
 0x322   :  { %7821 = vmatpush1.bf16.msra.mxu1 %v7820_v29  ;;  %8051 = vmatprep.subr.bf16.mxu0 %v8050_v1  ;;  %v8066_v29 = vpack.c.bf16 %v2449_v60, %v2442_v41  ;;  %v2330_v1 = vld [vmem:[#allocation8 + $0x730] sm:$0xff]  ;;  %v2505_v41 = vld [vmem:[#allocation8 + $0xca8] sm:$0xff]  ;;  %v2259_v60 = vld [vmem:[#allocation8 + $0x4f8] sm:$0xff] }
 0x323   :  { %7823 = vmatprep.subr.bf16.mxu1 %v7822_v3  ;;  %v2209_v3 = vld [vmem:[#allocation8 + $0x368] sm:$0xff]  ;;  %v8068_v59 = vpack.c.bf16 %v2337_v45, %v2330_v1  ;;  %v2258_v45 = vld [vmem:[#allocation8 + $0x4f0] sm:$0xff] }
 0x324   :  { %v2393_v1 = vld [vmem:[#allocation8 + $0x928] sm:$0xff] }
 0x325   :  { %8053 = vmatpush3.bf16.msra.mxu0 %v8052_v14  ;;  %v7840_v14 = vpack.c.bf16 %v2209_v3, %v2202_v25  ;;  %v7854_v25 = vpack.c.bf16 %v2266_v61, %v2259_v60  ;;  %v2512_v3 = vld [vmem:[#allocation8 + $0xce0] sm:$0xff]  ;;  %v2322_v60 = vld [vmem:[#allocation8 + $0x6f0] sm:$0xff] }
 0x326   :  { %7825 = vmatpush1.bf16.msra.mxu1 %v7824_v7  ;;  %8055 = vmatprep.subr.bf16.mxu0 %v8054_v17  ;;  %v8070_v7 = vpack.c.bf16 %v2463_v5, %v2456_v4  ;;  %v2344_v17 = vld [vmem:[#allocation8 + $0x7a0] sm:$0xff]  ;;  %v2519_v4 = vld [vmem:[#allocation8 + $0xd18] sm:$0xff]  ;;  %v2273_v5 = vld [vmem:[#allocation8 + $0x568] sm:$0xff] }
 0x327   :  { %7827 = vmatprep.subr.bf16.mxu1 %v7826_v24  ;;  %v2223_v24 = vld [vmem:[#allocation8 + $0x3d8] sm:$0xff]  ;;  %v8072_v28 = vpack.c.bf16 %v2351_v15, %v2344_v17  ;;  %v2272_v15 = vld [vmem:[#allocation8 + $0x560] sm:$0xff] }
 0x328   :  { %v2407_v17 = vld [vmem:[#allocation8 + $0x998] sm:$0xff] }
 0x329   :  { %8057 = vmatpush3.bf16.msra.mxu0 %v8056_v30  ;;  %v7844_v30 = vpack.c.bf16 %v2223_v24, %v2216_v19  ;;  %v7858_v19 = vpack.c.bf16 %v2280_v6, %v2273_v5  ;;  %v2526_v24 = vld [vmem:[#allocation8 + $0xd50] sm:$0xff]  ;;  %v2336_v5 = vld [vmem:[#allocation8 + $0x760] sm:$0xff] }
 0x32a   :  { %7829 = vmatpush1.bf16.msra.mxu1 %v7828_v56  ;;  %8059 = vmatprep.subr.bf16.mxu0 %v8058_v31  ;;  %v8074_v56 = vpack.c.bf16 %v2477_v62, %v2470_v52  ;;  %v2358_v31 = vld [vmem:[#allocation8 + $0x810] sm:$0xff]  ;;  %v2533_v52 = vld [vmem:[#allocation8 + $0xd88] sm:$0xff]  ;;  %v2287_v62 = vld [vmem:[#allocation8 + $0x5d8] sm:$0xff] }
 0x32b   :  { %7831 = vmatprep.subr.bf16.mxu1 %v7830_v40  ;;  %v2237_v40 = vld [vmem:[#allocation8 + $0x448] sm:$0xff]  ;;  %v8076_v48 = vpack.c.bf16 %v2365_v33, %v2358_v31  ;;  %v2286_v33 = vld [vmem:[#allocation8 + $0x5d0] sm:$0xff] }
 0x32c   :  { %v2421_v31 = vld [vmem:[#allocation8 + $0xa08] sm:$0xff] }
 0x32d   :  { %8061 = vmatpush3.bf16.msra.mxu0 %v8060_v51  ;;  %v7848_v51 = vpack.c.bf16 %v2237_v40, %v2230_v38  ;;  %v7862_v38 = vpack.c.bf16 %v2294_v26, %v2287_v62  ;;  %v2540_v40 = vld [vmem:[#allocation8 + $0xdc0] sm:$0xff]  ;;  %v2350_v62 = vld [vmem:[#allocation8 + $0x7d0] sm:$0xff] }
 0x32e   :  { %7833 = vmatpush1.bf16.msra.mxu1 %v7832_v18  ;;  %8063 = vmatprep.subr.bf16.mxu0 %v8062_v54  ;;  %v8078_v18 = vpack.c.bf16 %v2491_v44, %v2484_v43  ;;  %v2372_v54 = vld [vmem:[#allocation8 + $0x880] sm:$0xff]  ;;  %v2547_v43 = vld [vmem:[#allocation8 + $0xdf8] sm:$0xff]  ;;  %v2301_v44 = vld [vmem:[#allocation8 + $0x648] sm:$0xff] }
 0x32f   :  { %7835 = vmatprep.subr.bf16.mxu1 %v7834_v58  ;;  %v2251_v58 = vld [vmem:[#allocation8 + $0x4b8] sm:$0xff]  ;;  %v8080_v63 = vpack.c.bf16 %v2379_v49, %v2372_v54  ;;  %v2300_v49 = vld [vmem:[#allocation8 + $0x640] sm:$0xff] }
 0x330   :  { %v2435_v54 = vld [vmem:[#allocation8 + $0xa78] sm:$0xff] }
 0x331   :  { %8065 = vmatpush3.bf16.msra.mxu0 %v8064_v11  ;;  %v7852_v11 = vpack.c.bf16 %v2251_v58, %v2244_v23  ;;  %v7866_v23 = vpack.c.bf16 %v2308_v46, %v2301_v44  ;;  %v2666_v58 = vld [vmem:[#allocation8 + $0x11b0] sm:$0xff]  ;;  %v2364_v44 = vld [vmem:[#allocation8 + $0x840] sm:$0xff] }
 0x332   :  { %7837 = vmatpush1.bf16.msra.mxu1 %v7836_v0  ;;  %8067 = vmatprep.subr.bf16.mxu0 %v8066_v29  ;;  %v8082_v0 = vpack.c.bf16 %v2505_v41, %v2498_v39  ;;  %v2386_v29 = vld [vmem:[#allocation8 + $0x8f0] sm:$0xff]  ;;  %v2673_v39 = vld [vmem:[#allocation8 + $0x11e8] sm:$0xff]  ;;  %v2315_v41 = vld [vmem:[#allocation8 + $0x6b8] sm:$0xff] }
 0x333   :  { %7839 = vmatprep.subr.bf16.mxu1 %v7838_v2  ;;  %v2265_v2 = vld [vmem:[#allocation8 + $0x528] sm:$0xff]  ;;  %v8084_v9 = vpack.c.bf16 %v2393_v1, %v2386_v29  ;;  %v2314_v1 = vld [vmem:[#allocation8 + $0x6b0] sm:$0xff] }
 0x334   :  { %3838 = vmatmul.mubr.f32.vlgmr.msra.gmra.mrb[6].mxu0 %v9481_v50  ;;  %v2561_v29 = vld [vmem:[#allocation8 + $0xe68] sm:$0xff] }
 0x335   :  { %8069 = vmatpush3.bf16.msra.mxu0 %v8068_v59  ;;  %3907 = vmatprep.mubr.f32.mxu0 %v9497_v55  ;;  %v7856_v59 = vpack.c.bf16 %v2265_v2, %v2258_v45  ;;  %v7870_v45 = vpack.c.bf16 %v2322_v60, %v2315_v41  ;;  %v2680_v2 = vld [vmem:[#allocation8 + $0x1220] sm:$0xff]  ;;  %v2378_v41 = vld [vmem:[#allocation8 + $0x8b0] sm:$0xff] }
 0x336   :  { %7841 = vmatpush1.bf16.msra.mxu1 %v7840_v14  ;;  %8071 = vmatprep.subr.bf16.mxu0 %v8070_v7  ;;  %v8086_v14 = vpack.c.bf16 %v2519_v4, %v2512_v3  ;;  %v2400_v7 = vld [vmem:[#allocation8 + $0x960] sm:$0xff]  ;;  %v2687_v3 = vld [vmem:[#allocation8 + $0x1258] sm:$0xff]  ;;  %v2329_v4 = vld [vmem:[#allocation8 + $0x728] sm:$0xff] }
 0x337   :  { %7843 = vmatprep.subr.bf16.mxu1 %v7842_v21  ;;  %v2279_v21 = vld [vmem:[#allocation8 + $0x598] sm:$0xff]  ;;  %v8088_v27 = vpack.c.bf16 %v2407_v17, %v2400_v7  ;;  %v7874_v17 = vpack.c.bf16 %v2336_v5, %v2329_v4 }
 0x338   :  { %v2575_v7 = vld [vmem:[#allocation8 + $0xed8] sm:$0xff] }
 0x339   :  { %8073 = vmatpush3.bf16.msra.mxu0 %v8072_v28  ;;  %v7860_v28 = vpack.c.bf16 %v2279_v21, %v2272_v15  ;;  %v2328_v15 = vld [vmem:[#allocation8 + $0x720] sm:$0xff]  ;;  %v2694_v21 = vld [vmem:[#allocation8 + $0x1290] sm:$0xff] }
 0x33a   :  { %7845 = vmatpush1.bf16.msra.mxu1 %v7844_v30  ;;  %8075 = vmatprep.subr.bf16.mxu0 %v8074_v56  ;;  %v8090_v30 = vpack.c.bf16 %v2533_v52, %v2526_v24  ;;  %v2414_v56 = vld [vmem:[#allocation8 + $0x9d0] sm:$0xff]  ;;  %v2701_v24 = vld [vmem:[#allocation8 + $0x12c8] sm:$0xff]  ;;  %v2343_v52 = vld [vmem:[#allocation8 + $0x798] sm:$0xff] }
 0x33b   :  { %7847 = vmatprep.subr.bf16.mxu1 %v7846_v34  ;;  %v2293_v34 = vld [vmem:[#allocation8 + $0x608] sm:$0xff]  ;;  %v8092_v47 = vpack.c.bf16 %v2421_v31, %v2414_v56  ;;  %v2342_v56 = vld [vmem:[#allocation8 + $0x790] sm:$0xff]  ;;  %v8106_v31 = vpack.c.bf16 %v2701_v24, %v2694_v21 }
 0x33c   :  { %v2406_v21 = vld [vmem:[#allocation8 + $0x990] sm:$0xff] }
 0x33d   :  { %8077 = vmatpush3.bf16.msra.mxu0 %v8076_v48  ;;  %v7864_v48 = vpack.c.bf16 %v2293_v34, %v2286_v33  ;;  %v7878_v33 = vpack.c.bf16 %v2350_v62, %v2343_v52  ;;  %v2708_v34 = vld [vmem:[#allocation8 + $0x1300] sm:$0xff] }
 0x33e   :  { %7849 = vmatpush1.bf16.msra.mxu1 %v7848_v51  ;;  %8079 = vmatprep.subr.bf16.mxu0 %v8078_v18  ;;  %v8094_v51 = vpack.c.bf16 %v2547_v43, %v2540_v40  ;;  %v2428_v18 = vld [vmem:[#allocation8 + $0xa40] sm:$0xff]  ;;  %v2715_v40 = vld [vmem:[#allocation8 + $0x1338] sm:$0xff]  ;;  %v2357_v43 = vld [vmem:[#allocation8 + $0x808] sm:$0xff] }
 0x33f   :  { %7851 = vmatprep.subr.bf16.mxu1 %v7850_v57  ;;  %v2307_v57 = vld [vmem:[#allocation8 + $0x678] sm:$0xff]  ;;  %v8096_v61 = vpack.c.bf16 %v2435_v54, %v2428_v18  ;;  %v2356_v54 = vld [vmem:[#allocation8 + $0x800] sm:$0xff] }
 0x340   :  { %v2603_v18 = vld [vmem:[#allocation8 + $0xfb8] sm:$0xff] }
 0x341   :  { %8081 = vmatpush3.bf16.msra.mxu0 %v8080_v63  ;;  %v7868_v63 = vpack.c.bf16 %v2307_v57, %v2300_v49  ;;  %v7882_v49 = vpack.c.bf16 %v2364_v44, %v2357_v43  ;;  %v2722_v57 = vld [vmem:[#allocation8 + $0x1370] sm:$0xff] }
 0x342   :  { %7853 = vmatpush1.bf16.msra.mxu1 %v7852_v11  ;;  %8083 = vmatprep.subr.bf16.mxu0 %v8082_v0  ;;  %v8098_v11 = vpack.c.bf16 %v2673_v39, %v2666_v58  ;;  %v2554_v0 = vld [vmem:[#allocation8 + $0xe30] sm:$0xff]  ;;  %v2729_v58 = vld [vmem:[#allocation8 + $0x13a8] sm:$0xff]  ;;  %v2371_v39 = vld [vmem:[#allocation8 + $0x878] sm:$0xff] }
 0x343   :  { %7855 = vmatprep.subr.bf16.mxu1 %v7854_v25  ;;  %v2321_v25 = vld [vmem:[#allocation8 + $0x6e8] sm:$0xff]  ;;  %v8100_v6 = vpack.c.bf16 %v2561_v29, %v2554_v0  ;;  %v7886_v0 = vpack.c.bf16 %v2378_v41, %v2371_v39 }
 0x344   :  { %v2377_v29 = vld [vmem:[#allocation8 + $0x8a8] sm:$0xff] }
 0x345   :  { %8085 = vmatpush3.bf16.msra.mxu0 %v8084_v9  ;;  %v7872_v9 = vpack.c.bf16 %v2321_v25, %v2314_v1  ;;  %v2736_v1 = vld [vmem:[#allocation8 + $0x13e0] sm:$0xff]  ;;  %v2385_v25 = vld [vmem:[#allocation8 + $0x8e8] sm:$0xff] }
 0x346   :  { %7857 = vmatpush1.bf16.msra.mxu1 %v7856_v59  ;;  %8087 = vmatprep.subr.bf16.mxu0 %v8086_v14  ;;  %v8102_v59 = vpack.c.bf16 %v2687_v3, %v2680_v2  ;;  %v2568_v14 = vld [vmem:[#allocation8 + $0xea0] sm:$0xff]  ;;  %v2785_v39 = vld [vmem:[#allocation8 + $0x1568] sm:$0xff] }
 0x347   :  { %7859 = vmatprep.subr.bf16.mxu1 %v7858_v19  ;;  %v2335_v19 = vld [vmem:[#allocation8 + $0x758] sm:$0xff]  ;;  %v8104_v26 = vpack.c.bf16 %v2575_v7, %v2568_v14  ;;  %v2392_v2 = vld [vmem:[#allocation8 + $0x920] sm:$0xff] }
 0x348   :  { %v7890_v14 = vpack.c.bf16 %v2392_v2, %v2385_v25  ;;  %v2391_v7 = vld [vmem:[#allocation8 + $0x918] sm:$0xff] }
 0x349   :  { %8089 = vmatpush3.bf16.msra.mxu0 %v8088_v27  ;;  %v7876_v27 = vpack.c.bf16 %v2335_v19, %v2328_v15  ;;  %v2757_v15 = vld [vmem:[#allocation8 + $0x1488] sm:$0xff]  ;;  %v2399_v19 = vld [vmem:[#allocation8 + $0x958] sm:$0xff] }
 0x34a   :  { %7861 = vmatpush1.bf16.msra.mxu1 %v7860_v28  ;;  %8091 = vmatprep.subr.bf16.mxu0 %v8090_v30  ;;  %v2582_v28 = vld [vmem:[#allocation8 + $0xf10] sm:$0xff]  ;;  %v2589_v30 = vld [vmem:[#allocation8 + $0xf48] sm:$0xff]  ;;  %v2447_v25 = vld [vmem:[#allocation8 + $0xad8] sm:$0xff] }
 0x34b   :  { %7863 = vmatprep.subr.bf16.mxu1 %v7862_v38  ;;  %v2349_v38 = vld [vmem:[#allocation8 + $0x7c8] sm:$0xff]  ;;  %v8108_v46 = vpack.c.bf16 %v2589_v30, %v2582_v28  ;;  %v2398_v28 = vld [vmem:[#allocation8 + $0x950] sm:$0xff]  ;;  %v7894_v30 = vpack.c.bf16 %v2406_v21, %v2399_v19  ;;  %v2455_v2 = vld [vmem:[#allocation8 + $0xb18] sm:$0xff] }
 0x34d   :  { %8093 = vmatpush3.bf16.msra.mxu0 %v8092_v47  ;;  %v7880_v47 = vpack.c.bf16 %v2349_v38, %v2342_v56  ;;  %v2405_v56 = vld [vmem:[#allocation8 + $0x988] sm:$0xff] }
 0x34e   :  { %7865 = vmatpush1.bf16.msra.mxu1 %v7864_v48  ;;  %8095 = vmatprep.subr.bf16.mxu0 %v8094_v51  ;;  %v8110_v48 = vpack.c.bf16 %v2715_v40, %v2708_v34  ;;  %v2596_v51 = vld [vmem:[#allocation8 + $0xf80] sm:$0xff]  ;;  %v2413_v38 = vld [vmem:[#allocation8 + $0x9c8] sm:$0xff]  ;;  %v7896_v43 = vpack.c.bf16 %v2405_v56, %v2398_v28  ;;  %v2483_v28 = vld [vmem:[#allocation8 + $0xbf8] sm:$0xff] }
 0x34f   :  { %7867 = vmatprep.subr.bf16.mxu1 %v7866_v23  ;;  %v2363_v23 = vld [vmem:[#allocation8 + $0x838] sm:$0xff]  ;;  %v8112_v60 = vpack.c.bf16 %v2603_v18, %v2596_v51  ;;  %v2420_v34 = vld [vmem:[#allocation8 + $0xa00] sm:$0xff] }
 0x350   :  { %v2412_v51 = vld [vmem:[#allocation8 + $0x9c0] sm:$0xff]  ;;  %v2419_v18 = vld [vmem:[#allocation8 + $0x9f8] sm:$0xff] }
 0x351   :  { %8097 = vmatpush3.bf16.msra.mxu0 %v8096_v61  ;;  %v8114_v61 = vpack.c.bf16 %v2729_v58, %v2722_v57  ;;  %v7900_v57 = vpack.c.bf16 %v2419_v18, %v2412_v51  ;;  %v2778_v58 = vld [vmem:[#allocation8 + $0x1530] sm:$0xff]  ;;  %v2848_v51 = vld [vmem:[#allocation8 + $0x1760] sm:$0xff]  ;;  %v2855_v18 = vld [vmem:[#allocation8 + $0x1798] sm:$0xff] }
 0x352   :  { %7869 = vmatpush1.bf16.msra.mxu1 %v7868_v63  ;;  %8099 = vmatprep.subr.bf16.mxu0 %v8098_v11  ;;  %v2617_v63 = vld [vmem:[#allocation8 + $0x1028] sm:$0xff]  ;;  %v2370_v11 = vld [vmem:[#allocation8 + $0x870] sm:$0xff] }
 0x353   :  { %7871 = vmatprep.subr.bf16.mxu1 %v7870_v45  ;;  %v2743_v45 = vld [vmem:[#allocation8 + $0x1418] sm:$0xff]  ;;  %v7888_v4 = vpack.c.bf16 %v2377_v29, %v2370_v11 }
 0x354   :  { %3908 = vmatmul.mubr.f32.vlgmr.msra.gmra.mrb[8].mxu0 %v9501_v16  ;;  %v8118_v5 = vpack.c.bf16 %v2743_v45, %v2736_v1  ;;  %v2799_v29 = vld [vmem:[#allocation8 + $0x15d8] sm:$0xff]  ;;  %v2440_v45 = vld [vmem:[#allocation8 + $0xaa0] sm:$0xff] }
 0x355   :  { %8101 = vmatpush3.bf16.msra.mxu0 %v8100_v6  ;;  %3977 = vmatprep.mubr.f32.mxu0 %v9528_v8  ;;  %v2624_v6 = vld [vmem:[#allocation8 + $0x1060] sm:$0xff] }
 0x356   :  { %7873 = vmatpush1.bf16.msra.mxu1 %v7872_v9  ;;  %8103 = vmatprep.subr.bf16.mxu0 %v8102_v59  ;;  %v2631_v9 = vld [vmem:[#allocation8 + $0x1098] sm:$0xff]  ;;  %v2384_v59 = vld [vmem:[#allocation8 + $0x8e0] sm:$0xff] }
 0x357   :  { %7875 = vmatprep.subr.bf16.mxu1 %v7874_v17  ;;  %v2750_v17 = vld [vmem:[#allocation8 + $0x1450] sm:$0xff]  ;;  %v8120_v24 = vpack.c.bf16 %v2631_v9, %v2624_v6  ;;  %v7892_v52 = vpack.c.bf16 %v2391_v7, %v2384_v59  ;;  %v2813_v9 = vld [vmem:[#allocation8 + $0x1648] sm:$0xff] }
 0x358   :  { %v8122_v62 = vpack.c.bf16 %v2757_v15, %v2750_v17  ;;  %v2806_v6 = vld [vmem:[#allocation8 + $0x1610] sm:$0xff]  ;;  %v2461_v7 = vld [vmem:[#allocation8 + $0xb48] sm:$0xff]  ;;  %v2476_v15 = vld [vmem:[#allocation8 + $0xbc0] sm:$0xff] }
 0x359   :  { %8105 = vmatpush3.bf16.msra.mxu0 %v8104_v26  ;;  %3554 = vmatmul.mubr.f32.vlgmr.msra.gmra.mrb[14].mxu1 %v9481_v50  ;;  %v7884_v50 = vpack.c.bf16 %v2363_v23, %v2356_v54  ;;  %v2638_v26 = vld [vmem:[#allocation8 + $0x10d0] sm:$0xff]  ;;  %v2427_v54 = vld [vmem:[#allocation8 + $0xa38] sm:$0xff]  ;;  %v2469_v17 = vld [vmem:[#allocation8 + $0xb88] sm:$0xff]  ;;  %v8137_v19 = vpack.c.bf16 %v2813_v9, %v2806_v6 }
 0x35a   :  { %7877 = vmatpush1.bf16.msra.mxu1 %v7876_v27  ;;  %3624 = vmatprep.mubr.f32.mxu1 %v9497_v55  ;;  %v2610_v55 = vld [vmem:[#allocation8 + $0xff0] sm:$0xff]  ;;  %v2645_v27 = vld [vmem:[#allocation8 + $0x1108] sm:$0xff]  ;;  %v2539_v9 = vld [vmem:[#allocation8 + $0xdb8] sm:$0xff] }
 0x35b   :  { %8107 = vmatprep.subr.bf16.mxu0 %v8106_v31  ;;  %7879 = vmatprep.subr.bf16.mxu1 %v7878_v33  ;;  %v8116_v3 = vpack.c.bf16 %v2617_v63, %v2610_v55  ;;  %v2764_v31 = vld [vmem:[#allocation8 + $0x14c0] sm:$0xff]  ;;  %v2771_v33 = vld [vmem:[#allocation8 + $0x14f8] sm:$0xff]  ;;  %v8124_v40 = vpack.c.bf16 %v2645_v27, %v2638_v26  ;;  %v8131_v63 = vpack.c.bf16 %v2785_v39, %v2778_v58  ;;  %v2518_v58 = vld [vmem:[#allocation8 + $0xd10] sm:$0xff] }
 0x35c   :  { %v8126_v44 = vpack.c.bf16 %v2771_v33, %v2764_v31  ;;  %v2448_v55 = vld [vmem:[#allocation8 + $0xae0] sm:$0xff]  ;;  %v2475_v27 = vld [vmem:[#allocation8 + $0xbb8] sm:$0xff]  ;;  %v2834_v33 = vld [vmem:[#allocation8 + $0x16f0] sm:$0xff]  ;;  %v8146_v39 = vpack.c.bf16 %v2855_v18, %v2848_v51 }
 0x35d   :  { %8109 = vmatpush3.bf16.msra.mxu0 %v8108_v46  ;;  %v2652_v46 = vld [vmem:[#allocation8 + $0x1140] sm:$0xff]  ;;  %v4068_v6 = vld [vmem:[#allocation11 + $0x40] sm:$0xff] }
 0x35e   :  { %7881 = vmatpush1.bf16.msra.mxu1 %v7880_v47  ;;  %8111 = vmatprep.subr.bf16.mxu0 %v8110_v48  ;;  %v2659_v47 = vld [vmem:[#allocation8 + $0x1178] sm:$0xff]  ;;  %v7898_v48 = vpack.c.bf16 %v2420_v34, %v2413_v38  ;;  %v2468_v26 = vld [vmem:[#allocation8 + $0xb80] sm:$0xff]  ;;  %v2841_v38 = vld [vmem:[#allocation8 + $0x1728] sm:$0xff] }
 0x35f   :  { %7883 = vmatprep.subr.bf16.mxu1 %v7882_v49  ;;  %v2434_v49 = vld [vmem:[#allocation8 + $0xa70] sm:$0xff]  ;;  %v8128_v23 = vpack.c.bf16 %v2659_v47, %v2652_v46  ;;  %v7916_v31 = vpack.c.bf16 %v2475_v27, %v2468_v26  ;;  %v2504_v46 = vld [vmem:[#allocation8 + $0xca0] sm:$0xff]  ;;  %v8143_v47 = vpack.c.bf16 %v2841_v38, %v2834_v33  ;;  %v4082_v26 = vld [vmem:[#allocation11 + $0xb0] sm:$0xff] }
 0x360   :  { %v7902_v41 = vpack.c.bf16 %v2434_v49, %v2427_v54  ;;  %v2496_v49 = vld [vmem:[#allocation8 + $0xc60] sm:$0xff]  ;;  %v2553_v27 = vld [vmem:[#allocation8 + $0xe28] sm:$0xff]  ;;  %v4074_v33 = vld [vmem:[#allocation11 + $0x70] sm:$0xff] }
 0x361   :  { %8113 = vmatpush3.bf16.msra.mxu0 %v8112_v60  ;;  %v2426_v60 = vld [vmem:[#allocation8 + $0xa30] sm:$0xff] }
 0x362   :  { %7885 = vmatpush1.bf16.msra.mxu1 %v7884_v50  ;;  %8115 = vmatprep.subr.bf16.mxu0 %v8114_v61  ;;  %v2433_v50 = vld [vmem:[#allocation8 + $0xa68] sm:$0xff]  ;;  %v4081_v38 = vld [vmem:[#allocation11 + $0xa8] sm:$0xff] }
 0x363   :  { %7887 = vmatprep.subr.bf16.mxu1 %v7886_v0  ;;  %v2441_v61 = vld [vmem:[#allocation8 + $0xaa8] sm:$0xff]  ;;  %v7904_v11 = vpack.c.bf16 %v2433_v50, %v2426_v60  ;;  %v2792_v0 = vld [vmem:[#allocation8 + $0x15a0] sm:$0xff]  ;;  %v2862_v60 = vld [vmem:[#allocation8 + $0x17d0] sm:$0xff]  ;;  %v8160_v51 = vpack.c.bf16 %v4081_v38, %v4074_v33 }
 0x364   :  { %v7906_v1 = vpack.c.bf16 %v2448_v55, %v2441_v61  ;;  %v2869_v50 = vld [vmem:[#allocation8 + $0x1808] sm:$0xff]  ;;  %v2510_v55 = vld [vmem:[#allocation8 + $0xcd0] sm:$0xff] }
 0x365   :  { %8117 = vmatpush3.bf16.msra.mxu0 %v8116_v3  ;;  %v2462_v3 = vld [vmem:[#allocation8 + $0xb50] sm:$0xff]  ;;  %v4152_v38 = vld [vmem:[#allocation11 + $0x2e0] sm:$0xff] }
 0x366   :  { %7889 = vmatpush1.bf16.msra.mxu1 %v7888_v4  ;;  %8119 = vmatprep.subr.bf16.mxu0 %v8118_v5  ;;  %v8134_v4 = vpack.c.bf16 %v2799_v29, %v2792_v0  ;;  %v7908_v5 = vpack.c.bf16 %v2447_v25, %v2440_v45  ;;  %v7910_v59 = vpack.c.bf16 %v2462_v3, %v2455_v2  ;;  %v2532_v0 = vld [vmem:[#allocation8 + $0xd80] sm:$0xff]  ;;  %v2883_v25 = vld [vmem:[#allocation8 + $0x1878] sm:$0xff]  ;;  %v4145_v33 = vld [vmem:[#allocation11 + $0x2a8] sm:$0xff] }
 0x367   :  { %7891 = vmatprep.subr.bf16.mxu1 %v7890_v14  ;;  %v2454_v14 = vld [vmem:[#allocation8 + $0xb10] sm:$0xff]  ;;  %v8149_v29 = vpack.c.bf16 %v2869_v50, %v2862_v60  ;;  %v2876_v45 = vld [vmem:[#allocation8 + $0x1840] sm:$0xff]  ;;  %v4110_v60 = vld [vmem:[#allocation11 + $0x190] sm:$0xff] }
 0x368   :  { %v7912_v21 = vpack.c.bf16 %v2461_v7, %v2454_v14  ;;  %v2524_v2 = vld [vmem:[#allocation8 + $0xd40] sm:$0xff]  ;;  %v8152_v14 = vpack.c.bf16 %v2883_v25, %v2876_v45  ;;  %v2581_v50 = vld [vmem:[#allocation8 + $0xf08] sm:$0xff]  ;;  %v2587_v25 = vld [vmem:[#allocation8 + $0xf38] sm:$0xff] }
 0x369   :  { %8121 = vmatpush3.bf16.msra.mxu0 %v8120_v24  ;;  %v2820_v24 = vld [vmem:[#allocation8 + $0x1680] sm:$0xff] }
 0x36a   :  { %7893 = vmatpush1.bf16.msra.mxu1 %v7892_v52  ;;  %8123 = vmatprep.subr.bf16.mxu0 %v8122_v62  ;;  %v2827_v52 = vld [vmem:[#allocation8 + $0x16b8] sm:$0xff]  ;;  %v7914_v62 = vpack.c.bf16 %v2476_v15, %v2469_v17  ;;  %v2538_v17 = vld [vmem:[#allocation8 + $0xdb0] sm:$0xff] }
 0x36b   :  { %7895 = vmatprep.subr.bf16.mxu1 %v7894_v30  ;;  %v2490_v30 = vld [vmem:[#allocation8 + $0xc30] sm:$0xff]  ;;  %v8140_v56 = vpack.c.bf16 %v2827_v52, %v2820_v24  ;;  %v2545_v52 = vld [vmem:[#allocation8 + $0xde8] sm:$0xff] }
 0x36c   :  { %v7918_v34 = vpack.c.bf16 %v2490_v30, %v2483_v28  ;;  %v2560_v28 = vld [vmem:[#allocation8 + $0xe60] sm:$0xff] }
 0x36d   :  { %8125 = vmatpush3.bf16.msra.mxu0 %v8124_v40  ;;  %v2482_v40 = vld [vmem:[#allocation8 + $0xbf0] sm:$0xff] }
 0x36e   :  { %7897 = vmatpush1.bf16.msra.mxu1 %v7896_v43  ;;  %8127 = vmatprep.subr.bf16.mxu0 %v8126_v44  ;;  %v2489_v43 = vld [vmem:[#allocation8 + $0xc28] sm:$0xff] }
 0x36f   :  { %7899 = vmatprep.subr.bf16.mxu1 %v7898_v48  ;;  %v2497_v44 = vld [vmem:[#allocation8 + $0xc68] sm:$0xff]  ;;  %v7920_v48 = vpack.c.bf16 %v2489_v43, %v2482_v40  ;;  %v2552_v40 = vld [vmem:[#allocation8 + $0xe20] sm:$0xff]  ;;  %v2559_v43 = vld [vmem:[#allocation8 + $0xe58] sm:$0xff] }
 0x370   :  { %v7922_v54 = vpack.c.bf16 %v2504_v46, %v2497_v44  ;;  %v2567_v44 = vld [vmem:[#allocation8 + $0xe98] sm:$0xff]  ;;  %v2574_v46 = vld [vmem:[#allocation8 + $0xed0] sm:$0xff]  ;;  %v7940_v18 = vpack.c.bf16 %v2559_v43, %v2552_v40 }
 0x371   :  { %8129 = vmatpush3.bf16.msra.mxu0 %v8128_v23  ;;  %v2503_v23 = vld [vmem:[#allocation8 + $0xc98] sm:$0xff]  ;;  %v2630_v40 = vld [vmem:[#allocation8 + $0x1090] sm:$0xff] }
 0x372   :  { %7901 = vmatpush1.bf16.msra.mxu1 %v7900_v57  ;;  %8130 = vmatprep.subr.bf16.mxu0 %v9245_v37  ;;  %v2511_v57 = vld [vmem:[#allocation8 + $0xcd8] sm:$0xff] }
 0x373   :  { %7903 = vmatprep.subr.bf16.mxu1 %v7902_v41  ;;  %v7924_v41 = vpack.c.bf16 %v2503_v23, %v2496_v49  ;;  %v7926_v61 = vpack.c.bf16 %v2518_v58, %v2511_v57  ;;  %v4088_v49 = vld [vmem:[#allocation11 + $0xe0] sm:$0xff]  ;;  %v4095_v23 = vld [vmem:[#allocation11 + $0x118] sm:$0xff]  ;;  %v7942_v57 = vpack.c.bf16 %v2574_v46, %v2567_v44  ;;  %v2622_v46 = vld [vmem:[#allocation8 + $0x1050] sm:$0xff] }
 0x374   :  { %3978 = vmatmul.mubr.f32.vlgmr.msra.gmra.mrb[10].mxu0 %v9530_v12  ;;  %v2573_v58 = vld [vmem:[#allocation8 + $0xec8] sm:$0xff] }
 0x375   :  { %8132 = vmatpush3.bf16.msra.mxu0 %v8131_v63  ;;  %6532 = vmatprep.mubr.msk.f32.mxu0 %vm9246_vm0, %v9244_v53  ;;  %v2517_v63 = vld [vmem:[#allocation8 + $0xd08] sm:$0xff] }
 0x376   :  { %7905 = vmatpush1.bf16.msra.mxu1 %v7904_v11  ;;  %8133 = vmatprep.subr.bf16.mxu0 %v9245_v37  ;;  %v2525_v11 = vld [vmem:[#allocation8 + $0xd48] sm:$0xff] }
 0x377   :  { %7907 = vmatprep.subr.bf16.mxu1 %v7906_v1  ;;  %v7928_v1 = vpack.c.bf16 %v2517_v63, %v2510_v55  ;;  %v7930_v3 = vpack.c.bf16 %v2532_v0, %v2525_v11  ;;  %v8164_v55 = vpack.c.bf16 %v4095_v23, %v4088_v49  ;;  %v2580_v11 = vld [vmem:[#allocation8 + $0xf00] sm:$0xff]  ;;  %v4166_v23 = vld [vmem:[#allocation11 + $0x350] sm:$0xff] }
 0x378   :  { %v4159_v49 = vld [vmem:[#allocation11 + $0x318] sm:$0xff] }
 0x379   :  { %8135 = vmatpush3.bf16.msra.mxu0 %v8134_v4  ;;  %v2531_v4 = vld [vmem:[#allocation8 + $0xd78] sm:$0xff] }
 0x37a   :  { %7909 = vmatpush1.bf16.msra.mxu1 %v7908_v5  ;;  %8136 = vmatprep.subr.bf16.mxu0 %v9245_v37  ;;  %v4061_v5 = vld [vmem:[#allocation11 + $0x8] sm:$0xff]  ;;  %v7932_v7 = vpack.c.bf16 %v2531_v4, %v2524_v2  ;;  %v2595_v4 = vld [vmem:[#allocation8 + $0xf78] sm:$0xff] }
 0x37b   :  { %7911 = vmatprep.subr.bf16.mxu1 %v7910_v59  ;;  %v2546_v59 = vld [vmem:[#allocation8 + $0xdf0] sm:$0xff]  ;;  %v8154_v15 = vpack.c.bf16 %v4068_v6, %v4061_v5  ;;  %v7948_v6 = vpack.c.bf16 %v2587_v25, %v2580_v11  ;;  %v2643_v11 = vld [vmem:[#allocation8 + $0x10f8] sm:$0xff] }
 0x37c   :  { %v7934_v24 = vpack.c.bf16 %v2546_v59, %v2539_v9  ;;  %v4117_v2 = vld [vmem:[#allocation11 + $0x1c8] sm:$0xff]  ;;  %v4116_v59 = vld [vmem:[#allocation11 + $0x1c0] sm:$0xff] }
 0x37d   :  { %8138 = vmatpush3.bf16.msra.mxu0 %v8137_v19  ;;  %v4060_v19 = vld [vmem:[#allocation11] sm:$0xff]  ;;  %v2602_v5 = vld [vmem:[#allocation8 + $0xfb0] sm:$0xff] }
 0x37e   :  { %7913 = vmatpush1.bf16.msra.mxu1 %v7912_v21  ;;  %8139 = vmatprep.subr.bf16.mxu0 %v9245_v37  ;;  %v4067_v21 = vld [vmem:[#allocation11 + $0x38] sm:$0xff]  ;;  %v2594_v9 = vld [vmem:[#allocation8 + $0xf70] sm:$0xff] }
 0x37f   :  { %7915 = vmatprep.subr.bf16.mxu1 %v7914_v62  ;;  %v4075_v62 = vld [vmem:[#allocation11 + $0x78] sm:$0xff]  ;;  %v8156_v30 = vpack.c.bf16 %v4067_v21, %v4060_v19  ;;  %v4138_v19 = vld [vmem:[#allocation11 + $0x270] sm:$0xff]  ;;  %v2609_v21 = vld [vmem:[#allocation8 + $0xfe8] sm:$0xff] }
 0x381   :  { %8141 = vmatpush3.bf16.msra.mxu0 %v8140_v56  ;;  %v7936_v56 = vpack.c.bf16 %v2545_v52, %v2538_v17  ;;  %v2601_v17 = vld [vmem:[#allocation8 + $0xfa8] sm:$0xff] }
 0x382   :  { %7917 = vmatpush1.bf16.msra.mxu1 %v7916_v31  ;;  %8142 = vmatprep.subr.bf16.mxu0 %v9245_v37  ;;  %v8158_v31 = vpack.c.bf16 %v4082_v26, %v4075_v62  ;;  %v7952_v62 = vpack.c.bf16 %v2601_v17, %v2594_v9  ;;  %v2608_v26 = vld [vmem:[#allocation8 + $0xfe0] sm:$0xff]  ;;  %v2657_v9 = vld [vmem:[#allocation8 + $0x1168] sm:$0xff] }
 0x383   :  { %7919 = vmatprep.subr.bf16.mxu1 %v7918_v34  ;;  %v7938_v34 = vpack.c.bf16 %v2560_v28, %v2553_v27  ;;  %v4130_v28 = vld [vmem:[#allocation11 + $0x230] sm:$0xff] }
 0x385   :  { %8144 = vmatpush3.bf16.msra.mxu0 %v8143_v47  ;;  %v4089_v47 = vld [vmem:[#allocation11 + $0xe8] sm:$0xff] }
 0x386   :  { %7921 = vmatpush1.bf16.msra.mxu1 %v7920_v48  ;;  %8145 = vmatprep.subr.bf16.mxu0 %v9245_v37  ;;  %v4096_v48 = vld [vmem:[#allocation11 + $0x120] sm:$0xff] }
 0x387   :  { %7923 = vmatprep.subr.bf16.mxu1 %v7922_v54  ;;  %v2566_v54 = vld [vmem:[#allocation8 + $0xe90] sm:$0xff] }
 0x388   :  { %v7944_v63 = vpack.c.bf16 %v2573_v58, %v2566_v54  ;;  %v2629_v54 = vld [vmem:[#allocation8 + $0x1088] sm:$0xff]  ;;  %v2644_v58 = vld [vmem:[#allocation8 + $0x1100] sm:$0xff] }
 0x389   :  { %8147 = vmatpush3.bf16.msra.mxu0 %v8146_v39  ;;  %v8162_v39 = vpack.c.bf16 %v4096_v48, %v4089_v47  ;;  %v8178_v47 = vpack.c.bf16 %v4152_v38, %v4145_v33  ;;  %v4144_v48 = vld [vmem:[#allocation11 + $0x2a0] sm:$0xff]  ;;  %v2678_v38 = vld [vmem:[#allocation8 + $0x1210] sm:$0xff] }
 0x38a   :  { %7925 = vmatpush1.bf16.msra.mxu1 %v7924_v41  ;;  %8148 = vmatprep.subr.bf16.mxu0 %v9245_v37  ;;  %v4103_v41 = vld [vmem:[#allocation11 + $0x158] sm:$0xff] }
 0x38b   :  { %7927 = vmatprep.subr.bf16.mxu1 %v7926_v61  ;;  %v2588_v61 = vld [vmem:[#allocation8 + $0xf40] sm:$0xff]  ;;  %v8166_v0 = vpack.c.bf16 %v4110_v60, %v4103_v41  ;;  %v7960_v41 = vpack.c.bf16 %v2629_v54, %v2622_v46  ;;  %v2685_v46 = vld [vmem:[#allocation8 + $0x1248] sm:$0xff] }
 0x38c   :  { %v7946_v45 = vpack.c.bf16 %v2588_v61, %v2581_v50  ;;  %v2636_v60 = vld [vmem:[#allocation8 + $0x10c0] sm:$0xff]  ;;  %v8182_v50 = vpack.c.bf16 %v4166_v23, %v4159_v49  ;;  %v4158_v61 = vld [vmem:[#allocation11 + $0x310] sm:$0xff]  ;;  %v7976_v49 = vpack.c.bf16 %v2685_v46, %v2678_v38  ;;  %v2741_v38 = vld [vmem:[#allocation8 + $0x1408] sm:$0xff] }
 0x38d   :  { %8150 = vmatpush3.bf16.msra.mxu0 %v8149_v29  ;;  %v4102_v29 = vld [vmem:[#allocation11 + $0x150] sm:$0xff]  ;;  %v2692_v23 = vld [vmem:[#allocation8 + $0x1280] sm:$0xff] }
 0x38e   :  { %7929 = vmatpush1.bf16.msra.mxu1 %v7928_v1  ;;  %8151 = vmatprep.subr.bf16.mxu0 %v9245_v37  ;;  %v4109_v1 = vld [vmem:[#allocation11 + $0x188] sm:$0xff] }
 0x38f   :  { %7931 = vmatprep.subr.bf16.mxu1 %v7930_v3  ;;  %v4124_v3 = vld [vmem:[#allocation11 + $0x200] sm:$0xff] }
 0x391   :  { %8153 = vmatpush3.bf16.msra.mxu0 %v8152_v14  ;;  %v4123_v14 = vld [vmem:[#allocation11 + $0x1f8] sm:$0xff] }
 0x392   :  { %7933 = vmatpush1.bf16.msra.mxu1 %v7932_v7  ;;  %8155 = vmatprep.subr.bf16.mxu0 %v8154_v15  ;;  %v7950_v7 = vpack.c.bf16 %v2602_v5, %v2595_v4  ;;  %v4131_v15 = vld [vmem:[#allocation11 + $0x238] sm:$0xff]  ;;  %v8172_v52 = vpack.c.bf16 %v4123_v14, %v4116_v59  ;;  %v4172_v5 = vld [vmem:[#allocation11 + $0x380] sm:$0xff]  ;;  %v4194_v59 = vld [vmem:[#allocation11 + $0x430] sm:$0xff] }
 0x393   :  { %7935 = vmatprep.subr.bf16.mxu1 %v7934_v24  ;;  %v2616_v24 = vld [vmem:[#allocation8 + $0x1020] sm:$0xff]  ;;  %v8174_v27 = vpack.c.bf16 %v4138_v19, %v4131_v15  ;;  %v2665_v14 = vld [vmem:[#allocation8 + $0x11a8] sm:$0xff] }
 0x394   :  { %6533 = vmatmul.mubr.f32.vlgmr.msra.gmra.mrb[12].mxu0 %v9539_v13  ;;  %v2664_v19 = vld [vmem:[#allocation8 + $0x11a0] sm:$0xff] }
 0x395   :  { %8157 = vmatpush1.bf16.msra.mxu0 %v8156_v30  ;;  %v4137_v30 = vld [vmem:[#allocation11 + $0x268] sm:$0xff] }
 0x396   :  { %7937 = vmatpush1.bf16.msra.mxu1 %v7936_v56  ;;  %8159 = vmatprep.subr.bf16.mxu0 %v8158_v31  ;;  %v7954_v56 = vpack.c.bf16 %v2616_v24, %v2609_v21  ;;  %v2615_v31 = vld [vmem:[#allocation8 + $0x1018] sm:$0xff]  ;;  %v8176_v43 = vpack.c.bf16 %v4137_v30, %v4130_v28  ;;  %v4208_v28 = vld [vmem:[#allocation11 + $0x4a0] sm:$0xff] }
 0x397   :  { %7939 = vmatprep.subr.bf16.mxu1 %v7938_v34  ;;  %v2623_v34 = vld [vmem:[#allocation8 + $0x1058] sm:$0xff]  ;;  %v7956_v44 = vpack.c.bf16 %v2615_v31, %v2608_v26 }
 0x398   :  { %v4186_v24 = vld [vmem:[#allocation11 + $0x3f0] sm:$0xff] }
 0x399   :  { %3625 = vmatmul.mubr.f32.vlgmr.msra.gmra.mrb[14].mxu1 %v9501_v16  ;;  %8161 = vmatpush1.bf16.msra.mxu0 %v8160_v51  ;;  %v8168_v16 = vpack.c.bf16 %v4109_v1, %v4102_v29  ;;  %v4151_v51 = vld [vmem:[#allocation11 + $0x2d8] sm:$0xff]  ;;  %v4180_v29 = vld [vmem:[#allocation11 + $0x3c0] sm:$0xff]  ;;  %v2651_v1 = vld [vmem:[#allocation8 + $0x1138] sm:$0xff] }
 0x39a   :  { %7941 = vmatpush1.bf16.msra.mxu1 %v7940_v18  ;;  %3695 = vmatprep.mubr.f32.mxu1 %v9528_v8  ;;  %v8170_v8 = vpack.c.bf16 %v4124_v3, %v4117_v2  ;;  %v7958_v18 = vpack.c.bf16 %v2630_v40, %v2623_v34  ;;  %v7964_v2 = vpack.c.bf16 %v2643_v11, %v2636_v60  ;;  %v2650_v3 = vld [vmem:[#allocation8 + $0x1130] sm:$0xff]  ;;  %v2671_v26 = vld [vmem:[#allocation8 + $0x11d8] sm:$0xff]  ;;  %v4200_v40 = vld [vmem:[#allocation11 + $0x460] sm:$0xff] }
 0x39b   :  { %7943 = vmatprep.subr.bf16.mxu1 %v7942_v57  ;;  %8163 = vmatprep.subr.bf16.mxu0 %v8162_v39  ;;  %v2637_v57 = vld [vmem:[#allocation8 + $0x10c8] sm:$0xff]  ;;  %v8180_v39 = vpack.c.bf16 %v4151_v51, %v4144_v48  ;;  %v7968_v15 = vpack.c.bf16 %v2657_v9, %v2650_v3  ;;  %v2679_v30 = vld [vmem:[#allocation8 + $0x1218] sm:$0xff]  ;;  %v7972_v33 = vpack.c.bf16 %v2671_v26, %v2664_v19 }
 0x39c   :  { %v4222_v48 = vld [vmem:[#allocation11 + $0x510] sm:$0xff]  ;;  %v2693_v51 = vld [vmem:[#allocation8 + $0x1288] sm:$0xff] }
 0x39d   :  { %8165 = vmatpush1.bf16.msra.mxu0 %v8164_v55  ;;  %v4165_v55 = vld [vmem:[#allocation11 + $0x348] sm:$0xff]  ;;  %v2699_v60 = vld [vmem:[#allocation8 + $0x12b8] sm:$0xff]  ;;  %v2713_v3 = vld [vmem:[#allocation8 + $0x1328] sm:$0xff] }
 0x39e   :  { %7945 = vmatpush1.bf16.msra.mxu1 %v7944_v63  ;;  %8167 = vmatprep.subr.bf16.mxu0 %v8166_v0  ;;  %v7962_v63 = vpack.c.bf16 %v2644_v58, %v2637_v57  ;;  %v4173_v0 = vld [vmem:[#allocation11 + $0x388] sm:$0xff]  ;;  %v8184_v25 = vpack.c.bf16 %v4165_v55, %v4158_v61  ;;  %v4214_v58 = vld [vmem:[#allocation11 + $0x4d0] sm:$0xff]  ;;  %v4236_v61 = vld [vmem:[#allocation11 + $0x580] sm:$0xff] }
 0x39f   :  { %7947 = vmatprep.subr.bf16.mxu1 %v7946_v45  ;;  %v2658_v45 = vld [vmem:[#allocation8 + $0x1170] sm:$0xff]  ;;  %v8186_v4 = vpack.c.bf16 %v4180_v29, %v4173_v0  ;;  %v2707_v55 = vld [vmem:[#allocation8 + $0x12f8] sm:$0xff]  ;;  %v7980_v0 = vpack.c.bf16 %v2699_v60, %v2692_v23 }
 0x3a0   :  { %v2706_v29 = vld [vmem:[#allocation8 + $0x12f0] sm:$0xff]  ;;  %v2727_v19 = vld [vmem:[#allocation8 + $0x1398] sm:$0xff] }
 0x3a1   :  { %8169 = vmatpush1.bf16.msra.mxu0 %v8168_v16  ;;  %v4179_v16 = vld [vmem:[#allocation11 + $0x3b8] sm:$0xff]  ;;  %v2755_v23 = vld [vmem:[#allocation8 + $0x1478] sm:$0xff] }
 0x3a2   :  { %7949 = vmatpush1.bf16.msra.mxu1 %v7948_v6  ;;  %8171 = vmatprep.subr.bf16.mxu0 %v8170_v8  ;;  %v7966_v6 = vpack.c.bf16 %v2658_v45, %v2651_v1  ;;  %v4187_v8 = vld [vmem:[#allocation11 + $0x3f8] sm:$0xff]  ;;  %v8188_v17 = vpack.c.bf16 %v4179_v16, %v4172_v5  ;;  %v4228_v45 = vld [vmem:[#allocation11 + $0x540] sm:$0xff]  ;;  %v4250_v5 = vld [vmem:[#allocation11 + $0x5f0] sm:$0xff] }
 0x3a3   :  { %7951 = vmatprep.subr.bf16.mxu1 %v7950_v7  ;;  %v2672_v7 = vld [vmem:[#allocation8 + $0x11e0] sm:$0xff]  ;;  %v8190_v21 = vpack.c.bf16 %v4194_v59, %v4187_v8  ;;  %v2721_v16 = vld [vmem:[#allocation8 + $0x1368] sm:$0xff]  ;;  %v7984_v8 = vpack.c.bf16 %v2713_v3, %v2706_v29  ;;  %v2791_v3 = vld [vmem:[#allocation8 + $0x1598] sm:$0xff] }
 0x3a4   :  { %v2720_v59 = vld [vmem:[#allocation8 + $0x1360] sm:$0xff] }
 0x3a5   :  { %8173 = vmatpush1.bf16.msra.mxu0 %v8172_v52  ;;  %v4193_v52 = vld [vmem:[#allocation11 + $0x428] sm:$0xff]  ;;  %v2784_v29 = vld [vmem:[#allocation8 + $0x1560] sm:$0xff] }
 0x3a6   :  { %7953 = vmatpush1.bf16.msra.mxu1 %v7952_v62  ;;  %8175 = vmatprep.subr.bf16.mxu0 %v8174_v27  ;;  %v7970_v62 = vpack.c.bf16 %v2672_v7, %v2665_v14  ;;  %v4201_v27 = vld [vmem:[#allocation11 + $0x468] sm:$0xff]  ;;  %v8192_v31 = vpack.c.bf16 %v4193_v52, %v4186_v24  ;;  %v4242_v7 = vld [vmem:[#allocation11 + $0x5b0] sm:$0xff]  ;;  %v4264_v24 = vld [vmem:[#allocation11 + $0x660] sm:$0xff] }
 0x3a7   :  { %7955 = vmatprep.subr.bf16.mxu1 %v7954_v56  ;;  %v2686_v56 = vld [vmem:[#allocation8 + $0x1250] sm:$0xff]  ;;  %v8194_v34 = vpack.c.bf16 %v4208_v28, %v4201_v27  ;;  %v2735_v52 = vld [vmem:[#allocation8 + $0x13d8] sm:$0xff]  ;;  %v7988_v27 = vpack.c.bf16 %v2727_v19, %v2720_v59  ;;  %v2812_v59 = vld [vmem:[#allocation8 + $0x1640] sm:$0xff] }
 0x3a8   :  { %v2734_v28 = vld [vmem:[#allocation8 + $0x13d0] sm:$0xff]  ;;  %v2819_v19 = vld [vmem:[#allocation8 + $0x1678] sm:$0xff] }
 0x3a9   :  { %8177 = vmatpush1.bf16.msra.mxu0 %v8176_v43  ;;  %v4207_v43 = vld [vmem:[#allocation11 + $0x498] sm:$0xff] }
 0x3aa   :  { %7957 = vmatpush1.bf16.msra.mxu1 %v7956_v44  ;;  %8179 = vmatprep.subr.bf16.mxu0 %v8178_v47  ;;  %v7974_v44 = vpack.c.bf16 %v2686_v56, %v2679_v30  ;;  %v4215_v47 = vld [vmem:[#allocation11 + $0x4d8] sm:$0xff]  ;;  %v8196_v54 = vpack.c.bf16 %v4207_v43, %v4200_v40  ;;  %v4256_v56 = vld [vmem:[#allocation11 + $0x620] sm:$0xff]  ;;  %v4278_v40 = vld [vmem:[#allocation11 + $0x6d0] sm:$0xff] }
 0x3ab   :  { %7959 = vmatprep.subr.bf16.mxu1 %v7958_v18  ;;  %v2700_v18 = vld [vmem:[#allocation8 + $0x12c0] sm:$0xff]  ;;  %v8198_v57 = vpack.c.bf16 %v4222_v48, %v4215_v47  ;;  %v2749_v43 = vld [vmem:[#allocation8 + $0x1448] sm:$0xff]  ;;  %v7992_v47 = vpack.c.bf16 %v2741_v38, %v2734_v28  ;;  %v2854_v38 = vld [vmem:[#allocation8 + $0x1790] sm:$0xff] }
 0x3ac   :  { %v2748_v48 = vld [vmem:[#allocation8 + $0x1440] sm:$0xff] }
 0x3ad   :  { %8181 = vmatpush1.bf16.msra.mxu0 %v8180_v39  ;;  %v4221_v39 = vld [vmem:[#allocation11 + $0x508] sm:$0xff]  ;;  %v2840_v28 = vld [vmem:[#allocation8 + $0x1720] sm:$0xff] }
 0x3ae   :  { %7961 = vmatpush1.bf16.msra.mxu1 %v7960_v41  ;;  %8183 = vmatprep.subr.bf16.mxu0 %v8182_v50  ;;  %v7978_v41 = vpack.c.bf16 %v2700_v18, %v2693_v51  ;;  %v4229_v50 = vld [vmem:[#allocation11 + $0x548] sm:$0xff]  ;;  %v8200_v11 = vpack.c.bf16 %v4221_v39, %v4214_v58  ;;  %v4270_v18 = vld [vmem:[#allocation11 + $0x690] sm:$0xff]  ;;  %v4292_v58 = vld [vmem:[#allocation11 + $0x740] sm:$0xff] }
 0x3af   :  { %7963 = vmatprep.subr.bf16.mxu1 %v7962_v63  ;;  %v2714_v63 = vld [vmem:[#allocation8 + $0x1330] sm:$0xff]  ;;  %v8202_v1 = vpack.c.bf16 %v4236_v61, %v4229_v50  ;;  %v2763_v39 = vld [vmem:[#allocation8 + $0x14b8] sm:$0xff]  ;;  %v7996_v50 = vpack.c.bf16 %v2755_v23, %v2748_v48 }
 0x3b1   :  { %8185 = vmatpush1.bf16.msra.mxu0 %v8184_v25  ;;  %v4235_v25 = vld [vmem:[#allocation11 + $0x578] sm:$0xff] }
 0x3b2   :  { %7965 = vmatpush1.bf16.msra.mxu1 %v7964_v2  ;;  %8187 = vmatprep.subr.bf16.mxu0 %v8186_v4  ;;  %v7982_v2 = vpack.c.bf16 %v2714_v63, %v2707_v55  ;;  %v4243_v4 = vld [vmem:[#allocation11 + $0x5b8] sm:$0xff]  ;;  %v8204_v9 = vpack.c.bf16 %v4235_v25, %v4228_v45  ;;  %v2762_v63 = vld [vmem:[#allocation8 + $0x14b0] sm:$0xff] }
 0x3b3   :  { %7967 = vmatprep.subr.bf16.mxu1 %v7966_v6  ;;  %v2728_v6 = vld [vmem:[#allocation8 + $0x13a0] sm:$0xff]  ;;  %v8206_v14 = vpack.c.bf16 %v4250_v5, %v4243_v4  ;;  %v2798_v4 = vld [vmem:[#allocation8 + $0x15d0] sm:$0xff] }
 0x3b4   :  { %v2776_v25 = vld [vmem:[#allocation8 + $0x1520] sm:$0xff] }
 0x3b5   :  { %8189 = vmatpush1.bf16.msra.mxu0 %v8188_v17  ;;  %v4249_v17 = vld [vmem:[#allocation11 + $0x5e8] sm:$0xff] }
 0x3b6   :  { %7969 = vmatpush1.bf16.msra.mxu1 %v7968_v15  ;;  %8191 = vmatprep.subr.bf16.mxu0 %v8190_v21  ;;  %v7986_v15 = vpack.c.bf16 %v2728_v6, %v2721_v16  ;;  %v4257_v21 = vld [vmem:[#allocation11 + $0x628] sm:$0xff]  ;;  %v8208_v26 = vpack.c.bf16 %v4249_v17, %v4242_v7  ;;  %v8006_v16 = vpack.c.bf16 %v2798_v4, %v2791_v3  ;;  %v2804_v17 = vld [vmem:[#allocation8 + $0x1600] sm:$0xff] }
 0x3b7   :  { %7971 = vmatprep.subr.bf16.mxu1 %v7970_v62  ;;  %v2742_v62 = vld [vmem:[#allocation8 + $0x1410] sm:$0xff]  ;;  %v8210_v30 = vpack.c.bf16 %v4264_v24, %v4257_v21 }
 0x3b8   :  { %v2790_v6 = vld [vmem:[#allocation8 + $0x1590] sm:$0xff] }
 0x3b9   :  { %8193 = vmatpush1.bf16.msra.mxu0 %v8192_v31  ;;  %v4263_v31 = vld [vmem:[#allocation11 + $0x658] sm:$0xff]  ;;  %v2826_v21 = vld [vmem:[#allocation8 + $0x16b0] sm:$0xff] }
 0x3ba   :  { %7973 = vmatpush1.bf16.msra.mxu1 %v7972_v33  ;;  %8195 = vmatprep.subr.bf16.mxu0 %v8194_v34  ;;  %v7990_v33 = vpack.c.bf16 %v2742_v62, %v2735_v52  ;;  %v4271_v34 = vld [vmem:[#allocation11 + $0x698] sm:$0xff]  ;;  %v8212_v46 = vpack.c.bf16 %v4263_v31, %v4256_v56  ;;  %v8014_v52 = vpack.c.bf16 %v2826_v21, %v2819_v19  ;;  %v2818_v62 = vld [vmem:[#allocation8 + $0x1670] sm:$0xff]  ;;  %v2839_v31 = vld [vmem:[#allocation8 + $0x1718] sm:$0xff] }
 0x3bb   :  { %7975 = vmatprep.subr.bf16.mxu1 %v7974_v44  ;;  %v2756_v44 = vld [vmem:[#allocation8 + $0x1480] sm:$0xff]  ;;  %v8214_v51 = vpack.c.bf16 %v4278_v40, %v4271_v34  ;;  %v2874_v4 = vld [vmem:[#allocation8 + $0x1830] sm:$0xff] }
 0x3bc   :  { %v2832_v56 = vld [vmem:[#allocation8 + $0x16e0] sm:$0xff]  ;;  %v4313_v21 = vld [vmem:[#allocation11 + $0x7e8] sm:$0xff] }
 0x3bd   :  { %8197 = vmatpush1.bf16.msra.mxu0 %v8196_v54  ;;  %v4277_v54 = vld [vmem:[#allocation11 + $0x6c8] sm:$0xff]  ;;  %v8020_v34 = vpack.c.bf16 %v2839_v31, %v2832_v56  ;;  %v9567_v40 = vld [vmem:[#allocation10] sm:$0xff]  ;;  %v4312_v56 = vld [vmem:[#allocation11 + $0x7e0] sm:$0xff] }
 0x3be   :  { %7977 = vmatpush1.bf16.msra.mxu1 %v7976_v49  ;;  %8199 = vmatprep.subr.bf16.mxu0 %v8198_v57  ;;  %v7994_v49 = vpack.c.bf16 %v2756_v44, %v2749_v43  ;;  %v4285_v57 = vld [vmem:[#allocation11 + $0x708] sm:$0xff]  ;;  %v8216_v60 = vpack.c.bf16 %v4277_v54, %v4270_v18  ;;  %v2868_v18 = vld [vmem:[#allocation8 + $0x1800] sm:$0xff]  ;;  %v2889_v54 = vrot.slane %v9567_v40, %v9454_v22 }
 0x3bf   :  { %7979 = vmatprep.subr.bf16.mxu1 %v7978_v41  ;;  %v2770_v41 = vld [vmem:[#allocation8 + $0x14f0] sm:$0xff]  ;;  %v8218_v61 = vpack.c.bf16 %v4292_v58, %v4285_v57  ;;  %v2893_v23 = vrot.slane %v9567_v40, %v9457_v42  ;;  %v4319_v31 = vld [vmem:[#allocation11 + $0x818] sm:$0xff] }
 0x3c0   :  { %v7998_v55 = vpack.c.bf16 %v2770_v41, %v2763_v39  ;;  %v2860_v39 = vld [vmem:[#allocation8 + $0x17c0] sm:$0xff]  ;;  %v2867_v41 = vld [vmem:[#allocation8 + $0x17f8] sm:$0xff] }
 0x3c1   :  { %8201 = vmatpush1.bf16.msra.mxu0 %v8200_v11  ;;  %v2769_v11 = vld [vmem:[#allocation8 + $0x14e8] sm:$0xff] }
 0x3c2   :  { %7981 = vmatpush1.bf16.msra.mxu1 %v7980_v0  ;;  %8203 = vmatprep.subr.bf16.mxu0 %v8202_v1  ;;  %v2777_v0 = vld [vmem:[#allocation8 + $0x1528] sm:$0xff]  ;;  %v8000_v1 = vpack.c.bf16 %v2769_v11, %v2762_v63 }
 0x3c3   :  { %7983 = vmatprep.subr.bf16.mxu1 %v7982_v2  ;;  %v8002_v45 = vpack.c.bf16 %v2784_v29, %v2777_v0  ;;  %v2783_v2 = vld [vmem:[#allocation8 + $0x1558] sm:$0xff]  ;;  %v4284_v11 = vld [vmem:[#allocation11 + $0x700] sm:$0xff]  ;;  %v4291_v0 = vld [vmem:[#allocation11 + $0x738] sm:$0xff] }
 0x3c4   :  { %v8004_v5 = vpack.c.bf16 %v2783_v2, %v2776_v25  ;;  %v4299_v25 = vld [vmem:[#allocation11 + $0x778] sm:$0xff]  ;;  %v4306_v2 = vld [vmem:[#allocation11 + $0x7b0] sm:$0xff] }
 0x3c5   :  { %8205 = vmatpush1.bf16.msra.mxu0 %v8204_v9  ;;  %v2797_v9 = vld [vmem:[#allocation8 + $0x15c8] sm:$0xff] }
 0x3c6   :  { %7985 = vmatpush1.bf16.msra.mxu1 %v7984_v8  ;;  %8207 = vmatprep.subr.bf16.mxu0 %v8206_v14  ;;  %v2805_v8 = vld [vmem:[#allocation8 + $0x1608] sm:$0xff]  ;;  %v8008_v14 = vpack.c.bf16 %v2797_v9, %v2790_v6  ;;  %v8220_v6 = vpack.c.bf16 %v4291_v0, %v4284_v11  ;;  %v4063_v9 = vld [vmem:[#allocation11 + $0x18] sm:$0xff] }
 0x3c7   :  { %7987 = vmatprep.subr.bf16.mxu1 %v7986_v15  ;;  %v8010_v7 = vpack.c.bf16 %v2812_v59, %v2805_v8  ;;  %v2811_v15 = vld [vmem:[#allocation8 + $0x1638] sm:$0xff]  ;;  %v4340_v11 = vld [vmem:[#allocation11 + $0x8c0] sm:$0xff]  ;;  %v4347_v0 = vld [vmem:[#allocation11 + $0x8f8] sm:$0xff] }
 0x3c8   :  { %v8012_v24 = vpack.c.bf16 %v2811_v15, %v2804_v17  ;;  %v4070_v8 = vld [vmem:[#allocation11 + $0x50] sm:$0xff]  ;;  %v4305_v17 = vld [vmem:[#allocation11 + $0x7a8] sm:$0xff] }
 0x3c9   :  { %8209 = vmatpush1.bf16.msra.mxu0 %v8208_v26  ;;  %v2825_v26 = vld [vmem:[#allocation8 + $0x16a8] sm:$0xff] }
 0x3ca   :  { %7989 = vmatpush1.bf16.msra.mxu1 %v7988_v27  ;;  %8211 = vmatprep.subr.bf16.mxu0 %v8210_v30  ;;  %v2833_v27 = vld [vmem:[#allocation8 + $0x16e8] sm:$0xff] }
 0x3cb   :  { %7991 = vmatprep.subr.bf16.mxu1 %v7990_v33  ;;  %v8018_v30 = vpack.c.bf16 %v2840_v28, %v2833_v27  ;;  %v2847_v33 = vld [vmem:[#allocation8 + $0x1758] sm:$0xff]  ;;  %v4077_v28 = vld [vmem:[#allocation11 + $0x88] sm:$0xff] }
 0x3cc   :  { %v8022_v44 = vpack.c.bf16 %v2854_v38, %v2847_v33  ;;  %v4327_v38 = vld [vmem:[#allocation11 + $0x858] sm:$0xff] }
 0x3cd   :  { %8213 = vmatpush1.bf16.msra.mxu0 %v8212_v46  ;;  %v2846_v46 = vld [vmem:[#allocation8 + $0x1750] sm:$0xff] }
 0x3ce   :  { %7993 = vmatpush1.bf16.msra.mxu1 %v7992_v47  ;;  %8215 = vmatprep.subr.bf16.mxu0 %v8214_v51  ;;  %v2853_v47 = vld [vmem:[#allocation8 + $0x1788] sm:$0xff] }
 0x3cf   :  { %7995 = vmatprep.subr.bf16.mxu1 %v7994_v49  ;;  %v2861_v51 = vld [vmem:[#allocation8 + $0x17c8] sm:$0xff]  ;;  %v2901_v49 = vrot.slane %v9567_v40, %v9486_v10  ;;  %v8024_v57 = vpack.c.bf16 %v2853_v47, %v2846_v46  ;;  %v4083_v47 = vld [vmem:[#allocation11 + $0xb8] sm:$0xff] }
 0x3d0   :  { %v8026_v58 = vpack.c.bf16 %v2868_v18, %v2861_v51  ;;  %v4076_v46 = vld [vmem:[#allocation11 + $0x80] sm:$0xff]  ;;  %v4091_v51 = vld [vmem:[#allocation11 + $0xf8] sm:$0xff]  ;;  %v4098_v18 = vld [vmem:[#allocation11 + $0x130] sm:$0xff] }
 0x3d1   :  { %8217 = vmatpush1.bf16.msra.mxu0 %v8216_v60 }
 0x3d2   :  { %7997 = vmatpush1.bf16.msra.mxu1 %v7996_v50  ;;  %8219 = vmatprep.subr.bf16.mxu0 %v8218_v61  ;;  %v2875_v50 = vld [vmem:[#allocation8 + $0x1838] sm:$0xff]  ;;  %v2882_v61 = vld [vmem:[#allocation8 + $0x1870] sm:$0xff] }
 0x3d3   :  { %7999 = vmatprep.subr.bf16.mxu1 %v7998_v55  ;;  %v8030_v3 = vpack.c.bf16 %v2882_v61, %v2875_v50  ;;  %v4097_v50 = vld [vmem:[#allocation11 + $0x128] sm:$0xff] }
 0x3d6   :  { %8001 = vmatpush1.bf16.msra.mxu1 %v8000_v1 }
 0x3d7   :  { %8003 = vmatprep.subr.bf16.mxu1 %v8002_v45  ;;  %v8028_v45 = vpack.c.bf16 %v2867_v41, %v2860_v39  ;;  %v4348_v39 = vld [vmem:[#allocation11 + $0x900] sm:$0xff]  ;;  %v8386_v41 = vpack.c.bf16 %v4098_v18, %v4091_v51  ;;  %v4147_v51 = vld [vmem:[#allocation11 + $0x2b8] sm:$0xff]  ;;  %v4154_v18 = vld [vmem:[#allocation11 + $0x2f0] sm:$0xff] }
 0x3d9   :  { %3696 = vmatmul.mubr.f32.vlgmr.msra.gmra.mrb[14].mxu1 %v9530_v12  ;;  %v8016_v12 = vpack.c.bf16 %v2825_v26, %v2818_v62  ;;  %v4062_v62 = vld [vmem:[#allocation11 + $0x10] sm:$0xff]  ;;  %v4069_v26 = vld [vmem:[#allocation11 + $0x48] sm:$0xff] }
 0x3da   :  { %8005 = vmatpush1.bf16.msra.mxu1 %v8004_v5  ;;  %3766 = vmatprep.mubr.f32.mxu1 %v9244_v53  ;;  %v2881_v5 = vld [vmem:[#allocation8 + $0x1868] sm:$0xff]  ;;  %v8380_v33 = vpack.c.bf16 %v4069_v26, %v4062_v62  ;;  %v4133_v26 = vld [vmem:[#allocation11 + $0x248] sm:$0xff] }
 0x3db   :  { %8007 = vmatprep.subr.bf16.mxu1 %v8006_v16  ;;  %v8032_v19 = vpack.c.bf16 %v2881_v5, %v2874_v4  ;;  %v8236_v4 = vpack.c.bf16 %v4347_v0, %v4340_v11  ;;  %v4119_v5 = vld [vmem:[#allocation11 + $0x1d8] sm:$0xff]  ;;  %v4396_v0 = vld [vmem:[#allocation11 + $0xa80] sm:$0xff] }
 0x3de   :  { %8009 = vmatpush1.bf16.msra.mxu1 %v8008_v14  ;;  %v8222_v14 = vpack.c.bf16 %v4306_v2, %v4299_v25  ;;  %v4104_v2 = vld [vmem:[#allocation11 + $0x160] sm:$0xff] }
 0x3df   :  { %8011 = vmatprep.subr.bf16.mxu1 %v8010_v7  ;;  %v4298_v7 = vld [vmem:[#allocation11 + $0x770] sm:$0xff] }
 0x3e0   :  { %v8224_v27 = vpack.c.bf16 %v4305_v17, %v4298_v7  ;;  %v4369_v17 = vld [vmem:[#allocation11 + $0x9a8] sm:$0xff] }
 0x3e2   :  { %8013 = vmatpush1.bf16.msra.mxu1 %v8012_v24  ;;  %v4320_v24 = vld [vmem:[#allocation11 + $0x820] sm:$0xff] }
 0x3e3   :  { %8015 = vmatprep.subr.bf16.mxu1 %v8014_v52  ;;  %v8378_v52 = vpack.c.bf16 %v4070_v8, %v4063_v9  ;;  %v4354_v8 = vld [vmem:[#allocation11 + $0x930] sm:$0xff] }
 0x3e6   :  { %8017 = vmatpush1.bf16.msra.mxu1 %v8016_v12  ;;  %v4084_v12 = vld [vmem:[#allocation11 + $0xc0] sm:$0xff] }
 0x3e7   :  { %v9569_v43 = vpop.f32.mrb[4].mxu0  ;;  %8019 = vmatprep.subr.bf16.mxu1 %v8018_v30  ;;  %v8226_v30 = vpack.c.bf16 %v4320_v24, %v4313_v21  ;;  %v4118_v24 = vld [vmem:[#allocation11 + $0x1d0] sm:$0xff] }
 0x3e8   :  { %v3486_v48 = vpop.f32.mrb[5].mxu0 }
 0x3e9   :  { %v8957_v29 = vadd.f32 %v3486_v48, %v2901_v49  ;;  %v8228_v48 = vpack.c.bf16 %v4319_v31, %v4312_v56  ;;  %v4326_v49 = vld [vmem:[#allocation11 + $0x850] sm:$0xff]  ;;  %v4383_v31 = vld [vmem:[#allocation11 + $0xa18] sm:$0xff] }
 0x3ea   :  { %8021 = vmatpush1.bf16.msra.mxu1 %v8020_v34  ;;  %v4334_v34 = vld [vmem:[#allocation11 + $0x890] sm:$0xff] }
 0x3eb   :  { %8023 = vmatprep.subr.bf16.mxu1 %v8022_v44  ;;  %v9581_v15 = vmax.f32 %v8957_v29, 0.0  ;;  %v8382_v44 = vpack.c.bf16 %v4084_v12, %v4077_v28  ;;  %v4368_v12 = vld [vmem:[#allocation11 + $0x9a0] sm:$0xff] }
 0x3ec   :  { %v3200_v60 = vpop.f32.mrb[12].mxu1 }
 0x3ed   :  { %v8954_v55 = vadd.f32 %v3200_v60, %v2889_v54  ;;  %v3202_v63 = vpop.f32.mrb[13].mxu1  ;;  %v8230_v54 = vpack.c.bf16 %v4334_v34, %v4327_v38  ;;  %v4090_v60 = vld [vmem:[#allocation11 + $0xf0] sm:$0xff] }
 0x3ee   :  { %v8955_v1 = vadd.f32 %v3202_v63, %v2893_v23  ;;  %8025 = vmatpush1.bf16.msra.mxu1 %v8024_v57  ;;  %v4333_v23 = vld [vmem:[#allocation11 + $0x888] sm:$0xff]  ;;  %v8384_v57 = vpack.c.bf16 %v4083_v47, %v4076_v46  ;;  %v4112_v63 = vld [vmem:[#allocation11 + $0x1a0] sm:$0xff]  ;;  %v8388_v29 = vpack.c.bf16 %v4097_v50, %v4090_v60  ;;  %v4139_v46 = vld [vmem:[#allocation11 + $0x278] sm:$0xff]  ;;  %v8402_v60 = vpack.c.bf16 %v4154_v18, %v4147_v51 }
 0x3ef   :  { %8027 = vmatprep.subr.bf16.mxu1 %v8026_v58  ;;  %v9579_v59 = vmax.f32 %v8954_v55, 0.0  ;;  %v4341_v58 = vld [vmem:[#allocation11 + $0x8c8] sm:$0xff]  ;;  %v8232_v61 = vpack.c.bf16 %v4333_v23, %v4326_v49  ;;  %v4382_v23 = vld [vmem:[#allocation11 + $0xa10] sm:$0xff] }
 0x3f0   :  { %v9577_v16 = vmax.f32 %v8955_v1, 0.0  ;;  %v4105_v55 = vld [vmem:[#allocation11 + $0x168] sm:$0xff]  ;;  %v4355_v1 = vld [vmem:[#allocation11 + $0x938] sm:$0xff]  ;;  %v4146_v50 = vld [vmem:[#allocation11 + $0x2b0] sm:$0xff] }
 0x3f1   :  { %v8390_v25 = vpack.c.bf16 %v4112_v63, %v4105_v55  ;;  %v4161_v63 = vld [vmem:[#allocation11 + $0x328] sm:$0xff]  ;;  %v4210_v51 = vld [vmem:[#allocation11 + $0x4b0] sm:$0xff] }
 0x3f2   :  { %8029 = vmatpush1.bf16.msra.mxu1 %v8028_v45  ;;  %4945 = vmatprep.mubr.f32.mxu0 %v9577_v16  ;;  %v4362_v45 = vld [vmem:[#allocation11 + $0x970] sm:$0xff] }
 0x3f3   :  { %4946 = vmatmul.mubr.f32.vlgmr.msra.gmra.mrb[14].mxu0 %v9579_v59  ;;  %8031 = vmatprep.subr.bf16.mxu1 %v8030_v3  ;;  %v4111_v3 = vld [vmem:[#allocation11 + $0x198] sm:$0xff]  ;;  %v8238_v9 = vpack.c.bf16 %v4362_v45, %v4355_v1 }
 0x3f4   :  { %8221 = vmatpush1.bf16.msra.mxu0 %v8220_v6  ;;  %5016 = vmatprep.mubr.f32.mxu0 %v9581_v15  ;;  %v4126_v6 = vld [vmem:[#allocation11 + $0x210] sm:$0xff]  ;;  %v8392_v7 = vpack.c.bf16 %v4111_v3, %v4104_v2  ;;  %v4411_v45 = vld [vmem:[#allocation11 + $0xaf8] sm:$0xff]  ;;  %v4160_v3 = vld [vmem:[#allocation11 + $0x320] sm:$0xff] }
 0x3f5   :  { %8223 = vmatprep.subr.bf16.mxu0 %v8222_v14  ;;  %v4361_v14 = vld [vmem:[#allocation11 + $0x968] sm:$0xff]  ;;  %v8394_v21 = vpack.c.bf16 %v4126_v6, %v4119_v5  ;;  %v4175_v6 = vld [vmem:[#allocation11 + $0x398] sm:$0xff] }
 0x3f6   :  { %8033 = vmatpush1.bf16.msra.mxu1 %v8032_v19  ;;  %v4376_v19 = vld [vmem:[#allocation11 + $0x9e0] sm:$0xff]  ;;  %v8240_v62 = vpack.c.bf16 %v4361_v14, %v4354_v8  ;;  %v4410_v14 = vld [vmem:[#allocation11 + $0xaf0] sm:$0xff] }
 0x3f7   :  { %8379 = vmatprep.subr.bf16.mxu1 %v8378_v52  ;;  %v4125_v52 = vld [vmem:[#allocation11 + $0x208] sm:$0xff]  ;;  %v8242_v28 = vpack.c.bf16 %v4376_v19, %v4369_v17 }
 0x3f8   :  { %8225 = vmatpush1.bf16.msra.mxu0 %v8224_v27  ;;  %v4140_v27 = vld [vmem:[#allocation11 + $0x280] sm:$0xff]  ;;  %v8396_v56 = vpack.c.bf16 %v4125_v52, %v4118_v24  ;;  %v4425_v19 = vld [vmem:[#allocation11 + $0xb68] sm:$0xff]  ;;  %v4174_v52 = vld [vmem:[#allocation11 + $0x390] sm:$0xff] }
 0x3f9   :  { %3767 = vmatmul.mubr.f32.vlgmr.msra.gmra.mrb[14].mxu1 %v9539_v13  ;;  %8227 = vmatprep.subr.bf16.mxu0 %v8226_v30  ;;  %v8234_v13 = vpack.c.bf16 %v4348_v39, %v4341_v58  ;;  %v4375_v30 = vld [vmem:[#allocation11 + $0x9d8] sm:$0xff]  ;;  %v8398_v34 = vpack.c.bf16 %v4140_v27, %v4133_v26  ;;  %v4397_v39 = vld [vmem:[#allocation11 + $0xa88] sm:$0xff] }
 0x3fa   :  { %8381 = vmatpush1.bf16.msra.mxu1 %v8380_v33  ;;  %5229 = vmatprep.mubr.f32.mxu1 %v9577_v16  ;;  %v4390_v33 = vld [vmem:[#allocation11 + $0xa50] sm:$0xff]  ;;  %v4189_v27 = vld [vmem:[#allocation11 + $0x408] sm:$0xff] }
 0x3fb   :  { %8383 = vmatprep.subr.bf16.mxu1 %v8382_v44  ;;  %v4132_v44 = vld [vmem:[#allocation11 + $0x240] sm:$0xff]  ;;  %v8246_v49 = vpack.c.bf16 %v4390_v33, %v4383_v31  ;;  %v4439_v33 = vld [vmem:[#allocation11 + $0xbd8] sm:$0xff] }
 0x3fc   :  { %8229 = vmatpush1.bf16.msra.mxu0 %v8228_v48  ;;  %v8244_v48 = vpack.c.bf16 %v4375_v30, %v4368_v12  ;;  %v8400_v58 = vpack.c.bf16 %v4139_v46, %v4132_v44  ;;  %v4424_v30 = vld [vmem:[#allocation11 + $0xb60] sm:$0xff]  ;;  %v4195_v46 = vld [vmem:[#allocation11 + $0x438] sm:$0xff] }
 0x3fd   :  { %8231 = vmatprep.subr.bf16.mxu0 %v8230_v54  ;;  %v4188_v44 = vld [vmem:[#allocation11 + $0x400] sm:$0xff] }
 0x3fe   :  { %8385 = vmatpush1.bf16.msra.mxu1 %v8384_v57  ;;  %v4389_v57 = vld [vmem:[#allocation11 + $0xa48] sm:$0xff] }
 0x3ff   :  { %8387 = vmatprep.subr.bf16.mxu1 %v8386_v41  ;;  %v4404_v41 = vld [vmem:[#allocation11 + $0xac0] sm:$0xff]  ;;  %v8248_v55 = vpack.c.bf16 %v4389_v57, %v4382_v23  ;;  %v4445_v23 = vld [vmem:[#allocation11 + $0xc08] sm:$0xff]  ;;  %v8416_v57 = vpack.c.bf16 %v4195_v46, %v4188_v44 }
 0x400   :  { %8233 = vmatpush1.bf16.msra.mxu0 %v8232_v61  ;;  %v4153_v61 = vld [vmem:[#allocation11 + $0x2e8] sm:$0xff]  ;;  %v8250_v11 = vpack.c.bf16 %v4404_v41, %v4397_v39  ;;  %v4460_v39 = vld [vmem:[#allocation11 + $0xc80] sm:$0xff] }
 0x401   :  { %8235 = vmatprep.subr.bf16.mxu0 %v8234_v13  ;;  %v4168_v13 = vld [vmem:[#allocation11 + $0x360] sm:$0xff]  ;;  %v8404_v1 = vpack.c.bf16 %v4153_v61, %v4146_v50  ;;  %v4209_v50 = vld [vmem:[#allocation11 + $0x4a8] sm:$0xff] }
 0x402   :  { %8389 = vmatpush1.bf16.msra.mxu1 %v8388_v29  ;;  %v4403_v29 = vld [vmem:[#allocation11 + $0xab8] sm:$0xff]  ;;  %v8406_v2 = vpack.c.bf16 %v4168_v13, %v4161_v63  ;;  %v4224_v63 = vld [vmem:[#allocation11 + $0x520] sm:$0xff] }
 0x403   :  { %8391 = vmatprep.subr.bf16.mxu1 %v8390_v25  ;;  %v4418_v25 = vld [vmem:[#allocation11 + $0xb30] sm:$0xff]  ;;  %v8252_v5 = vpack.c.bf16 %v4403_v29, %v4396_v0  ;;  %v4459_v0 = vld [vmem:[#allocation11 + $0xc78] sm:$0xff]  ;;  %v4244_v46 = vld [vmem:[#allocation11 + $0x5c0] sm:$0xff] }
 0x404   :  { %8237 = vmatpush1.bf16.msra.mxu0 %v8236_v4  ;;  %v4167_v4 = vld [vmem:[#allocation11 + $0x358] sm:$0xff]  ;;  %v8254_v8 = vpack.c.bf16 %v4418_v25, %v4411_v45  ;;  %v4474_v45 = vld [vmem:[#allocation11 + $0xcf0] sm:$0xff] }
 0x405   :  { %8239 = vmatprep.subr.bf16.mxu0 %v8238_v9  ;;  %v4182_v9 = vld [vmem:[#allocation11 + $0x3d0] sm:$0xff]  ;;  %v8408_v17 = vpack.c.bf16 %v4167_v4, %v4160_v3  ;;  %v4223_v3 = vld [vmem:[#allocation11 + $0x518] sm:$0xff] }
 0x406   :  { %8393 = vmatpush1.bf16.msra.mxu1 %v8392_v7  ;;  %v4417_v7 = vld [vmem:[#allocation11 + $0xb28] sm:$0xff]  ;;  %v8410_v24 = vpack.c.bf16 %v4182_v9, %v4175_v6  ;;  %v4238_v6 = vld [vmem:[#allocation11 + $0x590] sm:$0xff] }
 0x407   :  { %v6253_v38 = vpop.f32.mrb[6].mxu0  ;;  %8395 = vmatprep.subr.bf16.mxu1 %v8394_v21  ;;  %v4432_v21 = vld [vmem:[#allocation11 + $0xba0] sm:$0xff]  ;;  %v8256_v26 = vpack.c.bf16 %v4417_v7, %v4410_v14  ;;  %v4473_v14 = vld [vmem:[#allocation11 + $0xce8] sm:$0xff] }
 0x408   :  { %v6254_v47 = vpop.f32.mrb[7].mxu0  ;;  %8241 = vmatpush1.bf16.msra.mxu0 %v8240_v62  ;;  %v4181_v62 = vld [vmem:[#allocation11 + $0x3c8] sm:$0xff]  ;;  %v8258_v12 = vpack.c.bf16 %v4432_v21, %v4425_v19  ;;  %v4488_v19 = vld [vmem:[#allocation11 + $0xd60] sm:$0xff] }
 0x409   :  { %v9588_v54 = vadd.f32 %v6254_v47, %v6253_v38  ;;  %8243 = vmatprep.subr.bf16.mxu0 %v8242_v28  ;;  %v4196_v28 = vld [vmem:[#allocation11 + $0x440] sm:$0xff]  ;;  %v8412_v31 = vpack.c.bf16 %v4181_v62, %v4174_v52  ;;  %v4446_v38 = vld [vmem:[#allocation11 + $0xc10] sm:$0xff]  ;;  %v4237_v52 = vld [vmem:[#allocation11 + $0x588] sm:$0xff] }
 0x40a   :  { %8397 = vmatpush1.bf16.msra.mxu1 %v8396_v56  ;;  %v4431_v56 = vld [vmem:[#allocation11 + $0xb98] sm:$0xff]  ;;  %v8262_v18 = vpack.c.bf16 %v4446_v38, %v4439_v33  ;;  %v4502_v38 = vld [vmem:[#allocation11 + $0xdd0] sm:$0xff] }
 0x40b   :  { %8399 = vmatprep.subr.bf16.mxu1 %v8398_v34  ;;  %v8414_v34 = vpack.c.bf16 %v4196_v28, %v4189_v27  ;;  %v8260_v47 = vpack.c.bf16 %v4431_v56, %v4424_v30  ;;  %v4252_v27 = vld [vmem:[#allocation11 + $0x600] sm:$0xff]  ;;  %v2913_v28 = vrot.slane %v9567_v40, %v9508_v20  ;;  %v4487_v56 = vld [vmem:[#allocation11 + $0xd58] sm:$0xff] }
 0x40c   :  { %8245 = vmatpush1.bf16.msra.mxu0 %v8244_v48  ;;  %v4203_v48 = vld [vmem:[#allocation11 + $0x478] sm:$0xff]  ;;  %v4480_v30 = vld [vmem:[#allocation11 + $0xd20] sm:$0xff] }
 0x40d   :  { %8247 = vmatprep.subr.bf16.mxu0 %v8246_v49  ;;  %v4438_v49 = vld [vmem:[#allocation11 + $0xbd0] sm:$0xff]  ;;  %v8418_v41 = vpack.c.bf16 %v4210_v51, %v4203_v48  ;;  %v4495_v33 = vld [vmem:[#allocation11 + $0xd98] sm:$0xff]  ;;  %v8276_v51 = vpack.c.bf16 %v4487_v56, %v4480_v30  ;;  %v4301_v30 = vld [vmem:[#allocation11 + $0x788] sm:$0xff] }
 0x40e   :  { %8401 = vmatpush1.bf16.msra.mxu1 %v8400_v58  ;;  %v4453_v58 = vld [vmem:[#allocation11 + $0xc48] sm:$0xff]  ;;  %v8264_v61 = vpack.c.bf16 %v4445_v23, %v4438_v49  ;;  %v4266_v49 = vld [vmem:[#allocation11 + $0x670] sm:$0xff]  ;;  %v2897_v23 = vrot.slane %v9567_v40, %v9493_v32  ;;  %v4308_v56 = vld [vmem:[#allocation11 + $0x7c0] sm:$0xff] }
 0x40f   :  { %8403 = vmatprep.subr.bf16.mxu1 %v8402_v60  ;;  %v4202_v60 = vld [vmem:[#allocation11 + $0x470] sm:$0xff]  ;;  %v8266_v13 = vpack.c.bf16 %v4460_v39, %v4453_v58  ;;  %v8278_v39 = vpack.c.bf16 %v4502_v38, %v4495_v33  ;;  %v4273_v40 = vld [vmem:[#allocation11 + $0x6a8] sm:$0xff]  ;;  %v4536_v38 = vld [vmem:[#allocation11 + $0xee0] sm:$0xff] }
 0x410   :  { %8249 = vmatpush1.bf16.msra.mxu0 %v8248_v55  ;;  %v4217_v55 = vld [vmem:[#allocation11 + $0x4e8] sm:$0xff]  ;;  %v8420_v29 = vpack.c.bf16 %v4209_v50, %v4202_v60 }
 0x411   :  { %8251 = vmatprep.subr.bf16.mxu0 %v8250_v11  ;;  %v4452_v11 = vld [vmem:[#allocation11 + $0xc40] sm:$0xff]  ;;  %v8422_v25 = vpack.c.bf16 %v4224_v63, %v4217_v55  ;;  %v4501_v60 = vld [vmem:[#allocation11 + $0xdc8] sm:$0xff] }
 0x412   :  { %8405 = vmatpush1.bf16.msra.mxu1 %v8404_v1  ;;  %v4467_v1 = vld [vmem:[#allocation11 + $0xcb8] sm:$0xff]  ;;  %v8268_v4 = vpack.c.bf16 %v4459_v0, %v4452_v11  ;;  %v4516_v55 = vld [vmem:[#allocation11 + $0xe40] sm:$0xff]  ;;  %v4258_v11 = vld [vmem:[#allocation11 + $0x630] sm:$0xff] }
 0x413   :  { %8407 = vmatprep.subr.bf16.mxu1 %v8406_v2  ;;  %v4216_v2 = vld [vmem:[#allocation11 + $0x4e0] sm:$0xff]  ;;  %v8270_v9 = vpack.c.bf16 %v4474_v45, %v4467_v1  ;;  %v4265_v0 = vld [vmem:[#allocation11 + $0x668] sm:$0xff] }
 0x414   :  { %8253 = vmatpush1.bf16.msra.mxu0 %v8252_v5  ;;  %v4231_v5 = vld [vmem:[#allocation11 + $0x558] sm:$0xff]  ;;  %v8424_v7 = vpack.c.bf16 %v4223_v3, %v4216_v2  ;;  %v4280_v1 = vld [vmem:[#allocation11 + $0x6e0] sm:$0xff]  ;;  %v8436_v3 = vpack.c.bf16 %v4265_v0, %v4258_v11  ;;  %v4321_v11 = vld [vmem:[#allocation11 + $0x828] sm:$0xff] }
 0x415   :  { %8255 = vmatprep.subr.bf16.mxu0 %v8254_v8  ;;  %v4466_v8 = vld [vmem:[#allocation11 + $0xcb0] sm:$0xff]  ;;  %v8426_v21 = vpack.c.bf16 %v4238_v6, %v4231_v5  ;;  %v4515_v2 = vld [vmem:[#allocation11 + $0xe38] sm:$0xff]  ;;  %v8438_v6 = vpack.c.bf16 %v4280_v1, %v4273_v40  ;;  %v4329_v0 = vld [vmem:[#allocation11 + $0x868] sm:$0xff] }
 0x416   :  { %8409 = vmatpush1.bf16.msra.mxu1 %v8408_v17  ;;  %v4481_v17 = vld [vmem:[#allocation11 + $0xd28] sm:$0xff]  ;;  %v8272_v62 = vpack.c.bf16 %v4473_v14, %v4466_v8  ;;  %v4530_v5 = vld [vmem:[#allocation11 + $0xeb0] sm:$0xff]  ;;  %v4279_v8 = vld [vmem:[#allocation11 + $0x6d8] sm:$0xff] }
 0x417   :  { %8411 = vmatprep.subr.bf16.mxu1 %v8410_v24  ;;  %v4230_v24 = vld [vmem:[#allocation11 + $0x550] sm:$0xff]  ;;  %v4287_v14 = vld [vmem:[#allocation11 + $0x718] sm:$0xff] }
 0x418   :  { %8257 = vmatpush1.bf16.msra.mxu0 %v8256_v26  ;;  %v4245_v26 = vld [vmem:[#allocation11 + $0x5c8] sm:$0xff] }
 0x419   :  { %8259 = vmatprep.subr.bf16.mxu0 %v8258_v12  ;;  %v8274_v12 = vpack.c.bf16 %v4488_v19, %v4481_v17  ;;  %v8430_v44 = vpack.c.bf16 %v4252_v27, %v4245_v26  ;;  %v4544_v26 = vld [vmem:[#allocation11 + $0xf20] sm:$0xff] }
 0x41a   :  { %8413 = vmatpush1.bf16.msra.mxu1 %v8412_v31  ;;  %v8428_v31 = vpack.c.bf16 %v4237_v52, %v4230_v24  ;;  %v4529_v24 = vld [vmem:[#allocation11 + $0xea8] sm:$0xff] }
 0x41b   :  { %8415 = vmatprep.subr.bf16.mxu1 %v8414_v34 }
 0x41c   :  { %8261 = vmatpush1.bf16.msra.mxu0 %v8260_v47  ;;  %v4251_v47 = vld [vmem:[#allocation11 + $0x5f8] sm:$0xff] }
 0x41d   :  { %8263 = vmatprep.subr.bf16.mxu0 %v8262_v18  ;;  %v4259_v18 = vld [vmem:[#allocation11 + $0x638] sm:$0xff]  ;;  %v8432_v50 = vpack.c.bf16 %v4251_v47, %v4244_v46  ;;  %v4558_v47 = vld [vmem:[#allocation11 + $0xf90] sm:$0xff] }
 0x41e   :  { %8417 = vmatpush1.bf16.msra.mxu1 %v8416_v57  ;;  %v3840_v57 = vadd.f32 %v9588_v54, %v2913_v28  ;;  %v8956_v54 = vadd.f32 %v9569_v43, %v2897_v23  ;;  %v4286_v28 = vld [vmem:[#allocation11 + $0x710] sm:$0xff]  ;;  %v4551_v46 = vld [vmem:[#allocation11 + $0xf58] sm:$0xff] }
 0x41f   :  { %8419 = vmatprep.subr.bf16.mxu1 %v8418_v41  ;;  %v4494_v41 = vld [vmem:[#allocation11 + $0xd90] sm:$0xff] }
 0x420   :  { %8265 = vmatpush1.bf16.msra.mxu0 %v8264_v61  ;;  %v4509_v61 = vld [vmem:[#allocation11 + $0xe08] sm:$0xff]  ;;  %v9598_v19 = vmax.f32 %v8956_v54, 0.0  ;;  %v4322_v23 = vld [vmem:[#allocation11 + $0x830] sm:$0xff]  ;;  %v4564_v54 = vld [vmem:[#allocation11 + $0xfc0] sm:$0xff] }
 0x421   :  { %8267 = vmatprep.subr.bf16.mxu0 %v8266_v13  ;;  %v8434_v13 = vpack.c.bf16 %v4266_v49, %v4259_v18  ;;  %v8282_v45 = vpack.c.bf16 %v4516_v55, %v4509_v61  ;;  %v4307_v18 = vld [vmem:[#allocation11 + $0x7b8] sm:$0xff]  ;;  %v4572_v61 = vld [vmem:[#allocation11 + $0x1000] sm:$0xff] }
 0x422   :  { %8421 = vmatpush1.bf16.msra.mxu1 %v8420_v29  ;;  %v8280_v29 = vpack.c.bf16 %v4501_v60, %v4494_v41  ;;  %v4315_v49 = vld [vmem:[#allocation11 + $0x7f8] sm:$0xff]  ;;  %v4557_v41 = vld [vmem:[#allocation11 + $0xf88] sm:$0xff] }
 0x423   :  { %8423 = vmatprep.subr.bf16.mxu1 %v8422_v25  ;;  %v4508_v25 = vld [vmem:[#allocation11 + $0xe00] sm:$0xff]  ;;  %v8450_v55 = vpack.c.bf16 %v4322_v23, %v4315_v49  ;;  %v4371_v49 = vld [vmem:[#allocation11 + $0x9b8] sm:$0xff]  ;;  %v4378_v23 = vld [vmem:[#allocation11 + $0x9f0] sm:$0xff] }
 0x424   :  { %8269 = vmatpush1.bf16.msra.mxu0 %v8268_v4  ;;  %v4523_v4 = vld [vmem:[#allocation11 + $0xe78] sm:$0xff]  ;;  %v8284_v17 = vpack.c.bf16 %v4515_v2, %v4508_v25 }
 0x425   :  { %8271 = vmatprep.subr.bf16.mxu0 %v8270_v9  ;;  %v4272_v9 = vld [vmem:[#allocation11 + $0x6a0] sm:$0xff]  ;;  %v8286_v43 = vpack.c.bf16 %v4530_v5, %v4523_v4  ;;  %v4579_v2 = vld [vmem:[#allocation11 + $0x1038] sm:$0xff] }
 0x426   :  { %8425 = vmatpush1.bf16.msra.mxu1 %v8424_v7  ;;  %v4294_v7 = vld [vmem:[#allocation11 + $0x750] sm:$0xff]  ;;  %v8440_v52 = vpack.c.bf16 %v4279_v8, %v4272_v9  ;;  %v4328_v5 = vld [vmem:[#allocation11 + $0x860] sm:$0xff]  ;;  %v4343_v9 = vld [vmem:[#allocation11 + $0x8d8] sm:$0xff] }
 0x427   :  { %v6288_v34 = vpop.f32.mrb[8].mxu0  ;;  %8427 = vmatprep.subr.bf16.mxu1 %v8426_v21  ;;  %v4522_v21 = vld [vmem:[#allocation11 + $0xe70] sm:$0xff]  ;;  %v8442_v27 = vpack.c.bf16 %v4294_v7, %v4287_v14 }
 0x428   :  { %v6289_v48 = vpop.f32.mrb[9].mxu0  ;;  %8273 = vmatpush1.bf16.msra.mxu0 %v8272_v62  ;;  %v4537_v62 = vld [vmem:[#allocation11 + $0xee8] sm:$0xff]  ;;  %v4350_v8 = vld [vmem:[#allocation11 + $0x910] sm:$0xff] }
 0x429   :  { %v6290_v58 = vadd.f32 %v6289_v48, %v6288_v34  ;;  %8275 = vmatprep.subr.bf16.mxu0 %v8274_v12  ;;  %v4293_v12 = vld [vmem:[#allocation11 + $0x748] sm:$0xff]  ;;  %v8290_v33 = vpack.c.bf16 %v4544_v26, %v4537_v62  ;;  %v4543_v34 = vld [vmem:[#allocation11 + $0xf18] sm:$0xff]  ;;  %v8446_v48 = vpack.c.bf16 %v4308_v56, %v4301_v30  ;;  %v8458_v62 = vpack.c.bf16 %v4350_v8, %v4343_v9  ;;  %v4342_v26 = vld [vmem:[#allocation11 + $0x8d0] sm:$0xff] }
 0x42a   :  { %8429 = vmatpush1.bf16.msra.mxu1 %v8428_v31  ;;  %v8288_v31 = vpack.c.bf16 %v4529_v24, %v4522_v21  ;;  %v4593_v24 = vld [vmem:[#allocation11 + $0x10a8] sm:$0xff]  ;;  %v4384_v9 = vld [vmem:[#allocation11 + $0xa20] sm:$0xff]  ;;  %v4391_v8 = vld [vmem:[#allocation11 + $0xa58] sm:$0xff] }
 0x42b   :  { %v9595_v63 = vadd.f32 %v6290_v58, %v3840_v57  ;;  %8431 = vmatprep.subr.bf16.mxu1 %v8430_v44  ;;  %v8444_v44 = vpack.c.bf16 %v4293_v12, %v4286_v28  ;;  %v8292_v57 = vpack.c.bf16 %v4543_v34, %v4536_v38  ;;  %v8294_v58 = vpack.c.bf16 %v4558_v47, %v4551_v46  ;;  %v4357_v28 = vld [vmem:[#allocation11 + $0x948] sm:$0xff]  ;;  %v4364_v12 = vld [vmem:[#allocation11 + $0x980] sm:$0xff]  ;;  %v4607_v34 = vld [vmem:[#allocation11 + $0x1118] sm:$0xff] }
 0x42c   :  { %8277 = vmatpush1.bf16.msra.mxu0 %v8276_v51  ;;  %v4300_v51 = vld [vmem:[#allocation11 + $0x780] sm:$0xff]  ;;  %v8462_v47 = vpack.c.bf16 %v4364_v12, %v4357_v28  ;;  %v4405_v28 = vld [vmem:[#allocation11 + $0xac8] sm:$0xff] }
 0x42d   :  { %8279 = vmatprep.subr.bf16.mxu0 %v8278_v39  ;;  %v4550_v39 = vld [vmem:[#allocation11 + $0xf50] sm:$0xff]  ;;  %v8448_v60 = vpack.c.bf16 %v4307_v18, %v4300_v51  ;;  %v4363_v51 = vld [vmem:[#allocation11 + $0x978] sm:$0xff]  ;;  %v4413_v12 = vld [vmem:[#allocation11 + $0xb08] sm:$0xff] }
 0x42e   :  { %8433 = vmatpush1.bf16.msra.mxu1 %v8432_v50  ;;  %v4565_v50 = vld [vmem:[#allocation11 + $0xfc8] sm:$0xff]  ;;  %v8296_v40 = vpack.c.bf16 %v4557_v41, %v4550_v39  ;;  %v4606_v41 = vld [vmem:[#allocation11 + $0x1110] sm:$0xff] }
 0x42f   :  { %8435 = vmatprep.subr.bf16.mxu1 %v8434_v13  ;;  %v4314_v13 = vld [vmem:[#allocation11 + $0x7f0] sm:$0xff]  ;;  %v8298_v1 = vpack.c.bf16 %v4572_v61, %v4565_v50  ;;  %v4621_v61 = vld [vmem:[#allocation11 + $0x1188] sm:$0xff] }
 0x430   :  { %8281 = vmatpush1.bf16.msra.mxu0 %v8280_v29  ;;  %v4336_v29 = vld [vmem:[#allocation11 + $0x8a0] sm:$0xff]  ;;  %v8452_v25 = vpack.c.bf16 %v4321_v11, %v4314_v13  ;;  %v8466_v13 = vpack.c.bf16 %v4378_v23, %v4371_v49  ;;  %v4370_v11 = vld [vmem:[#allocation11 + $0x9b0] sm:$0xff] }
 0x431   :  { %8283 = vmatprep.subr.bf16.mxu0 %v8282_v45  ;;  %v4571_v45 = vld [vmem:[#allocation11 + $0xff8] sm:$0xff]  ;;  %v8454_v4 = vpack.c.bf16 %v4336_v29, %v4329_v0  ;;  %v4377_v0 = vld [vmem:[#allocation11 + $0x9e8] sm:$0xff]  ;;  %v4434_v49 = vld [vmem:[#allocation11 + $0xbb0] sm:$0xff] }
 0x432   :  { %8437 = vmatpush1.bf16.msra.mxu1 %v8436_v3  ;;  %v4586_v3 = vld [vmem:[#allocation11 + $0x1070] sm:$0xff]  ;;  %v8300_v14 = vpack.c.bf16 %v4571_v45, %v4564_v54 }
 0x433   :  { %5017 = vmatmul.mubr.f32.vlgmr.msra.gmra.mrb[14].mxu0 %v9598_v19  ;;  %8439 = vmatprep.subr.bf16.mxu1 %v8438_v6  ;;  %v4335_v6 = vld [vmem:[#allocation11 + $0x898] sm:$0xff]  ;;  %v8302_v7 = vpack.c.bf16 %v4586_v3, %v4579_v2  ;;  %v8468_v3 = vpack.c.bf16 %v4377_v0, %v4370_v11  ;;  %v4441_v11 = vld [vmem:[#allocation11 + $0xbe8] sm:$0xff]  ;;  %v4448_v0 = vld [vmem:[#allocation11 + $0xc20] sm:$0xff] }
 0x434   :  { %8285 = vmatpush1.bf16.msra.mxu0 %v8284_v17  ;;  %v4578_v17 = vld [vmem:[#allocation11 + $0x1030] sm:$0xff]  ;;  %v8456_v21 = vpack.c.bf16 %v4335_v6, %v4328_v5  ;;  %v4627_v2 = vld [vmem:[#allocation11 + $0x11b8] sm:$0xff] }
 0x435   :  { %8287 = vmatprep.subr.bf16.mxu0 %v8286_v43  ;;  %v4585_v43 = vld [vmem:[#allocation11 + $0x1068] sm:$0xff]  ;;  %v4642_v5 = vld [vmem:[#allocation11 + $0x1230] sm:$0xff] }
 0x436   :  { %8441 = vmatpush1.bf16.msra.mxu1 %v8440_v52  ;;  %v4600_v52 = vld [vmem:[#allocation11 + $0x10e0] sm:$0xff]  ;;  %v8304_v30 = vpack.c.bf16 %v4585_v43, %v4578_v17  ;;  %v4634_v43 = vld [vmem:[#allocation11 + $0x11f0] sm:$0xff] }
 0x437   :  { %8443 = vmatprep.subr.bf16.mxu1 %v8442_v27  ;;  %v4349_v27 = vld [vmem:[#allocation11 + $0x908] sm:$0xff]  ;;  %v8306_v56 = vpack.c.bf16 %v4600_v52, %v4593_v24  ;;  %v8472_v24 = vpack.c.bf16 %v4391_v8, %v4384_v9  ;;  %v4455_v9 = vld [vmem:[#allocation11 + $0xc58] sm:$0xff]  ;;  %v4462_v8 = vld [vmem:[#allocation11 + $0xc90] sm:$0xff] }
 0x438   :  { %8289 = vmatpush1.bf16.msra.mxu0 %v8288_v31  ;;  %v4592_v31 = vld [vmem:[#allocation11 + $0x10a0] sm:$0xff]  ;;  %v8460_v38 = vpack.c.bf16 %v4349_v27, %v4342_v26  ;;  %v4649_v52 = vld [vmem:[#allocation11 + $0x1268] sm:$0xff]  ;;  %v4398_v27 = vld [vmem:[#allocation11 + $0xa90] sm:$0xff] }
 0x439   :  { %5230 = vmatmul.mubr.f32.vlgmr.msra.gmra.mrb[16].mxu1 %v9579_v59  ;;  %8291 = vmatprep.subr.bf16.mxu0 %v8290_v33  ;;  %v4599_v33 = vld [vmem:[#allocation11 + $0x10d8] sm:$0xff] }
 0x43a   :  { %8445 = vmatpush1.bf16.msra.mxu1 %v8444_v44  ;;  %5300 = vmatprep.mubr.f32.mxu1 %v9581_v15  ;;  %v4614_v44 = vld [vmem:[#allocation11 + $0x1150] sm:$0xff] }
 0x43b   :  { %8447 = vmatprep.subr.bf16.mxu1 %v8446_v48  ;;  %v4356_v48 = vld [vmem:[#allocation11 + $0x940] sm:$0xff]  ;;  %v8310_v39 = vpack.c.bf16 %v4614_v44, %v4607_v34  ;;  %v8476_v34 = vpack.c.bf16 %v4405_v28, %v4398_v27  ;;  %v4663_v44 = vld [vmem:[#allocation11 + $0x12d8] sm:$0xff]  ;;  %v4469_v27 = vld [vmem:[#allocation11 + $0xcc8] sm:$0xff] }
 0x43c   :  { %8293 = vmatpush1.bf16.msra.mxu0 %v8292_v57  ;;  %v8308_v57 = vpack.c.bf16 %v4599_v33, %v4592_v31  ;;  %v8464_v50 = vpack.c.bf16 %v4363_v51, %v4356_v48  ;;  %v4648_v33 = vld [vmem:[#allocation11 + $0x1260] sm:$0xff]  ;;  %v4419_v51 = vld [vmem:[#allocation11 + $0xb38] sm:$0xff] }
 0x43d   :  { %8295 = vmatprep.subr.bf16.mxu0 %v8294_v58  ;;  %v4412_v48 = vld [vmem:[#allocation11 + $0xb00] sm:$0xff] }
 0x43e   :  { %8449 = vmatpush1.bf16.msra.mxu1 %v8448_v60  ;;  %v4613_v60 = vld [vmem:[#allocation11 + $0x1148] sm:$0xff]  ;;  %v4476_v28 = vld [vmem:[#allocation11 + $0xd00] sm:$0xff] }
 0x43f   :  { %8451 = vmatprep.subr.bf16.mxu1 %v8450_v55  ;;  %v4628_v55 = vld [vmem:[#allocation11 + $0x11c0] sm:$0xff]  ;;  %v8312_v54 = vpack.c.bf16 %v4613_v60, %v4606_v41  ;;  %v8480_v41 = vpack.c.bf16 %v4419_v51, %v4412_v48  ;;  %v4677_v60 = vld [vmem:[#allocation11 + $0x1348] sm:$0xff]  ;;  %v4475_v48 = vld [vmem:[#allocation11 + $0xcf8] sm:$0xff] }
 0x440   :  { %8297 = vmatpush1.bf16.msra.mxu0 %v8296_v40  ;;  %v4385_v40 = vld [vmem:[#allocation11 + $0xa28] sm:$0xff]  ;;  %v8314_v45 = vpack.c.bf16 %v4628_v55, %v4621_v61  ;;  %v4426_v55 = vld [vmem:[#allocation11 + $0xb70] sm:$0xff] }
 0x441   :  { %8299 = vmatprep.subr.bf16.mxu0 %v8298_v1  ;;  %v4392_v1 = vld [vmem:[#allocation11 + $0xa60] sm:$0xff] }
 0x442   :  { %8453 = vmatpush1.bf16.msra.mxu1 %v8452_v25  ;;  %v4620_v25 = vld [vmem:[#allocation11 + $0x1180] sm:$0xff]  ;;  %v8470_v6 = vpack.c.bf16 %v4392_v1, %v4385_v40 }
 0x443   :  { %8455 = vmatprep.subr.bf16.mxu1 %v8454_v4  ;;  %v4635_v4 = vld [vmem:[#allocation11 + $0x11f8] sm:$0xff] }
 0x444   :  { %8301 = vmatpush1.bf16.msra.mxu0 %v8300_v14  ;;  %v4399_v14 = vld [vmem:[#allocation11 + $0xa98] sm:$0xff]  ;;  %v8318_v17 = vpack.c.bf16 %v4642_v5, %v4635_v4  ;;  %v8486_v4 = vpack.c.bf16 %v4448_v0, %v4441_v11  ;;  %v4440_v5 = vld [vmem:[#allocation11 + $0xbe0] sm:$0xff]  ;;  %v4489_v11 = vld [vmem:[#allocation11 + $0xd68] sm:$0xff] }
 0x445   :  { %8303 = vmatprep.subr.bf16.mxu0 %v8302_v7  ;;  %v4406_v7 = vld [vmem:[#allocation11 + $0xad0] sm:$0xff]  ;;  %v4497_v0 = vld [vmem:[#allocation11 + $0xda8] sm:$0xff] }
 0x446   :  { %8457 = vmatpush1.bf16.msra.mxu1 %v8456_v21  ;;  %v4641_v21 = vld [vmem:[#allocation11 + $0x1228] sm:$0xff]  ;;  %v8474_v26 = vpack.c.bf16 %v4406_v7, %v4399_v14 }
 0x447   :  { %v6323_v46 = vpop.f32.mrb[10].mxu0  ;;  %8459 = vmatprep.subr.bf16.mxu1 %v8458_v62  ;;  %v4656_v62 = vld [vmem:[#allocation11 + $0x12a0] sm:$0xff] }
 0x448   :  { %v6324_v18 = vpop.f32.mrb[11].mxu0  ;;  %8305 = vmatpush1.bf16.msra.mxu0 %v8304_v30  ;;  %v4420_v30 = vld [vmem:[#allocation11 + $0xb40] sm:$0xff]  ;;  %v8322_v31 = vpack.c.bf16 %v4656_v62, %v4649_v52  ;;  %v8490_v52 = vpack.c.bf16 %v4462_v8, %v4455_v9  ;;  %v4454_v62 = vld [vmem:[#allocation11 + $0xc50] sm:$0xff]  ;;  %v4517_v8 = vld [vmem:[#allocation11 + $0xe48] sm:$0xff] }
 0x449   :  { %v6325_v58 = vadd.f32 %v6324_v18, %v6323_v46  ;;  %8307 = vmatprep.subr.bf16.mxu0 %v8306_v56  ;;  %v8320_v56 = vpack.c.bf16 %v4641_v21, %v4634_v43  ;;  %v4670_v46 = vld [vmem:[#allocation11 + $0x1310] sm:$0xff]  ;;  %v4427_v18 = vld [vmem:[#allocation11 + $0xb78] sm:$0xff]  ;;  %v4705_v21 = vld [vmem:[#allocation11 + $0x1428] sm:$0xff] }
 0x44a   :  { %8461 = vmatpush1.bf16.msra.mxu1 %v8460_v38  ;;  %v4655_v38 = vld [vmem:[#allocation11 + $0x1298] sm:$0xff]  ;;  %v8482_v61 = vpack.c.bf16 %v4434_v49, %v4427_v18  ;;  %v4510_v9 = vld [vmem:[#allocation11 + $0xe10] sm:$0xff] }
 0x44b   :  { %8463 = vmatprep.subr.bf16.mxu1 %v8462_v47  ;;  %v9604_v29 = vadd.f32 %v6325_v58, %v9595_v63  ;;  %v8316_v63 = vpack.c.bf16 %v4627_v2, %v4620_v25  ;;  %v8478_v47 = vpack.c.bf16 %v4420_v30, %v4413_v12  ;;  %v8324_v23 = vpack.c.bf16 %v4655_v38, %v4648_v33  ;;  %v4662_v58 = vld [vmem:[#allocation11 + $0x12d0] sm:$0xff]  ;;  %v4691_v2 = vld [vmem:[#allocation11 + $0x13b8] sm:$0xff] }
 0x44c   :  { %8309 = vmatpush1.bf16.msra.mxu0 %v8308_v57  ;;  %v8326_v57 = vpack.c.bf16 %v4670_v46, %v4663_v44  ;;  %v4719_v38 = vld [vmem:[#allocation11 + $0x1498] sm:$0xff]  ;;  %v8494_v46 = vpack.c.bf16 %v4476_v28, %v4469_v27  ;;  %v4538_v27 = vld [vmem:[#allocation11 + $0xef0] sm:$0xff]  ;;  %v4545_v28 = vld [vmem:[#allocation11 + $0xf28] sm:$0xff] }
 0x44d   :  { %8311 = vmatprep.subr.bf16.mxu0 %v8310_v39  ;;  %v4669_v39 = vld [vmem:[#allocation11 + $0x1308] sm:$0xff]  ;;  %v4483_v49 = vld [vmem:[#allocation11 + $0xd38] sm:$0xff] }
 0x44e   :  { %8465 = vmatpush1.bf16.msra.mxu1 %v8464_v50  ;;  %v4684_v50 = vld [vmem:[#allocation11 + $0x1380] sm:$0xff]  ;;  %v8328_v40 = vpack.c.bf16 %v4669_v39, %v4662_v58  ;;  %v4718_v39 = vld [vmem:[#allocation11 + $0x1490] sm:$0xff] }
 0x44f   :  { %8467 = vmatprep.subr.bf16.mxu1 %v8466_v13  ;;  %v4433_v13 = vld [vmem:[#allocation11 + $0xba8] sm:$0xff]  ;;  %v8330_v1 = vpack.c.bf16 %v4684_v50, %v4677_v60 }
 0x450   :  { %8313 = vmatpush1.bf16.msra.mxu0 %v8312_v54  ;;  %v4676_v54 = vld [vmem:[#allocation11 + $0x1340] sm:$0xff]  ;;  %v8484_v25 = vpack.c.bf16 %v4433_v13, %v4426_v55  ;;  %v4733_v50 = vld [vmem:[#allocation11 + $0x1508] sm:$0xff]  ;;  %v4482_v13 = vld [vmem:[#allocation11 + $0xd30] sm:$0xff] }
 0x451   :  { %8315 = vmatprep.subr.bf16.mxu0 %v8314_v45  ;;  %v4683_v45 = vld [vmem:[#allocation11 + $0x1378] sm:$0xff] }
 0x452   :  { %8469 = vmatpush1.bf16.msra.mxu1 %v8468_v3  ;;  %v4698_v3 = vld [vmem:[#allocation11 + $0x13f0] sm:$0xff]  ;;  %v8332_v14 = vpack.c.bf16 %v4683_v45, %v4676_v54  ;;  %v8500_v54 = vpack.c.bf16 %v4489_v11, %v4482_v13  ;;  %v4601_v11 = vld [vmem:[#allocation11 + $0x10e8] sm:$0xff] }
 0x453   :  { %8471 = vmatprep.subr.bf16.mxu1 %v8470_v6  ;;  %v4447_v6 = vld [vmem:[#allocation11 + $0xc18] sm:$0xff]  ;;  %v8334_v7 = vpack.c.bf16 %v4698_v3, %v4691_v2  ;;  %v4594_v13 = vld [vmem:[#allocation11 + $0x10b0] sm:$0xff] }
 0x454   :  { %8317 = vmatpush1.bf16.msra.mxu0 %v8316_v63  ;;  %v4690_v63 = vld [vmem:[#allocation11 + $0x13b0] sm:$0xff]  ;;  %v8488_v43 = vpack.c.bf16 %v4447_v6, %v4440_v5  ;;  %v4503_v2 = vld [vmem:[#allocation11 + $0xdd8] sm:$0xff] }
 0x455   :  { %8319 = vmatprep.subr.bf16.mxu0 %v8318_v17  ;;  %v4697_v17 = vld [vmem:[#allocation11 + $0x13e8] sm:$0xff]  ;;  %v4511_v3 = vld [vmem:[#allocation11 + $0xe18] sm:$0xff] }
 0x456   :  { %8473 = vmatpush1.bf16.msra.mxu1 %v8472_v24  ;;  %v4712_v24 = vld [vmem:[#allocation11 + $0x1460] sm:$0xff]  ;;  %v8336_v12 = vpack.c.bf16 %v4697_v17, %v4690_v63  ;;  %v8508_v63 = vpack.c.bf16 %v4517_v8, %v4510_v9  ;;  %v4637_v9 = vld [vmem:[#allocation11 + $0x1208] sm:$0xff] }
 0x457   :  { %8475 = vmatprep.subr.bf16.mxu1 %v8474_v26  ;;  %v4461_v26 = vld [vmem:[#allocation11 + $0xc88] sm:$0xff]  ;;  %v8338_v30 = vpack.c.bf16 %v4712_v24, %v4705_v21  ;;  %v4531_v21 = vld [vmem:[#allocation11 + $0xeb8] sm:$0xff]  ;;  %v4644_v8 = vld [vmem:[#allocation11 + $0x1240] sm:$0xff] }
 0x458   :  { %8321 = vmatpush1.bf16.msra.mxu0 %v8320_v56  ;;  %v4704_v56 = vld [vmem:[#allocation11 + $0x1420] sm:$0xff]  ;;  %v8492_v33 = vpack.c.bf16 %v4461_v26, %v4454_v62  ;;  %v4539_v24 = vld [vmem:[#allocation11 + $0xef8] sm:$0xff] }
 0x459   :  { %8323 = vmatprep.subr.bf16.mxu0 %v8322_v31  ;;  %v4711_v31 = vld [vmem:[#allocation11 + $0x1458] sm:$0xff] }
 0x45a   :  { %8477 = vmatpush1.bf16.msra.mxu1 %v8476_v34  ;;  %v4726_v34 = vld [vmem:[#allocation11 + $0x14d0] sm:$0xff] }
 0x45b   :  { %8479 = vmatprep.subr.bf16.mxu1 %v8478_v47  ;;  %v4468_v47 = vld [vmem:[#allocation11 + $0xcc0] sm:$0xff]  ;;  %v8342_v58 = vpack.c.bf16 %v4726_v34, %v4719_v38  ;;  %v4559_v38 = vld [vmem:[#allocation11 + $0xf98] sm:$0xff] }
 0x45c   :  { %8325 = vmatpush1.bf16.msra.mxu0 %v8324_v23  ;;  %v4490_v23 = vld [vmem:[#allocation11 + $0xd70] sm:$0xff]  ;;  %v8496_v60 = vpack.c.bf16 %v4475_v48, %v4468_v47  ;;  %v4567_v34 = vld [vmem:[#allocation11 + $0xfd8] sm:$0xff] }
 0x45d   :  { %8327 = vmatprep.subr.bf16.mxu0 %v8326_v57  ;;  %v8340_v57 = vpack.c.bf16 %v4711_v31, %v4704_v56  ;;  %v8498_v55 = vpack.c.bf16 %v4490_v23, %v4483_v49  ;;  %v8516_v56 = vpack.c.bf16 %v4545_v28, %v4538_v27  ;;  %v4566_v48 = vld [vmem:[#allocation11 + $0xfd0] sm:$0xff]  ;;  %v4581_v49 = vld [vmem:[#allocation11 + $0x1048] sm:$0xff]  ;;  %v4588_v23 = vld [vmem:[#allocation11 + $0x1080] sm:$0xff] }
 0x45e   :  { %8481 = vmatpush1.bf16.msra.mxu1 %v8480_v41  ;;  %v4725_v41 = vld [vmem:[#allocation11 + $0x14c8] sm:$0xff]  ;;  %v4672_v28 = vld [vmem:[#allocation11 + $0x1320] sm:$0xff] }
 0x45f   :  { %8483 = vmatprep.subr.bf16.mxu1 %v8482_v61  ;;  %v4740_v61 = vld [vmem:[#allocation11 + $0x1540] sm:$0xff]  ;;  %v4665_v27 = vld [vmem:[#allocation11 + $0x12e8] sm:$0xff] }
 0x460   :  { %8329 = vmatpush1.bf16.msra.mxu0 %v8328_v40  ;;  %v8344_v40 = vpack.c.bf16 %v4725_v41, %v4718_v39  ;;  %v4580_v39 = vld [vmem:[#allocation11 + $0x1040] sm:$0xff]  ;;  %v4587_v41 = vld [vmem:[#allocation11 + $0x1078] sm:$0xff] }
 0x461   :  { %8331 = vmatprep.subr.bf16.mxu0 %v8330_v1  ;;  %v8346_v1 = vpack.c.bf16 %v4740_v61, %v4733_v50  ;;  %v4602_v50 = vld [vmem:[#allocation11 + $0x10f0] sm:$0xff]  ;;  %v8528_v61 = vpack.c.bf16 %v4587_v41, %v4580_v39  ;;  %v4707_v39 = vld [vmem:[#allocation11 + $0x1438] sm:$0xff] }
 0x462   :  { %8485 = vmatpush1.bf16.msra.mxu1 %v8484_v25  ;;  %v4496_v25 = vld [vmem:[#allocation11 + $0xda0] sm:$0xff]  ;;  %v4714_v41 = vld [vmem:[#allocation11 + $0x1470] sm:$0xff] }
 0x463   :  { %8487 = vmatprep.subr.bf16.mxu1 %v8486_v4  ;;  %v4518_v4 = vld [vmem:[#allocation11 + $0xe50] sm:$0xff]  ;;  %v8504_v5 = vpack.c.bf16 %v4503_v2, %v4496_v25  ;;  %v4623_v25 = vld [vmem:[#allocation11 + $0x1198] sm:$0xff] }
 0x464   :  { %8333 = vmatpush1.bf16.msra.mxu0 %v8332_v14  ;;  %v8506_v6 = vpack.c.bf16 %v4518_v4, %v4511_v3  ;;  %v4525_v14 = vld [vmem:[#allocation11 + $0xe88] sm:$0xff]  ;;  %v4630_v2 = vld [vmem:[#allocation11 + $0x11d0] sm:$0xff] }
 0x465   :  { %8335 = vmatprep.subr.bf16.mxu0 %v8334_v7  ;;  %v4532_v7 = vld [vmem:[#allocation11 + $0xec0] sm:$0xff]  ;;  %v8538_v4 = vpack.c.bf16 %v4630_v2, %v4623_v25 }
 0x466   :  { %8489 = vmatpush1.bf16.msra.mxu1 %v8488_v43  ;;  %v8510_v17 = vpack.c.bf16 %v4532_v7, %v4525_v14  ;;  %v4524_v43 = vld [vmem:[#allocation11 + $0xe80] sm:$0xff]  ;;  %v8542_v7 = vpack.c.bf16 %v4644_v8, %v4637_v9  ;;  %v4739_v8 = vld [vmem:[#allocation11 + $0x1538] sm:$0xff] }
 0x467   :  { %v4049_v44 = vpop.f32.mrb[12].mxu0  ;;  %8491 = vmatprep.subr.bf16.mxu1 %v8490_v52  ;;  %v4546_v52 = vld [vmem:[#allocation11 + $0xf30] sm:$0xff]  ;;  %v8512_v62 = vpack.c.bf16 %v4531_v21, %v4524_v43  ;;  %v4651_v43 = vld [vmem:[#allocation11 + $0x1278] sm:$0xff]  ;;  %v4732_v9 = vld [vmem:[#allocation11 + $0x1500] sm:$0xff] }
 0x468   :  { %v9607_v51 = vadd.f32 %v4049_v44, %v9604_v29  ;;  %v6534_v18 = vpop.f32.mrb[13].mxu0  ;;  %8337 = vmatpush1.bf16.msra.mxu0 %v8336_v12  ;;  %v4504_v29 = vld [vmem:[#allocation11 + $0xde0] sm:$0xff]  ;;  %v8514_v26 = vpack.c.bf16 %v4546_v52, %v4539_v24  ;;  %v4553_v12 = vld [vmem:[#allocation11 + $0xf68] sm:$0xff]  ;;  %v4574_v44 = vld [vmem:[#allocation11 + $0x1010] sm:$0xff] }
 0x469   :  { %8339 = vmatprep.subr.bf16.mxu0 %v8338_v30  ;;  %v8502_v45 = vpack.c.bf16 %v4504_v29, %v4497_v0  ;;  %v4560_v30 = vld [vmem:[#allocation11 + $0xfa0] sm:$0xff]  ;;  %v8522_v47 = vpack.c.bf16 %v4574_v44, %v4567_v34  ;;  %v4573_v18 = vld [vmem:[#allocation11 + $0x1008] sm:$0xff]  ;;  %v4658_v21 = vld [vmem:[#allocation11 + $0x12b0] sm:$0xff] }
 0x46a   :  { %8493 = vmatpush1.bf16.msra.mxu1 %v8492_v33  ;;  %v8518_v31 = vpack.c.bf16 %v4560_v30, %v4553_v12  ;;  %v4552_v33 = vld [vmem:[#allocation11 + $0xf60] sm:$0xff]  ;;  %v4609_v0 = vld [vmem:[#allocation11 + $0x1128] sm:$0xff]  ;;  %v8546_v52 = vpack.c.bf16 %v4658_v21, %v4651_v43  ;;  %v8550_v30 = vpack.c.bf16 %v4672_v28, %v4665_v27  ;;  %v4747_v43 = vld [vmem:[#allocation11 + $0x1578] sm:$0xff]  ;;  %v8348_v27 = vpack.c.bf16 %v4739_v8, %v4732_v9 }
 0x46b   :  { %8495 = vmatprep.subr.bf16.mxu1 %v8494_v46  ;;  %v8520_v46 = vpack.c.bf16 %v4559_v38, %v4552_v33  ;;  %v4616_v29 = vld [vmem:[#allocation11 + $0x1160] sm:$0xff]  ;;  %v4679_v33 = vld [vmem:[#allocation11 + $0x1358] sm:$0xff]  ;;  %v4686_v38 = vld [vmem:[#allocation11 + $0x1390] sm:$0xff] }
 0x46c   :  { %8341 = vmatpush1.bf16.msra.mxu0 %v8340_v57  ;;  %v8524_v57 = vpack.c.bf16 %v4573_v18, %v4566_v48  ;;  %v8554_v44 = vpack.c.bf16 %v4686_v38, %v4679_v33  ;;  %v4693_v48 = vld [vmem:[#allocation11 + $0x13c8] sm:$0xff]  ;;  %v4700_v18 = vld [vmem:[#allocation11 + $0x1400] sm:$0xff] }
 0x46d   :  { %8343 = vmatprep.subr.bf16.mxu0 %v8342_v58  ;;  %v8526_v58 = vpack.c.bf16 %v4588_v23, %v4581_v49  ;;  %v8558_v23 = vpack.c.bf16 %v4700_v18, %v4693_v48  ;;  %v4748_v38 = vld [vmem:[#allocation11 + $0x1580] sm:$0xff]  ;;  %v4770_v48 = vld [vmem:[#allocation11 + $0x1630] sm:$0xff] }
 0x46e   :  { %8497 = vmatpush1.bf16.msra.mxu1 %v8496_v60  ;;  %v4595_v60 = vld [vmem:[#allocation11 + $0x10b8] sm:$0xff]  ;;  %v4788_v8 = vld [vmem:[#allocation11 + $0x16c0] sm:$0xff] }
 0x46f   :  { %8499 = vmatprep.subr.bf16.mxu1 %v8498_v55  ;;  %v8530_v55 = vpack.c.bf16 %v4602_v50, %v4595_v60  ;;  %v8562_v50 = vpack.c.bf16 %v4714_v41, %v4707_v39  ;;  %v4762_v41 = vld [vmem:[#allocation11 + $0x15f0] sm:$0xff] }
 0x470   :  { %8345 = vmatpush1.bf16.msra.mxu0 %v8344_v40  ;;  %v8532_v40 = vpack.c.bf16 %v4601_v11, %v4594_v13  ;;  %v4721_v13 = vld [vmem:[#allocation11 + $0x14a8] sm:$0xff]  ;;  %v4728_v11 = vld [vmem:[#allocation11 + $0x14e0] sm:$0xff] }
 0x471   :  { %8347 = vmatprep.subr.bf16.mxu0 %v8346_v1  ;;  %v8534_v1 = vpack.c.bf16 %v4616_v29, %v4609_v0  ;;  %v8566_v29 = vpack.c.bf16 %v4728_v11, %v4721_v13  ;;  %v4784_v13 = vld [vmem:[#allocation11 + $0x16a0] sm:$0xff] }
 0x472   :  { %8501 = vmatpush1.bf16.msra.mxu1 %v8500_v54  ;;  %v4608_v54 = vld [vmem:[#allocation11 + $0x1120] sm:$0xff] }
 0x473   :  { %8503 = vmatprep.subr.bf16.mxu1 %v8502_v45  ;;  %v4615_v45 = vld [vmem:[#allocation11 + $0x1158] sm:$0xff] }
 0x474   :  { %v8536_v3 = vpack.c.bf16 %v4615_v45, %v4608_v54  ;;  %v4735_v54 = vld [vmem:[#allocation11 + $0x1518] sm:$0xff]  ;;  %v4742_v45 = vld [vmem:[#allocation11 + $0x1550] sm:$0xff] }
 0x475   :  { %v8570_v2 = vpack.c.bf16 %v4742_v45, %v4735_v54  ;;  %v4776_v45 = vld [vmem:[#allocation11 + $0x1660] sm:$0xff] }
 0x476   :  { %8505 = vmatpush1.bf16.msra.mxu1 %v8504_v5  ;;  %v4622_v5 = vld [vmem:[#allocation11 + $0x1190] sm:$0xff] }
 0x477   :  { %8507 = vmatprep.subr.bf16.mxu1 %v8506_v6  ;;  %v4629_v6 = vld [vmem:[#allocation11 + $0x11c8] sm:$0xff] }
 0x478   :  { %v8540_v14 = vpack.c.bf16 %v4629_v6, %v4622_v5 }
 0x479   :  { %5301 = vmatmul.mubr.f32.vlgmr.msra.gmra.mrb[16].mxu1 %v9598_v19 }
 0x47a   :  { %8509 = vmatpush1.bf16.msra.mxu1 %v8508_v63  ;;  %v4636_v63 = vld [vmem:[#allocation11 + $0x1200] sm:$0xff] }
 0x47b   :  { %8511 = vmatprep.subr.bf16.mxu1 %v8510_v17  ;;  %v4643_v17 = vld [vmem:[#allocation11 + $0x1238] sm:$0xff] }
 0x47c   :  { %v8544_v24 = vpack.c.bf16 %v4643_v17, %v4636_v63  ;;  %v4734_v63 = vld [vmem:[#allocation11 + $0x1510] sm:$0xff]  ;;  %v4741_v17 = vld [vmem:[#allocation11 + $0x1548] sm:$0xff] }
 0x47d   :  { %v8572_v28 = vpack.c.bf16 %v4741_v17, %v4734_v63  ;;  %v4790_v17 = vld [vmem:[#allocation11 + $0x16d0] sm:$0xff] }
 0x47e   :  { %8513 = vmatpush1.bf16.msra.mxu1 %v8512_v62  ;;  %v4650_v62 = vld [vmem:[#allocation11 + $0x1270] sm:$0xff] }
 0x47f   :  { %8515 = vmatprep.subr.bf16.mxu1 %v8514_v26  ;;  %v4657_v26 = vld [vmem:[#allocation11 + $0x12a8] sm:$0xff] }
 0x480   :  { %v8548_v12 = vpack.c.bf16 %v4657_v26, %v4650_v62  ;;  %v4756_v62 = vld [vmem:[#allocation11 + $0x15c0] sm:$0xff] }
 0x482   :  { %8517 = vmatpush1.bf16.msra.mxu1 %v8516_v56  ;;  %v4664_v56 = vld [vmem:[#allocation11 + $0x12e0] sm:$0xff] }
 0x483   :  { %8519 = vmatprep.subr.bf16.mxu1 %v8518_v31  ;;  %v4671_v31 = vld [vmem:[#allocation11 + $0x1318] sm:$0xff] }
 0x484   :  { %v8552_v34 = vpack.c.bf16 %v4671_v31, %v4664_v56 }
 0x486   :  { %8521 = vmatpush1.bf16.msra.mxu1 %v8520_v46  ;;  %v4678_v46 = vld [vmem:[#allocation11 + $0x1350] sm:$0xff] }
 0x487   :  { %8523 = vmatprep.subr.bf16.mxu1 %v8522_v47  ;;  %v4685_v47 = vld [vmem:[#allocation11 + $0x1388] sm:$0xff] }
 0x488   :  { %v8556_v49 = vpack.c.bf16 %v4685_v47, %v4678_v46  ;;  %v4768_v46 = vld [vmem:[#allocation11 + $0x1620] sm:$0xff]  ;;  %v4763_v47 = vld [vmem:[#allocation11 + $0x15f8] sm:$0xff] }
 0x489   :  { %v8578_v39 = vpack.c.bf16 %v4770_v48, %v4763_v47  ;;  %v4819_v47 = vld [vmem:[#allocation11 + $0x17b8] sm:$0xff]  ;;  %v4826_v48 = vld [vmem:[#allocation11 + $0x17f0] sm:$0xff] }
 0x48a   :  { %8525 = vmatpush1.bf16.msra.mxu1 %v8524_v57  ;;  %v4692_v57 = vld [vmem:[#allocation11 + $0x13c0] sm:$0xff] }
 0x48b   :  { %8527 = vmatprep.subr.bf16.mxu1 %v8526_v58  ;;  %v4699_v58 = vld [vmem:[#allocation11 + $0x13f8] sm:$0xff] }
 0x48c   :  { %v8560_v60 = vpack.c.bf16 %v4699_v58, %v4692_v57  ;;  %v4767_v57 = vld [vmem:[#allocation11 + $0x1618] sm:$0xff] }
 0x48e   :  { %8529 = vmatpush1.bf16.msra.mxu1 %v8528_v61  ;;  %v4706_v61 = vld [vmem:[#allocation11 + $0x1430] sm:$0xff] }
 0x48f   :  { %8531 = vmatprep.subr.bf16.mxu1 %v8530_v55  ;;  %v4713_v55 = vld [vmem:[#allocation11 + $0x1468] sm:$0xff] }
 0x490   :  { %v8564_v0 = vpack.c.bf16 %v4713_v55, %v4706_v61  ;;  %v4782_v61 = vld [vmem:[#allocation11 + $0x1690] sm:$0xff]  ;;  %v4777_v55 = vld [vmem:[#allocation11 + $0x1668] sm:$0xff] }
 0x491   :  { %v8582_v54 = vpack.c.bf16 %v4784_v13, %v4777_v55  ;;  %v4833_v55 = vld [vmem:[#allocation11 + $0x1828] sm:$0xff]  ;;  %v4840_v13 = vld [vmem:[#allocation11 + $0x1860] sm:$0xff] }
 0x492   :  { %8533 = vmatpush1.bf16.msra.mxu1 %v8532_v40  ;;  %v4720_v40 = vld [vmem:[#allocation11 + $0x14a0] sm:$0xff] }
 0x493   :  { %8535 = vmatprep.subr.bf16.mxu1 %v8534_v1  ;;  %v4727_v1 = vld [vmem:[#allocation11 + $0x14d8] sm:$0xff] }
 0x494   :  { %v8568_v25 = vpack.c.bf16 %v4727_v1, %v4720_v40  ;;  %v4781_v40 = vld [vmem:[#allocation11 + $0x1688] sm:$0xff] }
 0x496   :  { %8537 = vmatpush1.bf16.msra.mxu1 %v8536_v3  ;;  %v9047_v3 = vld [vmem:[#allocation10] sm:$0xff] }
 0x497   :  { %8539 = vmatprep.subr.bf16.mxu1 %v8538_v4  ;;  %v2905_v4 = vrot.slane %v9047_v3, %v9516_v35  ;;  %v2909_v5 = vrot.slane %v9047_v3, %v9519_v36  ;;  %v4796_v3 = vld [vmem:[#allocation11 + $0x1700] sm:$0xff] }
 0x49a   :  { %8541 = vmatpush1.bf16.msra.mxu1 %v8540_v14 }
 0x49b   :  { %8543 = vmatprep.subr.bf16.mxu1 %v8542_v7 }
 0x49e   :  { %8545 = vmatpush1.bf16.msra.mxu1 %v8544_v24  ;;  %v4754_v24 = vld [vmem:[#allocation11 + $0x15b0] sm:$0xff] }
 0x49f   :  { %8547 = vmatprep.subr.bf16.mxu1 %v8546_v52  ;;  %v4749_v52 = vld [vmem:[#allocation11 + $0x1588] sm:$0xff]  ;;  %v8350_v31 = vpack.c.bf16 %v4754_v24, %v4747_v43  ;;  %v4810_v24 = vld [vmem:[#allocation11 + $0x1770] sm:$0xff] }
 0x4a0   :  { %v8574_v33 = vpack.c.bf16 %v4756_v62, %v4749_v52  ;;  %v4797_v43 = vld [vmem:[#allocation11 + $0x1708] sm:$0xff]  ;;  %v4812_v62 = vld [vmem:[#allocation11 + $0x1780] sm:$0xff] }
 0x4a1   :  { %v4805_v52 = vld [vmem:[#allocation11 + $0x1748] sm:$0xff] }
 0x4a2   :  { %8549 = vmatpush1.bf16.msra.mxu1 %v8548_v12  ;;  %v4746_v12 = vld [vmem:[#allocation11 + $0x1570] sm:$0xff] }
 0x4a3   :  { %8551 = vmatprep.subr.bf16.mxu1 %v8550_v30  ;;  %v4753_v30 = vld [vmem:[#allocation11 + $0x15a8] sm:$0xff] }
 0x4a4   :  { %v8352_v18 = vpack.c.bf16 %v4753_v30, %v4746_v12  ;;  %v4802_v12 = vld [vmem:[#allocation11 + $0x1730] sm:$0xff]  ;;  %v4809_v30 = vld [vmem:[#allocation11 + $0x1768] sm:$0xff] }
 0x4a6   :  { %8553 = vmatpush1.bf16.msra.mxu1 %v8552_v34  ;;  %v4755_v34 = vld [vmem:[#allocation11 + $0x15b8] sm:$0xff] }
 0x4a7   :  { %8555 = vmatprep.subr.bf16.mxu1 %v8554_v44  ;;  %v4761_v44 = vld [vmem:[#allocation11 + $0x15e8] sm:$0xff] }
 0x4a8   :  { %v8354_v58 = vpack.c.bf16 %v4768_v46, %v4761_v44  ;;  %v4817_v44 = vld [vmem:[#allocation11 + $0x17a8] sm:$0xff]  ;;  %v4824_v46 = vld [vmem:[#allocation11 + $0x17e0] sm:$0xff] }
 0x4aa   :  { %8557 = vmatpush1.bf16.msra.mxu1 %v8556_v49  ;;  %v8576_v49 = vpack.c.bf16 %v4755_v34, %v4748_v38  ;;  %v4804_v38 = vld [vmem:[#allocation11 + $0x1740] sm:$0xff]  ;;  %v4811_v34 = vld [vmem:[#allocation11 + $0x1778] sm:$0xff] }
 0x4ab   :  { %8559 = vmatprep.subr.bf16.mxu1 %v8558_v23  ;;  %v4760_v23 = vld [vmem:[#allocation11 + $0x15e0] sm:$0xff] }
 0x4ac   :  { %v8356_v11 = vpack.c.bf16 %v4767_v57, %v4760_v23  ;;  %v4816_v23 = vld [vmem:[#allocation11 + $0x17a0] sm:$0xff]  ;;  %v4823_v57 = vld [vmem:[#allocation11 + $0x17d8] sm:$0xff] }
 0x4ae   :  { %8561 = vmatpush1.bf16.msra.mxu1 %v8560_v60  ;;  %v4769_v60 = vld [vmem:[#allocation11 + $0x1628] sm:$0xff] }
 0x4af   :  { %8563 = vmatprep.subr.bf16.mxu1 %v8562_v50  ;;  %v4775_v50 = vld [vmem:[#allocation11 + $0x1658] sm:$0xff] }
 0x4b0   :  { %v8358_v1 = vpack.c.bf16 %v4782_v61, %v4775_v50  ;;  %v4831_v50 = vld [vmem:[#allocation11 + $0x1818] sm:$0xff]  ;;  %v4838_v61 = vld [vmem:[#allocation11 + $0x1850] sm:$0xff] }
 0x4b2   :  { %8565 = vmatpush1.bf16.msra.mxu1 %v8564_v0  ;;  %v8580_v0 = vpack.c.bf16 %v4769_v60, %v4762_v41  ;;  %v4818_v41 = vld [vmem:[#allocation11 + $0x17b0] sm:$0xff]  ;;  %v4825_v60 = vld [vmem:[#allocation11 + $0x17e8] sm:$0xff] }
 0x4b3   :  { %8567 = vmatprep.subr.bf16.mxu1 %v8566_v29  ;;  %v4774_v29 = vld [vmem:[#allocation11 + $0x1650] sm:$0xff] }
 0x4b6   :  { %8569 = vmatpush1.bf16.msra.mxu1 %v8568_v25  ;;  %v4783_v25 = vld [vmem:[#allocation11 + $0x1698] sm:$0xff] }
 0x4b7   :  { %8571 = vmatprep.subr.bf16.mxu1 %v8570_v2  ;;  %v4789_v2 = vld [vmem:[#allocation11 + $0x16c8] sm:$0xff]  ;;  %v8584_v9 = vpack.c.bf16 %v4783_v25, %v4776_v45  ;;  %v4832_v45 = vld [vmem:[#allocation11 + $0x1820] sm:$0xff]  ;;  %v4839_v25 = vld [vmem:[#allocation11 + $0x1858] sm:$0xff] }
 0x4cc   :  { %v3768_v6 = vpop.f32.mrb[14].mxu1 }
 0x4cd   :  { %v8958_v14 = vadd.f32 %v3768_v6, %v2905_v4  ;;  %v3770_v7 = vpop.f32.mrb[15].mxu1  ;;  %v4791_v4 = vld [vmem:[#allocation11 + $0x16d8] sm:$0xff]  ;;  %v8360_v6 = vpack.c.bf16 %v4781_v40, %v4774_v29  ;;  %v4830_v29 = vld [vmem:[#allocation11 + $0x1810] sm:$0xff]  ;;  %v4837_v40 = vld [vmem:[#allocation11 + $0x1848] sm:$0xff] }
 0x4ce   :  { %v8959_v21 = vadd.f32 %v3770_v7, %v2909_v5  ;;  %v4798_v5 = vld [vmem:[#allocation11 + $0x1710] sm:$0xff]  ;;  %v8362_v7 = vpack.c.bf16 %v4796_v3, %v4789_v2  ;;  %v4065_v2 = vld [vmem:[#allocation11 + $0x28] sm:$0xff]  ;;  %v4072_v3 = vld [vmem:[#allocation11 + $0x60] sm:$0xff] }
 0x4cf   :  { %v9614_v56 = vmax.f32 %v8958_v14, 0.0  ;;  %v4795_v14 = vld [vmem:[#allocation11 + $0x16f8] sm:$0xff]  ;;  %v8586_v63 = vpack.c.bf16 %v4798_v5, %v4791_v4  ;;  %v4178_v4 = vld [vmem:[#allocation11 + $0x3b0] sm:$0xff]  ;;  %v4185_v5 = vld [vmem:[#allocation11 + $0x3e8] sm:$0xff] }
 0x4d0   :  { %v9612_v26 = vmax.f32 %v8959_v21, 0.0  ;;  %v4803_v21 = vld [vmem:[#allocation11 + $0x1738] sm:$0xff] }
 0x4d2   :  { %5087 = vmatprep.mubr.f32.mxu0 %v9612_v26  ;;  %5371 = vmatprep.mubr.f32.mxu1 %v9612_v26 }
 0x4d3   :  { %5088 = vmatmul.mubr.f32.vlgmr.msra.gmra.mrb[14].mxu0 %v9614_v56  ;;  %5372 = vmatmul.mubr.f32.vlgmr.msra.gmra.mrb[16].mxu1 %v9614_v56 }
 0x4d4   :  { %8349 = vmatpush1.bf16.msra.mxu0 %v8348_v27  ;;  %8573 = vmatpush1.bf16.msra.mxu1 %v8572_v28  ;;  %v8364_v27 = vpack.c.bf16 %v4795_v14, %v4788_v8  ;;  %v8588_v28 = vpack.c.bf16 %v4797_v43, %v4790_v17  ;;  %v8602_v8 = vpack.c.bf16 %v4072_v3, %v4065_v2  ;;  %v4066_v17 = vld [vmem:[#allocation11 + $0x30] sm:$0xff]  ;;  %v4073_v43 = vld [vmem:[#allocation11 + $0x68] sm:$0xff]  ;;  %v4128_v2 = vld [vmem:[#allocation11 + $0x220] sm:$0xff] }
 0x4d5   :  { %8351 = vmatprep.subr.bf16.mxu0 %v8350_v31  ;;  %8575 = vmatprep.subr.bf16.mxu1 %v8574_v33  ;;  %v8366_v31 = vpack.c.bf16 %v4810_v24, %v4803_v21  ;;  %v8590_v33 = vpack.c.bf16 %v4812_v62, %v4805_v52  ;;  %v8826_v14 = vpack.c.bf16 %v4185_v5, %v4178_v4  ;;  %v4079_v21 = vld [vmem:[#allocation11 + $0x98] sm:$0xff]  ;;  %v4086_v24 = vld [vmem:[#allocation11 + $0xd0] sm:$0xff]  ;;  %v4192_v52 = vld [vmem:[#allocation11 + $0x420] sm:$0xff] }
 0x4d6   :  { %5158 = vmatprep.mubr.f32.mxu0 %v9244_v53  ;;  %5442 = vmatprep.mubr.f32.mxu1 %v9244_v53  ;;  %v4199_v62 = vld [vmem:[#allocation11 + $0x458] sm:$0xff]  ;;  %v4234_v3 = vld [vmem:[#allocation11 + $0x570] sm:$0xff]  ;;  %v4241_v4 = vld [vmem:[#allocation11 + $0x5a8] sm:$0xff] }
 0x4d8   :  { %8353 = vmatpush1.bf16.msra.mxu0 %v8352_v18  ;;  %8577 = vmatpush1.bf16.msra.mxu1 %v8576_v49  ;;  %v8368_v18 = vpack.c.bf16 %v4809_v30, %v4802_v12  ;;  %v8592_v49 = vpack.c.bf16 %v4811_v34, %v4804_v38  ;;  %v8828_v12 = vpack.c.bf16 %v4073_v43, %v4066_v17  ;;  %v4078_v30 = vld [vmem:[#allocation11 + $0x90] sm:$0xff]  ;;  %v4129_v17 = vld [vmem:[#allocation11 + $0x228] sm:$0xff]  ;;  %v4135_v43 = vld [vmem:[#allocation11 + $0x258] sm:$0xff] }
 0x4d9   :  { %8355 = vmatprep.subr.bf16.mxu0 %v8354_v58  ;;  %8579 = vmatprep.subr.bf16.mxu1 %v8578_v39  ;;  %v8370_v58 = vpack.c.bf16 %v4824_v46, %v4817_v44  ;;  %v8594_v39 = vpack.c.bf16 %v4826_v48, %v4819_v47  ;;  %v8606_v38 = vpack.c.bf16 %v4086_v24, %v4079_v21  ;;  %v4087_v44 = vld [vmem:[#allocation11 + $0xd8] sm:$0xff]  ;;  %v4093_v46 = vld [vmem:[#allocation11 + $0x108] sm:$0xff]  ;;  %v4100_v47 = vld [vmem:[#allocation11 + $0x140] sm:$0xff] }
 0x4da   :  { %v8830_v34 = vpack.c.bf16 %v4199_v62, %v4192_v52  ;;  %v4206_v48 = vld [vmem:[#allocation11 + $0x490] sm:$0xff]  ;;  %v4248_v24 = vld [vmem:[#allocation11 + $0x5e0] sm:$0xff]  ;;  %v4255_v52 = vld [vmem:[#allocation11 + $0x618] sm:$0xff] }
 0x4db   :  { %v4142_v21 = vld [vmem:[#allocation11 + $0x290] sm:$0xff] }
 0x4dc   :  { %8357 = vmatpush1.bf16.msra.mxu0 %v8356_v11  ;;  %8581 = vmatpush1.bf16.msra.mxu1 %v8580_v0  ;;  %v8372_v11 = vpack.c.bf16 %v4823_v57, %v4816_v23  ;;  %v8596_v0 = vpack.c.bf16 %v4825_v60, %v4818_v41  ;;  %v8610_v23 = vpack.c.bf16 %v4100_v47, %v4093_v46  ;;  %v4092_v57 = vld [vmem:[#allocation11 + $0x100] sm:$0xff]  ;;  %v4101_v60 = vld [vmem:[#allocation11 + $0x148] sm:$0xff]  ;;  %v4262_v47 = vld [vmem:[#allocation11 + $0x650] sm:$0xff] }
 0x4dd   :  { %8359 = vmatprep.subr.bf16.mxu0 %v8358_v1  ;;  %8583 = vmatprep.subr.bf16.mxu1 %v8582_v54  ;;  %v8374_v1 = vpack.c.bf16 %v4838_v61, %v4831_v50  ;;  %v8598_v54 = vpack.c.bf16 %v4840_v13, %v4833_v55  ;;  %v4107_v50 = vld [vmem:[#allocation11 + $0x178] sm:$0xff]  ;;  %v4114_v61 = vld [vmem:[#allocation11 + $0x1b0] sm:$0xff]  ;;  %v4220_v55 = vld [vmem:[#allocation11 + $0x500] sm:$0xff] }
 0x4de   :  { %v4227_v13 = vld [vmem:[#allocation11 + $0x538] sm:$0xff]  ;;  %v4156_v46 = vld [vmem:[#allocation11 + $0x300] sm:$0xff] }
 0x4e0   :  { %8361 = vmatpush1.bf16.msra.mxu0 %v8360_v6  ;;  %8585 = vmatpush1.bf16.msra.mxu1 %v8584_v9  ;;  %v8376_v6 = vpack.c.bf16 %v4837_v40, %v4830_v29  ;;  %v8600_v9 = vpack.c.bf16 %v4839_v25, %v4832_v45  ;;  %v8614_v29 = vpack.c.bf16 %v4114_v61, %v4107_v50  ;;  %v4113_v40 = vld [vmem:[#allocation11 + $0x1a8] sm:$0xff]  ;;  %v4115_v45 = vld [vmem:[#allocation11 + $0x1b8] sm:$0xff]  ;;  %v4170_v50 = vld [vmem:[#allocation11 + $0x370] sm:$0xff] }
 0x4e1   :  { %8363 = vmatprep.subr.bf16.mxu0 %v8362_v7  ;;  %8587 = vmatprep.subr.bf16.mxu1 %v8586_v63  ;;  %v4064_v7 = vld [vmem:[#allocation11 + $0x20] sm:$0xff]  ;;  %v4071_v63 = vld [vmem:[#allocation11 + $0x58] sm:$0xff]  ;;  %v4121_v25 = vld [vmem:[#allocation11 + $0x1e8] sm:$0xff] }
 0x4e2   :  { %v4276_v61 = vld [vmem:[#allocation11 + $0x6c0] sm:$0xff] }
 0x4e4   :  { %8365 = vmatpush1.bf16.msra.mxu0 %v8364_v27  ;;  %8589 = vmatpush1.bf16.msra.mxu1 %v8588_v28  ;;  %v8604_v27 = vpack.c.bf16 %v4071_v63, %v4064_v7  ;;  %v9623_v28 = vmax.f32 %v9607_v51, 0.0  ;;  %v4122_v7 = vld [vmem:[#allocation11 + $0x1f0] sm:$0xff]  ;;  %v8842_v63 = vpack.c.bf16 %v4241_v4, %v4234_v3  ;;  %v4409_v3 = vld [vmem:[#allocation11 + $0xae8] sm:$0xff] }
 0x4e5   :  { %8367 = vmatprep.subr.bf16.mxu0 %v8366_v31  ;;  %8591 = vmatprep.subr.bf16.mxu1 %v8590_v33  ;;  %v4085_v31 = vld [vmem:[#allocation11 + $0xc8] sm:$0xff]  ;;  %v4080_v33 = vld [vmem:[#allocation11 + $0xa0] sm:$0xff] }
 0x4e6   :  { %v8608_v51 = vpack.c.bf16 %v4085_v31, %v4078_v30  ;;  %v4134_v30 = vld [vmem:[#allocation11 + $0x250] sm:$0xff]  ;;  %v4141_v31 = vld [vmem:[#allocation11 + $0x288] sm:$0xff] }
 0x4e8   :  { %8369 = vmatpush1.bf16.msra.mxu0 %v8368_v18  ;;  %8593 = vmatpush1.bf16.msra.mxu1 %v8592_v49  ;;  %v4213_v18 = vld [vmem:[#allocation11 + $0x4c8] sm:$0xff]  ;;  %v8832_v49 = vpack.c.bf16 %v4087_v44, %v4080_v33  ;;  %v4136_v33 = vld [vmem:[#allocation11 + $0x260] sm:$0xff] }
 0x4e9   :  { %8371 = vmatprep.subr.bf16.mxu0 %v8370_v58  ;;  %8595 = vmatprep.subr.bf16.mxu1 %v8594_v39  ;;  %v4099_v58 = vld [vmem:[#allocation11 + $0x138] sm:$0xff]  ;;  %v4094_v39 = vld [vmem:[#allocation11 + $0x110] sm:$0xff]  ;;  %v8834_v41 = vpack.c.bf16 %v4213_v18, %v4206_v48  ;;  %v4149_v44 = vld [vmem:[#allocation11 + $0x2c8] sm:$0xff]  ;;  %v8624_v18 = vpack.c.bf16 %v4141_v31, %v4134_v30 }
 0x4ea   :  { %v4269_v48 = vld [vmem:[#allocation11 + $0x688] sm:$0xff]  ;;  %v4304_v30 = vld [vmem:[#allocation11 + $0x7a0] sm:$0xff] }
 0x4ec   :  { %8373 = vmatpush1.bf16.msra.mxu0 %v8372_v11  ;;  %8597 = vmatpush1.bf16.msra.mxu1 %v8596_v0  ;;  %v8612_v11 = vpack.c.bf16 %v4099_v58, %v4092_v57  ;;  %v8836_v0 = vpack.c.bf16 %v4101_v60, %v4094_v39  ;;  %v4155_v57 = vld [vmem:[#allocation11 + $0x2f8] sm:$0xff]  ;;  %v4150_v58 = vld [vmem:[#allocation11 + $0x2d0] sm:$0xff]  ;;  %v8850_v39 = vpack.c.bf16 %v4269_v48, %v4262_v47  ;;  %v4437_v47 = vld [vmem:[#allocation11 + $0xbc8] sm:$0xff] }
 0x4ed   :  { %8375 = vmatprep.subr.bf16.mxu0 %v8374_v1  ;;  %8599 = vmatprep.subr.bf16.mxu1 %v8598_v54  ;;  %v4108_v1 = vld [vmem:[#allocation11 + $0x180] sm:$0xff]  ;;  %v8838_v54 = vpack.c.bf16 %v4227_v13, %v4220_v55  ;;  %v4163_v60 = vld [vmem:[#allocation11 + $0x338] sm:$0xff] }
 0x4ee   :  { %v4283_v55 = vld [vmem:[#allocation11 + $0x6f8] sm:$0xff] }
 0x4f0   :  { %8377 = vmatpush1.bf16.msra.mxu0 %v8376_v6  ;;  %8601 = vmatpush1.bf16.msra.mxu1 %v8600_v9  ;;  %v8840_v6 = vpack.c.bf16 %v4115_v45, %v4108_v1  ;;  %v8618_v9 = vpack.c.bf16 %v4128_v2, %v4121_v25  ;;  %v8854_v1 = vpack.c.bf16 %v4283_v55, %v4276_v61  ;;  %v4177_v45 = vld [vmem:[#allocation11 + $0x3a8] sm:$0xff]  ;;  %v4184_v25 = vld [vmem:[#allocation11 + $0x3e0] sm:$0xff]  ;;  %v4402_v2 = vld [vmem:[#allocation11 + $0xab0] sm:$0xff] }
 0x4f1   :  { %8603 = vmatprep.subr.bf16.mxu0 %v8602_v8  ;;  %8827 = vmatprep.subr.bf16.mxu1 %v8826_v14  ;;  %v4120_v8 = vld [vmem:[#allocation11 + $0x1e0] sm:$0xff]  ;;  %v4127_v14 = vld [vmem:[#allocation11 + $0x218] sm:$0xff] }
 0x4f2   :  { %v8620_v62 = vpack.c.bf16 %v4127_v14, %v4120_v8  ;;  %v4183_v8 = vld [vmem:[#allocation11 + $0x3d8] sm:$0xff]  ;;  %v8858_v14 = vpack.c.bf16 %v4409_v3, %v4402_v2  ;;  %v4465_v2 = vld [vmem:[#allocation11 + $0xca8] sm:$0xff] }
 0x4f3   :  { %5159 = vmatmul.mubr.f32.vlgmr.msra.gmra.mrb[14].mxu0 %v9623_v28  ;;  %5443 = vmatmul.mubr.f32.vlgmr.msra.gmra.mrb[16].mxu1 %v9623_v28  ;;  %v4451_v61 = vld [vmem:[#allocation11 + $0xc38] sm:$0xff] }
 0x4f4   :  { %8605 = vmatpush1.bf16.msra.mxu0 %v8604_v27  ;;  %5513 = vmatprep.mubr.f32.mxu0 %v9577_v16  ;;  %v8844_v27 = vpack.c.bf16 %v4129_v17, %v4122_v7  ;;  %v4290_v7 = vld [vmem:[#allocation11 + $0x730] sm:$0xff]  ;;  %v4191_v17 = vld [vmem:[#allocation11 + $0x418] sm:$0xff] }
 0x4f5   :  { %8829 = vmatpush3.bf16.msra.mxu1 %v8828_v12  ;;  %5797 = vmatprep.mubr.f32.mxu1 %v9577_v16  ;;  %v4106_v16 = vld [vmem:[#allocation11 + $0x170] sm:$0xff]  ;;  %v8622_v12 = vpack.c.bf16 %v4142_v21, %v4135_v43  ;;  %v4416_v21 = vld [vmem:[#allocation11 + $0xb20] sm:$0xff] }
 0x4f6   :  { %8607 = vmatprep.subr.bf16.mxu0 %v8606_v38  ;;  %8831 = vmatprep.subr.bf16.mxu1 %v8830_v34  ;;  %v8616_v5 = vpack.c.bf16 %v4113_v40, %v4106_v16  ;;  %v8846_v38 = vpack.c.bf16 %v4255_v52, %v4248_v24  ;;  %v4143_v34 = vld [vmem:[#allocation11 + $0x298] sm:$0xff]  ;;  %v4169_v16 = vld [vmem:[#allocation11 + $0x368] sm:$0xff]  ;;  %v4164_v40 = vld [vmem:[#allocation11 + $0x340] sm:$0xff] }
 0x4f7   :  { %v4198_v43 = vld [vmem:[#allocation11 + $0x450] sm:$0xff]  ;;  %v4423_v24 = vld [vmem:[#allocation11 + $0xb58] sm:$0xff] }
 0x4f8   :  { %8609 = vmatpush1.bf16.msra.mxu0 %v8608_v51  ;;  %v8848_v51 = vpack.c.bf16 %v4143_v34, %v4136_v33  ;;  %v8638_v31 = vpack.c.bf16 %v4198_v43, %v4191_v17  ;;  %v8862_v33 = vpack.c.bf16 %v4423_v24, %v4416_v21  ;;  %v4205_v34 = vld [vmem:[#allocation11 + $0x488] sm:$0xff]  ;;  %v4254_v17 = vld [vmem:[#allocation11 + $0x610] sm:$0xff]  ;;  %v4472_v43 = vld [vmem:[#allocation11 + $0xce0] sm:$0xff] }
 0x4f9   :  { %8833 = vmatpush3.bf16.msra.mxu1 %v8832_v49  ;;  %8611 = vmatprep.subr.bf16.mxu0 %v8610_v23  ;;  %v8626_v49 = vpack.c.bf16 %v4156_v46, %v4149_v44  ;;  %v4148_v23 = vld [vmem:[#allocation11 + $0x2c0] sm:$0xff]  ;;  %v4430_v46 = vld [vmem:[#allocation11 + $0xb90] sm:$0xff]  ;;  %v4479_v21 = vld [vmem:[#allocation11 + $0xd18] sm:$0xff] }
 0x4fa   :  { %8835 = vmatprep.subr.bf16.mxu1 %v8834_v41  ;;  %v4157_v41 = vld [vmem:[#allocation11 + $0x308] sm:$0xff]  ;;  %v8628_v13 = vpack.c.bf16 %v4155_v57, %v4148_v23  ;;  %v4212_v44 = vld [vmem:[#allocation11 + $0x4c0] sm:$0xff]  ;;  %v4211_v23 = vld [vmem:[#allocation11 + $0x4b8] sm:$0xff] }
 0x4fb   :  { %v4318_v57 = vld [vmem:[#allocation11 + $0x810] sm:$0xff] }
 0x4fc   :  { %8613 = vmatpush1.bf16.msra.mxu0 %v8612_v11  ;;  %v8852_v11 = vpack.c.bf16 %v4157_v41, %v4150_v58  ;;  %v8866_v58 = vpack.c.bf16 %v4437_v47, %v4430_v46  ;;  %v4219_v41 = vld [vmem:[#allocation11 + $0x4f8] sm:$0xff]  ;;  %v4493_v46 = vld [vmem:[#allocation11 + $0xd88] sm:$0xff] }
 0x4fd   :  { %8837 = vmatpush3.bf16.msra.mxu1 %v8836_v0  ;;  %8615 = vmatprep.subr.bf16.mxu0 %v8614_v29  ;;  %v8630_v0 = vpack.c.bf16 %v4170_v50, %v4163_v60  ;;  %v4162_v29 = vld [vmem:[#allocation11 + $0x330] sm:$0xff]  ;;  %v4444_v50 = vld [vmem:[#allocation11 + $0xc00] sm:$0xff] }
 0x4fe   :  { %8839 = vmatprep.subr.bf16.mxu1 %v8838_v54  ;;  %v4171_v54 = vld [vmem:[#allocation11 + $0x378] sm:$0xff]  ;;  %v8632_v4 = vpack.c.bf16 %v4169_v16, %v4162_v29  ;;  %v4226_v60 = vld [vmem:[#allocation11 + $0x530] sm:$0xff]  ;;  %v4225_v29 = vld [vmem:[#allocation11 + $0x528] sm:$0xff] }
 0x4ff   :  { %v4332_v16 = vld [vmem:[#allocation11 + $0x880] sm:$0xff] }
 0x500   :  { %8617 = vmatpush1.bf16.msra.mxu0 %v8616_v5  ;;  %v8856_v5 = vpack.c.bf16 %v4171_v54, %v4164_v40  ;;  %v8870_v40 = vpack.c.bf16 %v4451_v61, %v4444_v50  ;;  %v4233_v54 = vld [vmem:[#allocation11 + $0x568] sm:$0xff]  ;;  %v4507_v50 = vld [vmem:[#allocation11 + $0xdf8] sm:$0xff] }
 0x501   :  { %8841 = vmatpush3.bf16.msra.mxu1 %v8840_v6  ;;  %8619 = vmatprep.subr.bf16.mxu0 %v8618_v9  ;;  %v8634_v6 = vpack.c.bf16 %v4184_v25, %v4177_v45  ;;  %v4176_v9 = vld [vmem:[#allocation11 + $0x3a0] sm:$0xff]  ;;  %v4458_v25 = vld [vmem:[#allocation11 + $0xc70] sm:$0xff] }
 0x502   :  { %8843 = vmatprep.subr.bf16.mxu1 %v8842_v63  ;;  %v4297_v63 = vld [vmem:[#allocation11 + $0x768] sm:$0xff]  ;;  %v8636_v52 = vpack.c.bf16 %v4183_v8, %v4176_v9  ;;  %v4240_v45 = vld [vmem:[#allocation11 + $0x5a0] sm:$0xff]  ;;  %v4239_v9 = vld [vmem:[#allocation11 + $0x598] sm:$0xff] }
 0x503   :  { %v4346_v8 = vld [vmem:[#allocation11 + $0x8f0] sm:$0xff] }
 0x504   :  { %8621 = vmatpush1.bf16.msra.mxu0 %v8620_v62  ;;  %v8860_v62 = vpack.c.bf16 %v4297_v63, %v4290_v7  ;;  %v4353_v7 = vld [vmem:[#allocation11 + $0x928] sm:$0xff]  ;;  %v4247_v63 = vld [vmem:[#allocation11 + $0x5d8] sm:$0xff] }
 0x505   :  { %8845 = vmatpush3.bf16.msra.mxu1 %v8844_v27  ;;  %8623 = vmatprep.subr.bf16.mxu0 %v8622_v12  ;;  %v4190_v27 = vld [vmem:[#allocation11 + $0x410] sm:$0xff]  ;;  %v4197_v12 = vld [vmem:[#allocation11 + $0x448] sm:$0xff] }
 0x506   :  { %8847 = vmatprep.subr.bf16.mxu1 %v8846_v38  ;;  %v4311_v38 = vld [vmem:[#allocation11 + $0x7d8] sm:$0xff]  ;;  %v8640_v48 = vpack.c.bf16 %v4197_v12, %v4190_v27  ;;  %v4246_v27 = vld [vmem:[#allocation11 + $0x5d0] sm:$0xff]  ;;  %v4253_v12 = vld [vmem:[#allocation11 + $0x608] sm:$0xff] }
 0x507   :  { %v8656_v47 = vpack.c.bf16 %v4253_v12, %v4246_v27  ;;  %v4528_v27 = vld [vmem:[#allocation11 + $0xea0] sm:$0xff] }
 0x508   :  { %8625 = vmatpush1.bf16.msra.mxu0 %v8624_v18  ;;  %v8864_v18 = vpack.c.bf16 %v4311_v38, %v4304_v30  ;;  %v4360_v30 = vld [vmem:[#allocation11 + $0x960] sm:$0xff]  ;;  %v4261_v38 = vld [vmem:[#allocation11 + $0x648] sm:$0xff] }
 0x509   :  { %8849 = vmatpush3.bf16.msra.mxu1 %v8848_v51  ;;  %8627 = vmatprep.subr.bf16.mxu0 %v8626_v49  ;;  %v8642_v51 = vpack.c.bf16 %v4212_v44, %v4205_v34  ;;  %v4204_v49 = vld [vmem:[#allocation11 + $0x480] sm:$0xff]  ;;  %v4486_v44 = vld [vmem:[#allocation11 + $0xd50] sm:$0xff] }
 0x50a   :  { %8851 = vmatprep.subr.bf16.mxu1 %v8850_v39  ;;  %v4325_v39 = vld [vmem:[#allocation11 + $0x848] sm:$0xff]  ;;  %v8644_v55 = vpack.c.bf16 %v4211_v23, %v4204_v49  ;;  %v4268_v34 = vld [vmem:[#allocation11 + $0x680] sm:$0xff]  ;;  %v4267_v49 = vld [vmem:[#allocation11 + $0x678] sm:$0xff] }
 0x50b   :  { %v4374_v23 = vld [vmem:[#allocation11 + $0x9d0] sm:$0xff] }
 0x50c   :  { %8629 = vmatpush1.bf16.msra.mxu0 %v8628_v13  ;;  %v8868_v13 = vpack.c.bf16 %v4325_v39, %v4318_v57  ;;  %v8882_v57 = vpack.c.bf16 %v4493_v46, %v4486_v44  ;;  %v4275_v39 = vld [vmem:[#allocation11 + $0x6b8] sm:$0xff]  ;;  %v4661_v44 = vld [vmem:[#allocation11 + $0x12c8] sm:$0xff] }
 0x50d   :  { %8853 = vmatpush3.bf16.msra.mxu1 %v8852_v11  ;;  %8631 = vmatprep.subr.bf16.mxu0 %v8630_v0  ;;  %v8646_v11 = vpack.c.bf16 %v4226_v60, %v4219_v41  ;;  %v4218_v0 = vld [vmem:[#allocation11 + $0x4f0] sm:$0xff]  ;;  %v4500_v60 = vld [vmem:[#allocation11 + $0xdc0] sm:$0xff] }
 0x50e   :  { %8855 = vmatprep.subr.bf16.mxu1 %v8854_v1  ;;  %v4339_v1 = vld [vmem:[#allocation11 + $0x8b8] sm:$0xff]  ;;  %v8648_v3 = vpack.c.bf16 %v4225_v29, %v4218_v0  ;;  %v4282_v41 = vld [vmem:[#allocation11 + $0x6f0] sm:$0xff]  ;;  %v4281_v0 = vld [vmem:[#allocation11 + $0x6e8] sm:$0xff] }
 0x50f   :  { %v4388_v29 = vld [vmem:[#allocation11 + $0xa40] sm:$0xff] }
 0x510   :  { %8633 = vmatpush1.bf16.msra.mxu0 %v8632_v4  ;;  %v8872_v4 = vpack.c.bf16 %v4339_v1, %v4332_v16  ;;  %v8886_v16 = vpack.c.bf16 %v4507_v50, %v4500_v60  ;;  %v4289_v1 = vld [vmem:[#allocation11 + $0x728] sm:$0xff] }
 0x511   :  { %8857 = vmatpush3.bf16.msra.mxu1 %v8856_v5  ;;  %8635 = vmatprep.subr.bf16.mxu0 %v8634_v6  ;;  %v8650_v5 = vpack.c.bf16 %v4240_v45, %v4233_v54  ;;  %v4232_v6 = vld [vmem:[#allocation11 + $0x560] sm:$0xff]  ;;  %v4626_v45 = vld [vmem:[#allocation11 + $0x11b0] sm:$0xff] }
 0x512   :  { %8859 = vmatprep.subr.bf16.mxu1 %v8858_v14  ;;  %v8874_v14 = vpack.c.bf16 %v4465_v2, %v4458_v25  ;;  %v8652_v24 = vpack.c.bf16 %v4239_v9, %v4232_v6  ;;  %v4296_v54 = vld [vmem:[#allocation11 + $0x760] sm:$0xff]  ;;  %v4633_v25 = vld [vmem:[#allocation11 + $0x11e8] sm:$0xff]  ;;  %v4295_v6 = vld [vmem:[#allocation11 + $0x758] sm:$0xff] }
 0x513   :  { %v8890_v9 = vpack.c.bf16 %v4633_v25, %v4626_v45 }
 0x514   :  { %5798 = vmatmul.mubr.f32.vlgmr.msra.gmra.mrb[18].mxu1 %v9579_v59  ;;  %8637 = vmatpush1.bf16.msra.mxu0 %v8636_v52  ;;  %v8876_v52 = vpack.c.bf16 %v4353_v7, %v4346_v8  ;;  %v4514_v8 = vld [vmem:[#allocation11 + $0xe30] sm:$0xff]  ;;  %v4303_v7 = vld [vmem:[#allocation11 + $0x798] sm:$0xff] }
 0x515   :  { %8861 = vmatpush3.bf16.msra.mxu1 %v8860_v62  ;;  %5867 = vmatprep.mubr.f32.mxu1 %v9581_v15  ;;  %v8654_v62 = vpack.c.bf16 %v4254_v17, %v4247_v63  ;;  %v4310_v63 = vld [vmem:[#allocation11 + $0x7d0] sm:$0xff] }
 0x516   :  { %8639 = vmatprep.subr.bf16.mxu0 %v8638_v31  ;;  %8863 = vmatprep.subr.bf16.mxu1 %v8862_v33  ;;  %v8878_v31 = vpack.c.bf16 %v4479_v21, %v4472_v43  ;;  %v4367_v33 = vld [vmem:[#allocation11 + $0x998] sm:$0xff]  ;;  %v4640_v43 = vld [vmem:[#allocation11 + $0x1220] sm:$0xff]  ;;  %v8670_v12 = vpack.c.bf16 %v4310_v63, %v4303_v7 }
 0x517   :  { %v4647_v21 = vld [vmem:[#allocation11 + $0x1258] sm:$0xff] }
 0x518   :  { %8641 = vmatpush1.bf16.msra.mxu0 %v8640_v48  ;;  %v8880_v48 = vpack.c.bf16 %v4367_v33, %v4360_v30  ;;  %v4535_v30 = vld [vmem:[#allocation11 + $0xed8] sm:$0xff]  ;;  %v4324_v33 = vld [vmem:[#allocation11 + $0x840] sm:$0xff] }
 0x519   :  { %8865 = vmatpush3.bf16.msra.mxu1 %v8864_v18  ;;  %8643 = vmatprep.subr.bf16.mxu0 %v8642_v51  ;;  %v8658_v18 = vpack.c.bf16 %v4268_v34, %v4261_v38  ;;  %v4260_v51 = vld [vmem:[#allocation11 + $0x640] sm:$0xff]  ;;  %v8894_v38 = vpack.c.bf16 %v4647_v21, %v4640_v43  ;;  %v4654_v34 = vld [vmem:[#allocation11 + $0x1290] sm:$0xff]  ;;  %v4703_v7 = vld [vmem:[#allocation11 + $0x1418] sm:$0xff] }
 0x51a   :  { %8867 = vmatprep.subr.bf16.mxu1 %v8866_v58  ;;  %v4381_v58 = vld [vmem:[#allocation11 + $0xa08] sm:$0xff]  ;;  %v8660_v61 = vpack.c.bf16 %v4267_v49, %v4260_v51  ;;  %v4323_v51 = vld [vmem:[#allocation11 + $0x838] sm:$0xff]  ;;  %v4542_v49 = vld [vmem:[#allocation11 + $0xf10] sm:$0xff] }
 0x51b   :  { %v4358_v21 = vld [vmem:[#allocation11 + $0x950] sm:$0xff] }
 0x51c   :  { %8645 = vmatpush1.bf16.msra.mxu0 %v8644_v55  ;;  %v8884_v55 = vpack.c.bf16 %v4381_v58, %v4374_v23  ;;  %v8898_v23 = vpack.c.bf16 %v4661_v44, %v4654_v34  ;;  %v4338_v58 = vld [vmem:[#allocation11 + $0x8b0] sm:$0xff] }
 0x51d   :  { %8869 = vmatpush3.bf16.msra.mxu1 %v8868_v13  ;;  %8647 = vmatprep.subr.bf16.mxu0 %v8646_v11  ;;  %v8662_v13 = vpack.c.bf16 %v4282_v41, %v4275_v39  ;;  %v4274_v11 = vld [vmem:[#allocation11 + $0x6b0] sm:$0xff]  ;;  %v4668_v39 = vld [vmem:[#allocation11 + $0x1300] sm:$0xff]  ;;  %v4675_v41 = vld [vmem:[#allocation11 + $0x1338] sm:$0xff] }
 0x51e   :  { %8871 = vmatprep.subr.bf16.mxu1 %v8870_v40  ;;  %v4395_v40 = vld [vmem:[#allocation11 + $0xa78] sm:$0xff]  ;;  %v8664_v2 = vpack.c.bf16 %v4281_v0, %v4274_v11  ;;  %v8902_v11 = vpack.c.bf16 %v4675_v41, %v4668_v39 }
 0x51f   :  { %v4563_v0 = vld [vmem:[#allocation11 + $0xfb8] sm:$0xff] }
 0x520   :  { %8649 = vmatpush1.bf16.msra.mxu0 %v8648_v3  ;;  %v8888_v3 = vpack.c.bf16 %v4395_v40, %v4388_v29  ;;  %v4345_v29 = vld [vmem:[#allocation11 + $0x8e8] sm:$0xff]  ;;  %v4682_v40 = vld [vmem:[#allocation11 + $0x1370] sm:$0xff] }
 0x521   :  { %8873 = vmatpush3.bf16.msra.mxu1 %v8872_v4  ;;  %8651 = vmatprep.subr.bf16.mxu0 %v8650_v5  ;;  %v8666_v4 = vpack.c.bf16 %v4296_v54, %v4289_v1  ;;  %v4288_v5 = vld [vmem:[#allocation11 + $0x720] sm:$0xff]  ;;  %v4689_v1 = vld [vmem:[#allocation11 + $0x13a8] sm:$0xff] }
 0x522   :  { %8875 = vmatprep.subr.bf16.mxu1 %v8874_v14  ;;  %v4521_v14 = vld [vmem:[#allocation11 + $0xe68] sm:$0xff]  ;;  %v8668_v17 = vpack.c.bf16 %v4295_v6, %v4288_v5  ;;  %v8906_v5 = vpack.c.bf16 %v4689_v1, %v4682_v40  ;;  %v4400_v40 = vld [vmem:[#allocation11 + $0xaa0] sm:$0xff]  ;;  %v4407_v1 = vld [vmem:[#allocation11 + $0xad8] sm:$0xff] }
 0x523   :  { %v4577_v6 = vld [vmem:[#allocation11 + $0x1028] sm:$0xff] }
 0x524   :  { %8653 = vmatpush1.bf16.msra.mxu0 %v8652_v24  ;;  %v8892_v24 = vpack.c.bf16 %v4521_v14, %v4514_v8  ;;  %v4366_v8 = vld [vmem:[#allocation11 + $0x990] sm:$0xff]  ;;  %v4696_v14 = vld [vmem:[#allocation11 + $0x13e0] sm:$0xff] }
 0x525   :  { %8877 = vmatpush3.bf16.msra.mxu1 %v8876_v52  ;;  %8655 = vmatprep.subr.bf16.mxu0 %v8654_v62  ;;  %v4302_v52 = vld [vmem:[#allocation11 + $0x790] sm:$0xff]  ;;  %v4309_v62 = vld [vmem:[#allocation11 + $0x7c8] sm:$0xff] }
 0x526   :  { %8879 = vmatprep.subr.bf16.mxu1 %v8878_v31  ;;  %v4317_v31 = vld [vmem:[#allocation11 + $0x808] sm:$0xff]  ;;  %v8672_v46 = vpack.c.bf16 %v4309_v62, %v4302_v52  ;;  %v4584_v52 = vld [vmem:[#allocation11 + $0x1060] sm:$0xff]  ;;  %v8910_v62 = vpack.c.bf16 %v4703_v7, %v4696_v14  ;;  %v4759_v14 = vld [vmem:[#allocation11 + $0x15d8] sm:$0xff] }
 0x527   :  { %v4429_v7 = vld [vmem:[#allocation11 + $0xb88] sm:$0xff] }
 0x528   :  { %8657 = vmatpush1.bf16.msra.mxu0 %v8656_v47  ;;  %v8896_v47 = vpack.c.bf16 %v4535_v30, %v4528_v27  ;;  %v4591_v27 = vld [vmem:[#allocation11 + $0x1098] sm:$0xff]  ;;  %v4380_v30 = vld [vmem:[#allocation11 + $0xa00] sm:$0xff] }
 0x529   :  { %8881 = vmatpush3.bf16.msra.mxu1 %v8880_v48  ;;  %8659 = vmatprep.subr.bf16.mxu0 %v8658_v18  ;;  %v8674_v48 = vpack.c.bf16 %v4324_v33, %v4317_v31  ;;  %v4316_v18 = vld [vmem:[#allocation11 + $0x800] sm:$0xff]  ;;  %v4710_v31 = vld [vmem:[#allocation11 + $0x1450] sm:$0xff]  ;;  %v4717_v33 = vld [vmem:[#allocation11 + $0x1488] sm:$0xff]  ;;  %v8912_v34 = vpack.c.bf16 %v4591_v27, %v4584_v52 }
 0x52a   :  { %8883 = vmatprep.subr.bf16.mxu1 %v8882_v57  ;;  %v4331_v57 = vld [vmem:[#allocation11 + $0x878] sm:$0xff]  ;;  %v8676_v60 = vpack.c.bf16 %v4323_v51, %v4316_v18  ;;  %v8914_v18 = vpack.c.bf16 %v4717_v33, %v4710_v31  ;;  %v4605_v51 = vld [vmem:[#allocation11 + $0x1108] sm:$0xff] }
 0x52b   :  { %v8678_v50 = vpack.c.bf16 %v4338_v58, %v4331_v57  ;;  %v4731_v57 = vld [vmem:[#allocation11 + $0x14f8] sm:$0xff]  ;;  %v4773_v27 = vld [vmem:[#allocation11 + $0x1648] sm:$0xff] }
 0x52c   :  { %8661 = vmatpush1.bf16.msra.mxu0 %v8660_v61  ;;  %v4330_v61 = vld [vmem:[#allocation11 + $0x870] sm:$0xff]  ;;  %v4435_v52 = vld [vmem:[#allocation11 + $0xbb8] sm:$0xff] }
 0x52d   :  { %8885 = vmatpush3.bf16.msra.mxu1 %v8884_v55  ;;  %8663 = vmatprep.subr.bf16.mxu0 %v8662_v13  ;;  %v4337_v55 = vld [vmem:[#allocation11 + $0x8a8] sm:$0xff]  ;;  %v4556_v13 = vld [vmem:[#allocation11 + $0xf80] sm:$0xff] }
 0x52e   :  { %8887 = vmatprep.subr.bf16.mxu1 %v8886_v16  ;;  %v4352_v16 = vld [vmem:[#allocation11 + $0x920] sm:$0xff]  ;;  %v8680_v54 = vpack.c.bf16 %v4337_v55, %v4330_v61  ;;  %v8904_v45 = vpack.c.bf16 %v4563_v0, %v4556_v13  ;;  %v4619_v55 = vld [vmem:[#allocation11 + $0x1178] sm:$0xff]  ;;  %v4401_v13 = vld [vmem:[#allocation11 + $0xaa8] sm:$0xff] }
 0x52f   :  { %v8682_v25 = vpack.c.bf16 %v4352_v16, %v4345_v29 }
 0x530   :  { %8665 = vmatpush1.bf16.msra.mxu0 %v8664_v2  ;;  %v4344_v2 = vld [vmem:[#allocation11 + $0x8e0] sm:$0xff] }
 0x531   :  { %8889 = vmatpush3.bf16.msra.mxu1 %v8888_v3  ;;  %8667 = vmatprep.subr.bf16.mxu0 %v8666_v4  ;;  %v4351_v3 = vld [vmem:[#allocation11 + $0x918] sm:$0xff]  ;;  %v4570_v4 = vld [vmem:[#allocation11 + $0xff0] sm:$0xff] }
 0x532   :  { %8891 = vmatprep.subr.bf16.mxu1 %v8890_v9  ;;  %v4359_v9 = vld [vmem:[#allocation11 + $0x958] sm:$0xff]  ;;  %v8684_v63 = vpack.c.bf16 %v4351_v3, %v4344_v2  ;;  %v4422_v2 = vld [vmem:[#allocation11 + $0xb50] sm:$0xff]  ;;  %v8700_v3 = vpack.c.bf16 %v4407_v1, %v4400_v40 }
 0x533   :  { %5514 = vmatmul.mubr.f32.vlgmr.msra.gmra.mrb[16].mxu0 %v9579_v59  ;;  %v4549_v59 = vld [vmem:[#allocation11 + $0xf48] sm:$0xff]  ;;  %v8686_v43 = vpack.c.bf16 %v4366_v8, %v4359_v9  ;;  %v4752_v8 = vld [vmem:[#allocation11 + $0x15a0] sm:$0xff] }
 0x534   :  { %5868 = vmatmul.mubr.f32.vlgmr.msra.gmra.mrb[20].mxu1 %v9598_v19  ;;  %8669 = vmatpush1.bf16.msra.mxu0 %v8668_v17  ;;  %v8908_v17 = vpack.c.bf16 %v4577_v6, %v4570_v4  ;;  %v4414_v6 = vld [vmem:[#allocation11 + $0xb10] sm:$0xff]  ;;  %v4421_v9 = vld [vmem:[#allocation11 + $0xb48] sm:$0xff] }
 0x535   :  { %5584 = vmatprep.mubr.f32.mxu0 %v9581_v15  ;;  %8893 = vmatpush3.bf16.msra.mxu1 %v8892_v24  ;;  %v8900_v15 = vpack.c.bf16 %v4549_v59, %v4542_v49  ;;  %v4365_v24 = vld [vmem:[#allocation11 + $0x988] sm:$0xff]  ;;  %v4387_v49 = vld [vmem:[#allocation11 + $0xa38] sm:$0xff]  ;;  %v4724_v59 = vld [vmem:[#allocation11 + $0x14c0] sm:$0xff] }
 0x536   :  { %5937 = vmatprep.mubr.f32.mxu1 %v9612_v26  ;;  %8671 = vmatprep.subr.bf16.mxu0 %v8670_v12  ;;  %v4373_v12 = vld [vmem:[#allocation11 + $0x9c8] sm:$0xff]  ;;  %v8918_v61 = vpack.c.bf16 %v4731_v57, %v4724_v59  ;;  %v4456_v59 = vld [vmem:[#allocation11 + $0xc60] sm:$0xff]  ;;  %v4463_v57 = vld [vmem:[#allocation11 + $0xc98] sm:$0xff] }
 0x537   :  { %8895 = vmatprep.subr.bf16.mxu1 %v8894_v38  ;;  %v8688_v38 = vpack.c.bf16 %v4365_v24, %v4358_v21  ;;  %v8690_v44 = vpack.c.bf16 %v4380_v30, %v4373_v12  ;;  %v4428_v24 = vld [vmem:[#allocation11 + $0xb80] sm:$0xff]  ;;  %v4443_v12 = vld [vmem:[#allocation11 + $0xbf8] sm:$0xff]  ;;  %v4450_v30 = vld [vmem:[#allocation11 + $0xc30] sm:$0xff] }
 0x538   :  { %8673 = vmatpush1.bf16.msra.mxu0 %v8672_v46  ;;  %v4372_v46 = vld [vmem:[#allocation11 + $0x9c0] sm:$0xff]  ;;  %v8708_v31 = vpack.c.bf16 %v4435_v52, %v4428_v24 }
 0x539   :  { %8897 = vmatpush3.bf16.msra.mxu1 %v8896_v47  ;;  %8675 = vmatprep.subr.bf16.mxu0 %v8674_v48  ;;  %v4379_v47 = vld [vmem:[#allocation11 + $0x9f8] sm:$0xff]  ;;  %v4598_v48 = vld [vmem:[#allocation11 + $0x10d0] sm:$0xff] }
 0x53a   :  { %8899 = vmatprep.subr.bf16.mxu1 %v8898_v23  ;;  %v4394_v23 = vld [vmem:[#allocation11 + $0xa70] sm:$0xff]  ;;  %v8692_v58 = vpack.c.bf16 %v4379_v47, %v4372_v46  ;;  %v8916_v39 = vpack.c.bf16 %v4605_v51, %v4598_v48  ;;  %v4780_v46 = vld [vmem:[#allocation11 + $0x1680] sm:$0xff]  ;;  %v4787_v47 = vld [vmem:[#allocation11 + $0x16b8] sm:$0xff] }
 0x53b   :  { %v8694_v41 = vpack.c.bf16 %v4394_v23, %v4387_v49  ;;  %v4457_v48 = vld [vmem:[#allocation11 + $0xc68] sm:$0xff]  ;;  %v8932_v49 = vpack.c.bf16 %v4787_v47, %v4780_v46  ;;  %v4548_v47 = vld [vmem:[#allocation11 + $0xf40] sm:$0xff] }
 0x53c   :  { %8677 = vmatpush1.bf16.msra.mxu0 %v8676_v60  ;;  %v4386_v60 = vld [vmem:[#allocation11 + $0xa30] sm:$0xff]  ;;  %v4541_v46 = vld [vmem:[#allocation11 + $0xf08] sm:$0xff] }
 0x53d   :  { %8901 = vmatpush3.bf16.msra.mxu1 %v8900_v15  ;;  %8679 = vmatprep.subr.bf16.mxu0 %v8678_v50  ;;  %v4393_v15 = vld [vmem:[#allocation11 + $0xa68] sm:$0xff]  ;;  %v4612_v50 = vld [vmem:[#allocation11 + $0x1140] sm:$0xff] }
 0x53e   :  { %8903 = vmatprep.subr.bf16.mxu1 %v8902_v11  ;;  %v4408_v11 = vld [vmem:[#allocation11 + $0xae0] sm:$0xff]  ;;  %v8696_v0 = vpack.c.bf16 %v4393_v15, %v4386_v60  ;;  %v8920_v29 = vpack.c.bf16 %v4619_v55, %v4612_v50  ;;  %v4478_v60 = vld [vmem:[#allocation11 + $0xd10] sm:$0xff]  ;;  %v8716_v15 = vpack.c.bf16 %v4463_v57, %v4456_v59 }
 0x53f   :  { %v8698_v16 = vpack.c.bf16 %v4408_v11, %v4401_v13  ;;  %v4470_v55 = vld [vmem:[#allocation11 + $0xcd0] sm:$0xff]  ;;  %v4477_v13 = vld [vmem:[#allocation11 + $0xd08] sm:$0xff]  ;;  %v4808_v11 = vld [vmem:[#allocation11 + $0x1760] sm:$0xff] }
 0x540   :  { %8681 = vmatpush1.bf16.msra.mxu0 %v8680_v54  ;;  %v4738_v54 = vld [vmem:[#allocation11 + $0x1530] sm:$0xff]  ;;  %v8720_v40 = vpack.c.bf16 %v4477_v13, %v4470_v55 }
 0x541   :  { %8905 = vmatpush3.bf16.msra.mxu1 %v8904_v45  ;;  %8683 = vmatprep.subr.bf16.mxu0 %v8682_v25  ;;  %v4745_v45 = vld [vmem:[#allocation11 + $0x1568] sm:$0xff]  ;;  %v4415_v25 = vld [vmem:[#allocation11 + $0xb18] sm:$0xff]  ;;  %v4590_v55 = vld [vmem:[#allocation11 + $0x1090] sm:$0xff] }
 0x542   :  { %8907 = vmatprep.subr.bf16.mxu1 %v8906_v5  ;;  %v8923_v4 = vpack.c.bf16 %v4745_v45, %v4738_v54  ;;  %v8702_v5 = vpack.c.bf16 %v4422_v2, %v4415_v25  ;;  %v4484_v45 = vld [vmem:[#allocation11 + $0xd40] sm:$0xff]  ;;  %v4491_v25 = vld [vmem:[#allocation11 + $0xd78] sm:$0xff]  ;;  %v4822_v2 = vld [vmem:[#allocation11 + $0x17d0] sm:$0xff] }
 0x544   :  { %8685 = vmatpush1.bf16.msra.mxu0 %v8684_v63  ;;  %v4436_v63 = vld [vmem:[#allocation11 + $0xbc0] sm:$0xff] }
 0x545   :  { %8909 = vmatpush3.bf16.msra.mxu1 %v8908_v17  ;;  %8687 = vmatprep.subr.bf16.mxu0 %v8686_v43  ;;  %v8704_v17 = vpack.c.bf16 %v4421_v9, %v4414_v6  ;;  %v8926_v43 = vpack.c.bf16 %v4759_v14, %v4752_v8  ;;  %v8706_v21 = vpack.c.bf16 %v4436_v63, %v4429_v7  ;;  %v4498_v14 = vld [vmem:[#allocation11 + $0xdb0] sm:$0xff]  ;;  %v4505_v7 = vld [vmem:[#allocation11 + $0xde8] sm:$0xff]  ;;  %v4836_v63 = vld [vmem:[#allocation11 + $0x1840] sm:$0xff] }
 0x546   :  { %8911 = vmatprep.subr.bf16.mxu1 %v8910_v62  ;;  %v4766_v62 = vld [vmem:[#allocation11 + $0x1610] sm:$0xff]  ;;  %v8724_v6 = vpack.c.bf16 %v4491_v25, %v4484_v45  ;;  %v8728_v24 = vpack.c.bf16 %v4505_v7, %v4498_v14  ;;  %v4596_v45 = vld [vmem:[#allocation11 + $0x10c0] sm:$0xff]  ;;  %v4603_v25 = vld [vmem:[#allocation11 + $0x10f8] sm:$0xff] }
 0x547   :  { %v8929_v33 = vpack.c.bf16 %v4773_v27, %v4766_v62  ;;  %v4512_v27 = vld [vmem:[#allocation11 + $0xe20] sm:$0xff] }
 0x548   :  { %8689 = vmatpush1.bf16.msra.mxu0 %v8688_v38  ;;  %v8710_v38 = vpack.c.bf16 %v4450_v30, %v4443_v12  ;;  %v4519_v12 = vld [vmem:[#allocation11 + $0xe58] sm:$0xff]  ;;  %v4632_v14 = vld [vmem:[#allocation11 + $0x11e0] sm:$0xff] }
 0x549   :  { %8913 = vmatpush3.bf16.msra.mxu1 %v8912_v34  ;;  %8691 = vmatprep.subr.bf16.mxu0 %v8690_v44  ;;  %v4442_v34 = vld [vmem:[#allocation11 + $0xbf0] sm:$0xff]  ;;  %v4449_v44 = vld [vmem:[#allocation11 + $0xc28] sm:$0xff]  ;;  %v4527_v30 = vld [vmem:[#allocation11 + $0xe98] sm:$0xff] }
 0x54a   :  { %8915 = vmatprep.subr.bf16.mxu1 %v8914_v18  ;;  %v4464_v18 = vld [vmem:[#allocation11 + $0xca0] sm:$0xff]  ;;  %v8712_v51 = vpack.c.bf16 %v4449_v44, %v4442_v34  ;;  %v4526_v34 = vld [vmem:[#allocation11 + $0xe90] sm:$0xff]  ;;  %v4533_v44 = vld [vmem:[#allocation11 + $0xec8] sm:$0xff] }
 0x54b   :  { %v8714_v23 = vpack.c.bf16 %v4464_v18, %v4457_v48  ;;  %v8736_v48 = vpack.c.bf16 %v4533_v44, %v4526_v34  ;;  %v4540_v18 = vld [vmem:[#allocation11 + $0xf00] sm:$0xff]  ;;  %v4659_v44 = vld [vmem:[#allocation11 + $0x12b8] sm:$0xff] }
 0x54c   :  { %8693 = vmatpush1.bf16.msra.mxu0 %v8692_v58  ;;  %v4794_v58 = vld [vmem:[#allocation11 + $0x16f0] sm:$0xff]  ;;  %v4652_v34 = vld [vmem:[#allocation11 + $0x1280] sm:$0xff] }
 0x54d   :  { %8917 = vmatpush3.bf16.msra.mxu1 %v8916_v39  ;;  %8695 = vmatprep.subr.bf16.mxu0 %v8694_v41  ;;  %v4801_v39 = vld [vmem:[#allocation11 + $0x1728] sm:$0xff]  ;;  %v4471_v41 = vld [vmem:[#allocation11 + $0xcd8] sm:$0xff] }
 0x54e   :  { %8919 = vmatprep.subr.bf16.mxu1 %v8918_v61  ;;  %v8935_v50 = vpack.c.bf16 %v4801_v39, %v4794_v58  ;;  %v8718_v61 = vpack.c.bf16 %v4478_v60, %v4471_v41  ;;  %v4554_v58 = vld [vmem:[#allocation11 + $0xf70] sm:$0xff]  ;;  %v4561_v39 = vld [vmem:[#allocation11 + $0xfa8] sm:$0xff] }
 0x54f   :  { %v4569_v41 = vld [vmem:[#allocation11 + $0xfe8] sm:$0xff]  ;;  %v8744_v60 = vpack.c.bf16 %v4561_v39, %v4554_v58  ;;  %v4680_v58 = vld [vmem:[#allocation11 + $0x1360] sm:$0xff]  ;;  %v4687_v39 = vld [vmem:[#allocation11 + $0x1398] sm:$0xff] }
 0x550   :  { %8697 = vmatpush1.bf16.msra.mxu0 %v8696_v0  ;;  %v4815_v0 = vld [vmem:[#allocation11 + $0x1798] sm:$0xff] }
 0x551   :  { %8921 = vmatpush3.bf16.msra.mxu1 %v8920_v29  ;;  %8699 = vmatprep.subr.bf16.mxu0 %v8698_v16  ;;  %v4485_v29 = vld [vmem:[#allocation11 + $0xd48] sm:$0xff]  ;;  %v4492_v16 = vld [vmem:[#allocation11 + $0xd80] sm:$0xff]  ;;  %v8938_v1 = vpack.c.bf16 %v4815_v0, %v4808_v11  ;;  %v4582_v0 = vld [vmem:[#allocation11 + $0x1050] sm:$0xff] }
 0x552   :  { %8922 = vmatprep.subr.bf16.mxu1 %v9245_v37  ;;  %v8722_v54 = vpack.c.bf16 %v4492_v16, %v4485_v29  ;;  %v4589_v29 = vld [vmem:[#allocation11 + $0x1088] sm:$0xff] }
 0x553   :  { %v4597_v16 = vld [vmem:[#allocation11 + $0x10c8] sm:$0xff] }
 0x554   :  { %5938 = vmatmul.mubr.f32.vlgmr.msra.gmra.mrb[22].mxu1 %v9614_v56  ;;  %8701 = vmatpush1.bf16.msra.mxu0 %v8700_v3  ;;  %v4829_v3 = vld [vmem:[#allocation11 + $0x1808] sm:$0xff] }
 0x555   :  { %8924 = vmatpush3.bf16.msra.mxu1 %v8923_v4  ;;  %8703 = vmatprep.subr.bf16.mxu0 %v8702_v5  ;;  %v4499_v4 = vld [vmem:[#allocation11 + $0xdb8] sm:$0xff]  ;;  %v4506_v5 = vld [vmem:[#allocation11 + $0xdf0] sm:$0xff]  ;;  %v8941_v9 = vpack.c.bf16 %v4829_v3, %v4822_v2 }
 0x556   :  { %8925 = vmatprep.subr.bf16.mxu1 %v9245_v37  ;;  %6567 = vmatprep.mubr.msk.f32.mxu1 %vm9246_vm0, %v9244_v53  ;;  %v8726_v8 = vpack.c.bf16 %v4506_v5, %v4499_v4  ;;  %v4611_v2 = vld [vmem:[#allocation11 + $0x1138] sm:$0xff]  ;;  %v4618_v3 = vld [vmem:[#allocation11 + $0x1170] sm:$0xff]  ;;  %v8756_v4 = vpack.c.bf16 %v4603_v25, %v4596_v45  ;;  %v4729_v25 = vld [vmem:[#allocation11 + $0x14e8] sm:$0xff] }
 0x557   :  { %v8758_v5 = vpack.c.bf16 %v4618_v3, %v4611_v2  ;;  %v4722_v45 = vld [vmem:[#allocation11 + $0x14b0] sm:$0xff]  ;;  %v4737_v2 = vld [vmem:[#allocation11 + $0x1528] sm:$0xff]  ;;  %v4744_v3 = vld [vmem:[#allocation11 + $0x1560] sm:$0xff] }
 0x558   :  { %8705 = vmatpush1.bf16.msra.mxu0 %v8704_v17  ;;  %v4843_v17 = vld [vmem:[#allocation11 + $0x1878] sm:$0xff] }
 0x559   :  { %8927 = vmatpush3.bf16.msra.mxu1 %v8926_v43  ;;  %8707 = vmatprep.subr.bf16.mxu0 %v8706_v21  ;;  %v4513_v43 = vld [vmem:[#allocation11 + $0xe28] sm:$0xff]  ;;  %v4520_v21 = vld [vmem:[#allocation11 + $0xe60] sm:$0xff]  ;;  %v8944_v52 = vpack.c.bf16 %v4843_v17, %v4836_v63 }
 0x55a   :  { %8928 = vmatprep.subr.bf16.mxu1 %v9245_v37  ;;  %v8730_v62 = vpack.c.bf16 %v4520_v21, %v4513_v43  ;;  %v4624_v17 = vld [vmem:[#allocation11 + $0x11a0] sm:$0xff]  ;;  %v4631_v43 = vld [vmem:[#allocation11 + $0x11d8] sm:$0xff] }
 0x55b   :  { %v4639_v21 = vld [vmem:[#allocation11 + $0x1218] sm:$0xff] }
 0x55c   :  { %8709 = vmatpush1.bf16.msra.mxu0 %v8708_v31  ;;  %v4534_v31 = vld [vmem:[#allocation11 + $0xed0] sm:$0xff] }
 0x55d   :  { %8930 = vmatpush3.bf16.msra.mxu1 %v8929_v33  ;;  %8711 = vmatprep.subr.bf16.mxu0 %v8710_v38  ;;  %v8732_v33 = vpack.c.bf16 %v4519_v12, %v4512_v27  ;;  %v8734_v38 = vpack.c.bf16 %v4534_v31, %v4527_v30  ;;  %v4638_v27 = vld [vmem:[#allocation11 + $0x1210] sm:$0xff]  ;;  %v4645_v12 = vld [vmem:[#allocation11 + $0x1248] sm:$0xff]  ;;  %v4660_v31 = vld [vmem:[#allocation11 + $0x12c0] sm:$0xff] }
 0x55e   :  { %8931 = vmatprep.subr.bf16.mxu1 %v9245_v37  ;;  %v4653_v30 = vld [vmem:[#allocation11 + $0x1288] sm:$0xff] }
 0x560   :  { %8713 = vmatpush1.bf16.msra.mxu0 %v8712_v51  ;;  %v4547_v51 = vld [vmem:[#allocation11 + $0xf38] sm:$0xff] }
 0x561   :  { %8933 = vmatpush3.bf16.msra.mxu1 %v8932_v49  ;;  %8715 = vmatprep.subr.bf16.mxu0 %v8714_v23  ;;  %v4555_v49 = vld [vmem:[#allocation11 + $0xf78] sm:$0xff]  ;;  %v4562_v23 = vld [vmem:[#allocation11 + $0xfb0] sm:$0xff]  ;;  %v8740_v59 = vpack.c.bf16 %v4547_v51, %v4540_v18  ;;  %v4673_v51 = vld [vmem:[#allocation11 + $0x1328] sm:$0xff] }
 0x562   :  { %8934 = vmatprep.subr.bf16.mxu1 %v9245_v37  ;;  %v8742_v57 = vpack.c.bf16 %v4562_v23, %v4555_v49  ;;  %v4666_v18 = vld [vmem:[#allocation11 + $0x12f0] sm:$0xff]  ;;  %v4681_v49 = vld [vmem:[#allocation11 + $0x1368] sm:$0xff]  ;;  %v4688_v23 = vld [vmem:[#allocation11 + $0x13a0] sm:$0xff] }
 0x564   :  { %8717 = vmatpush1.bf16.msra.mxu0 %v8716_v15 }
 0x565   :  { %8936 = vmatpush3.bf16.msra.mxu1 %v8935_v50  ;;  %8719 = vmatprep.subr.bf16.mxu0 %v8718_v61  ;;  %v4568_v50 = vld [vmem:[#allocation11 + $0xfe0] sm:$0xff]  ;;  %v4583_v61 = vld [vmem:[#allocation11 + $0x1058] sm:$0xff] }
 0x566   :  { %8937 = vmatprep.subr.bf16.mxu1 %v9245_v37  ;;  %v8750_v11 = vpack.c.bf16 %v4590_v55, %v4583_v61  ;;  %v4709_v61 = vld [vmem:[#allocation11 + $0x1448] sm:$0xff]  ;;  %v4716_v55 = vld [vmem:[#allocation11 + $0x1480] sm:$0xff] }
 0x568   :  { %8721 = vmatpush1.bf16.msra.mxu0 %v8720_v40  ;;  %v4604_v40 = vld [vmem:[#allocation11 + $0x1100] sm:$0xff] }
 0x569   :  { %8939 = vmatpush3.bf16.msra.mxu1 %v8938_v1  ;;  %8723 = vmatprep.subr.bf16.mxu0 %v8722_v54  ;;  %v8752_v1 = vpack.c.bf16 %v4589_v29, %v4582_v0  ;;  %v8754_v54 = vpack.c.bf16 %v4604_v40, %v4597_v16  ;;  %v4708_v0 = vld [vmem:[#allocation11 + $0x1440] sm:$0xff]  ;;  %v4715_v29 = vld [vmem:[#allocation11 + $0x1478] sm:$0xff]  ;;  %v4730_v40 = vld [vmem:[#allocation11 + $0x14f0] sm:$0xff] }
 0x56a   :  { %8940 = vmatprep.subr.bf16.mxu1 %v9245_v37  ;;  %v4723_v16 = vld [vmem:[#allocation11 + $0x14b8] sm:$0xff] }
 0x56c   :  { %8725 = vmatpush1.bf16.msra.mxu0 %v8724_v6  ;;  %v4610_v6 = vld [vmem:[#allocation11 + $0x1130] sm:$0xff] }
 0x56d   :  { %8942 = vmatpush3.bf16.msra.mxu1 %v8941_v9  ;;  %8727 = vmatprep.subr.bf16.mxu0 %v8726_v8  ;;  %v4617_v9 = vld [vmem:[#allocation11 + $0x1168] sm:$0xff] }
 0x56e   :  { %8943 = vmatprep.subr.bf16.mxu1 %v9245_v37  ;;  %v8738_v37 = vpack.c.bf16 %v4548_v47, %v4541_v46  ;;  %v4625_v8 = vld [vmem:[#allocation11 + $0x11a8] sm:$0xff]  ;;  %v8760_v7 = vpack.c.bf16 %v4617_v9, %v4610_v6  ;;  %v4667_v46 = vld [vmem:[#allocation11 + $0x12f8] sm:$0xff]  ;;  %v4674_v47 = vld [vmem:[#allocation11 + $0x1330] sm:$0xff] }
 0x56f   :  { %v8762_v63 = vpack.c.bf16 %v4632_v14, %v4625_v8  ;;  %v4736_v6 = vld [vmem:[#allocation11 + $0x1520] sm:$0xff]  ;;  %v4743_v9 = vld [vmem:[#allocation11 + $0x1558] sm:$0xff]  ;;  %v4758_v14 = vld [vmem:[#allocation11 + $0x15d0] sm:$0xff] }
 0x570   :  { %8729 = vmatpush1.bf16.msra.mxu0 %v8728_v24  ;;  %v4646_v24 = vld [vmem:[#allocation11 + $0x1250] sm:$0xff]  ;;  %v4751_v8 = vld [vmem:[#allocation11 + $0x1598] sm:$0xff] }
 0x571   :  { %8945 = vmatpush3.bf16.msra.mxu1 %v8944_v52  ;;  %8731 = vmatprep.subr.bf16.mxu0 %v8730_v62  ;;  %v8764_v52 = vpack.c.bf16 %v4631_v43, %v4624_v17  ;;  %v8766_v62 = vpack.c.bf16 %v4646_v24, %v4639_v21  ;;  %v4750_v17 = vld [vmem:[#allocation11 + $0x1590] sm:$0xff]  ;;  %v4757_v43 = vld [vmem:[#allocation11 + $0x15c8] sm:$0xff]  ;;  %v4772_v24 = vld [vmem:[#allocation11 + $0x1640] sm:$0xff] }
 0x572   :  { %v4765_v21 = vld [vmem:[#allocation11 + $0x1608] sm:$0xff] }
 0x573   :  { %5585 = vmatmul.mubr.f32.vlgmr.msra.gmra.mrb[16].mxu0 %v9598_v19  ;;  %v4576_v19 = vld [vmem:[#allocation11 + $0x1020] sm:$0xff] }
 0x574   :  { %6568 = vmatmul.mubr.f32.vlgmr.msra.gmra.mrb[24].mxu1 %v9623_v28  ;;  %8733 = vmatpush1.bf16.msra.mxu0 %v8732_v33  ;;  %v8746_v15 = vpack.c.bf16 %v4576_v19, %v4569_v41  ;;  %v8768_v33 = vpack.c.bf16 %v4645_v12, %v4638_v27  ;;  %v4695_v41 = vld [vmem:[#allocation11 + $0x13d8] sm:$0xff]  ;;  %v4702_v19 = vld [vmem:[#allocation11 + $0x1410] sm:$0xff]  ;;  %v4764_v27 = vld [vmem:[#allocation11 + $0x1600] sm:$0xff] }
 0x575   :  { %5655 = vmatprep.mubr.f32.mxu0 %v9612_v26  ;;  %8735 = vmatprep.subr.bf16.mxu0 %v8734_v38  ;;  %v4575_v26 = vld [vmem:[#allocation11 + $0x1018] sm:$0xff]  ;;  %v8770_v38 = vpack.c.bf16 %v4660_v31, %v4653_v30  ;;  %v4786_v31 = vld [vmem:[#allocation11 + $0x16b0] sm:$0xff] }
 0x576   :  { %v8748_v13 = vpack.c.bf16 %v4575_v26, %v4568_v50  ;;  %v4694_v50 = vld [vmem:[#allocation11 + $0x13d0] sm:$0xff]  ;;  %v4701_v26 = vld [vmem:[#allocation11 + $0x1408] sm:$0xff]  ;;  %v4771_v12 = vld [vmem:[#allocation11 + $0x1638] sm:$0xff] }
 0x577   :  { %v4779_v30 = vld [vmem:[#allocation11 + $0x1678] sm:$0xff] }
 0x578   :  { %8737 = vmatpush1.bf16.msra.mxu0 %v8736_v48  ;;  %v8772_v48 = vpack.c.bf16 %v4659_v44, %v4652_v34  ;;  %v4778_v34 = vld [vmem:[#allocation11 + $0x1670] sm:$0xff]  ;;  %v4785_v44 = vld [vmem:[#allocation11 + $0x16a8] sm:$0xff] }
 0x579   :  { %8739 = vmatprep.subr.bf16.mxu0 %v8738_v37  ;;  %v8774_v37 = vpack.c.bf16 %v4674_v47, %v4667_v46  ;;  %v4793_v46 = vld [vmem:[#allocation11 + $0x16e8] sm:$0xff]  ;;  %v4800_v47 = vld [vmem:[#allocation11 + $0x1720] sm:$0xff] }
 0x57c   :  { %8741 = vmatpush1.bf16.msra.mxu0 %v8740_v59  ;;  %v8776_v59 = vpack.c.bf16 %v4673_v51, %v4666_v18  ;;  %v4807_v18 = vld [vmem:[#allocation11 + $0x1758] sm:$0xff]  ;;  %v4814_v51 = vld [vmem:[#allocation11 + $0x1790] sm:$0xff] }
 0x57d   :  { %8743 = vmatprep.subr.bf16.mxu0 %v8742_v57  ;;  %v8778_v57 = vpack.c.bf16 %v4688_v23, %v4681_v49  ;;  %v9651_v23 = vld [vmem:[#allocation13] sm:$0xff] }
 0x580   :  { %8745 = vmatpush1.bf16.msra.mxu0 %v8744_v60  ;;  %v8780_v60 = vpack.c.bf16 %v4687_v39, %v4680_v58  ;;  %v4813_v58 = vld [vmem:[#allocation11 + $0x1788] sm:$0xff] }
 0x581   :  { %8747 = vmatprep.subr.bf16.mxu0 %v8746_v15  ;;  %v8782_v15 = vpack.c.bf16 %v4702_v19, %v4695_v41  ;;  %v4821_v39 = vld [vmem:[#allocation11 + $0x17c8] sm:$0xff]  ;;  %v4828_v41 = vld [vmem:[#allocation11 + $0x1800] sm:$0xff]  ;;  %v4849_v19 = vrot.slane %v9651_v23, %v9454_v22 }
 0x584   :  { %8749 = vmatpush1.bf16.msra.mxu0 %v8748_v13  ;;  %v8784_v13 = vpack.c.bf16 %v4701_v26, %v4694_v50  ;;  %v4853_v50 = vrot.slane %v9651_v23, %v9457_v42  ;;  %v4861_v26 = vrot.slane %v9651_v23, %v9486_v10 }
 0x585   :  { %8751 = vmatprep.subr.bf16.mxu0 %v8750_v11  ;;  %v8786_v11 = vpack.c.bf16 %v4716_v55, %v4709_v61  ;;  %v8818_v55 = vpack.c.bf16 %v4828_v41, %v4821_v39 }
 0x588   :  { %8753 = vmatpush1.bf16.msra.mxu0 %v8752_v1  ;;  %v8788_v1 = vpack.c.bf16 %v4715_v29, %v4708_v0 }
 0x589   :  { %8755 = vmatprep.subr.bf16.mxu0 %v8754_v54  ;;  %v8790_v54 = vpack.c.bf16 %v4730_v40, %v4723_v16  ;;  %v4835_v16 = vld [vmem:[#allocation11 + $0x1838] sm:$0xff]  ;;  %v4842_v40 = vld [vmem:[#allocation11 + $0x1870] sm:$0xff] }
 0x58c   :  { %8757 = vmatpush1.bf16.msra.mxu0 %v8756_v4  ;;  %v8792_v4 = vpack.c.bf16 %v4729_v25, %v4722_v45 }
 0x58d   :  { %8759 = vmatprep.subr.bf16.mxu0 %v8758_v5  ;;  %v8794_v5 = vpack.c.bf16 %v4744_v3, %v4737_v2 }
 0x590   :  { %8761 = vmatpush1.bf16.msra.mxu0 %v8760_v7  ;;  %v8796_v7 = vpack.c.bf16 %v4743_v9, %v4736_v6 }
 0x591   :  { %8763 = vmatprep.subr.bf16.mxu0 %v8762_v63  ;;  %v8798_v63 = vpack.c.bf16 %v4758_v14, %v4751_v8  ;;  %v8822_v8 = vpack.c.bf16 %v4842_v40, %v4835_v16  ;;  %v4834_v14 = vld [vmem:[#allocation11 + $0x1830] sm:$0xff] }
 0x594   :  { %8765 = vmatpush1.bf16.msra.mxu0 %v8764_v52  ;;  %v8800_v52 = vpack.c.bf16 %v4757_v43, %v4750_v17 }
 0x595   :  { %8767 = vmatprep.subr.bf16.mxu0 %v8766_v62  ;;  %v8802_v62 = vpack.c.bf16 %v4772_v24, %v4765_v21 }
 0x598   :  { %8769 = vmatpush1.bf16.msra.mxu0 %v8768_v33  ;;  %v8804_v33 = vpack.c.bf16 %v4771_v12, %v4764_v27 }
 0x599   :  { %8771 = vmatprep.subr.bf16.mxu0 %v8770_v38  ;;  %v8806_v38 = vpack.c.bf16 %v4786_v31, %v4779_v30 }
 0x59c   :  { %8773 = vmatpush1.bf16.msra.mxu0 %v8772_v48  ;;  %v8810_v48 = vpack.c.bf16 %v4800_v47, %v4793_v46 }
 0x59d   :  { %8775 = vmatprep.subr.bf16.mxu0 %v8774_v37  ;;  %v4792_v37 = vld [vmem:[#allocation11 + $0x16e0] sm:$0xff] }
 0x5a0   :  { %8777 = vmatpush1.bf16.msra.mxu0 %v8776_v59  ;;  %v8814_v59 = vpack.c.bf16 %v4814_v51, %v4807_v18 }
 0x5a1   :  { %8779 = vmatprep.subr.bf16.mxu0 %v8778_v57  ;;  %v4806_v57 = vld [vmem:[#allocation11 + $0x1750] sm:$0xff] }
 0x5a2   :  { %v8816_v61 = vpack.c.bf16 %v4813_v58, %v4806_v57  ;;  %v4869_v57 = vrot.slane %v9651_v23, %v9519_v36 }
 0x5a4   :  { %8781 = vmatpush1.bf16.msra.mxu0 %v8780_v60  ;;  %v4857_v60 = vrot.slane %v9651_v23, %v9493_v32 }
 0x5a5   :  { %8783 = vmatprep.subr.bf16.mxu0 %v8782_v15  ;;  %v9657_v15 = vld [vmem:[#allocation14] sm:$0xff] }
 0x5a6   :  { %v6033_v17 = vrot.slane %v9657_v15, %v9493_v32  ;;  %v6041_v41 = vrot.slane %v9657_v15, %v9516_v35 }
 0x5a8   :  { %8785 = vmatpush1.bf16.msra.mxu0 %v8784_v13  ;;  %v4820_v13 = vld [vmem:[#allocation11 + $0x17c0] sm:$0xff] }
 0x5a9   :  { %8787 = vmatprep.subr.bf16.mxu0 %v8786_v11  ;;  %v4827_v11 = vld [vmem:[#allocation11 + $0x17f8] sm:$0xff] }
 0x5aa   :  { %v8820_v6 = vpack.c.bf16 %v4827_v11, %v4820_v13  ;;  %v6049_v11 = vrot.slane %v9657_v15, %v9508_v20 }
 0x5ac   :  { %8789 = vmatpush1.bf16.msra.mxu0 %v8788_v1 }
 0x5ad   :  { %8791 = vmatprep.subr.bf16.mxu0 %v8790_v54  ;;  %v6025_v54 = vrot.slane %v9657_v15, %v9454_v22 }
 0x5b0   :  { %8793 = vmatpush1.bf16.msra.mxu0 %v8792_v4  ;;  %v6029_v4 = vrot.slane %v9657_v15, %v9457_v42 }
 0x5b1   :  { %8795 = vmatprep.subr.bf16.mxu0 %v8794_v5 }
 0x5b3   :  { %5656 = vmatmul.mubr.f32.vlgmr.msra.gmra.mrb[16].mxu0 %v9614_v56  ;;  %v8808_v56 = vpack.c.bf16 %v4785_v44, %v4778_v34  ;;  %v4873_v34 = vrot.slane %v9651_v23, %v9508_v20 }
 0x5b4   :  { %8797 = vmatpush1.bf16.msra.mxu0 %v8796_v7  ;;  %5726 = vmatprep.mubr.f32.mxu0 %v9244_v53  ;;  %v4799_v53 = vld [vmem:[#allocation11 + $0x1718] sm:$0xff]  ;;  %v4841_v7 = vld [vmem:[#allocation11 + $0x1868] sm:$0xff] }
 0x5b5   :  { %8799 = vmatprep.subr.bf16.mxu0 %v8798_v63  ;;  %v8812_v49 = vpack.c.bf16 %v4799_v53, %v4792_v37  ;;  %v8824_v42 = vpack.c.bf16 %v4841_v7, %v4834_v14 }
 0x5b8   :  { %8801 = vmatpush1.bf16.msra.mxu0 %v8800_v52  ;;  %v6037_v52 = vrot.slane %v9657_v15, %v9486_v10 }
 0x5b9   :  { %8803 = vmatprep.subr.bf16.mxu0 %v8802_v62 }
 0x5bc   :  { %8805 = vmatpush1.bf16.msra.mxu0 %v8804_v33 }
 0x5bd   :  { %8807 = vmatprep.subr.bf16.mxu0 %v8806_v38 }
 0x5c0   :  { %8809 = vmatpush1.bf16.msra.mxu0 %v8808_v56 }
 0x5c1   :  { %8811 = vmatprep.subr.bf16.mxu0 %v8810_v48 }
 0x5c4   :  { %8813 = vmatpush1.bf16.msra.mxu0 %v8812_v49 }
 0x5c5   :  { %8815 = vmatprep.subr.bf16.mxu0 %v8814_v59 }
 0x5c6   :  { %v5160_v0 = vpop.f32.mrb[14].mxu0  ;;  %v5444_v29 = vpop.f32.mrb[16].mxu1 }
 0x5c7   :  { %v8960_v1 = vadd.f32 %v5160_v0, %v4849_v19  ;;  %v8962_v45 = vadd.f32 %v5444_v29, %v4857_v60  ;;  %v5162_v25 = vpop.f32.mrb[15].mxu0  ;;  %v5446_v2 = vpop.f32.mrb[17].mxu1 }
 0x5c8   :  { %v8961_v3 = vadd.f32 %v5162_v25, %v4853_v50  ;;  %v8963_v5 = vadd.f32 %v5446_v2, %v4861_v26  ;;  %8817 = vmatpush1.bf16.msra.mxu0 %v8816_v61  ;;  %v6045_v50 = vrot.slane %v9657_v15, %v9519_v36 }
 0x5c9   :  { %v6013_v9 = vmax.f32 %v8960_v1, 0.0  ;;  %8819 = vmatprep.subr.bf16.mxu0 %v8818_v55  ;;  %v6015_v63 = vmax.f32 %v8962_v45, 0.0  ;;  %v6097_v1 = vld [vmem:[#allocation2] ss:$0 sm:$0xff] }
 0x5ca   :  { %v6014_v22 = vmax.f32 %v8961_v3, 0.0  ;;  %v6016_v24 = vmax.f32 %v8963_v5, 0.0 }
 0x5cb   :  { %v6057_v43 = vmul.f32 %v6025_v54, %v6013_v9  ;;  %v6059_v62 = vmul.f32 %v6033_v17, %v6015_v63 }
 0x5cc   :  { %v6058_v21 = vmul.f32 %v6029_v4, %v6014_v22  ;;  %8821 = vmatpush1.bf16.msra.mxu0 %v8820_v6  ;;  %v6060_v12 = vmul.f32 %v6037_v52, %v6016_v24 }
 0x5cd   :  { %8823 = vmatprep.subr.bf16.mxu0 %v8822_v8 }
 0x5ce   :  { %v6064_v27 = vadd.f32 %v6058_v21, %v6057_v43 }
 0x5d0   :  { %v6065_v30 = vadd.f32 %v6064_v27, %v6059_v62  ;;  %8825 = vmatpush1.bf16.msra.mxu0 %v8824_v42 }
 0x5d2   :  { %v6066_v31 = vadd.f32 %v6065_v30, %v6060_v12 }
 0x5d3   :  { %5727 = vmatmul.mubr.f32.vlgmr.msra.gmra.mrb[16].mxu0 %v9623_v28  ;;  %v4865_v28 = vrot.slane %v9651_v23, %v9516_v35 }
 0x5e7   :  { %v6375_v33 = vpop.f32.mrb[18].mxu1 }
 0x5e8   :  { %v6376_v32 = vpop.f32.mrb[19].mxu1 }
 0x5e9   :  { %v6377_v38 = vadd.f32 %v6376_v32, %v6375_v33 }
 0x5eb   :  { %v5800_v10 = vadd.f32 %v6377_v38, %v4873_v34 }
 0x607   :  { %v6410_v44 = vpop.f32.mrb[20].mxu1 }
 0x608   :  { %v6411_v46 = vpop.f32.mrb[21].mxu1 }
 0x609   :  { %v6412_v47 = vadd.f32 %v6411_v46, %v6410_v44 }
 0x60b   :  { %v5870_v56 = vadd.f32 %v6412_v47, %v5800_v10 }
 0x627   :  { %v6445_v48 = vpop.f32.mrb[22].mxu1 }
 0x628   :  { %v6446_v37 = vpop.f32.mrb[23].mxu1 }
 0x629   :  { %v6447_v53 = vadd.f32 %v6446_v37, %v6445_v48 }
 0x62b   :  { %v5940_v18 = vadd.f32 %v6447_v53, %v5870_v56 }
 0x647   :  { %v6009_v51 = vpop.f32.mrb[24].mxu1 }
 0x648   :  { %v6010_v49 = vadd.f32 %v6009_v51, %v5940_v18  ;;  %v6569_v59 = vpop.f32.mrb[25].mxu1 }
 0x64a   :  { %v6019_v55 = vmax.f32 %v6010_v49, 0.0 }
 0x64c   :  { %v6063_v23 = vmul.f32 %v6049_v11, %v6019_v55 }
 0x6a6   :  { %v5728_v58 = vpop.f32.mrb[16].mxu0 }
 0x6a7   :  { %v8964_v39 = vadd.f32 %v5728_v58, %v4865_v28  ;;  %v5730_v19 = vpop.f32.mrb[17].mxu0 }
 0x6a8   :  { %v8965_v60 = vadd.f32 %v5730_v19, %v4869_v57 }
 0x6a9   :  { %v6017_v26 = vmax.f32 %v8964_v39, 0.0 }
 0x6aa   :  { %v6018_v61 = vmax.f32 %v8965_v60, 0.0 }
 0x6ab   :  { %v6061_v13 = vmul.f32 %v6041_v41, %v6017_v26 }
 0x6ac   :  { %v6062_v0 = vmul.f32 %v6045_v50, %v6018_v61 }
 0x6ad   :  { %v6067_v29 = vadd.f32 %v6066_v31, %v6061_v13 }
 0x6af   :  { %v6068_v16 = vadd.f32 %v6067_v29, %v6062_v0 }
 0x6b1   :  { %v6069_v40 = vadd.f32 %v6068_v16, %v6063_v23 }
 0x6b3   :  { %6070 = vadd.xlane.f32.xlu0 %v6069_v40 }
 0x740   :  { %v6071_v35 = vpop.xlane.xlu0 %6070 }
 0x741   :  { %v6079_v54 = vadd.f32 %v6097_v1, %v6071_v35 }
 0x743   :  { %v6098_v45 = vmul.f32 -1.442695, %v6079_v54 }
 0x745   :  { %9031 = vpow2.f32 %v6098_v45 }
 0x74f   :  { %v9032_v25 = vpop.eup %9031 }
 0x750   :  { %v6083_v36 = vadd.f32 1.0, %v9032_v25 }
 0x752   :  { %9033 = vrcp.f32 %v6083_v36 }
 0x75c   :  { %v9034_v2 = vpop.eup %9033 }
 0x75d   :  { %6087 = vst.msk [vmem:[%s9696_s9] sm:$0xff] %vm6086_vm1, %v9034_v2 }
 0x75e   :  { %6092 = vsyncpa [#allocation4], 1 }
 0x75f   :  { %6093 = vsyncpa [#allocation6], 1 }
 0x760   :  { %6094 = vsyncpa [#allocation9], 1 }
 0x761   :  { %6095 = vsyncpa [#allocation12], 1 }
 0x762   :  { %6096 = vsyncpa [#allocation15], 1 }

</bundles_post_ra>
